<compile_context>
chip_gen: v7x
topology: tpu7x:2x2x1
jax: 0.10.0
libtpu: 0.0.40
codegen_flags: <defaults>
</compile_context>

<pallas_src>
import numpy as np
import jax
import jax.numpy as jnp
from jax import lax
from jax.experimental import pallas as pl
from jax.experimental.pallas import tpu as pltpu


# ----------------------------------------------------------------------------
# Wavelet filter banks (pywt convention, dec_lo).  db8 / db4.
# ----------------------------------------------------------------------------
DB8_DEC_LO = [
    -0.00011747678400228192, 0.0006754494059985568, -0.0003917403729959771,
    -0.00487035299301066, 0.008746094047015655, 0.013981027917015516,
    -0.04408825393106472, -0.01736930100202211, 0.128747426620186,
    0.00047248457399797254, -0.2840155429624281, -0.015829105256023893,
    0.5853546836548691, 0.6756307362980128, 0.3128715909144659,
    0.05441584224308161,
]
DB4_DEC_LO = [
    -0.010597401784997278, 0.032883011666982945, 0.030841381835986965,
    -0.18703481171888114, -0.02798376941698385, 0.6308807679295904,
    0.7148465705525415, 0.23037781330885523,
]


def _ortho_filter_bank(dec_lo):
    dec_lo = np.asarray(dec_lo, np.float64)
    L = len(dec_lo)
    rec_lo = dec_lo[::-1].copy()
    rec_hi = np.array([(-1.0) ** k * rec_lo[L - 1 - k] for k in range(L)])
    dec_hi = rec_hi[::-1].copy()
    return dec_lo, dec_hi, rec_lo, rec_hi


def _analysis_matrix(N, dec_lo, dec_hi):
    """Matrix form of pytorch_wavelets afb1d (mode='zero'), stacked [lo; hi]."""
    L = len(dec_lo)
    out = (N + L - 1) // 2                       # pywt.dwt_coeff_len, mode='zero'
    p = 2 * (out - 1) - N + L
    half = p // 2
    A = np.zeros((2 * out, N), np.float64)
    for k in range(out):
        for m in range(N):
            j = m + half - 2 * k                 # filter tap index
            if 0 <= j < L:
                A[k, m] = dec_lo[L - 1 - j]
                A[out + k, m] = dec_hi[L - 1 - j]
    return A, out


def _synthesis_matrix(n, target, rec_lo, rec_hi):
    """Matrix form of pytorch_wavelets sfb1d (mode='zero'), hstacked [G0 | G1],
    pre-cropped to `target` output rows (the iDWT / final crop)."""
    L = len(rec_lo)
    full = 2 * n - L + 2
    S = np.zeros((full, 2 * n), np.float64)
    for m in range(full):
        for k in range(n):
            j = m - 2 * k + L - 2
            if 0 <= j < L:
                S[m, k] = rec_lo[j]
                S[m, n + k] = rec_hi[j]
    return S[:target]


def _replication_pad_matrix(n, pad):
    P = np.zeros((n + pad, n), np.float64)
    P[np.arange(n), np.arange(n)] = 1.0
    if pad:
        P[n:, n - 1] = 1.0                       # replicate last row/col
    return P


def build_wavelet_plan(H, W, level, dec_lo):
    dec_lo, dec_hi, rec_lo, rec_hi = _ortho_filter_bank(dec_lo)
    Hp, Wp = H + H % 2, W + W % 2
    PadH = _replication_pad_matrix(H, Hp - H)
    PadW = _replication_pad_matrix(W, Wp - W)
    sizes = [(Hp, Wp)]
    A_list = []
    h, w = Hp, Wp
    for l in range(level):
        Ac, ho = _analysis_matrix(h, dec_lo, dec_hi)
        Ar, wo = _analysis_matrix(w, dec_lo, dec_hi)
        if l == 0:                               # fold ReplicationPad2d into level 0
            Ac = Ac @ PadH
            Ar = Ar @ PadW
        A_list.append((jnp.asarray(Ac, jnp.float32),
                       jnp.asarray(Ar.T, jnp.float32)))
        h, w = ho, wo
        sizes.append((h, w))
    S_list = []
    for l in range(level):
        th, tw = (H, W) if l == 0 else sizes[l]  # final crop folded into level 0
        n_h, n_w = sizes[l + 1]
        Sc = _synthesis_matrix(n_h, th, rec_lo, rec_hi)
        Sr = _synthesis_matrix(n_w, tw, rec_lo, rec_hi)
        S_list.append((jnp.asarray(Sc, jnp.float32),
                       jnp.asarray(Sr.T, jnp.float32)))
    return dict(A=tuple(A_list), S=tuple(S_list), sizes=tuple(sizes))


# ----------------------------------------------------------------------------
# Fused WaveletDict forward: one pallas_call, grid = ADMM iterations.
# ----------------------------------------------------------------------------
def make_wavelet_dict_forward(plans, level, B, C, H, W, max_iter):
    P = len(plans)
    BC = B * C

    mats = []
    for p in range(P):
        for l in range(level):
            Ac, ArT = plans[p]["A"][l]
            Sc, SrT = plans[p]["S"][l]
            mats.extend([Ac, ArT, Sc, SrT])
    n_mats = len(mats)

    def kernel(*refs):
        ths_ref = refs[0]                         # SMEM scalar
        y_ref = refs[1]                           # (BC, H, W)
        mat_refs = refs[2:2 + n_mats]             # analysis / synthesis matrices
        out_ref = refs[2 + n_mats]                # (BC, H, W)  resident across grid
        z_ref = refs[2 + n_mats + 1]              # (P, BC, H, W) scratch
        act_ref = refs[2 + n_mats + 2]            # (1, 1, 1)  1.0 = still iterating

        def mref(p, l, k):
            return mat_refs[(p * level + l) * 4 + k]

        step = pl.program_id(0)

        @pl.when(step == 0)
        def _init():
            yv = y_ref[...]
            out_ref[...] = jnp.zeros((BC, H, W), jnp.float32)
            for p in range(P):
                z_ref[p] = yv
            act_ref[...] = jnp.ones((1, 1, 1), jnp.float32)

        ths = ths_ref[0]

        def soft(x):
            zero = jnp.float32(0.0)
            return jnp.maximum(zero, x - ths) + jnp.minimum(zero, x + ths)

        def lmul(a2d, x3d):                       # a2d @ x3d[b]  (batched on MXU)
            ab = jnp.broadcast_to(a2d, (BC,) + a2d.shape)
            return jnp.einsum('bij,bjk->bik', ab, x3d,
                              preferred_element_type=jnp.float32)

        def rmul(x3d, a2d):                       # x3d[b] @ a2d  (batched on MXU)
            ab = jnp.broadcast_to(a2d, (BC,) + a2d.shape)
            return jnp.einsum('bij,bjk->bik', x3d, ab,
                              preferred_element_type=jnp.float32)

        def run_prior(zp, p):
            sizes = plans[p]["sizes"]
            cur = zp
            stacked = []
            # analysis
            for l in range(level):
                Ac = mref(p, l, 0)[...]
                ArT = mref(p, l, 1)[...]
                c = rmul(lmul(Ac, cur), ArT)      # (BC, 2ho, 2wo) = [[LL,HL],[LH,HH]]
                stacked.append(c)
                ho, wo = sizes[l + 1]
                cur = c[:, :ho, :wo]              # LL feeds the next level
            ll = cur                              # deepest LL (never thresholded)
            # prox + synthesis (LL injected via its own sandwich, details masked)
            for l in reversed(range(level)):
                ho, wo = sizes[l + 1]
                c = stacked[l]
                h2, w2 = c.shape[1], c.shape[2]
                Sc = mref(p, l, 2)[...]
                SrT = mref(p, l, 3)[...]
                rows = lax.broadcasted_iota(jnp.int32, (BC, h2, w2), 1)
                cols = lax.broadcasted_iota(jnp.int32, (BC, h2, w2), 2)
                is_detail = jnp.logical_or(rows >= ho, cols >= wo)
                d_det = jnp.where(is_detail, soft(c), jnp.float32(0.0))
                rec = rmul(lmul(Sc, d_det), SrT)                     # detail bands
                rec_ll = rmul(lmul(Sc[:, :ho], ll), SrT[:wo, :])     # LL band
                ll = rec + rec_ll
            return ll                              # (BC, H, W)

        x_prev = out_ref[...]
        priors = []
        acc = jnp.zeros((BC, H, W), jnp.float32)
        for p in range(P):
            xp = run_prior(z_ref[p], p)
            priors.append(xp)
            acc = acc + xp
        x_new = acc * jnp.float32(1.0 / P)

        # select-gate: once converged, keep x / z frozen (PyTorch early-break).
        act = jnp.broadcast_to(act_ref[...], (BC, H, W))
        out_ref[...] = act * x_new + (1.0 - act) * x_prev
        for p in range(P):
            z_old = z_ref[p]
            z_new = x_new + z_old - priors[p]
            z_ref[p] = act * z_new + (1.0 - act) * z_old

        # relative-change criterion, fully in-kernel (no extra XLA reductions).
        def sumsq(v):
            s = jnp.sum(v * v, axis=2, keepdims=True)
            s = jnp.sum(s, axis=1, keepdims=True)
            return jnp.sum(s, axis=0, keepdims=True)       # (1,1,1)

        num = sumsq(x_new - x_prev)
        den = sumsq(x_new + jnp.float32(1e-6))             # matches torch: norm(x + 1e-6)
        converged = num < jnp.float32(1e-6) * den          # (rel < 1e-3) squared
        act_ref[...] = act_ref[...] * jnp.where(converged, jnp.float32(0.0),
                                                jnp.float32(1.0))

    in_specs = [pl.BlockSpec(memory_space=pltpu.MemorySpace.SMEM),        # ths
                pl.BlockSpec((BC, H, W), lambda i: (0, 0, 0))]            # y
    in_specs += [pl.BlockSpec(m.shape, lambda i: (0, 0)) for m in mats]   # operators

    call = pl.pallas_call(
        kernel,
        out_shape=jax.ShapeDtypeStruct((BC, H, W), jnp.float32),
        grid=(max_iter,),
        in_specs=in_specs,
        out_specs=pl.BlockSpec((BC, H, W), lambda i: (0, 0, 0)),
        scratch_shapes=[pltpu.VMEM((P, BC, H, W), jnp.float32),   # z_p state
                        pltpu.VMEM((1, 1, 1), jnp.float32)],      # active flag
        compiler_params=pltpu.CompilerParams(
            dimension_semantics=("arbitrary",),
            vmem_limit_bytes=32 * 1024 * 1024),
    )

    def forward(y, ths):
        # TODO(synk): only a scalar ths is supported here.
        ths_arr = jnp.reshape(jnp.asarray(ths, jnp.float32), (1,))
        yf = jnp.reshape(y.astype(jnp.float32), (BC, H, W))
        x = call(ths_arr, yf, *mats)
        return jnp.reshape(x, (B, C, H, W))

    return forward


# ----------------------------------------------------------------------------
if __name__ == "__main__":
    key = jax.random.PRNGKey(0)
    B, C, H, W = 2, 4, 16, 16
    y = jax.random.normal(key, (B, C, H, W), dtype=jnp.float32)

    level = 3
    max_iter = 10
    plans = tuple(build_wavelet_plan(H, W, level, dec)
                  for dec in (DB8_DEC_LO, DB4_DEC_LO))   # ['db8', 'db4']

    fwd = jax.jit(make_wavelet_dict_forward(plans, level, B, C, H, W, max_iter))

    # ths = 0.0: every prox is the identity -> perfect-reconstruction sanity check
    out0 = jax.block_until_ready(fwd(y, jnp.zeros((), jnp.float32)))
    assert out0.shape == (B, C, H, W)
    assert np.allclose(np.asarray(out0), np.asarray(y), atol=1e-3)

    # ths = 0.1: exercises soft-thresholding + gated consensus iterations
    out = jax.block_until_ready(fwd(y, jnp.asarray(0.1, jnp.float32)))
    assert out.shape == (B, C, H, W) and out.dtype == jnp.float32
    assert np.all(np.isfinite(np.asarray(out)))

    print("KERNEL_OK")
</pallas_src>

<mosaic_0001>
module attributes {stable_mosaic.version = 11 : i64} {
  func.func @kernel(%arg0: i32, %arg1: memref<1xf32, #tpu.memory_space<smem>>, %arg2: memref<8x16x16xf32, #tpu.memory_space<vmem>>, %arg3: memref<30x16xf32, #tpu.memory_space<vmem>>, %arg4: memref<16x30xf32, #tpu.memory_space<vmem>>, %arg5: memref<16x30xf32, #tpu.memory_space<vmem>>, %arg6: memref<30x16xf32, #tpu.memory_space<vmem>>, %arg7: memref<30x15xf32, #tpu.memory_space<vmem>>, %arg8: memref<15x30xf32, #tpu.memory_space<vmem>>, %arg9: memref<15x30xf32, #tpu.memory_space<vmem>>, %arg10: memref<30x15xf32, #tpu.memory_space<vmem>>, %arg11: memref<30x15xf32, #tpu.memory_space<vmem>>, %arg12: memref<15x30xf32, #tpu.memory_space<vmem>>, %arg13: memref<15x30xf32, #tpu.memory_space<vmem>>, %arg14: memref<30x15xf32, #tpu.memory_space<vmem>>, %arg15: memref<22x16xf32, #tpu.memory_space<vmem>>, %arg16: memref<16x22xf32, #tpu.memory_space<vmem>>, %arg17: memref<16x22xf32, #tpu.memory_space<vmem>>, %arg18: memref<22x16xf32, #tpu.memory_space<vmem>>, %arg19: memref<18x11xf32, #tpu.memory_space<vmem>>, %arg20: memref<11x18xf32, #tpu.memory_space<vmem>>, %arg21: memref<11x18xf32, #tpu.memory_space<vmem>>, %arg22: memref<18x11xf32, #tpu.memory_space<vmem>>, %arg23: memref<16x9xf32, #tpu.memory_space<vmem>>, %arg24: memref<9x16xf32, #tpu.memory_space<vmem>>, %arg25: memref<9x16xf32, #tpu.memory_space<vmem>>, %arg26: memref<16x9xf32, #tpu.memory_space<vmem>>, %arg27: memref<8x16x16xf32, #tpu.memory_space<vmem>>, %arg28: memref<2x8x16x16xf32, #tpu.memory_space<vmem>>, %arg29: memref<1x1x1xf32, #tpu.memory_space<vmem>>) attributes {dimension_semantics = [#tpu.dimension_semantics<arbitrary>], iteration_bounds = array<i64: 10>, scalar_prefetch = 0 : i64, scratch_operands = 2 : i64, tpu.core_type = #tpu.core_type<tc>, window_params = [{transform_indices = @transform_0, window_bounds = array<i64: 1>}, {pipeline_mode = #tpu.pipeline_mode<synchronous>, transform_indices = @transform_1, window_bounds = array<i64: 8, 16, 16>}, {pipeline_mode = #tpu.pipeline_mode<synchronous>, transform_indices = @transform_2, window_bounds = array<i64: 30, 16>}, {pipeline_mode = #tpu.pipeline_mode<synchronous>, transform_indices = @transform_3, window_bounds = array<i64: 16, 30>}, {pipeline_mode = #tpu.pipeline_mode<synchronous>, transform_indices = @transform_4, window_bounds = array<i64: 16, 30>}, {pipeline_mode = #tpu.pipeline_mode<synchronous>, transform_indices = @transform_5, window_bounds = array<i64: 30, 16>}, {pipeline_mode = #tpu.pipeline_mode<synchronous>, transform_indices = @transform_6, window_bounds = array<i64: 30, 15>}, {pipeline_mode = #tpu.pipeline_mode<synchronous>, transform_indices = @transform_7, window_bounds = array<i64: 15, 30>}, {pipeline_mode = #tpu.pipeline_mode<synchronous>, transform_indices = @transform_8, window_bounds = array<i64: 15, 30>}, {pipeline_mode = #tpu.pipeline_mode<synchronous>, transform_indices = @transform_9, window_bounds = array<i64: 30, 15>}, {pipeline_mode = #tpu.pipeline_mode<synchronous>, transform_indices = @transform_10, window_bounds = array<i64: 30, 15>}, {pipeline_mode = #tpu.pipeline_mode<synchronous>, transform_indices = @transform_11, window_bounds = array<i64: 15, 30>}, {pipeline_mode = #tpu.pipeline_mode<synchronous>, transform_indices = @transform_12, window_bounds = array<i64: 15, 30>}, {pipeline_mode = #tpu.pipeline_mode<synchronous>, transform_indices = @transform_13, window_bounds = array<i64: 30, 15>}, {pipeline_mode = #tpu.pipeline_mode<synchronous>, transform_indices = @transform_14, window_bounds = array<i64: 22, 16>}, {pipeline_mode = #tpu.pipeline_mode<synchronous>, transform_indices = @transform_15, window_bounds = array<i64: 16, 22>}, {pipeline_mode = #tpu.pipeline_mode<synchronous>, transform_indices = @transform_16, window_bounds = array<i64: 16, 22>}, {pipeline_mode = #tpu.pipeline_mode<synchronous>, transform_indices = @transform_17, window_bounds = array<i64: 22, 16>}, {pipeline_mode = #tpu.pipeline_mode<synchronous>, transform_indices = @transform_18, window_bounds = array<i64: 18, 11>}, {pipeline_mode = #tpu.pipeline_mode<synchronous>, transform_indices = @transform_19, window_bounds = array<i64: 11, 18>}, {pipeline_mode = #tpu.pipeline_mode<synchronous>, transform_indices = @transform_20, window_bounds = array<i64: 11, 18>}, {pipeline_mode = #tpu.pipeline_mode<synchronous>, transform_indices = @transform_21, window_bounds = array<i64: 18, 11>}, {pipeline_mode = #tpu.pipeline_mode<synchronous>, transform_indices = @transform_22, window_bounds = array<i64: 16, 9>}, {pipeline_mode = #tpu.pipeline_mode<synchronous>, transform_indices = @transform_23, window_bounds = array<i64: 9, 16>}, {pipeline_mode = #tpu.pipeline_mode<synchronous>, transform_indices = @transform_24, window_bounds = array<i64: 9, 16>}, {pipeline_mode = #tpu.pipeline_mode<synchronous>, transform_indices = @transform_25, window_bounds = array<i64: 16, 9>}, {pipeline_mode = #tpu.pipeline_mode<synchronous>, transform_indices = @transform_26, window_bounds = array<i64: 8, 16, 16>}]} {
    %c0_i32 = arith.constant 0 : i32
    %0 = arith.cmpi eq, %arg0, %c0_i32 : i32
    %1 = arith.extui %0 : i1 to i32
    %c0_i32_0 = arith.constant 0 : i32
    %2 = arith.cmpi ne, %1, %c0_i32_0 : i32
    scf.if %2 {
      %c0_163 = arith.constant 0 : index
      %c0_164 = arith.constant 0 : index
      %c0_165 = arith.constant 0 : index
      %337 = vector.load %arg2[%c0_163, %c0_164, %c0_165] : memref<8x16x16xf32, #tpu.memory_space<vmem>>, vector<8x16x16xf32>
      %cst_166 = arith.constant 0.000000e+00 : f32
      %338 = vector.broadcast %cst_166 : f32 to vector<8x16x16xf32>
      %c0_167 = arith.constant 0 : index
      %c0_168 = arith.constant 0 : index
      %c0_169 = arith.constant 0 : index
      %339 = vector.load %arg27[%c0_167, %c0_168, %c0_169] : memref<8x16x16xf32, #tpu.memory_space<vmem>>, vector<8x16x16xf32>
      tpu.vector_store %arg27[%c0_167, %c0_168, %c0_169], %338 {strides = array<i32>} : memref<8x16x16xf32, #tpu.memory_space<vmem>>, vector<8x16x16xf32>,
      %c0_170 = arith.constant 0 : index
      %c0_171 = arith.constant 0 : index
      %c0_172 = arith.constant 0 : index
      %c0_173 = arith.constant 0 : index
      %340 = vector.load %arg28[%c0_170, %c0_171, %c0_172, %c0_173] : memref<2x8x16x16xf32, #tpu.memory_space<vmem>>, vector<1x8x16x16xf32>
      %341 = vector.shape_cast %340 : vector<1x8x16x16xf32> to vector<8x16x16xf32>
      %342 = vector.shape_cast %337 : vector<8x16x16xf32> to vector<1x8x16x16xf32>
      tpu.vector_store %arg28[%c0_170, %c0_171, %c0_172, %c0_173], %342 {strides = array<i32>} : memref<2x8x16x16xf32, #tpu.memory_space<vmem>>, vector<1x8x16x16xf32>,
      %c1_174 = arith.constant 1 : index
      %c0_175 = arith.constant 0 : index
      %c0_176 = arith.constant 0 : index
      %c0_177 = arith.constant 0 : index
      %343 = vector.load %arg28[%c1_174, %c0_175, %c0_176, %c0_177] : memref<2x8x16x16xf32, #tpu.memory_space<vmem>>, vector<1x8x16x16xf32>
      %344 = vector.shape_cast %343 : vector<1x8x16x16xf32> to vector<8x16x16xf32>
      %345 = vector.shape_cast %337 : vector<8x16x16xf32> to vector<1x8x16x16xf32>
      tpu.vector_store %arg28[%c1_174, %c0_175, %c0_176, %c0_177], %345 {strides = array<i32>} : memref<2x8x16x16xf32, #tpu.memory_space<vmem>>, vector<1x8x16x16xf32>,
      %cst_178 = arith.constant 1.000000e+00 : f32
      %346 = vector.broadcast %cst_178 : f32 to vector<1x1x1xf32>
      %c0_179 = arith.constant 0 : index
      %c0_180 = arith.constant 0 : index
      %c0_181 = arith.constant 0 : index
      %347 = vector.load %arg29[%c0_179, %c0_180, %c0_181] : memref<1x1x1xf32, #tpu.memory_space<vmem>>, vector<1x1x1xf32>
      tpu.vector_store %arg29[%c0_179, %c0_180, %c0_181], %346 {strides = array<i32>} : memref<1x1x1xf32, #tpu.memory_space<vmem>>, vector<1x1x1xf32>,
    } else {
    }
    %c0 = arith.constant 0 : index
    %3 = memref.load %arg1[%c0] : memref<1xf32, #tpu.memory_space<smem>>
    %c0_1 = arith.constant 0 : index
    %c0_2 = arith.constant 0 : index
    %c0_3 = arith.constant 0 : index
    %4 = vector.load %arg27[%c0_1, %c0_2, %c0_3] : memref<8x16x16xf32, #tpu.memory_space<vmem>>, vector<8x16x16xf32>
    %cst = arith.constant 0.000000e+00 : f32
    %5 = vector.broadcast %cst : f32 to vector<8x16x16xf32>
    %c0_4 = arith.constant 0 : index
    %c0_5 = arith.constant 0 : index
    %c0_6 = arith.constant 0 : index
    %c0_7 = arith.constant 0 : index
    %6 = vector.load %arg28[%c0_4, %c0_5, %c0_6, %c0_7] : memref<2x8x16x16xf32, #tpu.memory_space<vmem>>, vector<1x8x16x16xf32>
    %7 = vector.shape_cast %6 : vector<1x8x16x16xf32> to vector<8x16x16xf32>
    %c0_8 = arith.constant 0 : index
    %c0_9 = arith.constant 0 : index
    %8 = vector.load %arg3[%c0_8, %c0_9] : memref<30x16xf32, #tpu.memory_space<vmem>>, vector<30x16xf32>
    %c0_10 = arith.constant 0 : index
    %c0_11 = arith.constant 0 : index
    %9 = vector.load %arg4[%c0_10, %c0_11] : memref<16x30xf32, #tpu.memory_space<vmem>>, vector<16x30xf32>
    %10 = vector.shape_cast %8 : vector<30x16xf32> to vector<1x30x16xf32>
    %11 = vector.broadcast %10 : vector<1x30x16xf32> to vector<8x30x16xf32>
    "tpu.trace_start"() <{level = 10 : i32, message = "bij,bjk->bik"}> : () -> ()
    %cst_12 = arith.constant dense<0.000000e+00> : vector<8x30x16xf32>
    %12 = tpu.matmul %11, %7, %cst_12 {dimension_numbers = #tpu.dot_dimension_numbers<[2], [1], [1], [2], [0, 0, 0, 1, 1, 2], [0], [0]>} : vector<8x30x16xf32>, vector<8x16x16xf32>, vector<8x30x16xf32> -> vector<8x30x16xf32>
    "tpu.trace_stop"() : () -> ()
    %13 = vector.shape_cast %9 : vector<16x30xf32> to vector<1x16x30xf32>
    %14 = vector.broadcast %13 : vector<1x16x30xf32> to vector<8x16x30xf32>
    "tpu.trace_start"() <{level = 10 : i32, message = "bij,bjk->bik"}> : () -> ()
    %cst_13 = arith.constant dense<0.000000e+00> : vector<8x30x30xf32>
    %15 = tpu.matmul %12, %14, %cst_13 {dimension_numbers = #tpu.dot_dimension_numbers<[2], [1], [1], [2], [0, 0, 0, 1, 1, 2], [0], [0]>} : vector<8x30x16xf32>, vector<8x16x30xf32>, vector<8x30x30xf32> -> vector<8x30x30xf32>
    "tpu.trace_stop"() : () -> ()
    %16 = vector.extract_strided_slice %15 {offsets = [0, 0, 0], sizes = [8, 15, 15], strides = [1, 1, 1]} : vector<8x30x30xf32> to vector<8x15x15xf32>
    %c0_14 = arith.constant 0 : index
    %c0_15 = arith.constant 0 : index
    %17 = vector.load %arg7[%c0_14, %c0_15] : memref<30x15xf32, #tpu.memory_space<vmem>>, vector<30x15xf32>
    %c0_16 = arith.constant 0 : index
    %c0_17 = arith.constant 0 : index
    %18 = vector.load %arg8[%c0_16, %c0_17] : memref<15x30xf32, #tpu.memory_space<vmem>>, vector<15x30xf32>
    %19 = vector.shape_cast %17 : vector<30x15xf32> to vector<1x30x15xf32>
    %20 = vector.broadcast %19 : vector<1x30x15xf32> to vector<8x30x15xf32>
    "tpu.trace_start"() <{level = 10 : i32, message = "bij,bjk->bik"}> : () -> ()
    %cst_18 = arith.constant dense<0.000000e+00> : vector<8x30x15xf32>
    %21 = tpu.matmul %20, %16, %cst_18 {dimension_numbers = #tpu.dot_dimension_numbers<[2], [1], [1], [2], [0, 0, 0, 1, 1, 2], [0], [0]>} : vector<8x30x15xf32>, vector<8x15x15xf32>, vector<8x30x15xf32> -> vector<8x30x15xf32>
    "tpu.trace_stop"() : () -> ()
    %22 = vector.shape_cast %18 : vector<15x30xf32> to vector<1x15x30xf32>
    %23 = vector.broadcast %22 : vector<1x15x30xf32> to vector<8x15x30xf32>
    "tpu.trace_start"() <{level = 10 : i32, message = "bij,bjk->bik"}> : () -> ()
    %cst_19 = arith.constant dense<0.000000e+00> : vector<8x30x30xf32>
    %24 = tpu.matmul %21, %23, %cst_19 {dimension_numbers = #tpu.dot_dimension_numbers<[2], [1], [1], [2], [0, 0, 0, 1, 1, 2], [0], [0]>} : vector<8x30x15xf32>, vector<8x15x30xf32>, vector<8x30x30xf32> -> vector<8x30x30xf32>
    "tpu.trace_stop"() : () -> ()
    %25 = vector.extract_strided_slice %24 {offsets = [0, 0, 0], sizes = [8, 15, 15], strides = [1, 1, 1]} : vector<8x30x30xf32> to vector<8x15x15xf32>
    %c0_20 = arith.constant 0 : index
    %c0_21 = arith.constant 0 : index
    %26 = vector.load %arg11[%c0_20, %c0_21] : memref<30x15xf32, #tpu.memory_space<vmem>>, vector<30x15xf32>
    %c0_22 = arith.constant 0 : index
    %c0_23 = arith.constant 0 : index
    %27 = vector.load %arg12[%c0_22, %c0_23] : memref<15x30xf32, #tpu.memory_space<vmem>>, vector<15x30xf32>
    %28 = vector.shape_cast %26 : vector<30x15xf32> to vector<1x30x15xf32>
    %29 = vector.broadcast %28 : vector<1x30x15xf32> to vector<8x30x15xf32>
    "tpu.trace_start"() <{level = 10 : i32, message = "bij,bjk->bik"}> : () -> ()
    %cst_24 = arith.constant dense<0.000000e+00> : vector<8x30x15xf32>
    %30 = tpu.matmul %29, %25, %cst_24 {dimension_numbers = #tpu.dot_dimension_numbers<[2], [1], [1], [2], [0, 0, 0, 1, 1, 2], [0], [0]>} : vector<8x30x15xf32>, vector<8x15x15xf32>, vector<8x30x15xf32> -> vector<8x30x15xf32>
    "tpu.trace_stop"() : () -> ()
    %31 = vector.shape_cast %27 : vector<15x30xf32> to vector<1x15x30xf32>
    %32 = vector.broadcast %31 : vector<1x15x30xf32> to vector<8x15x30xf32>
    "tpu.trace_start"() <{level = 10 : i32, message = "bij,bjk->bik"}> : () -> ()
    %cst_25 = arith.constant dense<0.000000e+00> : vector<8x30x30xf32>
    %33 = tpu.matmul %30, %32, %cst_25 {dimension_numbers = #tpu.dot_dimension_numbers<[2], [1], [1], [2], [0, 0, 0, 1, 1, 2], [0], [0]>} : vector<8x30x15xf32>, vector<8x15x30xf32>, vector<8x30x30xf32> -> vector<8x30x30xf32>
    "tpu.trace_stop"() : () -> ()
    %34 = vector.extract_strided_slice %33 {offsets = [0, 0, 0], sizes = [8, 15, 15], strides = [1, 1, 1]} : vector<8x30x30xf32> to vector<8x15x15xf32>
    %c0_26 = arith.constant 0 : index
    %c0_27 = arith.constant 0 : index
    %35 = vector.load %arg13[%c0_26, %c0_27] : memref<15x30xf32, #tpu.memory_space<vmem>>, vector<15x30xf32>
    %c0_28 = arith.constant 0 : index
    %c0_29 = arith.constant 0 : index
    %36 = vector.load %arg14[%c0_28, %c0_29] : memref<30x15xf32, #tpu.memory_space<vmem>>, vector<30x15xf32>
    %37 = tpu.iota {dimensions = array<i32: 1>} : vector<8x30x30xi32>
    %38 = tpu.iota {dimensions = array<i32: 2>} : vector<8x30x30xi32>
    %c15_i32 = arith.constant 15 : i32
    %39 = vector.broadcast %c15_i32 : i32 to vector<8x30x30xi32>
    %40 = arith.cmpi sge, %37, %39 : vector<8x30x30xi32>
    %c15_i32_30 = arith.constant 15 : i32
    %41 = vector.broadcast %c15_i32_30 : i32 to vector<8x30x30xi32>
    %42 = arith.cmpi sge, %38, %41 : vector<8x30x30xi32>
    %43 = arith.ori %40, %42 : vector<8x30x30xi1>
    %44 = vector.broadcast %3 : f32 to vector<8x30x30xf32>
    %45 = arith.subf %33, %44 : vector<8x30x30xf32>
    %cst_31 = arith.constant 0.000000e+00 : f32
    %46 = vector.broadcast %cst_31 : f32 to vector<8x30x30xf32>
    %47 = arith.maximumf %46, %45 : vector<8x30x30xf32>
    %48 = vector.broadcast %3 : f32 to vector<8x30x30xf32>
    %49 = arith.addf %33, %48 : vector<8x30x30xf32>
    %cst_32 = arith.constant 0.000000e+00 : f32
    %50 = vector.broadcast %cst_32 : f32 to vector<8x30x30xf32>
    %51 = arith.minimumf %50, %49 : vector<8x30x30xf32>
    %52 = arith.addf %47, %51 : vector<8x30x30xf32>
    %cst_33 = arith.constant 0.000000e+00 : f32
    %53 = vector.broadcast %cst_33 : f32 to vector<8x30x30xf32>
    %54 = arith.select %43, %52, %53 : vector<8x30x30xi1>, vector<8x30x30xf32>
    %55 = vector.shape_cast %35 : vector<15x30xf32> to vector<1x15x30xf32>
    %56 = vector.broadcast %55 : vector<1x15x30xf32> to vector<8x15x30xf32>
    "tpu.trace_start"() <{level = 10 : i32, message = "bij,bjk->bik"}> : () -> ()
    %cst_34 = arith.constant dense<0.000000e+00> : vector<8x15x30xf32>
    %57 = tpu.matmul %56, %54, %cst_34 {dimension_numbers = #tpu.dot_dimension_numbers<[2], [1], [1], [2], [0, 0, 0, 1, 1, 2], [0], [0]>} : vector<8x15x30xf32>, vector<8x30x30xf32>, vector<8x15x30xf32> -> vector<8x15x30xf32>
    "tpu.trace_stop"() : () -> ()
    %58 = vector.shape_cast %36 : vector<30x15xf32> to vector<1x30x15xf32>
    %59 = vector.broadcast %58 : vector<1x30x15xf32> to vector<8x30x15xf32>
    "tpu.trace_start"() <{level = 10 : i32, message = "bij,bjk->bik"}> : () -> ()
    %cst_35 = arith.constant dense<0.000000e+00> : vector<8x15x15xf32>
    %60 = tpu.matmul %57, %59, %cst_35 {dimension_numbers = #tpu.dot_dimension_numbers<[2], [1], [1], [2], [0, 0, 0, 1, 1, 2], [0], [0]>} : vector<8x15x30xf32>, vector<8x30x15xf32>, vector<8x15x15xf32> -> vector<8x15x15xf32>
    "tpu.trace_stop"() : () -> ()
    %61 = vector.extract_strided_slice %35 {offsets = [0, 0], sizes = [15, 15], strides = [1, 1]} : vector<15x30xf32> to vector<15x15xf32>
    %62 = vector.shape_cast %61 : vector<15x15xf32> to vector<1x15x15xf32>
    %63 = vector.broadcast %62 : vector<1x15x15xf32> to vector<8x15x15xf32>
    "tpu.trace_start"() <{level = 10 : i32, message = "bij,bjk->bik"}> : () -> ()
    %cst_36 = arith.constant dense<0.000000e+00> : vector<8x15x15xf32>
    %64 = tpu.matmul %63, %34, %cst_36 {dimension_numbers = #tpu.dot_dimension_numbers<[2], [1], [1], [2], [0, 0, 0, 1, 1, 2], [0], [0]>} : vector<8x15x15xf32>, vector<8x15x15xf32>, vector<8x15x15xf32> -> vector<8x15x15xf32>
    "tpu.trace_stop"() : () -> ()
    %65 = vector.extract_strided_slice %36 {offsets = [0, 0], sizes = [15, 15], strides = [1, 1]} : vector<30x15xf32> to vector<15x15xf32>
    %66 = vector.shape_cast %65 : vector<15x15xf32> to vector<1x15x15xf32>
    %67 = vector.broadcast %66 : vector<1x15x15xf32> to vector<8x15x15xf32>
    "tpu.trace_start"() <{level = 10 : i32, message = "bij,bjk->bik"}> : () -> ()
    %cst_37 = arith.constant dense<0.000000e+00> : vector<8x15x15xf32>
    %68 = tpu.matmul %64, %67, %cst_37 {dimension_numbers = #tpu.dot_dimension_numbers<[2], [1], [1], [2], [0, 0, 0, 1, 1, 2], [0], [0]>} : vector<8x15x15xf32>, vector<8x15x15xf32>, vector<8x15x15xf32> -> vector<8x15x15xf32>
    "tpu.trace_stop"() : () -> ()
    %69 = arith.addf %60, %68 : vector<8x15x15xf32>
    %c0_38 = arith.constant 0 : index
    %c0_39 = arith.constant 0 : index
    %70 = vector.load %arg9[%c0_38, %c0_39] : memref<15x30xf32, #tpu.memory_space<vmem>>, vector<15x30xf32>
    %c0_40 = arith.constant 0 : index
    %c0_41 = arith.constant 0 : index
    %71 = vector.load %arg10[%c0_40, %c0_41] : memref<30x15xf32, #tpu.memory_space<vmem>>, vector<30x15xf32>
    %72 = tpu.iota {dimensions = array<i32: 1>} : vector<8x30x30xi32>
    %73 = tpu.iota {dimensions = array<i32: 2>} : vector<8x30x30xi32>
    %c15_i32_42 = arith.constant 15 : i32
    %74 = vector.broadcast %c15_i32_42 : i32 to vector<8x30x30xi32>
    %75 = arith.cmpi sge, %72, %74 : vector<8x30x30xi32>
    %c15_i32_43 = arith.constant 15 : i32
    %76 = vector.broadcast %c15_i32_43 : i32 to vector<8x30x30xi32>
    %77 = arith.cmpi sge, %73, %76 : vector<8x30x30xi32>
    %78 = arith.ori %75, %77 : vector<8x30x30xi1>
    %79 = vector.broadcast %3 : f32 to vector<8x30x30xf32>
    %80 = arith.subf %24, %79 : vector<8x30x30xf32>
    %cst_44 = arith.constant 0.000000e+00 : f32
    %81 = vector.broadcast %cst_44 : f32 to vector<8x30x30xf32>
    %82 = arith.maximumf %81, %80 : vector<8x30x30xf32>
    %83 = vector.broadcast %3 : f32 to vector<8x30x30xf32>
    %84 = arith.addf %24, %83 : vector<8x30x30xf32>
    %cst_45 = arith.constant 0.000000e+00 : f32
    %85 = vector.broadcast %cst_45 : f32 to vector<8x30x30xf32>
    %86 = arith.minimumf %85, %84 : vector<8x30x30xf32>
    %87 = arith.addf %82, %86 : vector<8x30x30xf32>
    %cst_46 = arith.constant 0.000000e+00 : f32
    %88 = vector.broadcast %cst_46 : f32 to vector<8x30x30xf32>
    %89 = arith.select %78, %87, %88 : vector<8x30x30xi1>, vector<8x30x30xf32>
    %90 = vector.shape_cast %70 : vector<15x30xf32> to vector<1x15x30xf32>
    %91 = vector.broadcast %90 : vector<1x15x30xf32> to vector<8x15x30xf32>
    "tpu.trace_start"() <{level = 10 : i32, message = "bij,bjk->bik"}> : () -> ()
    %cst_47 = arith.constant dense<0.000000e+00> : vector<8x15x30xf32>
    %92 = tpu.matmul %91, %89, %cst_47 {dimension_numbers = #tpu.dot_dimension_numbers<[2], [1], [1], [2], [0, 0, 0, 1, 1, 2], [0], [0]>} : vector<8x15x30xf32>, vector<8x30x30xf32>, vector<8x15x30xf32> -> vector<8x15x30xf32>
    "tpu.trace_stop"() : () -> ()
    %93 = vector.shape_cast %71 : vector<30x15xf32> to vector<1x30x15xf32>
    %94 = vector.broadcast %93 : vector<1x30x15xf32> to vector<8x30x15xf32>
    "tpu.trace_start"() <{level = 10 : i32, message = "bij,bjk->bik"}> : () -> ()
    %cst_48 = arith.constant dense<0.000000e+00> : vector<8x15x15xf32>
    %95 = tpu.matmul %92, %94, %cst_48 {dimension_numbers = #tpu.dot_dimension_numbers<[2], [1], [1], [2], [0, 0, 0, 1, 1, 2], [0], [0]>} : vector<8x15x30xf32>, vector<8x30x15xf32>, vector<8x15x15xf32> -> vector<8x15x15xf32>
    "tpu.trace_stop"() : () -> ()
    %96 = vector.extract_strided_slice %70 {offsets = [0, 0], sizes = [15, 15], strides = [1, 1]} : vector<15x30xf32> to vector<15x15xf32>
    %97 = vector.shape_cast %96 : vector<15x15xf32> to vector<1x15x15xf32>
    %98 = vector.broadcast %97 : vector<1x15x15xf32> to vector<8x15x15xf32>
    "tpu.trace_start"() <{level = 10 : i32, message = "bij,bjk->bik"}> : () -> ()
    %cst_49 = arith.constant dense<0.000000e+00> : vector<8x15x15xf32>
    %99 = tpu.matmul %98, %69, %cst_49 {dimension_numbers = #tpu.dot_dimension_numbers<[2], [1], [1], [2], [0, 0, 0, 1, 1, 2], [0], [0]>} : vector<8x15x15xf32>, vector<8x15x15xf32>, vector<8x15x15xf32> -> vector<8x15x15xf32>
    "tpu.trace_stop"() : () -> ()
    %100 = vector.extract_strided_slice %71 {offsets = [0, 0], sizes = [15, 15], strides = [1, 1]} : vector<30x15xf32> to vector<15x15xf32>
    %101 = vector.shape_cast %100 : vector<15x15xf32> to vector<1x15x15xf32>
    %102 = vector.broadcast %101 : vector<1x15x15xf32> to vector<8x15x15xf32>
    "tpu.trace_start"() <{level = 10 : i32, message = "bij,bjk->bik"}> : () -> ()
    %cst_50 = arith.constant dense<0.000000e+00> : vector<8x15x15xf32>
    %103 = tpu.matmul %99, %102, %cst_50 {dimension_numbers = #tpu.dot_dimension_numbers<[2], [1], [1], [2], [0, 0, 0, 1, 1, 2], [0], [0]>} : vector<8x15x15xf32>, vector<8x15x15xf32>, vector<8x15x15xf32> -> vector<8x15x15xf32>
    "tpu.trace_stop"() : () -> ()
    %104 = arith.addf %95, %103 : vector<8x15x15xf32>
    %c0_51 = arith.constant 0 : index
    %c0_52 = arith.constant 0 : index
    %105 = vector.load %arg5[%c0_51, %c0_52] : memref<16x30xf32, #tpu.memory_space<vmem>>, vector<16x30xf32>
    %c0_53 = arith.constant 0 : index
    %c0_54 = arith.constant 0 : index
    %106 = vector.load %arg6[%c0_53, %c0_54] : memref<30x16xf32, #tpu.memory_space<vmem>>, vector<30x16xf32>
    %107 = tpu.iota {dimensions = array<i32: 1>} : vector<8x30x30xi32>
    %108 = tpu.iota {dimensions = array<i32: 2>} : vector<8x30x30xi32>
    %c15_i32_55 = arith.constant 15 : i32
    %109 = vector.broadcast %c15_i32_55 : i32 to vector<8x30x30xi32>
    %110 = arith.cmpi sge, %107, %109 : vector<8x30x30xi32>
    %c15_i32_56 = arith.constant 15 : i32
    %111 = vector.broadcast %c15_i32_56 : i32 to vector<8x30x30xi32>
    %112 = arith.cmpi sge, %108, %111 : vector<8x30x30xi32>
    %113 = arith.ori %110, %112 : vector<8x30x30xi1>
    %114 = vector.broadcast %3 : f32 to vector<8x30x30xf32>
    %115 = arith.subf %15, %114 : vector<8x30x30xf32>
    %cst_57 = arith.constant 0.000000e+00 : f32
    %116 = vector.broadcast %cst_57 : f32 to vector<8x30x30xf32>
    %117 = arith.maximumf %116, %115 : vector<8x30x30xf32>
    %118 = vector.broadcast %3 : f32 to vector<8x30x30xf32>
    %119 = arith.addf %15, %118 : vector<8x30x30xf32>
    %cst_58 = arith.constant 0.000000e+00 : f32
    %120 = vector.broadcast %cst_58 : f32 to vector<8x30x30xf32>
    %121 = arith.minimumf %120, %119 : vector<8x30x30xf32>
    %122 = arith.addf %117, %121 : vector<8x30x30xf32>
    %cst_59 = arith.constant 0.000000e+00 : f32
    %123 = vector.broadcast %cst_59 : f32 to vector<8x30x30xf32>
    %124 = arith.select %113, %122, %123 : vector<8x30x30xi1>, vector<8x30x30xf32>
    %125 = vector.shape_cast %105 : vector<16x30xf32> to vector<1x16x30xf32>
    %126 = vector.broadcast %125 : vector<1x16x30xf32> to vector<8x16x30xf32>
    "tpu.trace_start"() <{level = 10 : i32, message = "bij,bjk->bik"}> : () -> ()
    %cst_60 = arith.constant dense<0.000000e+00> : vector<8x16x30xf32>
    %127 = tpu.matmul %126, %124, %cst_60 {dimension_numbers = #tpu.dot_dimension_numbers<[2], [1], [1], [2], [0, 0, 0, 1, 1, 2], [0], [0]>} : vector<8x16x30xf32>, vector<8x30x30xf32>, vector<8x16x30xf32> -> vector<8x16x30xf32>
    "tpu.trace_stop"() : () -> ()
    %128 = vector.shape_cast %106 : vector<30x16xf32> to vector<1x30x16xf32>
    %129 = vector.broadcast %128 : vector<1x30x16xf32> to vector<8x30x16xf32>
    "tpu.trace_start"() <{level = 10 : i32, message = "bij,bjk->bik"}> : () -> ()
    %cst_61 = arith.constant dense<0.000000e+00> : vector<8x16x16xf32>
    %130 = tpu.matmul %127, %129, %cst_61 {dimension_numbers = #tpu.dot_dimension_numbers<[2], [1], [1], [2], [0, 0, 0, 1, 1, 2], [0], [0]>} : vector<8x16x30xf32>, vector<8x30x16xf32>, vector<8x16x16xf32> -> vector<8x16x16xf32>
    "tpu.trace_stop"() : () -> ()
    %131 = vector.extract_strided_slice %105 {offsets = [0, 0], sizes = [16, 15], strides = [1, 1]} : vector<16x30xf32> to vector<16x15xf32>
    %132 = vector.shape_cast %131 : vector<16x15xf32> to vector<1x16x15xf32>
    %133 = vector.broadcast %132 : vector<1x16x15xf32> to vector<8x16x15xf32>
    "tpu.trace_start"() <{level = 10 : i32, message = "bij,bjk->bik"}> : () -> ()
    %cst_62 = arith.constant dense<0.000000e+00> : vector<8x16x15xf32>
    %134 = tpu.matmul %133, %104, %cst_62 {dimension_numbers = #tpu.dot_dimension_numbers<[2], [1], [1], [2], [0, 0, 0, 1, 1, 2], [0], [0]>} : vector<8x16x15xf32>, vector<8x15x15xf32>, vector<8x16x15xf32> -> vector<8x16x15xf32>
    "tpu.trace_stop"() : () -> ()
    %135 = vector.extract_strided_slice %106 {offsets = [0, 0], sizes = [15, 16], strides = [1, 1]} : vector<30x16xf32> to vector<15x16xf32>
    %136 = vector.shape_cast %135 : vector<15x16xf32> to vector<1x15x16xf32>
    %137 = vector.broadcast %136 : vector<1x15x16xf32> to vector<8x15x16xf32>
    "tpu.trace_start"() <{level = 10 : i32, message = "bij,bjk->bik"}> : () -> ()
    %cst_63 = arith.constant dense<0.000000e+00> : vector<8x16x16xf32>
    %138 = tpu.matmul %134, %137, %cst_63 {dimension_numbers = #tpu.dot_dimension_numbers<[2], [1], [1], [2], [0, 0, 0, 1, 1, 2], [0], [0]>} : vector<8x16x15xf32>, vector<8x15x16xf32>, vector<8x16x16xf32> -> vector<8x16x16xf32>
    "tpu.trace_stop"() : () -> ()
    %139 = arith.addf %130, %138 : vector<8x16x16xf32>
    %140 = arith.addf %5, %139 : vector<8x16x16xf32>
    %c1 = arith.constant 1 : index
    %c0_64 = arith.constant 0 : index
    %c0_65 = arith.constant 0 : index
    %c0_66 = arith.constant 0 : index
    %141 = vector.load %arg28[%c1, %c0_64, %c0_65, %c0_66] : memref<2x8x16x16xf32, #tpu.memory_space<vmem>>, vector<1x8x16x16xf32>
    %142 = vector.shape_cast %141 : vector<1x8x16x16xf32> to vector<8x16x16xf32>
    %c0_67 = arith.constant 0 : index
    %c0_68 = arith.constant 0 : index
    %143 = vector.load %arg15[%c0_67, %c0_68] : memref<22x16xf32, #tpu.memory_space<vmem>>, vector<22x16xf32>
    %c0_69 = arith.constant 0 : index
    %c0_70 = arith.constant 0 : index
    %144 = vector.load %arg16[%c0_69, %c0_70] : memref<16x22xf32, #tpu.memory_space<vmem>>, vector<16x22xf32>
    %145 = vector.shape_cast %143 : vector<22x16xf32> to vector<1x22x16xf32>
    %146 = vector.broadcast %145 : vector<1x22x16xf32> to vector<8x22x16xf32>
    "tpu.trace_start"() <{level = 10 : i32, message = "bij,bjk->bik"}> : () -> ()
    %cst_71 = arith.constant dense<0.000000e+00> : vector<8x22x16xf32>
    %147 = tpu.matmul %146, %142, %cst_71 {dimension_numbers = #tpu.dot_dimension_numbers<[2], [1], [1], [2], [0, 0, 0, 1, 1, 2], [0], [0]>} : vector<8x22x16xf32>, vector<8x16x16xf32>, vector<8x22x16xf32> -> vector<8x22x16xf32>
    "tpu.trace_stop"() : () -> ()
    %148 = vector.shape_cast %144 : vector<16x22xf32> to vector<1x16x22xf32>
    %149 = vector.broadcast %148 : vector<1x16x22xf32> to vector<8x16x22xf32>
    "tpu.trace_start"() <{level = 10 : i32, message = "bij,bjk->bik"}> : () -> ()
    %cst_72 = arith.constant dense<0.000000e+00> : vector<8x22x22xf32>
    %150 = tpu.matmul %147, %149, %cst_72 {dimension_numbers = #tpu.dot_dimension_numbers<[2], [1], [1], [2], [0, 0, 0, 1, 1, 2], [0], [0]>} : vector<8x22x16xf32>, vector<8x16x22xf32>, vector<8x22x22xf32> -> vector<8x22x22xf32>
    "tpu.trace_stop"() : () -> ()
    %151 = vector.extract_strided_slice %150 {offsets = [0, 0, 0], sizes = [8, 11, 11], strides = [1, 1, 1]} : vector<8x22x22xf32> to vector<8x11x11xf32>
    %c0_73 = arith.constant 0 : index
    %c0_74 = arith.constant 0 : index
    %152 = vector.load %arg19[%c0_73, %c0_74] : memref<18x11xf32, #tpu.memory_space<vmem>>, vector<18x11xf32>
    %c0_75 = arith.constant 0 : index
    %c0_76 = arith.constant 0 : index
    %153 = vector.load %arg20[%c0_75, %c0_76] : memref<11x18xf32, #tpu.memory_space<vmem>>, vector<11x18xf32>
    %154 = vector.shape_cast %152 : vector<18x11xf32> to vector<1x18x11xf32>
    %155 = vector.broadcast %154 : vector<1x18x11xf32> to vector<8x18x11xf32>
    "tpu.trace_start"() <{level = 10 : i32, message = "bij,bjk->bik"}> : () -> ()
    %cst_77 = arith.constant dense<0.000000e+00> : vector<8x18x11xf32>
    %156 = tpu.matmul %155, %151, %cst_77 {dimension_numbers = #tpu.dot_dimension_numbers<[2], [1], [1], [2], [0, 0, 0, 1, 1, 2], [0], [0]>} : vector<8x18x11xf32>, vector<8x11x11xf32>, vector<8x18x11xf32> -> vector<8x18x11xf32>
    "tpu.trace_stop"() : () -> ()
    %157 = vector.shape_cast %153 : vector<11x18xf32> to vector<1x11x18xf32>
    %158 = vector.broadcast %157 : vector<1x11x18xf32> to vector<8x11x18xf32>
    "tpu.trace_start"() <{level = 10 : i32, message = "bij,bjk->bik"}> : () -> ()
    %cst_78 = arith.constant dense<0.000000e+00> : vector<8x18x18xf32>
    %159 = tpu.matmul %156, %158, %cst_78 {dimension_numbers = #tpu.dot_dimension_numbers<[2], [1], [1], [2], [0, 0, 0, 1, 1, 2], [0], [0]>} : vector<8x18x11xf32>, vector<8x11x18xf32>, vector<8x18x18xf32> -> vector<8x18x18xf32>
    "tpu.trace_stop"() : () -> ()
    %160 = vector.extract_strided_slice %159 {offsets = [0, 0, 0], sizes = [8, 9, 9], strides = [1, 1, 1]} : vector<8x18x18xf32> to vector<8x9x9xf32>
    %c0_79 = arith.constant 0 : index
    %c0_80 = arith.constant 0 : index
    %161 = vector.load %arg23[%c0_79, %c0_80] : memref<16x9xf32, #tpu.memory_space<vmem>>, vector<16x9xf32>
    %c0_81 = arith.constant 0 : index
    %c0_82 = arith.constant 0 : index
    %162 = vector.load %arg24[%c0_81, %c0_82] : memref<9x16xf32, #tpu.memory_space<vmem>>, vector<9x16xf32>
    %163 = vector.shape_cast %161 : vector<16x9xf32> to vector<1x16x9xf32>
    %164 = vector.broadcast %163 : vector<1x16x9xf32> to vector<8x16x9xf32>
    "tpu.trace_start"() <{level = 10 : i32, message = "bij,bjk->bik"}> : () -> ()
    %cst_83 = arith.constant dense<0.000000e+00> : vector<8x16x9xf32>
    %165 = tpu.matmul %164, %160, %cst_83 {dimension_numbers = #tpu.dot_dimension_numbers<[2], [1], [1], [2], [0, 0, 0, 1, 1, 2], [0], [0]>} : vector<8x16x9xf32>, vector<8x9x9xf32>, vector<8x16x9xf32> -> vector<8x16x9xf32>
    "tpu.trace_stop"() : () -> ()
    %166 = vector.shape_cast %162 : vector<9x16xf32> to vector<1x9x16xf32>
    %167 = vector.broadcast %166 : vector<1x9x16xf32> to vector<8x9x16xf32>
    "tpu.trace_start"() <{level = 10 : i32, message = "bij,bjk->bik"}> : () -> ()
    %cst_84 = arith.constant dense<0.000000e+00> : vector<8x16x16xf32>
    %168 = tpu.matmul %165, %167, %cst_84 {dimension_numbers = #tpu.dot_dimension_numbers<[2], [1], [1], [2], [0, 0, 0, 1, 1, 2], [0], [0]>} : vector<8x16x9xf32>, vector<8x9x16xf32>, vector<8x16x16xf32> -> vector<8x16x16xf32>
    "tpu.trace_stop"() : () -> ()
    %169 = vector.extract_strided_slice %168 {offsets = [0, 0, 0], sizes = [8, 8, 8], strides = [1, 1, 1]} : vector<8x16x16xf32> to vector<8x8x8xf32>
    %c0_85 = arith.constant 0 : index
    %c0_86 = arith.constant 0 : index
    %170 = vector.load %arg25[%c0_85, %c0_86] : memref<9x16xf32, #tpu.memory_space<vmem>>, vector<9x16xf32>
    %c0_87 = arith.constant 0 : index
    %c0_88 = arith.constant 0 : index
    %171 = vector.load %arg26[%c0_87, %c0_88] : memref<16x9xf32, #tpu.memory_space<vmem>>, vector<16x9xf32>
    %172 = tpu.iota {dimensions = array<i32: 1>} : vector<8x16x16xi32>
    %173 = tpu.iota {dimensions = array<i32: 2>} : vector<8x16x16xi32>
    %c8_i32 = arith.constant 8 : i32
    %174 = vector.broadcast %c8_i32 : i32 to vector<8x16x16xi32>
    %175 = arith.cmpi sge, %172, %174 : vector<8x16x16xi32>
    %c8_i32_89 = arith.constant 8 : i32
    %176 = vector.broadcast %c8_i32_89 : i32 to vector<8x16x16xi32>
    %177 = arith.cmpi sge, %173, %176 : vector<8x16x16xi32>
    %178 = arith.ori %175, %177 : vector<8x16x16xi1>
    %179 = vector.broadcast %3 : f32 to vector<8x16x16xf32>
    %180 = arith.subf %168, %179 : vector<8x16x16xf32>
    %cst_90 = arith.constant 0.000000e+00 : f32
    %181 = vector.broadcast %cst_90 : f32 to vector<8x16x16xf32>
    %182 = arith.maximumf %181, %180 : vector<8x16x16xf32>
    %183 = vector.broadcast %3 : f32 to vector<8x16x16xf32>
    %184 = arith.addf %168, %183 : vector<8x16x16xf32>
    %cst_91 = arith.constant 0.000000e+00 : f32
    %185 = vector.broadcast %cst_91 : f32 to vector<8x16x16xf32>
    %186 = arith.minimumf %185, %184 : vector<8x16x16xf32>
    %187 = arith.addf %182, %186 : vector<8x16x16xf32>
    %cst_92 = arith.constant 0.000000e+00 : f32
    %188 = vector.broadcast %cst_92 : f32 to vector<8x16x16xf32>
    %189 = arith.select %178, %187, %188 : vector<8x16x16xi1>, vector<8x16x16xf32>
    %190 = vector.shape_cast %170 : vector<9x16xf32> to vector<1x9x16xf32>
    %191 = vector.broadcast %190 : vector<1x9x16xf32> to vector<8x9x16xf32>
    "tpu.trace_start"() <{level = 10 : i32, message = "bij,bjk->bik"}> : () -> ()
    %cst_93 = arith.constant dense<0.000000e+00> : vector<8x9x16xf32>
    %192 = tpu.matmul %191, %189, %cst_93 {dimension_numbers = #tpu.dot_dimension_numbers<[2], [1], [1], [2], [0, 0, 0, 1, 1, 2], [0], [0]>} : vector<8x9x16xf32>, vector<8x16x16xf32>, vector<8x9x16xf32> -> vector<8x9x16xf32>
    "tpu.trace_stop"() : () -> ()
    %193 = vector.shape_cast %171 : vector<16x9xf32> to vector<1x16x9xf32>
    %194 = vector.broadcast %193 : vector<1x16x9xf32> to vector<8x16x9xf32>
    "tpu.trace_start"() <{level = 10 : i32, message = "bij,bjk->bik"}> : () -> ()
    %cst_94 = arith.constant dense<0.000000e+00> : vector<8x9x9xf32>
    %195 = tpu.matmul %192, %194, %cst_94 {dimension_numbers = #tpu.dot_dimension_numbers<[2], [1], [1], [2], [0, 0, 0, 1, 1, 2], [0], [0]>} : vector<8x9x16xf32>, vector<8x16x9xf32>, vector<8x9x9xf32> -> vector<8x9x9xf32>
    "tpu.trace_stop"() : () -> ()
    %196 = vector.extract_strided_slice %170 {offsets = [0, 0], sizes = [9, 8], strides = [1, 1]} : vector<9x16xf32> to vector<9x8xf32>
    %197 = vector.shape_cast %196 : vector<9x8xf32> to vector<1x9x8xf32>
    %198 = vector.broadcast %197 : vector<1x9x8xf32> to vector<8x9x8xf32>
    "tpu.trace_start"() <{level = 10 : i32, message = "bij,bjk->bik"}> : () -> ()
    %cst_95 = arith.constant dense<0.000000e+00> : vector<8x9x8xf32>
    %199 = tpu.matmul %198, %169, %cst_95 {dimension_numbers = #tpu.dot_dimension_numbers<[2], [1], [1], [2], [0, 0, 0, 1, 1, 2], [0], [0]>} : vector<8x9x8xf32>, vector<8x8x8xf32>, vector<8x9x8xf32> -> vector<8x9x8xf32>
    "tpu.trace_stop"() : () -> ()
    %200 = vector.extract_strided_slice %171 {offsets = [0, 0], sizes = [8, 9], strides = [1, 1]} : vector<16x9xf32> to vector<8x9xf32>
    %201 = vector.shape_cast %200 : vector<8x9xf32> to vector<1x8x9xf32>
    %202 = vector.broadcast %201 : vector<1x8x9xf32> to vector<8x8x9xf32>
    "tpu.trace_start"() <{level = 10 : i32, message = "bij,bjk->bik"}> : () -> ()
    %cst_96 = arith.constant dense<0.000000e+00> : vector<8x9x9xf32>
    %203 = tpu.matmul %199, %202, %cst_96 {dimension_numbers = #tpu.dot_dimension_numbers<[2], [1], [1], [2], [0, 0, 0, 1, 1, 2], [0], [0]>} : vector<8x9x8xf32>, vector<8x8x9xf32>, vector<8x9x9xf32> -> vector<8x9x9xf32>
    "tpu.trace_stop"() : () -> ()
    %204 = arith.addf %195, %203 : vector<8x9x9xf32>
    %c0_97 = arith.constant 0 : index
    %c0_98 = arith.constant 0 : index
    %205 = vector.load %arg21[%c0_97, %c0_98] : memref<11x18xf32, #tpu.memory_space<vmem>>, vector<11x18xf32>
    %c0_99 = arith.constant 0 : index
    %c0_100 = arith.constant 0 : index
    %206 = vector.load %arg22[%c0_99, %c0_100] : memref<18x11xf32, #tpu.memory_space<vmem>>, vector<18x11xf32>
    %207 = tpu.iota {dimensions = array<i32: 1>} : vector<8x18x18xi32>
    %208 = tpu.iota {dimensions = array<i32: 2>} : vector<8x18x18xi32>
    %c9_i32 = arith.constant 9 : i32
    %209 = vector.broadcast %c9_i32 : i32 to vector<8x18x18xi32>
    %210 = arith.cmpi sge, %207, %209 : vector<8x18x18xi32>
    %c9_i32_101 = arith.constant 9 : i32
    %211 = vector.broadcast %c9_i32_101 : i32 to vector<8x18x18xi32>
    %212 = arith.cmpi sge, %208, %211 : vector<8x18x18xi32>
    %213 = arith.ori %210, %212 : vector<8x18x18xi1>
    %214 = vector.broadcast %3 : f32 to vector<8x18x18xf32>
    %215 = arith.subf %159, %214 : vector<8x18x18xf32>
    %cst_102 = arith.constant 0.000000e+00 : f32
    %216 = vector.broadcast %cst_102 : f32 to vector<8x18x18xf32>
    %217 = arith.maximumf %216, %215 : vector<8x18x18xf32>
    %218 = vector.broadcast %3 : f32 to vector<8x18x18xf32>
    %219 = arith.addf %159, %218 : vector<8x18x18xf32>
    %cst_103 = arith.constant 0.000000e+00 : f32
    %220 = vector.broadcast %cst_103 : f32 to vector<8x18x18xf32>
    %221 = arith.minimumf %220, %219 : vector<8x18x18xf32>
    %222 = arith.addf %217, %221 : vector<8x18x18xf32>
    %cst_104 = arith.constant 0.000000e+00 : f32
    %223 = vector.broadcast %cst_104 : f32 to vector<8x18x18xf32>
    %224 = arith.select %213, %222, %223 : vector<8x18x18xi1>, vector<8x18x18xf32>
    %225 = vector.shape_cast %205 : vector<11x18xf32> to vector<1x11x18xf32>
    %226 = vector.broadcast %225 : vector<1x11x18xf32> to vector<8x11x18xf32>
    "tpu.trace_start"() <{level = 10 : i32, message = "bij,bjk->bik"}> : () -> ()
    %cst_105 = arith.constant dense<0.000000e+00> : vector<8x11x18xf32>
    %227 = tpu.matmul %226, %224, %cst_105 {dimension_numbers = #tpu.dot_dimension_numbers<[2], [1], [1], [2], [0, 0, 0, 1, 1, 2], [0], [0]>} : vector<8x11x18xf32>, vector<8x18x18xf32>, vector<8x11x18xf32> -> vector<8x11x18xf32>
    "tpu.trace_stop"() : () -> ()
    %228 = vector.shape_cast %206 : vector<18x11xf32> to vector<1x18x11xf32>
    %229 = vector.broadcast %228 : vector<1x18x11xf32> to vector<8x18x11xf32>
    "tpu.trace_start"() <{level = 10 : i32, message = "bij,bjk->bik"}> : () -> ()
    %cst_106 = arith.constant dense<0.000000e+00> : vector<8x11x11xf32>
    %230 = tpu.matmul %227, %229, %cst_106 {dimension_numbers = #tpu.dot_dimension_numbers<[2], [1], [1], [2], [0, 0, 0, 1, 1, 2], [0], [0]>} : vector<8x11x18xf32>, vector<8x18x11xf32>, vector<8x11x11xf32> -> vector<8x11x11xf32>
    "tpu.trace_stop"() : () -> ()
    %231 = vector.extract_strided_slice %205 {offsets = [0, 0], sizes = [11, 9], strides = [1, 1]} : vector<11x18xf32> to vector<11x9xf32>
    %232 = vector.shape_cast %231 : vector<11x9xf32> to vector<1x11x9xf32>
    %233 = vector.broadcast %232 : vector<1x11x9xf32> to vector<8x11x9xf32>
    "tpu.trace_start"() <{level = 10 : i32, message = "bij,bjk->bik"}> : () -> ()
    %cst_107 = arith.constant dense<0.000000e+00> : vector<8x11x9xf32>
    %234 = tpu.matmul %233, %204, %cst_107 {dimension_numbers = #tpu.dot_dimension_numbers<[2], [1], [1], [2], [0, 0, 0, 1, 1, 2], [0], [0]>} : vector<8x11x9xf32>, vector<8x9x9xf32>, vector<8x11x9xf32> -> vector<8x11x9xf32>
    "tpu.trace_stop"() : () -> ()
    %235 = vector.extract_strided_slice %206 {offsets = [0, 0], sizes = [9, 11], strides = [1, 1]} : vector<18x11xf32> to vector<9x11xf32>
    %236 = vector.shape_cast %235 : vector<9x11xf32> to vector<1x9x11xf32>
    %237 = vector.broadcast %236 : vector<1x9x11xf32> to vector<8x9x11xf32>
    "tpu.trace_start"() <{level = 10 : i32, message = "bij,bjk->bik"}> : () -> ()
    %cst_108 = arith.constant dense<0.000000e+00> : vector<8x11x11xf32>
    %238 = tpu.matmul %234, %237, %cst_108 {dimension_numbers = #tpu.dot_dimension_numbers<[2], [1], [1], [2], [0, 0, 0, 1, 1, 2], [0], [0]>} : vector<8x11x9xf32>, vector<8x9x11xf32>, vector<8x11x11xf32> -> vector<8x11x11xf32>
    "tpu.trace_stop"() : () -> ()
    %239 = arith.addf %230, %238 : vector<8x11x11xf32>
    %c0_109 = arith.constant 0 : index
    %c0_110 = arith.constant 0 : index
    %240 = vector.load %arg17[%c0_109, %c0_110] : memref<16x22xf32, #tpu.memory_space<vmem>>, vector<16x22xf32>
    %c0_111 = arith.constant 0 : index
    %c0_112 = arith.constant 0 : index
    %241 = vector.load %arg18[%c0_111, %c0_112] : memref<22x16xf32, #tpu.memory_space<vmem>>, vector<22x16xf32>
    %242 = tpu.iota {dimensions = array<i32: 1>} : vector<8x22x22xi32>
    %243 = tpu.iota {dimensions = array<i32: 2>} : vector<8x22x22xi32>
    %c11_i32 = arith.constant 11 : i32
    %244 = vector.broadcast %c11_i32 : i32 to vector<8x22x22xi32>
    %245 = arith.cmpi sge, %242, %244 : vector<8x22x22xi32>
    %c11_i32_113 = arith.constant 11 : i32
    %246 = vector.broadcast %c11_i32_113 : i32 to vector<8x22x22xi32>
    %247 = arith.cmpi sge, %243, %246 : vector<8x22x22xi32>
    %248 = arith.ori %245, %247 : vector<8x22x22xi1>
    %249 = vector.broadcast %3 : f32 to vector<8x22x22xf32>
    %250 = arith.subf %150, %249 : vector<8x22x22xf32>
    %cst_114 = arith.constant 0.000000e+00 : f32
    %251 = vector.broadcast %cst_114 : f32 to vector<8x22x22xf32>
    %252 = arith.maximumf %251, %250 : vector<8x22x22xf32>
    %253 = vector.broadcast %3 : f32 to vector<8x22x22xf32>
    %254 = arith.addf %150, %253 : vector<8x22x22xf32>
    %cst_115 = arith.constant 0.000000e+00 : f32
    %255 = vector.broadcast %cst_115 : f32 to vector<8x22x22xf32>
    %256 = arith.minimumf %255, %254 : vector<8x22x22xf32>
    %257 = arith.addf %252, %256 : vector<8x22x22xf32>
    %cst_116 = arith.constant 0.000000e+00 : f32
    %258 = vector.broadcast %cst_116 : f32 to vector<8x22x22xf32>
    %259 = arith.select %248, %257, %258 : vector<8x22x22xi1>, vector<8x22x22xf32>
    %260 = vector.shape_cast %240 : vector<16x22xf32> to vector<1x16x22xf32>
    %261 = vector.broadcast %260 : vector<1x16x22xf32> to vector<8x16x22xf32>
    "tpu.trace_start"() <{level = 10 : i32, message = "bij,bjk->bik"}> : () -> ()
    %cst_117 = arith.constant dense<0.000000e+00> : vector<8x16x22xf32>
    %262 = tpu.matmul %261, %259, %cst_117 {dimension_numbers = #tpu.dot_dimension_numbers<[2], [1], [1], [2], [0, 0, 0, 1, 1, 2], [0], [0]>} : vector<8x16x22xf32>, vector<8x22x22xf32>, vector<8x16x22xf32> -> vector<8x16x22xf32>
    "tpu.trace_stop"() : () -> ()
    %263 = vector.shape_cast %241 : vector<22x16xf32> to vector<1x22x16xf32>
    %264 = vector.broadcast %263 : vector<1x22x16xf32> to vector<8x22x16xf32>
    "tpu.trace_start"() <{level = 10 : i32, message = "bij,bjk->bik"}> : () -> ()
    %cst_118 = arith.constant dense<0.000000e+00> : vector<8x16x16xf32>
    %265 = tpu.matmul %262, %264, %cst_118 {dimension_numbers = #tpu.dot_dimension_numbers<[2], [1], [1], [2], [0, 0, 0, 1, 1, 2], [0], [0]>} : vector<8x16x22xf32>, vector<8x22x16xf32>, vector<8x16x16xf32> -> vector<8x16x16xf32>
    "tpu.trace_stop"() : () -> ()
    %266 = vector.extract_strided_slice %240 {offsets = [0, 0], sizes = [16, 11], strides = [1, 1]} : vector<16x22xf32> to vector<16x11xf32>
    %267 = vector.shape_cast %266 : vector<16x11xf32> to vector<1x16x11xf32>
    %268 = vector.broadcast %267 : vector<1x16x11xf32> to vector<8x16x11xf32>
    "tpu.trace_start"() <{level = 10 : i32, message = "bij,bjk->bik"}> : () -> ()
    %cst_119 = arith.constant dense<0.000000e+00> : vector<8x16x11xf32>
    %269 = tpu.matmul %268, %239, %cst_119 {dimension_numbers = #tpu.dot_dimension_numbers<[2], [1], [1], [2], [0, 0, 0, 1, 1, 2], [0], [0]>} : vector<8x16x11xf32>, vector<8x11x11xf32>, vector<8x16x11xf32> -> vector<8x16x11xf32>
    "tpu.trace_stop"() : () -> ()
    %270 = vector.extract_strided_slice %241 {offsets = [0, 0], sizes = [11, 16], strides = [1, 1]} : vector<22x16xf32> to vector<11x16xf32>
    %271 = vector.shape_cast %270 : vector<11x16xf32> to vector<1x11x16xf32>
    %272 = vector.broadcast %271 : vector<1x11x16xf32> to vector<8x11x16xf32>
    "tpu.trace_start"() <{level = 10 : i32, message = "bij,bjk->bik"}> : () -> ()
    %cst_120 = arith.constant dense<0.000000e+00> : vector<8x16x16xf32>
    %273 = tpu.matmul %269, %272, %cst_120 {dimension_numbers = #tpu.dot_dimension_numbers<[2], [1], [1], [2], [0, 0, 0, 1, 1, 2], [0], [0]>} : vector<8x16x11xf32>, vector<8x11x16xf32>, vector<8x16x16xf32> -> vector<8x16x16xf32>
    "tpu.trace_stop"() : () -> ()
    %274 = arith.addf %265, %273 : vector<8x16x16xf32>
    %275 = arith.addf %140, %274 : vector<8x16x16xf32>
    %cst_121 = arith.constant 5.000000e-01 : f32
    %276 = vector.broadcast %cst_121 : f32 to vector<8x16x16xf32>
    %277 = arith.mulf %275, %276 : vector<8x16x16xf32>
    %c0_122 = arith.constant 0 : index
    %c0_123 = arith.constant 0 : index
    %c0_124 = arith.constant 0 : index
    %278 = vector.load %arg29[%c0_122, %c0_123, %c0_124] : memref<1x1x1xf32, #tpu.memory_space<vmem>>, vector<1x1x1xf32>
    %279 = vector.shape_cast %278 : vector<1x1x1xf32> to vector<1x1x1xf32>
    %280 = vector.broadcast %279 : vector<1x1x1xf32> to vector<8x16x16xf32>
    %281 = arith.mulf %280, %277 : vector<8x16x16xf32>
    %cst_125 = arith.constant 1.000000e+00 : f32
    %282 = vector.broadcast %cst_125 : f32 to vector<8x16x16xf32>
    %283 = arith.subf %282, %280 : vector<8x16x16xf32>
    %284 = arith.mulf %283, %4 : vector<8x16x16xf32>
    %285 = arith.addf %281, %284 : vector<8x16x16xf32>
    %c0_126 = arith.constant 0 : index
    %c0_127 = arith.constant 0 : index
    %c0_128 = arith.constant 0 : index
    %286 = vector.load %arg27[%c0_126, %c0_127, %c0_128] : memref<8x16x16xf32, #tpu.memory_space<vmem>>, vector<8x16x16xf32>
    tpu.vector_store %arg27[%c0_126, %c0_127, %c0_128], %285 {strides = array<i32>} : memref<8x16x16xf32, #tpu.memory_space<vmem>>, vector<8x16x16xf32>,
    %c0_129 = arith.constant 0 : index
    %c0_130 = arith.constant 0 : index
    %c0_131 = arith.constant 0 : index
    %c0_132 = arith.constant 0 : index
    %287 = vector.load %arg28[%c0_129, %c0_130, %c0_131, %c0_132] : memref<2x8x16x16xf32, #tpu.memory_space<vmem>>, vector<1x8x16x16xf32>
    %288 = vector.shape_cast %287 : vector<1x8x16x16xf32> to vector<8x16x16xf32>
    %289 = arith.addf %277, %288 : vector<8x16x16xf32>
    %290 = arith.subf %289, %139 : vector<8x16x16xf32>
    %291 = arith.mulf %280, %290 : vector<8x16x16xf32>
    %cst_133 = arith.constant 1.000000e+00 : f32
    %292 = vector.broadcast %cst_133 : f32 to vector<8x16x16xf32>
    %293 = arith.subf %292, %280 : vector<8x16x16xf32>
    %294 = arith.mulf %293, %288 : vector<8x16x16xf32>
    %295 = arith.addf %291, %294 : vector<8x16x16xf32>
    %c0_134 = arith.constant 0 : index
    %c0_135 = arith.constant 0 : index
    %c0_136 = arith.constant 0 : index
    %c0_137 = arith.constant 0 : index
    %296 = vector.load %arg28[%c0_134, %c0_135, %c0_136, %c0_137] : memref<2x8x16x16xf32, #tpu.memory_space<vmem>>, vector<1x8x16x16xf32>
    %297 = vector.shape_cast %296 : vector<1x8x16x16xf32> to vector<8x16x16xf32>
    %298 = vector.shape_cast %295 : vector<8x16x16xf32> to vector<1x8x16x16xf32>
    tpu.vector_store %arg28[%c0_134, %c0_135, %c0_136, %c0_137], %298 {strides = array<i32>} : memref<2x8x16x16xf32, #tpu.memory_space<vmem>>, vector<1x8x16x16xf32>,
    %c1_138 = arith.constant 1 : index
    %c0_139 = arith.constant 0 : index
    %c0_140 = arith.constant 0 : index
    %c0_141 = arith.constant 0 : index
    %299 = vector.load %arg28[%c1_138, %c0_139, %c0_140, %c0_141] : memref<2x8x16x16xf32, #tpu.memory_space<vmem>>, vector<1x8x16x16xf32>
    %300 = vector.shape_cast %299 : vector<1x8x16x16xf32> to vector<8x16x16xf32>
    %301 = arith.addf %277, %300 : vector<8x16x16xf32>
    %302 = arith.subf %301, %274 : vector<8x16x16xf32>
    %303 = arith.mulf %280, %302 : vector<8x16x16xf32>
    %cst_142 = arith.constant 1.000000e+00 : f32
    %304 = vector.broadcast %cst_142 : f32 to vector<8x16x16xf32>
    %305 = arith.subf %304, %280 : vector<8x16x16xf32>
    %306 = arith.mulf %305, %300 : vector<8x16x16xf32>
    %307 = arith.addf %303, %306 : vector<8x16x16xf32>
    %c1_143 = arith.constant 1 : index
    %c0_144 = arith.constant 0 : index
    %c0_145 = arith.constant 0 : index
    %c0_146 = arith.constant 0 : index
    %308 = vector.load %arg28[%c1_143, %c0_144, %c0_145, %c0_146] : memref<2x8x16x16xf32, #tpu.memory_space<vmem>>, vector<1x8x16x16xf32>
    %309 = vector.shape_cast %308 : vector<1x8x16x16xf32> to vector<8x16x16xf32>
    %310 = vector.shape_cast %307 : vector<8x16x16xf32> to vector<1x8x16x16xf32>
    tpu.vector_store %arg28[%c1_143, %c0_144, %c0_145, %c0_146], %310 {strides = array<i32>} : memref<2x8x16x16xf32, #tpu.memory_space<vmem>>, vector<1x8x16x16xf32>,
    %311 = arith.subf %277, %4 : vector<8x16x16xf32>
    %312 = arith.mulf %311, %311 : vector<8x16x16xf32>
    %cst_147 = arith.constant dense<0.000000e+00> : vector<8x16xf32>
    %313 = vector.multi_reduction <add>, %312, %cst_147 [2] : vector<8x16x16xf32> to vector<8x16xf32>
    %314 = vector.shape_cast %313 : vector<8x16xf32> to vector<8x16x1xf32>
    %cst_148 = arith.constant dense<0.000000e+00> : vector<8x1xf32>
    %315 = vector.multi_reduction <add>, %314, %cst_148 [1] : vector<8x16x1xf32> to vector<8x1xf32>
    %316 = vector.shape_cast %315 : vector<8x1xf32> to vector<8x1x1xf32>
    %cst_149 = arith.constant dense<0.000000e+00> : vector<1x1xf32>
    %317 = vector.multi_reduction <add>, %316, %cst_149 [0] : vector<8x1x1xf32> to vector<1x1xf32>
    %318 = vector.shape_cast %317 : vector<1x1xf32> to vector<1x1x1xf32>
    %cst_150 = arith.constant 9.99999997E-7 : f32
    %319 = vector.broadcast %cst_150 : f32 to vector<8x16x16xf32>
    %320 = arith.addf %277, %319 : vector<8x16x16xf32>
    %321 = arith.mulf %320, %320 : vector<8x16x16xf32>
    %cst_151 = arith.constant dense<0.000000e+00> : vector<8x16xf32>
    %322 = vector.multi_reduction <add>, %321, %cst_151 [2] : vector<8x16x16xf32> to vector<8x16xf32>
    %323 = vector.shape_cast %322 : vector<8x16xf32> to vector<8x16x1xf32>
    %cst_152 = arith.constant dense<0.000000e+00> : vector<8x1xf32>
    %324 = vector.multi_reduction <add>, %323, %cst_152 [1] : vector<8x16x1xf32> to vector<8x1xf32>
    %325 = vector.shape_cast %324 : vector<8x1xf32> to vector<8x1x1xf32>
    %cst_153 = arith.constant dense<0.000000e+00> : vector<1x1xf32>
    %326 = vector.multi_reduction <add>, %325, %cst_153 [0] : vector<8x1x1xf32> to vector<1x1xf32>
    %327 = vector.shape_cast %326 : vector<1x1xf32> to vector<1x1x1xf32>
    %cst_154 = arith.constant 9.99999997E-7 : f32
    %328 = vector.broadcast %cst_154 : f32 to vector<1x1x1xf32>
    %329 = arith.mulf %328, %327 : vector<1x1x1xf32>
    %330 = arith.cmpf olt, %318, %329 : vector<1x1x1xf32>
    %c0_155 = arith.constant 0 : index
    %c0_156 = arith.constant 0 : index
    %c0_157 = arith.constant 0 : index
    %331 = vector.load %arg29[%c0_155, %c0_156, %c0_157] : memref<1x1x1xf32, #tpu.memory_space<vmem>>, vector<1x1x1xf32>
    %cst_158 = arith.constant 0.000000e+00 : f32
    %cst_159 = arith.constant 1.000000e+00 : f32
    %332 = vector.broadcast %cst_158 : f32 to vector<1x1x1xf32>
    %333 = vector.broadcast %cst_159 : f32 to vector<1x1x1xf32>
    %334 = arith.select %330, %332, %333 : vector<1x1x1xi1>, vector<1x1x1xf32>
    %335 = arith.mulf %331, %334 : vector<1x1x1xf32>
    %c0_160 = arith.constant 0 : index
    %c0_161 = arith.constant 0 : index
    %c0_162 = arith.constant 0 : index
    %336 = vector.load %arg29[%c0_160, %c0_161, %c0_162] : memref<1x1x1xf32, #tpu.memory_space<vmem>>, vector<1x1x1xf32>
    tpu.vector_store %arg29[%c0_160, %c0_161, %c0_162], %335 {strides = array<i32>} : memref<1x1x1xf32, #tpu.memory_space<vmem>>, vector<1x1x1xf32>,
    return
  }
  func.func @transform_0(%arg0: i32) -> i32 {
    %c0_i32 = arith.constant 0 : i32
    %c0_i32_0 = arith.constant 0 : i32
    return %c0_i32 : i32
  }
  func.func @transform_1(%arg0: i32) -> (i32, i32, i32) {
    %c0_i32 = arith.constant 0 : i32
    %c0_i32_0 = arith.constant 0 : i32
    %c0_i32_1 = arith.constant 0 : i32
    %c0_i32_2 = arith.constant 0 : i32
    return %c0_i32, %c0_i32_0, %c0_i32_1 : i32, i32, i32
  }
  func.func @transform_2(%arg0: i32) -> (i32, i32) {
    %c0_i32 = arith.constant 0 : i32
    %c0_i32_0 = arith.constant 0 : i32
    %c0_i32_1 = arith.constant 0 : i32
    return %c0_i32, %c0_i32_0 : i32, i32
  }
  func.func @transform_3(%arg0: i32) -> (i32, i32) {
    %c0_i32 = arith.constant 0 : i32
    %c0_i32_0 = arith.constant 0 : i32
    %c0_i32_1 = arith.constant 0 : i32
    return %c0_i32, %c0_i32_0 : i32, i32
  }
  func.func @transform_4(%arg0: i32) -> (i32, i32) {
    %c0_i32 = arith.constant 0 : i32
    %c0_i32_0 = arith.constant 0 : i32
    %c0_i32_1 = arith.constant 0 : i32
    return %c0_i32, %c0_i32_0 : i32, i32
  }
  func.func @transform_5(%arg0: i32) -> (i32, i32) {
    %c0_i32 = arith.constant 0 : i32
    %c0_i32_0 = arith.constant 0 : i32
    %c0_i32_1 = arith.constant 0 : i32
    return %c0_i32, %c0_i32_0 : i32, i32
  }
  func.func @transform_6(%arg0: i32) -> (i32, i32) {
    %c0_i32 = arith.constant 0 : i32
    %c0_i32_0 = arith.constant 0 : i32
    %c0_i32_1 = arith.constant 0 : i32
    return %c0_i32, %c0_i32_0 : i32, i32
  }
  func.func @transform_7(%arg0: i32) -> (i32, i32) {
    %c0_i32 = arith.constant 0 : i32
    %c0_i32_0 = arith.constant 0 : i32
    %c0_i32_1 = arith.constant 0 : i32
    return %c0_i32, %c0_i32_0 : i32, i32
  }
  func.func @transform_8(%arg0: i32) -> (i32, i32) {
    %c0_i32 = arith.constant 0 : i32
    %c0_i32_0 = arith.constant 0 : i32
    %c0_i32_1 = arith.constant 0 : i32
    return %c0_i32, %c0_i32_0 : i32, i32
  }
  func.func @transform_9(%arg0: i32) -> (i32, i32) {
    %c0_i32 = arith.constant 0 : i32
    %c0_i32_0 = arith.constant 0 : i32
    %c0_i32_1 = arith.constant 0 : i32
    return %c0_i32, %c0_i32_0 : i32, i32
  }
  func.func @transform_10(%arg0: i32) -> (i32, i32) {
    %c0_i32 = arith.constant 0 : i32
    %c0_i32_0 = arith.constant 0 : i32
    %c0_i32_1 = arith.constant 0 : i32
    return %c0_i32, %c0_i32_0 : i32, i32
  }
  func.func @transform_11(%arg0: i32) -> (i32, i32) {
    %c0_i32 = arith.constant 0 : i32
    %c0_i32_0 = arith.constant 0 : i32
    %c0_i32_1 = arith.constant 0 : i32
    return %c0_i32, %c0_i32_0 : i32, i32
  }
  func.func @transform_12(%arg0: i32) -> (i32, i32) {
    %c0_i32 = arith.constant 0 : i32
    %c0_i32_0 = arith.constant 0 : i32
    %c0_i32_1 = arith.constant 0 : i32
    return %c0_i32, %c0_i32_0 : i32, i32
  }
  func.func @transform_13(%arg0: i32) -> (i32, i32) {
    %c0_i32 = arith.constant 0 : i32
    %c0_i32_0 = arith.constant 0 : i32
    %c0_i32_1 = arith.constant 0 : i32
    return %c0_i32, %c0_i32_0 : i32, i32
  }
  func.func @transform_14(%arg0: i32) -> (i32, i32) {
    %c0_i32 = arith.constant 0 : i32
    %c0_i32_0 = arith.constant 0 : i32
    %c0_i32_1 = arith.constant 0 : i32
    return %c0_i32, %c0_i32_0 : i32, i32
  }
  func.func @transform_15(%arg0: i32) -> (i32, i32) {
    %c0_i32 = arith.constant 0 : i32
    %c0_i32_0 = arith.constant 0 : i32
    %c0_i32_1 = arith.constant 0 : i32
    return %c0_i32, %c0_i32_0 : i32, i32
  }
  func.func @transform_16(%arg0: i32) -> (i32, i32) {
    %c0_i32 = arith.constant 0 : i32
    %c0_i32_0 = arith.constant 0 : i32
    %c0_i32_1 = arith.constant 0 : i32
    return %c0_i32, %c0_i32_0 : i32, i32
  }
  func.func @transform_17(%arg0: i32) -> (i32, i32) {
    %c0_i32 = arith.constant 0 : i32
    %c0_i32_0 = arith.constant 0 : i32
    %c0_i32_1 = arith.constant 0 : i32
    return %c0_i32, %c0_i32_0 : i32, i32
  }
  func.func @transform_18(%arg0: i32) -> (i32, i32) {
    %c0_i32 = arith.constant 0 : i32
    %c0_i32_0 = arith.constant 0 : i32
    %c0_i32_1 = arith.constant 0 : i32
    return %c0_i32, %c0_i32_0 : i32, i32
  }
  func.func @transform_19(%arg0: i32) -> (i32, i32) {
    %c0_i32 = arith.constant 0 : i32
    %c0_i32_0 = arith.constant 0 : i32
    %c0_i32_1 = arith.constant 0 : i32
    return %c0_i32, %c0_i32_0 : i32, i32
  }
  func.func @transform_20(%arg0: i32) -> (i32, i32) {
    %c0_i32 = arith.constant 0 : i32
    %c0_i32_0 = arith.constant 0 : i32
    %c0_i32_1 = arith.constant 0 : i32
    return %c0_i32, %c0_i32_0 : i32, i32
  }
  func.func @transform_21(%arg0: i32) -> (i32, i32) {
    %c0_i32 = arith.constant 0 : i32
    %c0_i32_0 = arith.constant 0 : i32
    %c0_i32_1 = arith.constant 0 : i32
    return %c0_i32, %c0_i32_0 : i32, i32
  }
  func.func @transform_22(%arg0: i32) -> (i32, i32) {
    %c0_i32 = arith.constant 0 : i32
    %c0_i32_0 = arith.constant 0 : i32
    %c0_i32_1 = arith.constant 0 : i32
    return %c0_i32, %c0_i32_0 : i32, i32
  }
  func.func @transform_23(%arg0: i32) -> (i32, i32) {
    %c0_i32 = arith.constant 0 : i32
    %c0_i32_0 = arith.constant 0 : i32
    %c0_i32_1 = arith.constant 0 : i32
    return %c0_i32, %c0_i32_0 : i32, i32
  }
  func.func @transform_24(%arg0: i32) -> (i32, i32) {
    %c0_i32 = arith.constant 0 : i32
    %c0_i32_0 = arith.constant 0 : i32
    %c0_i32_1 = arith.constant 0 : i32
    return %c0_i32, %c0_i32_0 : i32, i32
  }
  func.func @transform_25(%arg0: i32) -> (i32, i32) {
    %c0_i32 = arith.constant 0 : i32
    %c0_i32_0 = arith.constant 0 : i32
    %c0_i32_1 = arith.constant 0 : i32
    return %c0_i32, %c0_i32_0 : i32, i32
  }
  func.func @transform_26(%arg0: i32) -> (i32, i32, i32) {
    %c0_i32 = arith.constant 0 : i32
    %c0_i32_0 = arith.constant 0 : i32
    %c0_i32_1 = arith.constant 0 : i32
    %c0_i32_2 = arith.constant 0 : i32
    return %c0_i32, %c0_i32_0, %c0_i32_1 : i32, i32, i32
  }
}

</mosaic_0001>

<bundles_post_ra>
// kernel: forward.1
= control target key start
LH: loop header
LB: loop body
LE: loop exit
PB: predicated region body
PF: predicated region fallthrough
CT: control target
= control target key end

     0   :  { %s40206_s0 = inlined_call_operand.<no memory space> [shape: f32[1], index: 0, kind: input, shape index: {}]   ;;  %s40207_s1 = inlined_call_operand.hbm [shape: f32[8,16,16], index: 1, kind: input, shape index: {}]   ;;  %s40208_s2 = inlined_call_operand.hbm [shape: f32[30,16], index: 2, kind: input, shape index: {}, may-alias: {2,5}]   ;;  %s40209_s3 = inlined_call_operand.hbm [shape: f32[16,30], index: 3, kind: input, shape index: {}, may-alias: {3,4}]   ;;  %s40210_s4 = inlined_call_operand.hbm [shape: f32[16,30], index: 4, kind: input, shape index: {}, may-alias: {3,4}]   ;;  %s40211_s5 = inlined_call_operand.hbm [shape: f32[30,16], index: 5, kind: input, shape index: {}, may-alias: {2,5}]   ;;  %s40212_s6 = inlined_call_operand.hbm [shape: f32[30,15], index: 6, kind: input, shape index: {}, may-alias: {6,9,10,13}]   ;;  %s40213_s7 = inlined_call_operand.vmem [shape: f32[15,30], index: 7, kind: input, shape index: {}, may-alias: {7,8,11,12}]   ;;  %s40214_s8 = inlined_call_operand.vmem [shape: f32[15,30], index: 8, kind: input, shape index: {}, may-alias: {7,8,11,12}]   ;;  %s40215_s9 = inlined_call_operand.hbm [shape: f32[30,15], index: 9, kind: input, shape index: {}, may-alias: {6,9,10,13}]   ;;  %s40216_s10 = inlined_call_operand.hbm [shape: f32[30,15], index: 10, kind: input, shape index: {}, may-alias: {6,9,10,13}]   ;;  %s40217_s11 = inlined_call_operand.vmem [shape: f32[15,30], index: 11, kind: input, shape index: {}, may-alias: {7,8,11,12}]   ;;  %s40218_s12 = inlined_call_operand.vmem [shape: f32[15,30], index: 12, kind: input, shape index: {}, may-alias: {7,8,11,12}]   ;;  %s40219_s13 = inlined_call_operand.hbm [shape: f32[30,15], index: 13, kind: input, shape index: {}, may-alias: {6,9,10,13}]   ;;  %s40220_s14 = inlined_call_operand.hbm [shape: f32[22,16], index: 14, kind: input, shape index: {}, may-alias: {14,17}]   ;;  %s40221_s15 = inlined_call_operand.hbm [shape: f32[16,22], index: 15, kind: input, shape index: {}, may-alias: {15,16}]   ;;  %s40222_s16 = inlined_call_operand.hbm [shape: f32[16,22], index: 16, kind: input, shape index: {}, may-alias: {15,16}]   ;;  %s40223_s17 = inlined_call_operand.hbm [shape: f32[22,16], index: 17, kind: input, shape index: {}, may-alias: {14,17}]   ;;  %s40224_s18 = inlined_call_operand.vmem [shape: f32[18,11], index: 18, kind: input, shape index: {}, may-alias: {18,21}]   ;;  %s40225_s19 = inlined_call_operand.hbm [shape: f32[11,18], index: 19, kind: input, shape index: {}, may-alias: {19,20}]   ;;  %s40226_s20 = inlined_call_operand.hbm [shape: f32[11,18], index: 20, kind: input, shape index: {}, may-alias: {19,20}]   ;;  %s40227_s21 = inlined_call_operand.vmem [shape: f32[18,11], index: 21, kind: input, shape index: {}, may-alias: {18,21}]   ;;  %s40228_s22 = inlined_call_operand.hbm [shape: f32[16,9], index: 22, kind: input, shape index: {}, may-alias: {22,25}]   ;;  %s40229_s23 = inlined_call_operand.hbm [shape: f32[9,16], index: 23, kind: input, shape index: {}, may-alias: {23,24}]   ;;  %s40230_s24 = inlined_call_operand.hbm [shape: f32[9,16], index: 24, kind: input, shape index: {}, may-alias: {23,24}]   ;;  %s40231_s25 = inlined_call_operand.hbm [shape: f32[16,9], index: 25, kind: input, shape index: {}, may-alias: {22,25}]   ;;  %s40232_s26 = inlined_call_operand.hbm [shape: f32[8,16,16], index: 26, kind: output, shape index: {}]  }
   0x1   :  { %40410 = sst [smem:[#allocation143_spill]] %s40206_s0 }
   0x2   :  { %40411 = sst [smem:[#allocation144_spill]] %s40207_s1 }
   0x3   :  { %40412 = sst [smem:[#allocation145_spill]] %s40208_s2 }
   0x4   :  { %40413 = sst [smem:[#allocation146_spill]] %s40209_s3 }
   0x5   :  { %40414 = sst [smem:[#allocation147_spill]] %s40210_s4 }
   0x6   :  { %40415 = sst [smem:[#allocation148_spill]] %s40211_s5 }
   0x7   :  { %40416 = sst [smem:[#allocation149_spill]] %s40212_s6 }
   0x8   :  { %40417 = sst [smem:[#allocation150_spill]] %s40213_s7  ;;  %s40427_s7 = sld [smem:[#allocation143_spill]] }
   0x9   :  { %40418 = sst [smem:[#allocation151_spill]] %s40214_s8 }
   0xa   :  { %40419 = sst [smem:[#allocation152_spill]] %s40215_s9 }
   0xb   :  { %40420 = sst [smem:[#allocation153_spill]] %s40216_s10 }
   0xc   :  { %40421 = sst [smem:[#allocation154_spill]] %s40217_s11 }
   0xd   :  { %40422 = sst [smem:[#allocation155_spill]] %s40218_s12 }
   0xe   :  { %40423 = sst [smem:[#allocation156_spill]] %s40220_s14 }
   0xf   :  { %40424 = sst [smem:[#allocation157_spill]] %s40224_s18 }
  0x10   :  { %40425 = sst [smem:[#allocation158_spill]] %s40227_s21 }
  0x11   :  { %40426 = sst [smem:[#allocation159_spill]] %s40232_s26 }
  0x12   :  { %31 = sst [smem:[#allocation4]] %s40427_s7 }
  0x13   :  { %32 = vsyncpa [#allocation6], 0 }
  0x14   :  { %33 = vsyncpa [#allocation9], 0 }
  0x15   :  { %34 = vsyncpa [#allocation12], 0 }
  0x16   :  { %35 = vsyncpa [#allocation15], 0 }
  0x17   :  { %36 = vsyncpa [#allocation18], 0 }
  0x18   :  { %37 = vsyncpa [#allocation21], 0 }
  0x19   :  { %38 = vsyncpa [#allocation24], 0 }
  0x1a   :  { %39 = vsyncpa [#allocation27], 0 }
  0x1b   :  { %40 = vsyncpa [#allocation30], 0 }
  0x1c   :  { %41 = vsyncpa [#allocation33], 0 }
  0x1d   :  { %42 = vsyncpa [#allocation7], 0  ;;  %s34729_s28 = smov 0  }
  0x1e LB: > { %40428 = sst [smem:[#allocation47_spill]] %s34557_s28  ;;  %s34735_s8 = sadd.s32 4294967295, %s34557_s28   ;;  %s34557_s28 = sphi %s34729_s28, %s48_s28  }
  0x1f   : > { %40429 = sst [smem:[#allocation48_spill]] %s34735_s8  ;;  %p26884_p0 = scmp.ge.s32.totalorder %s34557_s28, 1 }
  0x20   : > { %p620_p1 = scmp.lt.s32.totalorder %s34557_s28, 11  ;;  %p40252_p3 = scmp.eq.s32.totalorder %s34735_s8, 0 }
  0x21   : > { %s34559_s29 = smov [#allocation8]   ;;  %s34560_s9 = smov [#allocation11]  }
  0x22   : > { %p34741_p4 = pnand %p26884_p0, %p620_p1  ;;  %s648_s0 = sshll.u32 %s34559_s29, 4  ;;  %s34745_s0 = int_to_ptr.vmem [resolvable:$true] %s648_s0 }
  0x23   : > { %s674_s30 = sshll.u32 %s34560_s9, 4  ;;  %s34561_s5 = smov [#allocation14]   ;;  %s34749_s30 = int_to_ptr.vmem [resolvable:$true] %s674_s30 }
  0x24   : > { %s40430_s4 = scalar_select %p34741_p4, 1, 0 }
  0x25   : > { %p33802_p5 = pneg %p34741_p4  ;;  %s700_s10 = sshll.u32 %s34561_s5, 4  ;;  %s34757_s10 = int_to_ptr.vmem [resolvable:$true] %s700_s10 }
  0x26   : > { %s34562_s6 = smov [#allocation17]   ;;  %s40432_s7 = sld [smem:[#allocation145_spill]] }
  0x27   : > { %p34753_p6 = pnand %p40252_p3, %p33802_p5  ;;  %s34759_s1 = sshll.u32 %s34562_s6, 4  ;;  %s733_s1 = int_to_ptr.vmem [resolvable:$true] %s34759_s1 }
  0x29   : > { %p34769_p8 = pneg %p34753_p6 }
  0x2c   : > { %s33949_s29 = scalar_lea.hbm %s40432_s7, 512 }
  0x2d   : > { %p33950_p7 = scmp.ne.s32.totalorder %s40432_s7, %s33949_s29  ;;  %p33956_p11 = scmp.lt.u32.totalorder %s33949_s29, %s40432_s7 }
  0x2f   : > { %p33952_p9 = pnand %p34769_p8, %p33950_p7 }
  0x31   : > { %p33953_p10 = pneg %p33952_p9 }
  0x33   : > { %p33958_p12 = pnand %p33956_p11, %p33953_p10 }
  0x35   : > { %33961 = shalt.err (!%p33958_p12)
}
  0x36   : > { %s33962_s28 = scalar_lea.vmem %s34745_s0, 512  ;;  %p33970_p5 = scmp.lt.s32.totalorder %s34745_s0, %s34745_s0 }
  0x37   : > { %p33963_p13 = scmp.ne.s32.totalorder %s34745_s0, %s33962_s28  ;;  %p33971_p2 = scmp.lt.s32.totalorder %s33962_s28, %s33962_s28 }
  0x39   : > { %p33965_p0 = pnand %p33963_p13, %p34769_p8  ;;  %p33972_p7 = por %p33971_p2, %p33970_p5 }
  0x3b   : > { %p33966_p1 = pneg %p33965_p0 }
  0x3d   : > { %p33973_p9 = pnand %p33972_p7, %p33966_p1 }
  0x3f   : > { %33976 = shalt.err (!%p33973_p9)
}
  0x40   : > { %s34563_s27 = smov 128   ;;  %s34564_s3 = smov 8  }
  0x41   : > { %33808 = dma.hbm_to_vmem [thread:$0]  (!%p34753_p6), %s40432_s7, 512, %s34745_s0, [#allocation9], %s34563_s27, %s34563_s27, %s34564_s3  }
  0x42   : > { %s40434_s21 = sld [smem:[#allocation147_spill]] }
  0x48   : > { %s33977_s28 = scalar_lea.hbm %s40434_s21, 256 }
  0x49   : > { %p33978_p2 = scmp.ne.s32.totalorder %s40434_s21, %s33977_s28  ;;  %p33984_p12 = scmp.lt.u32.totalorder %s33977_s28, %s40434_s21 }
  0x4b   : > { %p33980_p10 = pnand %p33978_p2, %p34769_p8 }
  0x4d   : > { %p33981_p11 = pneg %p33980_p10 }
  0x4f   : > { %p33986_p13 = pnand %p33984_p12, %p33981_p11 }
  0x51   : > { %33989 = shalt.err (!%p33986_p13)
}
  0x52   : > { %s33990_s0 = scalar_lea.vmem %s34749_s30, 256  ;;  %p33998_p7 = scmp.lt.s32.totalorder %s34749_s30, %s34749_s30 }
  0x53   : > { %p33991_p0 = scmp.ne.s32.totalorder %s34749_s30, %s33990_s0  ;;  %p33999_p9 = scmp.lt.s32.totalorder %s33990_s0, %s33990_s0 }
  0x55   : > { %p33993_p1 = pnand %p33991_p0, %p34769_p8  ;;  %p34000_p2 = por %p33999_p9, %p33998_p7 }
  0x57   : > { %p33994_p5 = pneg %p33993_p1 }
  0x59   : > { %p34001_p10 = pnand %p34000_p2, %p33994_p5 }
  0x5b   : > { %34004 = shalt.err (!%p34001_p10)
}
  0x5c   : > { %33814 = dma.hbm_to_vmem [thread:$0]  (!%p34753_p6), %s40434_s21, 256, %s34749_s30, [#allocation12], %s34563_s27, %s34563_s27, %s34564_s3  }
  0x5d   : > { %s40435_s29 = sld [smem:[#allocation149_spill]] }
  0x63   : > { %s34005_s9 = scalar_lea.hbm %s40435_s29, 512 }
  0x64   : > { %p34006_p11 = scmp.ne.s32.totalorder %s40435_s29, %s34005_s9  ;;  %p34012_p0 = scmp.lt.u32.totalorder %s34005_s9, %s40435_s29 }
  0x66   : > { %p34008_p12 = pnand %p34006_p11, %p34769_p8 }
  0x68   : > { %p34009_p13 = pneg %p34008_p12 }
  0x6a   : > { %p34014_p1 = pnand %p34012_p0, %p34009_p13 }
  0x6c   : > { %34017 = shalt.err (!%p34014_p1)
}
  0x6d   : > { %s34018_s30 = scalar_lea.vmem %s34757_s10, 512  ;;  %p34026_p2 = scmp.lt.s32.totalorder %s34757_s10, %s34757_s10 }
  0x6e   : > { %p34019_p5 = scmp.ne.s32.totalorder %s34757_s10, %s34018_s30  ;;  %p34027_p10 = scmp.lt.s32.totalorder %s34018_s30, %s34018_s30 }
  0x70   : > { %p34021_p7 = pnand %p34019_p5, %p34769_p8  ;;  %p34028_p11 = por %p34027_p10, %p34026_p2 }
  0x72   : > { %p34022_p9 = pneg %p34021_p7 }
  0x74   : > { %p34029_p12 = pnand %p34028_p11, %p34022_p9 }
  0x76   : > { %34032 = shalt.err (!%p34029_p12)
}
  0x77   : > { %33820 = dma.hbm_to_vmem [thread:$0]  (!%p34753_p6), %s40435_s29, 512, %s34757_s10, [#allocation15], %s34563_s27, %s34563_s27, %s34564_s3  }
  0x78   : > { %s40436_s9 = sld [smem:[#allocation153_spill]] }
  0x7e   : > { %s34033_s5 = scalar_lea.hbm %s40436_s9, 512 }
  0x7f   : > { %p34034_p13 = scmp.ne.s32.totalorder %s40436_s9, %s34033_s5  ;;  %p34040_p5 = scmp.lt.u32.totalorder %s34033_s5, %s40436_s9 }
  0x81   : > { %p34036_p0 = pnand %p34034_p13, %p34769_p8 }
  0x83   : > { %p34037_p1 = pneg %p34036_p0 }
  0x85   : > { %p34042_p7 = pnand %p34040_p5, %p34037_p1 }
  0x87   : > { %34045 = shalt.err (!%p34042_p7)
}
  0x88   : > { %s34046_s11 = scalar_lea.vmem %s733_s1, 512  ;;  %p34054_p11 = scmp.lt.s32.totalorder %s733_s1, %s733_s1 }
  0x89   : > { %p34047_p9 = scmp.ne.s32.totalorder %s733_s1, %s34046_s11  ;;  %p34055_p12 = scmp.lt.s32.totalorder %s34046_s11, %s34046_s11 }
  0x8b   : > { %p34049_p2 = pnand %p34047_p9, %p34769_p8  ;;  %p34056_p3 = por %p34055_p12, %p34054_p11 }
  0x8d   : > { %p34050_p10 = pneg %p34049_p2 }
  0x8f   : > { %p34057_p4 = pnand %p34056_p3, %p34050_p10 }
  0x91   : > { %34060 = shalt.err (!%p34057_p4)
}
  0x92   : > { %33826 = dma.hbm_to_vmem [thread:$0]  (!%p34753_p6), %s40436_s9, 512, %s733_s1, [#allocation18], %s34563_s27, %s34563_s27, %s34564_s3  }
  0x93   : > { %s34565_s18 = smov [#allocation20]   ;;  %s34566_s5 = smov [#allocation23]  }
  0x94   : > { %s764_s8 = sshll.u32 %s34565_s18, 4  ;;  %s790_s6 = sshll.u32 %s34566_s5, 4  ;;  %s765_s8 = int_to_ptr.vmem [resolvable:$true] %s764_s8  ;;  %s791_s6 = int_to_ptr.vmem [resolvable:$true] %s790_s6 }
  0x95   : > { %s40437_s14 = sld [smem:[#allocation156_spill]] }
  0x9b   : > { %s34061_s30 = scalar_lea.hbm %s40437_s14, 384 }
  0x9c   : > { %p34062_p3 = scmp.ne.s32.totalorder %s40437_s14, %s34061_s30  ;;  %p34068_p0 = scmp.lt.u32.totalorder %s34061_s30, %s40437_s14 }
  0x9e   : > { %p34064_p4 = pnand %p34062_p3, %p34769_p8 }
  0xa0   : > { %p34065_p13 = pneg %p34064_p4 }
  0xa2   : > { %p34070_p1 = pnand %p34068_p0, %p34065_p13 }
  0xa4   : > { %34073 = shalt.err (!%p34070_p1)
}
  0xa5   : > { %s34074_s1 = scalar_lea.vmem %s765_s8, 384  ;;  %p34082_p2 = scmp.lt.s32.totalorder %s765_s8, %s765_s8 }
  0xa6   : > { %p34075_p5 = scmp.ne.s32.totalorder %s765_s8, %s34074_s1  ;;  %p34083_p10 = scmp.lt.s32.totalorder %s34074_s1, %s34074_s1 }
  0xa8   : > { %p34077_p7 = pnand %p34075_p5, %p34769_p8  ;;  %p34084_p11 = por %p34083_p10, %p34082_p2 }
  0xaa   : > { %p34078_p9 = pneg %p34077_p7 }
  0xac   : > { %p34085_p12 = pnand %p34084_p11, %p34078_p9 }
  0xae   : > { %34088 = shalt.err (!%p34085_p12)
}
  0xaf   : > { %33832 = dma.hbm_to_vmem [thread:$0]  (!%p34753_p6), %s40437_s14, 384, %s765_s8, [#allocation21], %s34563_s27, %s34563_s27, %s34564_s3  }
  0xb0   : > { %s34089_s5 = scalar_lea.hbm %s40222_s16, 256 }
  0xb1   : > { %p34090_p3 = scmp.ne.s32.totalorder %s40222_s16, %s34089_s5  ;;  %p34096_p0 = scmp.lt.u32.totalorder %s34089_s5, %s40222_s16 }
  0xb3   : > { %p34092_p4 = pnand %p34090_p3, %p34769_p8 }
  0xb5   : > { %p34093_p13 = pneg %p34092_p4 }
  0xb7   : > { %p34098_p1 = pnand %p34096_p0, %p34093_p13 }
  0xb9   : > { %34101 = shalt.err (!%p34098_p1)
}
  0xba   : > { %s34102_s10 = scalar_lea.vmem %s791_s6, 256  ;;  %p34110_p2 = scmp.lt.s32.totalorder %s791_s6, %s791_s6 }
  0xbb   : > { %p34103_p5 = scmp.ne.s32.totalorder %s791_s6, %s34102_s10  ;;  %p34111_p10 = scmp.lt.s32.totalorder %s34102_s10, %s34102_s10 }
  0xbd   : > { %p34105_p7 = pnand %p34103_p5, %p34769_p8  ;;  %p34112_p11 = por %p34111_p10, %p34110_p2 }
  0xbf   : > { %p34106_p9 = pneg %p34105_p7 }
  0xc1   : > { %p34113_p12 = pnand %p34112_p11, %p34106_p9 }
  0xc3   : > { %34116 = shalt.err (!%p34113_p12)
}
  0xc4   : > { %33838 = dma.hbm_to_vmem [thread:$0]  (!%p34753_p6), %s40222_s16, 256, %s791_s6, [#allocation24], %s34563_s27, %s34563_s27, %s34564_s3  }
  0xc5   : > { %s34567_s21 = smov [#allocation26]   ;;  %s34568_s12 = smov [#allocation29]  }
  0xc6   : > { %s819_s7 = sshll.u32 %s34567_s21, 4  ;;  %s848_s18 = sshll.u32 %s34568_s12, 4  ;;  %s820_s7 = int_to_ptr.vmem [resolvable:$true] %s819_s7  ;;  %s849_s18 = int_to_ptr.vmem [resolvable:$true] %s848_s18 }
  0xc7   : > { %s34117_s0 = scalar_lea.hbm %s40225_s19, 256 }
  0xc8   : > { %p34118_p3 = scmp.ne.s32.totalorder %s40225_s19, %s34117_s0  ;;  %p34124_p0 = scmp.lt.u32.totalorder %s34117_s0, %s40225_s19 }
  0xca   : > { %p34120_p4 = pnand %p34118_p3, %p34769_p8 }
  0xcc   : > { %p34121_p13 = pneg %p34120_p4 }
  0xce   : > { %p34126_p1 = pnand %p34124_p0, %p34121_p13 }
  0xd0   : > { %34129 = shalt.err (!%p34126_p1)
}
  0xd1   : > { %s34130_s6 = scalar_lea.vmem %s820_s7, 256  ;;  %p34138_p2 = scmp.lt.s32.totalorder %s820_s7, %s820_s7 }
  0xd2   : > { %p34131_p5 = scmp.ne.s32.totalorder %s820_s7, %s34130_s6  ;;  %p34139_p10 = scmp.lt.s32.totalorder %s34130_s6, %s34130_s6 }
  0xd4   : > { %p34133_p7 = pnand %p34131_p5, %p34769_p8  ;;  %p34140_p11 = por %p34139_p10, %p34138_p2 }
  0xd6   : > { %p34134_p9 = pneg %p34133_p7 }
  0xd8   : > { %p34141_p12 = pnand %p34140_p11, %p34134_p9 }
  0xda   : > { %34144 = shalt.err (!%p34141_p12)
}
  0xdb   : > { %33844 = dma.hbm_to_vmem [thread:$0]  (!%p34753_p6), %s40225_s19, 256, %s820_s7, [#allocation27], %s34563_s27, %s34563_s27, %s34564_s3  }
  0xdc   : > { %s34145_s28 = scalar_lea.hbm %s40228_s22, 256 }
  0xdd   : > { %p34146_p3 = scmp.ne.s32.totalorder %s40228_s22, %s34145_s28  ;;  %p34152_p0 = scmp.lt.u32.totalorder %s34145_s28, %s40228_s22 }
  0xdf   : > { %p34148_p4 = pnand %p34146_p3, %p34769_p8 }
  0xe1   : > { %p34149_p13 = pneg %p34148_p4 }
  0xe3   : > { %p34154_p1 = pnand %p34152_p0, %p34149_p13 }
  0xe5   : > { %34157 = shalt.err (!%p34154_p1)
}
  0xe6   : > { %s34158_s8 = scalar_lea.vmem %s849_s18, 256  ;;  %p34166_p2 = scmp.lt.s32.totalorder %s849_s18, %s849_s18 }
  0xe7   : > { %p34159_p5 = scmp.ne.s32.totalorder %s849_s18, %s34158_s8  ;;  %p34167_p10 = scmp.lt.s32.totalorder %s34158_s8, %s34158_s8 }
  0xe9   : > { %p34161_p7 = pnand %p34159_p5, %p34769_p8  ;;  %p34168_p11 = por %p34167_p10, %p34166_p2 }
  0xeb   : > { %p34162_p9 = pneg %p34161_p7 }
  0xed   : > { %p34169_p12 = pnand %p34168_p11, %p34162_p9 }
  0xef   : > { %34172 = shalt.err (!%p34169_p12)
}
  0xf0   : > { %33850 = dma.hbm_to_vmem [thread:$0]  (!%p34753_p6), %s40228_s22, 256, %s849_s18, [#allocation30], %s34563_s27, %s34563_s27, %s34564_s3  }
  0xf1   : > { %s34569_s1 = smov [#allocation32]   ;;  %s34570_s12 = smov [#allocation5]  }
  0xf2   : > { %s874_s21 = sshll.u32 %s34569_s1, 4  ;;  %s635_s5 = sshll.u32 %s34570_s12, 4  ;;  %s875_s21 = int_to_ptr.vmem [resolvable:$true] %s874_s21  ;;  %s636_s5 = int_to_ptr.vmem [resolvable:$true] %s635_s5 }
  0xf3   : > { %s34173_s30 = scalar_lea.hbm %s40230_s24, 256 }
  0xf4   : > { %p34174_p3 = scmp.ne.s32.totalorder %s40230_s24, %s34173_s30  ;;  %p34180_p0 = scmp.lt.u32.totalorder %s34173_s30, %s40230_s24 }
  0xf6   : > { %p34176_p4 = pnand %p34174_p3, %p34769_p8 }
  0xf8   : > { %p34177_p13 = pneg %p34176_p4 }
  0xfa   : > { %p34182_p1 = pnand %p34180_p0, %p34177_p13 }
  0xfc   : > { %34185 = shalt.err (!%p34182_p1)
}
  0xfd   : > { %s34186_s18 = scalar_lea.vmem %s875_s21, 256  ;;  %p34194_p2 = scmp.lt.s32.totalorder %s875_s21, %s875_s21 }
  0xfe   : > { %p34187_p5 = scmp.ne.s32.totalorder %s875_s21, %s34186_s18  ;;  %p34195_p10 = scmp.lt.s32.totalorder %s34186_s18, %s34186_s18 }
 0x100   : > { %p34189_p7 = pnand %p34187_p5, %p34769_p8  ;;  %p34196_p11 = por %p34195_p10, %p34194_p2 }
 0x102   : > { %p34190_p9 = pneg %p34189_p7 }
 0x104   : > { %p34197_p12 = pnand %p34196_p11, %p34190_p9 }
 0x106   : > { %34200 = shalt.err (!%p34197_p12)
}
 0x107   : > { %33856 = dma.hbm_to_vmem [thread:$0]  (!%p34753_p6), %s40230_s24, 256, %s875_s21, [#allocation33], %s34563_s27, %s34563_s27, %s34564_s3  }
 0x108   : > { %s40438_s0 = sld [smem:[#allocation144_spill]] }
 0x10e   : > { %s34201_s30 = scalar_lea.hbm %s40438_s0, 2048 }
 0x10f   : > { %p34202_p3 = scmp.ne.s32.totalorder %s40438_s0, %s34201_s30  ;;  %p34208_p0 = scmp.lt.u32.totalorder %s34201_s30, %s40438_s0 }
 0x111   : > { %p34204_p4 = pnand %p34202_p3, %p34769_p8 }
 0x113   : > { %p34205_p13 = pneg %p34204_p4 }
 0x115   : > { %p34210_p1 = pnand %p34208_p0, %p34205_p13 }
 0x117   : > { %34213 = shalt.err (!%p34210_p1)
}
 0x118   : > { %s34214_s18 = scalar_lea.vmem %s636_s5, 2048  ;;  %p34222_p2 = scmp.lt.s32.totalorder %s636_s5, %s636_s5 }
 0x119   : > { %p34215_p5 = scmp.ne.s32.totalorder %s636_s5, %s34214_s18  ;;  %p34223_p10 = scmp.lt.s32.totalorder %s34214_s18, %s34214_s18 }
 0x11b   : > { %p34217_p7 = pnand %p34215_p5, %p34769_p8  ;;  %p34224_p11 = por %p34223_p10, %p34222_p2 }
 0x11d   : > { %p34218_p9 = pneg %p34217_p7 }
 0x11f   : > { %p34225_p12 = pnand %p34224_p11, %p34218_p9 }
 0x121   : > { %34228 = shalt.err (!%p34225_p12)
}
 0x122   : > { %33805 = dma.hbm_to_vmem [thread:$0]  (!%p34753_p6), %s40438_s0, 2048, %s636_s5, [#allocation6], %s34563_s27, %s34563_s27, %s34564_s3  }
 0x123   : > { %s34571_s1 = smov [#allocation10]   ;;  %s34572_s28 = smov [#allocation13]  }
 0x124   : > { %s661_s12 = sshll.u32 %s34571_s1, 4  ;;  %s687_s30 = sshll.u32 %s34572_s28, 4  ;;  %s662_s12 = int_to_ptr.vmem [resolvable:$true] %s661_s12  ;;  %s688_s30 = int_to_ptr.vmem [resolvable:$true] %s687_s30 }
 0x125   : > { %s40439_s8 = sld [smem:[#allocation146_spill]] }
 0x12b   : > { %s34229_s7 = scalar_lea.hbm %s40439_s8, 256 }
 0x12c   : > { %p34230_p3 = scmp.ne.s32.totalorder %s40439_s8, %s34229_s7  ;;  %p34236_p0 = scmp.lt.u32.totalorder %s34229_s7, %s40439_s8 }
 0x12e   : > { %p34232_p4 = pnand %p34230_p3, %p34769_p8 }
 0x130   : > { %p34233_p13 = pneg %p34232_p4 }
 0x132   : > { %p34238_p1 = pnand %p34236_p0, %p34233_p13 }
 0x134   : > { %34241 = shalt.err (!%p34238_p1)
}
 0x135   : > { %s34242_s5 = scalar_lea.vmem %s662_s12, 256  ;;  %p34250_p2 = scmp.lt.s32.totalorder %s662_s12, %s662_s12 }
 0x136   : > { %p34243_p5 = scmp.ne.s32.totalorder %s662_s12, %s34242_s5  ;;  %p34251_p10 = scmp.lt.s32.totalorder %s34242_s5, %s34242_s5 }
 0x138   : > { %p34245_p7 = pnand %p34243_p5, %p34769_p8  ;;  %p34252_p11 = por %p34251_p10, %p34250_p2 }
 0x13a   : > { %p34246_p9 = pneg %p34245_p7 }
 0x13c   : > { %p34253_p12 = pnand %p34252_p11, %p34246_p9 }
 0x13e   : > { %34256 = shalt.err (!%p34253_p12)
}
 0x13f   : > { %33811 = dma.hbm_to_vmem [thread:$0]  (!%p34753_p6), %s40439_s8, 256, %s662_s12, [#allocation9], %s34563_s27, %s34563_s27, %s34564_s3  }
 0x140   : > { %s40440_s28 = sld [smem:[#allocation148_spill]] }
 0x146   : > { %s40441_s11 = smov %s40440_s28  ;;  %s34257_s10 = scalar_lea.hbm %s40440_s28, 512 }
 0x147   : > { %p34258_p3 = scmp.ne.s32.totalorder %s40441_s11, %s34257_s10  ;;  %p34264_p0 = scmp.lt.u32.totalorder %s34257_s10, %s40441_s11 }
 0x149   : > { %p34260_p4 = pnand %p34258_p3, %p34769_p8 }
 0x14b   : > { %p34261_p13 = pneg %p34260_p4 }
 0x14d   : > { %p34266_p1 = pnand %p34264_p0, %p34261_p13 }
 0x14f   : > { %34269 = shalt.err (!%p34266_p1)
}
 0x150   : > { %s34270_s14 = scalar_lea.vmem %s688_s30, 512  ;;  %p34278_p2 = scmp.lt.s32.totalorder %s688_s30, %s688_s30 }
 0x151   : > { %p34271_p5 = scmp.ne.s32.totalorder %s688_s30, %s34270_s14  ;;  %p34279_p10 = scmp.lt.s32.totalorder %s34270_s14, %s34270_s14 }
 0x153   : > { %p34273_p7 = pnand %p34271_p5, %p34769_p8  ;;  %p34280_p11 = por %p34279_p10, %p34278_p2 }
 0x155   : > { %p34274_p9 = pneg %p34273_p7 }
 0x157   : > { %p34281_p12 = pnand %p34280_p11, %p34274_p9 }
 0x159   : > { %34284 = shalt.err (!%p34281_p12)
}
 0x15a   : > { %33817 = dma.hbm_to_vmem [thread:$0]  (!%p34753_p6), %s40441_s11, 512, %s688_s30, [#allocation12], %s34563_s27, %s34563_s27, %s34564_s3  }
 0x15b   : > { %s34573_s6 = smov [#allocation16]   ;;  %s34574_s28 = smov [#allocation19]  }
 0x15c   : > { %s719_s1 = sshll.u32 %s34573_s6, 4  ;;  %s751_s10 = sshll.u32 %s34574_s28, 4  ;;  %s720_s1 = int_to_ptr.vmem [resolvable:$true] %s719_s1  ;;  %s752_s10 = int_to_ptr.vmem [resolvable:$true] %s751_s10 }
 0x15d   : > { %s40442_s21 = sld [smem:[#allocation152_spill]] }
 0x163   : > { %s34285_s5 = scalar_lea.hbm %s40442_s21, 512 }
 0x164   : > { %p34286_p3 = scmp.ne.s32.totalorder %s40442_s21, %s34285_s5  ;;  %p34292_p0 = scmp.lt.u32.totalorder %s34285_s5, %s40442_s21 }
 0x166   : > { %p34288_p4 = pnand %p34286_p3, %p34769_p8 }
 0x168   : > { %p34289_p13 = pneg %p34288_p4 }
 0x16a   : > { %p34294_p1 = pnand %p34292_p0, %p34289_p13 }
 0x16c   : > { %34297 = shalt.err (!%p34294_p1)
}
 0x16d   : > { %s34298_s30 = scalar_lea.vmem %s720_s1, 512  ;;  %p34306_p2 = scmp.lt.s32.totalorder %s720_s1, %s720_s1 }
 0x16e   : > { %p34299_p5 = scmp.ne.s32.totalorder %s720_s1, %s34298_s30  ;;  %p34307_p10 = scmp.lt.s32.totalorder %s34298_s30, %s34298_s30 }
 0x170   : > { %p34301_p7 = pnand %p34299_p5, %p34769_p8  ;;  %p34308_p11 = por %p34307_p10, %p34306_p2 }
 0x172   : > { %p34302_p9 = pneg %p34301_p7 }
 0x174   : > { %p34309_p12 = pnand %p34308_p11, %p34302_p9 }
 0x176   : > { %34312 = shalt.err (!%p34309_p12)
}
 0x177   : > { %33823 = dma.hbm_to_vmem [thread:$0]  (!%p34753_p6), %s40442_s21, 512, %s720_s1, [#allocation15], %s34563_s27, %s34563_s27, %s34564_s3  }
 0x178   : > { %s34313_s28 = scalar_lea.hbm %s40219_s13, 512 }
 0x179   : > { %p34314_p3 = scmp.ne.s32.totalorder %s40219_s13, %s34313_s28  ;;  %p34320_p0 = scmp.lt.u32.totalorder %s34313_s28, %s40219_s13 }
 0x17b   : > { %p34316_p4 = pnand %p34314_p3, %p34769_p8 }
 0x17d   : > { %p34317_p13 = pneg %p34316_p4 }
 0x17f   : > { %p34322_p1 = pnand %p34320_p0, %p34317_p13 }
 0x181   : > { %34325 = shalt.err (!%p34322_p1)
}
 0x182   : > { %s34326_s12 = scalar_lea.vmem %s752_s10, 512  ;;  %p34334_p2 = scmp.lt.s32.totalorder %s752_s10, %s752_s10 }
 0x183   : > { %p34327_p5 = scmp.ne.s32.totalorder %s752_s10, %s34326_s12  ;;  %p34335_p10 = scmp.lt.s32.totalorder %s34326_s12, %s34326_s12 }
 0x185   : > { %p34329_p7 = pnand %p34327_p5, %p34769_p8  ;;  %p34336_p11 = por %p34335_p10, %p34334_p2 }
 0x187   : > { %p34330_p9 = pneg %p34329_p7 }
 0x189   : > { %p34337_p12 = pnand %p34336_p11, %p34330_p9 }
 0x18b   : > { %34340 = shalt.err (!%p34337_p12)
}
 0x18c   : > { %33829 = dma.hbm_to_vmem [thread:$0]  (!%p34753_p6), %s40219_s13, 512, %s752_s10, [#allocation18], %s34563_s27, %s34563_s27, %s34564_s3  }
 0x18d   : > { %s34575_s0 = smov [#allocation22]   ;;  %s34576_s9 = smov [#allocation25]  }
 0x18e   : > { %s777_s8 = sshll.u32 %s34575_s0, 4  ;;  %s803_s6 = sshll.u32 %s34576_s9, 4  ;;  %s778_s8 = int_to_ptr.vmem [resolvable:$true] %s777_s8  ;;  %s804_s6 = int_to_ptr.vmem [resolvable:$true] %s803_s6 }
 0x18f   : > { %s34341_s18 = scalar_lea.hbm %s40221_s15, 256 }
 0x190   : > { %p34342_p3 = scmp.ne.s32.totalorder %s40221_s15, %s34341_s18  ;;  %p34348_p0 = scmp.lt.u32.totalorder %s34341_s18, %s40221_s15 }
 0x192   : > { %p34344_p4 = pnand %p34342_p3, %p34769_p8 }
 0x194   : > { %p34345_p13 = pneg %p34344_p4 }
 0x196   : > { %p34350_p1 = pnand %p34348_p0, %p34345_p13 }
 0x198   : > { %34353 = shalt.err (!%p34350_p1)
}
 0x199   : > { %s34354_s10 = scalar_lea.vmem %s778_s8, 256  ;;  %p34362_p2 = scmp.lt.s32.totalorder %s778_s8, %s778_s8 }
 0x19a   : > { %p34355_p5 = scmp.ne.s32.totalorder %s778_s8, %s34354_s10  ;;  %p34363_p10 = scmp.lt.s32.totalorder %s34354_s10, %s34354_s10 }
 0x19c   : > { %p34357_p7 = pnand %p34355_p5, %p34769_p8  ;;  %p34364_p11 = por %p34363_p10, %p34362_p2 }
 0x19e   : > { %p34358_p9 = pneg %p34357_p7 }
 0x1a0   : > { %p34365_p12 = pnand %p34364_p11, %p34358_p9 }
 0x1a2   : > { %34368 = shalt.err (!%p34365_p12)
}
 0x1a3   : > { %33835 = dma.hbm_to_vmem [thread:$0]  (!%p34753_p6), %s40221_s15, 256, %s778_s8, [#allocation21], %s34563_s27, %s34563_s27, %s34564_s3  }
 0x1a4   : > { %s34369_s7 = scalar_lea.hbm %s40223_s17, 384 }
 0x1a5   : > { %p34370_p3 = scmp.ne.s32.totalorder %s40223_s17, %s34369_s7  ;;  %p34376_p0 = scmp.lt.u32.totalorder %s34369_s7, %s40223_s17 }
 0x1a7   : > { %p34372_p4 = pnand %p34370_p3, %p34769_p8 }
 0x1a9   : > { %p34373_p13 = pneg %p34372_p4 }
 0x1ab   : > { %p34378_p1 = pnand %p34376_p0, %p34373_p13 }
 0x1ad   : > { %34381 = shalt.err (!%p34378_p1)
}
 0x1ae   : > { %s34382_s1 = scalar_lea.vmem %s804_s6, 384  ;;  %p34390_p2 = scmp.lt.s32.totalorder %s804_s6, %s804_s6 }
 0x1af   : > { %p34383_p5 = scmp.ne.s32.totalorder %s804_s6, %s34382_s1  ;;  %p34391_p10 = scmp.lt.s32.totalorder %s34382_s1, %s34382_s1 }
 0x1b1   : > { %p34385_p7 = pnand %p34383_p5, %p34769_p8  ;;  %p34392_p11 = por %p34391_p10, %p34390_p2 }
 0x1b3   : > { %p34386_p9 = pneg %p34385_p7 }
 0x1b5   : > { %p34393_p12 = pnand %p34392_p11, %p34386_p9 }
 0x1b7   : > { %34396 = shalt.err (!%p34393_p12)
}
 0x1b8   : > { %33841 = dma.hbm_to_vmem [thread:$0]  (!%p34753_p6), %s40223_s17, 384, %s804_s6, [#allocation24], %s34563_s27, %s34563_s27, %s34564_s3  }
 0x1b9   : > { %s34577_s30 = smov [#allocation28]   ;;  %s34578_s9 = smov [#allocation31]  }
 0x1ba   : > { %s832_s0 = sshll.u32 %s34577_s30, 4  ;;  %s861_s28 = sshll.u32 %s34578_s9, 4  ;;  %s833_s0 = int_to_ptr.vmem [resolvable:$true] %s832_s0  ;;  %s862_s28 = int_to_ptr.vmem [resolvable:$true] %s861_s28 }
 0x1bb   : > { %s34397_s5 = scalar_lea.hbm %s40226_s20, 256 }
 0x1bc   : > { %p34398_p3 = scmp.ne.s32.totalorder %s40226_s20, %s34397_s5  ;;  %p34404_p0 = scmp.lt.u32.totalorder %s34397_s5, %s40226_s20 }
 0x1be   : > { %p34400_p4 = pnand %p34398_p3, %p34769_p8 }
 0x1c0   : > { %p34401_p13 = pneg %p34400_p4 }
 0x1c2   : > { %p34406_p1 = pnand %p34404_p0, %p34401_p13 }
 0x1c4   : > { %34409 = shalt.err (!%p34406_p1)
}
 0x1c5   : > { %s34410_s6 = scalar_lea.vmem %s833_s0, 256  ;;  %p34418_p2 = scmp.lt.s32.totalorder %s833_s0, %s833_s0 }
 0x1c6   : > { %p34411_p5 = scmp.ne.s32.totalorder %s833_s0, %s34410_s6  ;;  %p34419_p10 = scmp.lt.s32.totalorder %s34410_s6, %s34410_s6 }
 0x1c8   : > { %p34413_p7 = pnand %p34411_p5, %p34769_p8  ;;  %p34420_p11 = por %p34419_p10, %p34418_p2 }
 0x1ca   : > { %p34414_p9 = pneg %p34413_p7 }
 0x1cc   : > { %p34421_p12 = pnand %p34420_p11, %p34414_p9 }
 0x1ce   : > { %34424 = shalt.err (!%p34421_p12)
}
 0x1cf   : > { %33847 = dma.hbm_to_vmem [thread:$0]  (!%p34753_p6), %s40226_s20, 256, %s833_s0, [#allocation27], %s34563_s27, %s34563_s27, %s34564_s3  }
 0x1d0   : > { %s34425_s18 = scalar_lea.hbm %s40229_s23, 256 }
 0x1d1   : > { %p34426_p3 = scmp.ne.s32.totalorder %s40229_s23, %s34425_s18  ;;  %p34432_p0 = scmp.lt.u32.totalorder %s34425_s18, %s40229_s23 }
 0x1d3   : > { %p34428_p4 = pnand %p34426_p3, %p34769_p8 }
 0x1d5   : > { %p34429_p13 = pneg %p34428_p4 }
 0x1d7   : > { %p34434_p1 = pnand %p34432_p0, %p34429_p13 }
 0x1d9   : > { %34437 = shalt.err (!%p34434_p1)
}
 0x1da   : > { %s34438_s8 = scalar_lea.vmem %s862_s28, 256  ;;  %p34446_p2 = scmp.lt.s32.totalorder %s862_s28, %s862_s28 }
 0x1db   : > { %p34439_p5 = scmp.ne.s32.totalorder %s862_s28, %s34438_s8  ;;  %p34447_p10 = scmp.lt.s32.totalorder %s34438_s8, %s34438_s8 }
 0x1dd   : > { %p34441_p7 = pnand %p34439_p5, %p34769_p8  ;;  %p34448_p11 = por %p34447_p10, %p34446_p2 }
 0x1df   : > { %p34442_p9 = pneg %p34441_p7 }
 0x1e1   : > { %p34449_p12 = pnand %p34448_p11, %p34442_p9 }
 0x1e3   : > { %34452 = shalt.err (!%p34449_p12)
}
 0x1e4   : > { %33853 = dma.hbm_to_vmem [thread:$0]  (!%p34753_p6), %s40229_s23, 256, %s862_s28, [#allocation30], %s34563_s27, %s34563_s27, %s34564_s3  }
 0x1e5   : > { %s34579_s10 = smov [#allocation34]   ;;  %s34453_s18 = scalar_lea.hbm %s40231_s25, 256 }
 0x1e6   : > { %s887_s30 = sshll.u32 %s34579_s10, 4  ;;  %p34454_p3 = scmp.ne.s32.totalorder %s40231_s25, %s34453_s18  ;;  %s888_s30 = int_to_ptr.vmem [resolvable:$true] %s887_s30 }
 0x1e7   : > { %p34460_p0 = scmp.lt.u32.totalorder %s34453_s18, %s40231_s25 }
 0x1e8   : > { %p34456_p4 = pnand %p34454_p3, %p34769_p8 }
 0x1ea   : > { %p34457_p13 = pneg %p34456_p4 }
 0x1ec   : > { %p34462_p1 = pnand %p34460_p0, %p34457_p13 }
 0x1ee   : > { %34465 = shalt.err (!%p34462_p1)
}
 0x1ef   : > { %s34466_s28 = scalar_lea.vmem %s888_s30, 256  ;;  %p34474_p2 = scmp.lt.s32.totalorder %s888_s30, %s888_s30 }
 0x1f0   : > { %p34467_p5 = scmp.ne.s32.totalorder %s888_s30, %s34466_s28  ;;  %p34475_p10 = scmp.lt.s32.totalorder %s34466_s28, %s34466_s28 }
 0x1f2   : > { %p34469_p7 = pnand %p34467_p5, %p34769_p8  ;;  %p34476_p11 = por %p34475_p10, %p34474_p2 }
 0x1f4   : > { %p34470_p9 = pneg %p34469_p7 }
 0x1f6   : > { %p34477_p12 = pnand %p34476_p11, %p34470_p9 }
 0x1f8   : > { %34480 = shalt.err (!%p34477_p12)
}
 0x1f9   : > { %33859 = dma.hbm_to_vmem [thread:$0]  (!%p34753_p6), %s40231_s25, 256, %s888_s30, [#allocation33], %s34563_s27, %s34563_s27, %s34564_s3  }
 0x1fa   : > { %p40443_p3 = scmp.ne.s32.totalorder %s40430_s4, 0 }
 0x1fc   : > { %903 = sbr.rel (%p40443_p3) target bundleno = 6123 (0x17eb), region = 124 }
 0x203   : > { %s40444_s26 = sld [smem:[#allocation48_spill]] }
 0x209   : > { %p40445_p8 = scmp.eq.s32.totalorder %s40444_s26, 0 }
 0x20b   : > { %34512 = dma.done.wait (%p40445_p8), [#allocation6], 2048   ;;  %p40446_p4 = pmov %p40445_p8 }
 0x20d   : > { %34514 = vsyncadd (%p40446_p4), [#allocation6], 4294965248  ;;  %p40447_p13 = pmov %p40446_p4 }
 0x20e   : > { %p40448_p0 = pmov %p40446_p4 }
 0x20f   : > { %34516 = dma.done.wait (%p40447_p13), [#allocation9], 768  }
 0x210   : > { %34518 = vsyncadd (%p40448_p0), [#allocation9], 4294966528  ;;  %p40449_p1 = pmov %p40448_p0 }
 0x211   : > { %p40450_p6 = pmov %p40448_p0 }
 0x212   : > { %34520 = dma.done.wait (%p40449_p1), [#allocation12], 768  }
 0x213   : > { %34522 = vsyncadd (%p40450_p6), [#allocation12], 4294966528  ;;  %p40451_p5 = pmov %p40448_p0 }
 0x214   : > { %p40452_p7 = pmov %p40448_p0 }
 0x215   : > { %34524 = dma.done.wait (%p40451_p5), [#allocation15], 1024  }
 0x216   : > { %34526 = vsyncadd (%p40452_p7), [#allocation15], 4294966272  ;;  %p40453_p9 = pmov %p40448_p0 }
 0x217   : > { %p40454_p2 = pmov %p40448_p0 }
 0x218   : > { %34528 = dma.done.wait (%p40453_p9), [#allocation18], 1024  }
 0x219   : > { %34530 = vsyncadd (%p40454_p2), [#allocation18], 4294966272  ;;  %p40455_p10 = pmov %p40448_p0 }
 0x21a   : > { %p40456_p11 = pmov %p40448_p0 }
 0x21b   : > { %34532 = dma.done.wait (%p40455_p10), [#allocation21], 640  }
 0x21c   : > { %34534 = vsyncadd (%p40456_p11), [#allocation21], 4294966656  ;;  %p40457_p12 = pmov %p40448_p0 }
 0x21d   : > { %p40458_p3 = pmov %p40448_p0 }
 0x21e   : > { %34536 = dma.done.wait (%p40457_p12), [#allocation24], 640  }
 0x21f   : > { %34538 = vsyncadd (%p40458_p3), [#allocation24], 4294966656  ;;  %p40459_p8 = pmov %p40448_p0 }
 0x220   : > { %p40460_p4 = pmov %p40448_p0 }
 0x221   : > { %34540 = dma.done.wait (%p40459_p8), [#allocation27], 512  }
 0x222   : > { %34542 = vsyncadd (%p40460_p4), [#allocation27], 4294966784  ;;  %p40461_p13 = pmov %p40448_p0 }
 0x224   : > { %34544 = dma.done.wait (%p40461_p13), [#allocation30], 512  }
 0x225   : > { %34546 = vsyncadd (%p40448_p0), [#allocation30], 4294966784  ;;  %p40462_p1 = pmov %p40448_p0 }
 0x226   : > { %p40463_p6 = pmov %p40448_p0 }
 0x227   : > { %34548 = dma.done.wait (%p40462_p1), [#allocation33], 512  }
 0x228   : > { %34550 = vsyncadd (%p40463_p6), [#allocation33], 4294966784  ;;  %p40464_p5 = scmp.ne.s32.totalorder %s40444_s26, 0 }
 0x229   : > { %vm1055_vm0 = vcmask (!%p40464_p5), 130048   ;;  %v1039_v0 = vld [vmem:[#allocation5] sm:$0xff] (!%p40464_p5)  ;;  %v1040_v1 = vld [vmem:[#allocation5 + $0x8] sm:$0xff] (!%p40464_p5)  ;;  %v1041_v2 = vld [vmem:[#allocation5 + $0x10] sm:$0xff] (!%p40464_p5)  ;;  %vm1105_vm1 = vcmask (!%p40464_p5), 0   ;;  %v34580_v3 = vmov (!%p40464_p5), 0.0  }
 0x22a   : > { %1038 = sbr.rel (%p40464_p5) target bundleno = 579 (0x243), region = 204  ;;  %1056 = vst.msk [vmem:[#allocation35] sm:$0xff] (!%p40464_p5), %vm1055_vm0, %v34580_v3  ;;  %1057 = vst.msk [vmem:[#allocation35 + $0x8] sm:$0xff] (!%p40464_p5), %vm1055_vm0, %v34580_v3  ;;  %v1042_v4 = vld [vmem:[#allocation5 + $0x18] sm:$0xff] (!%p40464_p5)  ;;  %v1043_v5 = vld [vmem:[#allocation5 + $0x20] sm:$0xff] (!%p40464_p5)  ;;  %v34581_v10 = vmov (!%p40464_p5), 1.0  }
 0x22b   : > { %1058 = vst.msk [vmem:[#allocation35 + $0x10] sm:$0xff] (!%p40464_p5), %vm1055_vm0, %v34580_v3  ;;  %1059 = vst.msk [vmem:[#allocation35 + $0x18] sm:$0xff] (!%p40464_p5), %vm1055_vm0, %v34580_v3  ;;  %v1044_v6 = vld [vmem:[#allocation5 + $0x28] sm:$0xff] (!%p40464_p5)  ;;  %v1045_v7 = vld [vmem:[#allocation5 + $0x30] sm:$0xff] (!%p40464_p5) }
 0x22c   : > { %1060 = vst.msk [vmem:[#allocation35 + $0x20] sm:$0xff] (!%p40464_p5), %vm1055_vm0, %v34580_v3  ;;  %1061 = vst.msk [vmem:[#allocation35 + $0x28] sm:$0xff] (!%p40464_p5), %vm1055_vm0, %v34580_v3  ;;  %v1046_v8 = vld [vmem:[#allocation5 + $0x38] sm:$0xff] (!%p40464_p5)  ;;  %v1047_v9 = vld [vmem:[#allocation5 + $0x40] sm:$0xff] (!%p40464_p5) }
 0x22d   : > { %1062 = vst.msk [vmem:[#allocation35 + $0x30] sm:$0xff] (!%p40464_p5), %vm1055_vm0, %v34580_v3  ;;  %1063 = vst.msk [vmem:[#allocation35 + $0x38] sm:$0xff] (!%p40464_p5), %vm1055_vm0, %v34580_v3  ;;  %v1048_v11 = vld [vmem:[#allocation5 + $0x48] sm:$0xff] (!%p40464_p5)  ;;  %v1049_v12 = vld [vmem:[#allocation5 + $0x50] sm:$0xff] (!%p40464_p5) }
 0x22e   : > { %1064 = vst.msk [vmem:[#allocation35 + $0x40] sm:$0xff] (!%p40464_p5), %vm1055_vm0, %v34580_v3  ;;  %1065 = vst.msk [vmem:[#allocation35 + $0x48] sm:$0xff] (!%p40464_p5), %vm1055_vm0, %v34580_v3  ;;  %v1050_v13 = vld [vmem:[#allocation5 + $0x58] sm:$0xff] (!%p40464_p5)  ;;  %v1051_v14 = vld [vmem:[#allocation5 + $0x60] sm:$0xff] (!%p40464_p5) }
 0x22f   : > { %1066 = vst.msk [vmem:[#allocation35 + $0x50] sm:$0xff] (!%p40464_p5), %vm1055_vm0, %v34580_v3  ;;  %1067 = vst.msk [vmem:[#allocation35 + $0x58] sm:$0xff] (!%p40464_p5), %vm1055_vm0, %v34580_v3  ;;  %v1052_v15 = vld [vmem:[#allocation5 + $0x68] sm:$0xff] (!%p40464_p5)  ;;  %v1053_v16 = vld [vmem:[#allocation5 + $0x70] sm:$0xff] (!%p40464_p5) }
 0x230   : > { %1068 = vst.msk [vmem:[#allocation35 + $0x60] sm:$0xff] (!%p40464_p5), %vm1055_vm0, %v34580_v3  ;;  %1069 = vst.msk [vmem:[#allocation35 + $0x68] sm:$0xff] (!%p40464_p5), %vm1055_vm0, %v34580_v3  ;;  %v1054_v17 = vld [vmem:[#allocation5 + $0x78] sm:$0xff] (!%p40464_p5) }
 0x231   : > { %1070 = vst.msk [vmem:[#allocation35 + $0x70] sm:$0xff] %vm1055_vm0, %v34580_v3  ;;  %1071 = vst.msk [vmem:[#allocation35 + $0x78] sm:$0xff] %vm1055_vm0, %v34580_v3 }
 0x232   : > { %1072 = vst.msk [vmem:[#allocation2] sm:$0xff] %vm1055_vm0, %v1039_v0  ;;  %1089 = vst.msk [vmem:[#allocation2 + $0x80] sm:$0xff] %vm1055_vm0, %v1039_v0 }
 0x233   : > { %1073 = vst.msk [vmem:[#allocation2 + $0x8] sm:$0xff] %vm1055_vm0, %v1040_v1  ;;  %1090 = vst.msk [vmem:[#allocation2 + $0x88] sm:$0xff] %vm1055_vm0, %v1040_v1 }
 0x234   : > { %1074 = vst.msk [vmem:[#allocation2 + $0x10] sm:$0xff] %vm1055_vm0, %v1041_v2  ;;  %1091 = vst.msk [vmem:[#allocation2 + $0x90] sm:$0xff] %vm1055_vm0, %v1041_v2 }
 0x235   : > { %1075 = vst.msk [vmem:[#allocation2 + $0x18] sm:$0xff] %vm1055_vm0, %v1042_v4  ;;  %1092 = vst.msk [vmem:[#allocation2 + $0x98] sm:$0xff] %vm1055_vm0, %v1042_v4 }
 0x236   : > { %1076 = vst.msk [vmem:[#allocation2 + $0x20] sm:$0xff] %vm1055_vm0, %v1043_v5  ;;  %1093 = vst.msk [vmem:[#allocation2 + $0xa0] sm:$0xff] %vm1055_vm0, %v1043_v5 }
 0x237   : > { %1077 = vst.msk [vmem:[#allocation2 + $0x28] sm:$0xff] %vm1055_vm0, %v1044_v6  ;;  %1094 = vst.msk [vmem:[#allocation2 + $0xa8] sm:$0xff] %vm1055_vm0, %v1044_v6 }
 0x238   : > { %1106 = vst.msk [vmem:[#allocation3] sm:$0x1] %vm1105_vm1, %v34581_v10 }
 0x239   : > { %1078 = vst.msk [vmem:[#allocation2 + $0x30] sm:$0xff] %vm1055_vm0, %v1045_v7  ;;  %1095 = vst.msk [vmem:[#allocation2 + $0xb0] sm:$0xff] %vm1055_vm0, %v1045_v7 }
 0x23a   : > { %1079 = vst.msk [vmem:[#allocation2 + $0x38] sm:$0xff] %vm1055_vm0, %v1046_v8  ;;  %1096 = vst.msk [vmem:[#allocation2 + $0xb8] sm:$0xff] %vm1055_vm0, %v1046_v8 }
 0x23b   : > { %1080 = vst.msk [vmem:[#allocation2 + $0x40] sm:$0xff] %vm1055_vm0, %v1047_v9  ;;  %1097 = vst.msk [vmem:[#allocation2 + $0xc0] sm:$0xff] %vm1055_vm0, %v1047_v9 }
 0x23c   : > { %1081 = vst.msk [vmem:[#allocation2 + $0x48] sm:$0xff] %vm1055_vm0, %v1048_v11  ;;  %1098 = vst.msk [vmem:[#allocation2 + $0xc8] sm:$0xff] %vm1055_vm0, %v1048_v11 }
 0x23d   : > { %1082 = vst.msk [vmem:[#allocation2 + $0x50] sm:$0xff] %vm1055_vm0, %v1049_v12  ;;  %1099 = vst.msk [vmem:[#allocation2 + $0xd0] sm:$0xff] %vm1055_vm0, %v1049_v12 }
 0x23e   : > { %1083 = vst.msk [vmem:[#allocation2 + $0x58] sm:$0xff] %vm1055_vm0, %v1050_v13  ;;  %1100 = vst.msk [vmem:[#allocation2 + $0xd8] sm:$0xff] %vm1055_vm0, %v1050_v13 }
 0x23f   : > { %1084 = vst.msk [vmem:[#allocation2 + $0x60] sm:$0xff] %vm1055_vm0, %v1051_v14  ;;  %1101 = vst.msk [vmem:[#allocation2 + $0xe0] sm:$0xff] %vm1055_vm0, %v1051_v14 }
 0x240   : > { %1085 = vst.msk [vmem:[#allocation2 + $0x68] sm:$0xff] %vm1055_vm0, %v1052_v15  ;;  %1102 = vst.msk [vmem:[#allocation2 + $0xe8] sm:$0xff] %vm1055_vm0, %v1052_v15 }
 0x241   : > { %1086 = vst.msk [vmem:[#allocation2 + $0x70] sm:$0xff] %vm1055_vm0, %v1053_v16  ;;  %1103 = vst.msk [vmem:[#allocation2 + $0xf0] sm:$0xff] %vm1055_vm0, %v1053_v16 }
 0x242   : > { %1087 = vst.msk [vmem:[#allocation2 + $0x78] sm:$0xff] %vm1055_vm0, %v1054_v17  ;;  %1104 = vst.msk [vmem:[#allocation2 + $0xf8] sm:$0xff] %vm1055_vm0, %v1054_v17 }
 0x243 PF: > { %v1124_v18 = vld [vmem:[#allocation2] sm:$0xff]  ;;  %v1125_v19 = vld [vmem:[#allocation2 + $0x8] sm:$0xff]  ;;  %v1126_v20 = vld [vmem:[#allocation2 + $0x10] sm:$0xff]  ;;  %vm1146_vm2 = vcmask 130048   ;;  %vm2621_vm3 = vcmask 121856   ;;  %s1107_s4 = sld [smem:[#allocation4]] }
 0x244   : > { %v31914_v21 = vpack.c.bf16 %v1125_v19, %v1124_v18  ;;  %v1127_v22 = vld [vmem:[#allocation2 + $0x18] sm:$0xff]  ;;  %v35275_v23 = vld [vmem:[#allocation8] sm:$0xff]  ;;  %v35281_v25 = vld [vmem:[#allocation8 + $0x8] sm:$0xff]  ;;  %vm2634_vm4 = vcmask 1046528   ;;  %vm34582_vm5 = vmmov 1   ;;  %s40467_s3 = sld [smem:[#allocation150_spill]] }
 0x245   : > { %v31918_v24 = vpack.c.bf16 %v1127_v22, %v1126_v20  ;;  %29342 = vmatprep.mubr.msk.f32.mxu0 %vm1146_vm2, %v35275_v23  ;;  %29352 = vmatprep.mubr.msk.f32.mxu1 %vm1146_vm2, %v35275_v23  ;;  %v1128_v26 = vld [vmem:[#allocation2 + $0x20] sm:$0xff]  ;;  %v1129_v27 = vld [vmem:[#allocation2 + $0x28] sm:$0xff]  ;;  %v1130_v28 = vld [vmem:[#allocation2 + $0x30] sm:$0xff]  ;;  %s40498_s7 = sld [smem:[#allocation154_spill]]  ;;  %s40517_s1 = sld [smem:[#allocation155_spill]]  ;;  %vm5834_vm7 = vcmask 244736  }
 0x246   : > { %31915 = vmatprep.subr.bf16.mxu0 %v31914_v21  ;;  %v1131_v29 = vld [vmem:[#allocation2 + $0x38] sm:$0xff]  ;;  %v31922_v30 = vpack.c.bf16 %v1129_v27, %v1128_v26  ;;  %v1132_v32 = vld [vmem:[#allocation2 + $0x40] sm:$0xff]  ;;  %v1133_v33 = vld [vmem:[#allocation2 + $0x48] sm:$0xff]  ;;  %vm5841_vm10 = vcmask 1045504   ;;  %vm34584_vm14 = vmmov 0   ;;  %vm15326_vm15 = vcmask 1042432  }
 0x247   : > { %31919 = vmatprep.subr.bf16.mxu1 %v31918_v24  ;;  %31917 = vmatpush3.bf16.msra.mxu0 %v31914_v21  ;;  %v31926_v31 = vpack.c.bf16 %v1131_v29, %v1130_v28  ;;  %v1134_v34 = vld [vmem:[#allocation2 + $0x50] sm:$0xff]  ;;  %v1135_v36 = vld [vmem:[#allocation2 + $0x58] sm:$0xff]  ;;  %v31930_v37 = vpack.c.bf16 %v1133_v33, %v1132_v32  ;;  %v1136_v40 = vld [vmem:[#allocation2 + $0x60] sm:$0xff]  ;;  %s40573_s30 = sld [smem:[#allocation157_spill]]  ;;  %vm15316_vm1 = vcmask 89088   ;;  %s40582_s8 = sld [smem:[#allocation158_spill]] }
 0x248   : > { %31921 = vmatpush3.bf16.msra.mxu1 %v31918_v24  ;;  %v1142_v35 = vld [vmem:[#allocation8 + $0x10] sm:$0xff]  ;;  %31923 = vmatprep.subr.bf16.mxu0 %v31922_v30  ;;  %v31934_v38 = vpack.c.bf16 %v1135_v36, %v1134_v34  ;;  %v1143_v39 = vld [vmem:[#allocation8 + $0x18] sm:$0x3f]  ;;  %v1137_v41 = vld [vmem:[#allocation2 + $0x68] sm:$0xff]  ;;  %s40813_s6 = sld [smem:[#allocation48_spill]]  ;;  %s34588_s10 = smov [#allocation35]  }
 0x249   : > { %31927 = vmatprep.subr.bf16.mxu1 %v31926_v31  ;;  %v1138_v42 = vld [vmem:[#allocation2 + $0x70] sm:$0xff]  ;;  %v1139_v43 = vld [vmem:[#allocation2 + $0x78] sm:$0xff]  ;;  %v31938_v44 = vpack.c.bf16 %v1137_v41, %v1136_v40  ;;  %v1144_v46 = vld [vmem:[#allocation10] sm:$0xff]  ;;  %s26670_s9 = sshll.u32 %s34588_s10, 4  ;;  %s40167_s9 = int_to_ptr.vmem [resolvable:$true] %s26670_s9 }
 0x24a   : > { %29343 = vmatmul.mubr.msk.f32.vlgmr.msra.gmra.mrb[0].mxu0 %vm1146_vm2, %v35281_v25  ;;  %v31942_v45 = vpack.c.bf16 %v1139_v43, %v1138_v42  ;;  %v1145_v47 = vld [vmem:[#allocation10 + $0x8] sm:$0xff]  ;;  %v35377_v17 = vld [vmem:[#allocation14] sm:$0xff]  ;;  %vm35388_vm6 = vmpackc.low %vm2634_vm4, %vm34582_vm5  ;;  %vm16717_vm4 = vcmask 1040384   ;;  %s34481_s18 = scalar_lea.vmem %s40167_s9, 2048  ;;  %p34488_p11 = scmp.lt.s32.totalorder %s40167_s9, %s40167_s9 }
 0x24b   : > { %29353 = vmatmul.mubr.msk.f32.vlgmr.msra.gmra.mrb[0].mxu1 %vm1146_vm2, %v35281_v25  ;;  %29345 = vmatprep.mubr.msk.f32.mxu0 %vm1146_vm2, %v1142_v35  ;;  %v35307_v48 = vpack.c.bf16 %v1145_v47, %v1144_v46  ;;  %v35419_v40 = vld [vmem:[#allocation14 + $0x8] sm:$0xff]  ;;  %vm36477_vm13 = vmpackc.low %vm5841_vm10, %vm34582_vm5  ;;  %p34482_p9 = scmp.ne.s32.totalorder %s40167_s9, %s34481_s18  ;;  %p34489_p12 = scmp.lt.s32.totalorder %s34481_s18, %s34481_s18 }
 0x24c   : > { %29355 = vmatprep.mubr.msk.f32.mxu1 %vm1146_vm2, %v1142_v35  ;;  %31925 = vmatpush3.bf16.msra.mxu0 %v31922_v30  ;;  %v2619_v30 = vld [vmem:[%s40467_s3] sm:$0xff]  ;;  %vm37910_vm0 = vmpackc.low %vm15326_vm15, %vm34582_vm5  ;;  %vm20761_vm15 = vcmask 146432  }
 0x24d   : > { %31929 = vmatpush3.bf16.msra.mxu1 %v31926_v31  ;;  %31931 = vmatprep.subr.bf16.mxu0 %v31930_v37  ;;  %v2620_v31 = vld [vmem:[%s40467_s3 + $0x8] sm:$0x7f]  ;;  %p34490_p3 = por %p34489_p12, %p34488_p11 }
 0x24e   : > { %29346 = vmatmul.mubr.msk.f32.gmra.mrb[2].mxu0 %vm1146_vm2, %v1143_v39  ;;  %31935 = vmatprep.subr.bf16.mxu1 %v31934_v38  ;;  %v35423_v42 = vpack.c.bf16 %v2620_v31, %v2619_v30  ;;  %p33898_p7 = scmp.eq.s32.totalorder %s40813_s6, 9 }
 0x24f   : > { %29356 = vmatmul.mubr.msk.f32.gmra.mrb[2].mxu1 %vm1146_vm2, %v1143_v39  ;;  %29362 = vmatprep.mubr.msk.f32.mxu0 %vm1146_vm2, %v35275_v23 }
 0x250   : > { %29372 = vmatprep.mubr.msk.f32.mxu1 %vm1146_vm2, %v35275_v23  ;;  %p34483_p2 = pnand %p34482_p9, %p33898_p7 }
 0x252   : > { %29363 = vmatmul.mubr.msk.f32.vlgmr.msra.gmra.mrb[4].mxu0 %vm1146_vm2, %v35281_v25  ;;  %p34484_p10 = pneg %p34483_p2 }
 0x253   : > { %29373 = vmatmul.mubr.msk.f32.vlgmr.msra.gmra.mrb[4].mxu1 %vm1146_vm2, %v35281_v25  ;;  %29365 = vmatprep.mubr.msk.f32.mxu0 %vm1146_vm2, %v1142_v35 }
 0x254   : > { %29375 = vmatprep.mubr.msk.f32.mxu1 %vm1146_vm2, %v1142_v35  ;;  %31933 = vmatpush3.bf16.msra.mxu0 %v31930_v37  ;;  %p34491_p8 = pnand %p34490_p3, %p34484_p10 }
 0x255   : > { %31937 = vmatpush3.bf16.msra.mxu1 %v31934_v38  ;;  %31939 = vmatprep.subr.bf16.mxu0 %v31938_v44 }
 0x256   : > { %29366 = vmatmul.mubr.msk.f32.gmra.mrb[6].mxu0 %vm1146_vm2, %v1143_v39  ;;  %31943 = vmatprep.subr.bf16.mxu1 %v31942_v45 }
 0x257   : > { %29376 = vmatmul.mubr.msk.f32.gmra.mrb[6].mxu1 %vm1146_vm2, %v1143_v39  ;;  %29382 = vmatprep.mubr.msk.f32.mxu0 %vm1146_vm2, %v35275_v23 }
 0x258   : > { %29392 = vmatprep.mubr.msk.f32.mxu1 %vm1146_vm2, %v35275_v23 }
 0x25a   : > { %29383 = vmatmul.mubr.msk.f32.vlgmr.msra.gmra.mrb[8].mxu0 %vm1146_vm2, %v35281_v25 }
 0x25b   : > { %29393 = vmatmul.mubr.msk.f32.vlgmr.msra.gmra.mrb[8].mxu1 %vm1146_vm2, %v35281_v25  ;;  %29385 = vmatprep.mubr.msk.f32.mxu0 %vm1146_vm2, %v1142_v35 }
 0x25c   : > { %29395 = vmatprep.mubr.msk.f32.mxu1 %vm1146_vm2, %v1142_v35  ;;  %31941 = vmatpush3.bf16.msra.mxu0 %v31938_v44 }
 0x25d   : > { %31945 = vmatpush3.bf16.msra.mxu1 %v31942_v45  ;;  %31947 = vmatprep.subr.bf16.mxu0 %v35307_v48 }
 0x25e   : > { %29386 = vmatmul.mubr.msk.f32.gmra.mrb[10].mxu0 %vm1146_vm2, %v1143_v39  ;;  %31951 = vmatprep.subr.bf16.mxu1 %v35307_v48 }
 0x25f   : > { %29396 = vmatmul.mubr.msk.f32.gmra.mrb[10].mxu1 %vm1146_vm2, %v1143_v39  ;;  %29402 = vmatprep.mubr.msk.f32.mxu0 %vm1146_vm2, %v35275_v23 }
 0x260   : > { %29412 = vmatprep.mubr.msk.f32.mxu1 %vm1146_vm2, %v35275_v23  ;;  %v35385_v23 = vstv %s1107_s4  ;;  %s40527_s4 = sld [smem:[#allocation151_spill]] }
 0x262   : > { %29403 = vmatmul.mubr.msk.f32.vlgmr.msra.gmra.mrb[12].mxu0 %vm1146_vm2, %v35281_v25 }
 0x263   : > { %29413 = vmatmul.mubr.msk.f32.vlgmr.msra.gmra.mrb[12].mxu1 %vm1146_vm2, %v35281_v25  ;;  %29405 = vmatprep.mubr.msk.f32.mxu0 %vm1146_vm2, %v1142_v35  ;;  %v13929_v25 = vld [vmem:[#allocation2 + $0x80] sm:$0xff] }
 0x264   : > { %29415 = vmatprep.mubr.msk.f32.mxu1 %vm1146_vm2, %v1142_v35  ;;  %31949 = vmatpush3.bf16.msra.mxu0 %v35307_v48 }
 0x265   : > { %31953 = vmatpush3.bf16.msra.mxu1 %v35307_v48  ;;  %31955 = vmatprep.subr.bf16.mxu0 %v35307_v48 }
 0x266   : > { %29406 = vmatmul.mubr.msk.f32.gmra.mrb[14].mxu0 %vm1146_vm2, %v1143_v39  ;;  %31959 = vmatprep.subr.bf16.mxu1 %v35307_v48 }
 0x267   : > { %29416 = vmatmul.mubr.msk.f32.gmra.mrb[14].mxu1 %vm1146_vm2, %v1143_v39 }
 0x31d   : > { %v29344_v49 = vpop.f32.mrb[0].mxu0 }
 0x31e   : > { %v29354_v50 = vpop.f32.mrb[0].mxu1  ;;  %v1225_v51 = vpop.f32.mrb[1].mxu0 }
 0x31f   : > { %v1310_v52 = vpop.f32.mrb[1].mxu1  ;;  %29422 = vmatprep.mubr.msk.f32.mxu0 %vm1146_vm2, %v1225_v51 }
 0x320   : > { %29432 = vmatprep.mubr.msk.f32.mxu1 %vm1146_vm2, %v1310_v52  ;;  %29423 = vmatmul.mubr.msk.f32.vlgmr.msra.gmra.mrb[16].mxu0 %vm1146_vm2, %v29344_v49 }
 0x321   : > { %29433 = vmatmul.mubr.msk.f32.vlgmr.msra.gmra.mrb[16].mxu1 %vm1146_vm2, %v29354_v50  ;;  %v29347_v53 = vpop.f32.mrb[2].mxu0  ;;  %31957 = vmatpush3.bf16.msra.mxu0 %v35307_v48 }
 0x322   : > { %v29357_v54 = vpop.f32.mrb[2].mxu1  ;;  %v1235_v55 = vpop.f32.mrb[3].mxu0  ;;  %31961 = vmatpush3.bf16.msra.mxu1 %v35307_v48  ;;  %31963 = vmatprep.subr.bf16.mxu0 %v35307_v48 }
 0x323   : > { %v1320_v56 = vpop.f32.mrb[3].mxu1  ;;  %29425 = vmatprep.mubr.msk.f32.mxu0 %vm1146_vm2, %v1235_v55  ;;  %31967 = vmatprep.subr.bf16.mxu1 %v35307_v48 }
 0x324   : > { %29435 = vmatprep.mubr.msk.f32.mxu1 %vm1146_vm2, %v1320_v56  ;;  %29426 = vmatmul.mubr.msk.f32.gmra.mrb[18].mxu0 %vm1146_vm2, %v29347_v53 }
 0x325   : > { %29436 = vmatmul.mubr.msk.f32.gmra.mrb[18].mxu1 %vm1146_vm2, %v29357_v54  ;;  %v29364_v57 = vpop.f32.mrb[4].mxu0 }
 0x326   : > { %v29374_v58 = vpop.f32.mrb[4].mxu1  ;;  %v1395_v59 = vpop.f32.mrb[5].mxu0 }
 0x327   : > { %v1480_v60 = vpop.f32.mrb[5].mxu1  ;;  %29442 = vmatprep.mubr.msk.f32.mxu0 %vm1146_vm2, %v1395_v59 }
 0x328   : > { %29452 = vmatprep.mubr.msk.f32.mxu1 %vm1146_vm2, %v1480_v60  ;;  %29443 = vmatmul.mubr.msk.f32.vlgmr.msra.gmra.mrb[20].mxu0 %vm1146_vm2, %v29364_v57 }
 0x329   : > { %29453 = vmatmul.mubr.msk.f32.vlgmr.msra.gmra.mrb[20].mxu1 %vm1146_vm2, %v29374_v58  ;;  %v29367_v61 = vpop.f32.mrb[6].mxu0  ;;  %31965 = vmatpush3.bf16.msra.mxu0 %v35307_v48 }
 0x32a   : > { %v29377_v62 = vpop.f32.mrb[6].mxu1  ;;  %v1405_v63 = vpop.f32.mrb[7].mxu0  ;;  %31969 = vmatpush3.bf16.msra.mxu1 %v35307_v48  ;;  %31971 = vmatprep.subr.bf16.mxu0 %v35307_v48 }
 0x32b   : > { %v1490_v0 = vpop.f32.mrb[7].mxu1  ;;  %29445 = vmatprep.mubr.msk.f32.mxu0 %vm1146_vm2, %v1405_v63  ;;  %31975 = vmatprep.subr.bf16.mxu1 %v35307_v48  ;;  %v35458_v63 = vld [vmem:[#allocation14 + $0x18] sm:$0x3f] }
 0x32c   : > { %29455 = vmatprep.mubr.msk.f32.mxu1 %vm1146_vm2, %v1490_v0  ;;  %29446 = vmatmul.mubr.msk.f32.gmra.mrb[22].mxu0 %vm1146_vm2, %v29367_v61 }
 0x32d   : > { %29456 = vmatmul.mubr.msk.f32.gmra.mrb[22].mxu1 %vm1146_vm2, %v29377_v62  ;;  %v29384_v1 = vpop.f32.mrb[8].mxu0 }
 0x32e   : > { %v29394_v2 = vpop.f32.mrb[8].mxu1  ;;  %v1565_v3 = vpop.f32.mrb[9].mxu0 }
 0x32f   : > { %v1650_v4 = vpop.f32.mrb[9].mxu1  ;;  %29462 = vmatprep.mubr.msk.f32.mxu0 %vm1146_vm2, %v1565_v3 }
 0x330   : > { %29472 = vmatprep.mubr.msk.f32.mxu1 %vm1146_vm2, %v1650_v4  ;;  %29463 = vmatmul.mubr.msk.f32.vlgmr.msra.gmra.mrb[24].mxu0 %vm1146_vm2, %v29384_v1 }
 0x331   : > { %29473 = vmatmul.mubr.msk.f32.vlgmr.msra.gmra.mrb[24].mxu1 %vm1146_vm2, %v29394_v2  ;;  %v29387_v5 = vpop.f32.mrb[10].mxu0  ;;  %31973 = vmatpush3.bf16.msra.mxu0 %v35307_v48 }
 0x332   : > { %v29397_v6 = vpop.f32.mrb[10].mxu1  ;;  %v1575_v7 = vpop.f32.mrb[11].mxu0  ;;  %31977 = vmatpush3.bf16.msra.mxu1 %v35307_v48  ;;  %v35433_v48 = vld [vmem:[#allocation14 + $0x10] sm:$0xff] }
 0x333   : > { %v1660_v8 = vpop.f32.mrb[11].mxu1  ;;  %29465 = vmatprep.mubr.msk.f32.mxu0 %vm1146_vm2, %v1575_v7 }
 0x334   : > { %29475 = vmatprep.mubr.msk.f32.mxu1 %vm1146_vm2, %v1660_v8  ;;  %29466 = vmatmul.mubr.msk.f32.gmra.mrb[26].mxu0 %vm1146_vm2, %v29387_v5 }
 0x335   : > { %29476 = vmatmul.mubr.msk.f32.gmra.mrb[26].mxu1 %vm1146_vm2, %v29397_v6  ;;  %v29404_v9 = vpop.f32.mrb[12].mxu0 }
 0x336   : > { %v29414_v10 = vpop.f32.mrb[12].mxu1  ;;  %v1735_v11 = vpop.f32.mrb[13].mxu0 }
 0x337   : > { %v1820_v12 = vpop.f32.mrb[13].mxu1  ;;  %29482 = vmatprep.mubr.msk.f32.mxu0 %vm1146_vm2, %v1735_v11 }
 0x338   : > { %29492 = vmatprep.mubr.msk.f32.mxu1 %vm1146_vm2, %v1820_v12  ;;  %29483 = vmatmul.mubr.msk.f32.vlgmr.msra.gmra.mrb[28].mxu0 %vm1146_vm2, %v29404_v9 }
 0x339   : > { %29493 = vmatmul.mubr.msk.f32.vlgmr.msra.gmra.mrb[28].mxu1 %vm1146_vm2, %v29414_v10  ;;  %v29407_v13 = vpop.f32.mrb[14].mxu0 }
 0x33a   : > { %v29417_v14 = vpop.f32.mrb[14].mxu1  ;;  %v1745_v15 = vpop.f32.mrb[15].mxu0 }
 0x33b   : > { %v1830_v16 = vpop.f32.mrb[15].mxu1  ;;  %29485 = vmatprep.mubr.msk.f32.mxu0 %vm1146_vm2, %v1745_v15 }
 0x33c   : > { %29495 = vmatprep.mubr.msk.f32.mxu1 %vm1146_vm2, %v1830_v16  ;;  %29486 = vmatmul.mubr.msk.f32.gmra.mrb[30].mxu0 %vm1146_vm2, %v29407_v13 }
 0x33d   : > { %29496 = vmatmul.mubr.msk.f32.gmra.mrb[30].mxu1 %vm1146_vm2, %v29417_v14  ;;  %29502 = vmatprep.mubr.msk.f32.mxu0 %vm2621_vm3, %v35377_v17 }
 0x33e   : > { %29512 = vmatprep.mubr.msk.f32.mxu1 %vm2621_vm3, %v35377_v17 }
 0x3f3   : > { %v29424_v18 = vpop.f32.mrb[16].mxu0 }
 0x3f4   : > { %v29434_v19 = vpop.f32.mrb[16].mxu1  ;;  %v1917_v20 = vpop.f32.mrb[17].mxu0  ;;  %v11161_v34 = vsub.f32 %v29424_v18, %v35385_v23  ;;  %v35403_v35 = vadd.f32 %v29424_v18, %v35385_v23 }
 0x3f5   : > { %v35383_v21 = vpop.f32.mrb[17].mxu1  ;;  %v31978_v27 = vpack.c.bf16 %v29424_v18, %v1917_v20  ;;  %v11165_v43 = vsub.f32 %v29434_v19, %v35385_v23  ;;  %v35427_v44 = vadd.f32 %v29434_v19, %v35385_v23  ;;  %v11160_v49 = vsub.f32 %v1917_v20, %v35385_v23 }
 0x3f6   : > { %v31984_v28 = vpack.c.bf16 %v29434_v19, %v35383_v21  ;;  %v35437_v50 = vadd.f32 %v35385_v23, %v1917_v20  ;;  %v35439_v53 = vmax.f32 %v11161_v34, 0.0  ;;  %v11164_v55 = vsub.f32 %v35383_v21, %v35385_v23 }
 0x3f7   : > { %v29427_v22 = vpop.f32.mrb[18].mxu0  ;;  %31980 = vmatprep.subr.msk.bf16.mxu0 %vm35388_vm6, %v31978_v27  ;;  %v35446_v56 = vadd.f32 %v35385_v23, %v35383_v21  ;;  %v35460_v1 = vmax.f32 %v11165_v43, 0.0  ;;  %v35463_v6 = vmax.f32 %v11160_v49, 0.0 }
 0x3f8   : > { %v29437_v24 = vpop.f32.mrb[18].mxu1  ;;  %v1927_v26 = vpop.f32.mrb[19].mxu0  ;;  %v11163_v32 = vsub.f32 %v29427_v22, %v35385_v23  ;;  %v11227_v33 = vadd.f32 %v29427_v22, %v35385_v23  ;;  %31986 = vmatprep.subr.msk.bf16.mxu1 %vm35388_vm6, %v31984_v28  ;;  %31983 = vmatpush3.bf16.msk.msra.mxu0 %vm35388_vm6, %v31978_v27  ;;  %v35496_v22 = vmax.f32 %v11164_v55, 0.0 }
 0x3f9   : > { %v2024_v29 = vpop.f32.mrb[19].mxu1  ;;  %v11167_v37 = vsub.f32 %v29437_v24, %v35385_v23  ;;  %v11231_v38 = vadd.f32 %v29437_v24, %v35385_v23  ;;  %31989 = vmatpush3.bf16.msk.msra.mxu1 %vm35388_vm6, %v31984_v28  ;;  %v11162_v45 = vsub.f32 %v1927_v26, %v35385_v23  ;;  %v11226_v46 = vadd.f32 %v35385_v23, %v1927_v26 }
 0x3fa   : > { %v11195_v51 = vmax.f32 %v11163_v32, 0.0  ;;  %v11259_v52 = vmin.f32 %v11227_v33, 0.0  ;;  %v11166_v60 = vsub.f32 %v2024_v29, %v35385_v23  ;;  %v11230_v61 = vadd.f32 %v35385_v23, %v2024_v29 }
 0x3fb   : > { %v35409_v36 = vpop.f32.mrb[20].mxu0  ;;  %29503 = vmatmul.mubr.msk.f32.vlgmr.msra.gmra.mrb[32].mxu0 %vm2621_vm3, %v35419_v40  ;;  %v11199_v58 = vmax.f32 %v11167_v37, 0.0  ;;  %v11263_v59 = vmin.f32 %v11231_v38, 0.0  ;;  %v11194_v3 = vmax.f32 %v11162_v45, 0.0  ;;  %v11258_v4 = vmin.f32 %v11226_v46, 0.0 }
 0x3fc   : > { %v35417_v39 = vpop.f32.mrb[20].mxu1  ;;  %v35421_v41 = vpop.f32.mrb[21].mxu0  ;;  %29513 = vmatmul.mubr.msk.f32.vlgmr.msra.gmra.mrb[32].mxu1 %vm2621_vm3, %v35419_v40  ;;  %29505 = vmatprep.mubr.msk.f32.mxu0 %vm2621_vm3, %v35433_v48  ;;  %v35465_v7 = vadd.f32 %v11259_v52, %v11195_v51  ;;  %v11169_v8 = vsub.f32 %v35409_v36, %v35385_v23  ;;  %v11198_v16 = vmax.f32 %v11166_v60, 0.0  ;;  %v11262_v18 = vmin.f32 %v11230_v61, 0.0 }
 0x3fd   : > { %v35431_v47 = vpop.f32.mrb[21].mxu1  ;;  %29515 = vmatprep.mubr.msk.f32.mxu1 %vm2621_vm3, %v35433_v48  ;;  %v31990_v12 = vpack.c.bf16 %v35409_v36, %v35421_v41  ;;  %v35482_v15 = vadd.f32 %v11263_v59, %v11199_v58  ;;  %v35486_v19 = vadd.f32 %v35409_v36, %v35385_v23  ;;  %v35498_v24 = vadd.f32 %v11258_v4, %v11194_v3 }
 0x3fe   : > { %v31996_v13 = vpack.c.bf16 %v35417_v39, %v35431_v47  ;;  %v11173_v26 = vsub.f32 %v35417_v39, %v35385_v23  ;;  %v35519_v33 = vadd.f32 %v35417_v39, %v35385_v23  ;;  %v11168_v34 = vsub.f32 %v35421_v41, %v35385_v23 }
 0x3ff   : > { %v29447_v57 = vpop.f32.mrb[22].mxu0  ;;  %29506 = vmatmul.mubr.msk.f32.gmra.mrb[34].mxu0 %vm2621_vm3, %v35458_v63  ;;  %31992 = vmatprep.subr.msk.bf16.mxu0 %vm35388_vm6, %v31990_v12  ;;  %v35525_v43 = vadd.f32 %v11262_v18, %v11198_v16  ;;  %v35527_v45 = vmax.f32 %v11169_v8, 0.0  ;;  %v11172_v58 = vsub.f32 %v35431_v47, %v35385_v23  ;;  %v35559_v4 = vadd.f32 %v35385_v23, %v35431_v47 }
 0x400   : > { %v29457_v62 = vpop.f32.mrb[22].mxu1  ;;  %v2121_v0 = vpop.f32.mrb[23].mxu0  ;;  %v11171_v9 = vsub.f32 %v29447_v57, %v35385_v23  ;;  %v11235_v11 = vadd.f32 %v29447_v57, %v35385_v23  ;;  %29516 = vmatmul.mubr.msk.f32.gmra.mrb[34].mxu1 %vm2621_vm3, %v35458_v63  ;;  %29522 = vmatprep.mubr.msk.f32.mxu0 %vm2621_vm3, %v35377_v17  ;;  %v35536_v55 = vmax.f32 %v11173_v26, 0.0  ;;  %v35540_v57 = vadd.f32 %v35385_v23, %v35421_v41 }
 0x401   : > { %v2218_v5 = vpop.f32.mrb[23].mxu1  ;;  %29532 = vmatprep.mubr.msk.f32.mxu1 %vm2621_vm3, %v35377_v17  ;;  %v11175_v27 = vsub.f32 %v29457_v62, %v35385_v23  ;;  %31998 = vmatprep.subr.msk.bf16.mxu1 %vm35388_vm6, %v31996_v13  ;;  %v11239_v30 = vadd.f32 %v29457_v62, %v35385_v23  ;;  %v11170_v31 = vsub.f32 %v2121_v0, %v35385_v23  ;;  %v35555_v3 = vmax.f32 %v11168_v34, 0.0 }
 0x402   : > { %v11234_v32 = vadd.f32 %v35385_v23, %v2121_v0  ;;  %31995 = vmatpush3.bf16.msk.msra.mxu0 %vm35388_vm6, %v31990_v12  ;;  %32001 = vmatpush3.bf16.msk.msra.mxu1 %vm35388_vm6, %v31996_v13  ;;  %v11203_v36 = vmax.f32 %v11171_v9, 0.0  ;;  %v11267_v37 = vmin.f32 %v11235_v11, 0.0  ;;  %v11174_v46 = vsub.f32 %v2218_v5, %v35385_v23 }
 0x403   : > { %v35480_v14 = vpop.f32.mrb[24].mxu0  ;;  %v11238_v49 = vadd.f32 %v35385_v23, %v2218_v5  ;;  %v11207_v60 = vmax.f32 %v11175_v27, 0.0  ;;  %v11271_v61 = vmin.f32 %v11239_v30, 0.0  ;;  %v11202_v62 = vmax.f32 %v11170_v31, 0.0 }
 0x404   : > { %v35492_v20 = vpop.f32.mrb[24].mxu1  ;;  %v35494_v21 = vpop.f32.mrb[25].mxu0  ;;  %v11266_v0 = vmin.f32 %v11234_v32, 0.0  ;;  %v35561_v5 = vadd.f32 %v11267_v37, %v11203_v36  ;;  %v11206_v9 = vmax.f32 %v11174_v46, 0.0  ;;  %v11177_v12 = vsub.f32 %v35480_v14, %v35385_v23 }
 0x405   : > { %v35507_v28 = vpop.f32.mrb[25].mxu1  ;;  %29523 = vmatmul.mubr.msk.f32.vlgmr.msra.gmra.mrb[36].mxu0 %vm2621_vm3, %v35419_v40  ;;  %29533 = vmatmul.mubr.msk.f32.vlgmr.msra.gmra.mrb[36].mxu1 %vm2621_vm3, %v35419_v40  ;;  %v11270_v11 = vmin.f32 %v11238_v49, 0.0  ;;  %v32002_v13 = vpack.c.bf16 %v35480_v14, %v35494_v21  ;;  %v35576_v47 = vadd.f32 %v35480_v14, %v35385_v23  ;;  %v11181_v27 = vsub.f32 %v35492_v20, %v35385_v23 }
 0x406   : > { %29525 = vmatprep.mubr.msk.f32.mxu0 %vm2621_vm3, %v35433_v48  ;;  %29535 = vmatprep.mubr.msk.f32.mxu1 %vm2621_vm3, %v35433_v48  ;;  %v32008_v30 = vpack.c.bf16 %v35492_v20, %v35507_v28  ;;  %v35588_v32 = vmax.f32 %v11172_v58, 0.0  ;;  %v35590_v34 = vadd.f32 %v11271_v61, %v11207_v60  ;;  %v35592_v14 = vadd.f32 %v11266_v0, %v11202_v62 }
 0x407   : > { %v35523_v38 = vpop.f32.mrb[26].mxu0  ;;  %v35596_v36 = vadd.f32 %v35492_v20, %v35385_v23  ;;  %32004 = vmatprep.subr.msk.bf16.mxu0 %vm35388_vm6, %v32002_v13  ;;  %v11176_v46 = vsub.f32 %v35494_v21, %v35385_v23  ;;  %v35615_v60 = vadd.f32 %v11270_v11, %v11206_v9  ;;  %v35617_v61 = vmax.f32 %v11177_v12, 0.0 }
 0x408   : > { %v35531_v51 = vpop.f32.mrb[26].mxu1  ;;  %v35533_v52 = vpop.f32.mrb[27].mxu0  ;;  %v11179_v49 = vsub.f32 %v35523_v38, %v35385_v23  ;;  %v11243_v58 = vadd.f32 %v35523_v38, %v35385_v23  ;;  %32010 = vmatprep.subr.msk.bf16.mxu1 %vm35388_vm6, %v32008_v30  ;;  %32007 = vmatpush3.bf16.msk.msra.mxu0 %vm35388_vm6, %v32002_v13  ;;  %v35632_v11 = vmax.f32 %v11181_v27, 0.0  ;;  %v35643_v37 = vadd.f32 %v35385_v23, %v35494_v21 }
 0x409   : > { %v35548_v59 = vpop.f32.mrb[27].mxu1  ;;  %29526 = vmatmul.mubr.msk.f32.gmra.mrb[38].mxu0 %vm2621_vm3, %v35458_v63  ;;  %29536 = vmatmul.mubr.msk.f32.gmra.mrb[38].mxu1 %vm2621_vm3, %v35458_v63  ;;  %v11183_v62 = vsub.f32 %v35531_v51, %v35385_v23  ;;  %v11247_v0 = vadd.f32 %v35531_v51, %v35385_v23  ;;  %v11178_v12 = vsub.f32 %v35533_v52, %v35385_v23  ;;  %v35651_v9 = vmax.f32 %v11176_v46, 0.0 }
 0x40a   : > { %29542 = vmatprep.mubr.msk.f32.mxu0 %vm2621_vm3, %v35377_v17  ;;  %32013 = vmatpush3.bf16.msk.msra.mxu1 %vm35388_vm6, %v32008_v30  ;;  %v11242_v51 = vadd.f32 %v35385_v23, %v35533_v52  ;;  %v11182_v39 = vsub.f32 %v35548_v59, %v35385_v23  ;;  %v11246_v27 = vadd.f32 %v35385_v23, %v35548_v59  ;;  %v11211_v26 = vmax.f32 %v11179_v49, 0.0 }
 0x40b   : > { %v35563_v8 = vpop.f32.mrb[28].mxu0  ;;  %29552 = vmatprep.mubr.msk.f32.mxu1 %vm2621_vm3, %v35377_v17  ;;  %v11180_v52 = vsub.f32 %v35507_v28, %v35385_v23  ;;  %v11275_v30 = vmin.f32 %v11243_v58, 0.0  ;;  %v35661_v21 = vadd.f32 %v35385_v23, %v35507_v28  ;;  %v11215_v59 = vmax.f32 %v11183_v62, 0.0 }
 0x40c   : > { %v35569_v16 = vpop.f32.mrb[28].mxu1  ;;  %v35571_v18 = vpop.f32.mrb[29].mxu0  ;;  %v11279_v2 = vmin.f32 %v11247_v0, 0.0  ;;  %v11185_v46 = vsub.f32 %v35563_v8, %v35385_v23  ;;  %v11210_v49 = vmax.f32 %v11178_v12, 0.0  ;;  %v11274_v58 = vmin.f32 %v11242_v51, 0.0 }
 0x40d   : > { %v35586_v31 = vpop.f32.mrb[29].mxu1  ;;  %29543 = vmatmul.mubr.msk.f32.vlgmr.msra.gmra.mrb[40].mxu0 %vm2621_vm3, %v35419_v40  ;;  %29553 = vmatmul.mubr.msk.f32.vlgmr.msra.gmra.mrb[40].mxu1 %vm2621_vm3, %v35419_v40  ;;  %v32014_v29 = vpack.c.bf16 %v35563_v8, %v35571_v18  ;;  %v11272_v10 = vmin.f32 %v35643_v37, 0.0  ;;  %v11214_v28 = vmax.f32 %v11182_v39, 0.0  ;;  %v35674_v62 = vadd.f32 %v35563_v8, %v35385_v23 }
 0x40e   : > { %29545 = vmatprep.mubr.msk.f32.mxu0 %vm2621_vm3, %v35433_v48  ;;  %29555 = vmatprep.mubr.msk.f32.mxu1 %vm2621_vm3, %v35433_v48  ;;  %v32020_v54 = vpack.c.bf16 %v35569_v16, %v35586_v31  ;;  %v11212_v0 = vmax.f32 %v11180_v52, 0.0  ;;  %v11307_v12 = vadd.f32 %v11275_v30, %v11211_v26  ;;  %v11189_v51 = vsub.f32 %v35569_v16, %v35385_v23 }
 0x40f   : > { %v35613_v20 = vpop.f32.mrb[30].mxu0  ;;  %32016 = vmatprep.subr.msk.bf16.mxu0 %vm35388_vm6, %v32014_v29  ;;  %v11276_v39 = vmin.f32 %v35661_v21, 0.0  ;;  %v11311_v8 = vadd.f32 %v11279_v2, %v11215_v59  ;;  %v11184_v37 = vsub.f32 %v35571_v18, %v35385_v23  ;;  %v11248_v26 = vadd.f32 %v35385_v23, %v35571_v18 }
 0x410   : > { %v35627_v38 = vpop.f32.mrb[30].mxu1  ;;  %v35629_v13 = vpop.f32.mrb[31].mxu0  ;;  %32022 = vmatprep.subr.msk.bf16.mxu1 %vm35388_vm6, %v32020_v54  ;;  %32019 = vmatpush3.bf16.msk.msra.mxu0 %vm35388_vm6, %v32014_v29  ;;  %v11217_v30 = vmax.f32 %v11185_v46, 0.0  ;;  %v40470_v2 = vmin.f32 %v35437_v50, 0.0  ;;  %v11281_v21 = vmin.f32 %v35674_v62, 0.0  ;;  %v11252_v29 = vadd.f32 %v35385_v23, %v35586_v31 }
 0x411   : > { %40468 = vst [vmem:[#allocation49_spill] sm:$0xff] %v35629_v13  ;;  %v35638_v41 = vpop.f32.mrb[31].mxu1  ;;  %29546 = vmatmul.mubr.msk.f32.gmra.mrb[42].mxu0 %vm2621_vm3, %v35458_v63  ;;  %v35682_v13 = vadd.f32 %v35569_v16, %v35385_v23  ;;  %29556 = vmatmul.mubr.msk.f32.gmra.mrb[42].mxu1 %vm2621_vm3, %v35458_v63  ;;  %v11306_v16 = vadd.f32 %v11274_v58, %v11210_v49  ;;  %v11221_v46 = vmax.f32 %v11189_v51, 0.0 }
 0x412   : > { %40469 = vst [vmem:[#allocation50_spill] sm:$0xff] %v35638_v41  ;;  %v11278_v41 = vmin.f32 %v11246_v27, 0.0  ;;  %v11188_v27 = vsub.f32 %v35586_v31, %v35385_v23  ;;  %32025 = vmatpush3.bf16.msk.msra.mxu1 %vm35388_vm6, %v32020_v54  ;;  %29562 = vmatprep.mubr.msk.f32.mxu0 %vm2621_vm3, %v35377_v17  ;;  %v11288_v18 = vadd.f32 %v40470_v2, %v35463_v6  ;;  %v40471_v54 = vmin.f32 %v35403_v35, 0.0 }
 0x413   : > { %29572 = vmatprep.mubr.msk.f32.mxu1 %vm2621_vm3, %v35377_v17  ;;  %32028 = vmatprep.subr.msk.bf16.mxu0 %vm35388_vm6, %v35423_v42  ;;  %v11285_v50 = vmin.f32 %v35682_v13, 0.0  ;;  %v40472_v17 = vmin.f32 %v35446_v56, 0.0  ;;  %v11216_v35 = vmax.f32 %v11184_v37, 0.0  ;;  %v35737_v49 = vpack.c.bf16 %v35465_v7, %v35498_v24 }
 0x414   : > { %v11310_v52 = vadd.f32 %v11278_v41, %v11214_v28  ;;  %v11289_v59 = vadd.f32 %v40471_v54, %v35439_v53  ;;  %32034 = vmatprep.subr.msk.bf16.mxu1 %vm35388_vm6, %v35423_v42  ;;  %v40473_v41 = vmin.f32 %v35427_v44, 0.0  ;;  %v11280_v53 = vmin.f32 %v11248_v26, 0.0 }
 0x415   : > { %29563 = vmatmul.mubr.msk.f32.vlgmr.msra.gmra.mrb[44].mxu0 %vm2621_vm3, %v35419_v40  ;;  %v11292_v6 = vadd.f32 %v40472_v17, %v35496_v22  ;;  %29573 = vmatmul.mubr.msk.f32.vlgmr.msra.gmra.mrb[44].mxu1 %vm2621_vm3, %v35419_v40  ;;  %40475 = vst [vmem:[#allocation52_spill] sm:$0xff] %v35737_v49  ;;  %v11220_v56 = vmax.f32 %v11188_v27, 0.0  ;;  %v35748_v40 = vpack.c.bf16 %v35482_v15, %v35525_v43  ;;  %v11284_v7 = vmin.f32 %v11252_v29, 0.0 }
 0x416   : > { %v11293_v31 = vadd.f32 %v40473_v41, %v35460_v1  ;;  %29565 = vmatprep.mubr.msk.f32.mxu0 %vm2621_vm3, %v35433_v48  ;;  %v35733_v13 = vpack.c.bf16 %v11289_v59, %v11288_v18  ;;  %29575 = vmatprep.mubr.msk.f32.mxu1 %vm2621_vm3, %v35433_v48  ;;  %v40478_v1 = vmin.f32 %v35540_v57, 0.0  ;;  %v40479_v48 = vmin.f32 %v35486_v19, 0.0 }
 0x417   : > { %32031 = vmatpush3.bf16.msk.msra.mxu0 %vm35388_vm6, %v35423_v42  ;;  %40477 = vst [vmem:[#allocation54_spill] sm:$0xff] %v35748_v40  ;;  %32037 = vmatpush3.bf16.msk.msra.mxu1 %vm35388_vm6, %v35423_v42  ;;  %v40480_v15 = vmin.f32 %v35559_v4, 0.0  ;;  %v40481_v57 = vmin.f32 %v35519_v33, 0.0  ;;  %v35775_v58 = vpack.c.bf16 %v35561_v5, %v35592_v14  ;;  %v35779_v19 = vpack.c.bf16 %v35590_v34, %v35615_v60 }
 0x418   : > { %40474 = vst [vmem:[#allocation51_spill] sm:$0xff] %v35733_v13  ;;  %v35744_v44 = vpack.c.bf16 %v11293_v31, %v11292_v6  ;;  %v11296_v22 = vadd.f32 %v40478_v1, %v35555_v3  ;;  %32040 = vmatprep.subr.msk.bf16.mxu0 %vm35388_vm6, %v35423_v42  ;;  %v11297_v24 = vadd.f32 %v40479_v48, %v35527_v45  ;;  %v40486_v4 = vmin.f32 %v35576_v47, 0.0 }
 0x419   : > { %v11300_v43 = vadd.f32 %v40480_v15, %v35588_v32  ;;  %v11301_v3 = vadd.f32 %v40481_v57, %v35536_v55  ;;  %29566 = vmatmul.mubr.msk.f32.gmra.mrb[46].mxu0 %vm2621_vm3, %v35458_v63  ;;  %32046 = vmatprep.subr.msk.bf16.mxu1 %vm35388_vm6, %v35423_v42  ;;  %40482 = vst [vmem:[#allocation55_spill] sm:$0xff] %v35775_v58  ;;  %40483 = vst [vmem:[#allocation56_spill] sm:$0xff] %v35779_v19  ;;  %v40487_v5 = vmin.f32 %v35596_v36, 0.0 }
 0x41a   : > { %40476 = vst [vmem:[#allocation53_spill] sm:$0xff] %v35744_v44  ;;  %v11304_v45 = vadd.f32 %v11272_v10, %v35651_v9  ;;  %29576 = vmatmul.mubr.msk.f32.gmra.mrb[46].mxu1 %vm2621_vm3, %v35458_v63  ;;  %v35784_v33 = vpack.c.bf16 %v11297_v24, %v11296_v22  ;;  %v11305_v32 = vadd.f32 %v40486_v4, %v35617_v61 }
 0x41b   : > { %v35786_v55 = vpack.c.bf16 %v11301_v3, %v11300_v43  ;;  %v11308_v28 = vadd.f32 %v11276_v39, %v11212_v0  ;;  %v11309_v14 = vadd.f32 %v40487_v5, %v35632_v11  ;;  %v35794_v34 = vpack.c.bf16 %v11307_v12, %v11306_v16  ;;  %v40494_v12 = vld [vmem:[#allocation49_spill] sm:$0xff]  ;;  %v40495_v16 = vld [vmem:[#allocation50_spill] sm:$0xff] }
 0x41c   : > { %40484 = vst [vmem:[#allocation57_spill] sm:$0xff] %v35784_v33  ;;  %v35796_v60 = vpack.c.bf16 %v11311_v8, %v11310_v52  ;;  %v11312_v10 = vadd.f32 %v11280_v53, %v11216_v35  ;;  %v35798_v9 = vpack.c.bf16 %v11305_v32, %v11304_v45  ;;  %v11313_v63 = vadd.f32 %v11281_v21, %v11217_v30 }
 0x41d   : > { %40485 = vst [vmem:[#allocation58_spill] sm:$0xff] %v35786_v55  ;;  %40488 = vst [vmem:[#allocation59_spill] sm:$0xff] %v35794_v34  ;;  %v11316_v62 = vadd.f32 %v11284_v7, %v11220_v56  ;;  %v11317_v51 = vadd.f32 %v11285_v50, %v11221_v46  ;;  %v35800_v37 = vpack.c.bf16 %v11309_v14, %v11308_v28 }
 0x41e   : > { %40489 = vst [vmem:[#allocation60_spill] sm:$0xff] %v35796_v60  ;;  %40490 = vst [vmem:[#allocation61_spill] sm:$0xff] %v35798_v9  ;;  %v35802_v26 = vpack.c.bf16 %v11313_v63, %v11312_v10  ;;  %v11187_v36 = vsub.f32 %v35613_v20, %v35385_v23  ;;  %v11251_v61 = vadd.f32 %v35613_v20, %v35385_v23 }
 0x41f   : > { %40491 = vst [vmem:[#allocation62_spill] sm:$0xff] %v35800_v37  ;;  %v35804_v47 = vpack.c.bf16 %v11317_v51, %v11316_v62  ;;  %v11191_v11 = vsub.f32 %v35627_v38, %v35385_v23  ;;  %v11255_v0 = vadd.f32 %v35627_v38, %v35385_v23  ;;  %v11186_v39 = vsub.f32 %v40494_v12, %v35385_v23 }
 0x420   : > { %40492 = vst [vmem:[#allocation63_spill] sm:$0xff] %v35802_v26  ;;  %v11250_v8 = vadd.f32 %v35385_v23, %v40494_v12  ;;  %v11190_v30 = vsub.f32 %v40495_v16, %v35385_v23  ;;  %v11254_v27 = vadd.f32 %v35385_v23, %v40495_v16  ;;  %v11219_v2 = vmax.f32 %v11187_v36, 0.0 }
 0x421   : > { %40493 = vst [vmem:[#allocation64_spill] sm:$0xff] %v35804_v47  ;;  %v11283_v20 = vmin.f32 %v11251_v61, 0.0  ;;  %v11223_v18 = vmax.f32 %v11191_v11, 0.0  ;;  %v11287_v52 = vmin.f32 %v11255_v0, 0.0  ;;  %v11218_v21 = vmax.f32 %v11186_v39, 0.0 }
 0x422   : > { %v11282_v29 = vmin.f32 %v11250_v8, 0.0  ;;  %v11222_v54 = vmax.f32 %v11190_v30, 0.0  ;;  %v11286_v38 = vmin.f32 %v11254_v27, 0.0  ;;  %v35888_v30 = vld [vmem:[#allocation17] sm:$0xff] }
 0x423   : > { %v11315_v59 = vadd.f32 %v11283_v20, %v11219_v2  ;;  %v11319_v46 = vadd.f32 %v11287_v52, %v11223_v18 }
 0x424   : > { %v11314_v50 = vadd.f32 %v11282_v29, %v11218_v21  ;;  %v11318_v17 = vadd.f32 %v11286_v38, %v11222_v54 }
 0x426   : > { %v35822_v6 = vpack.c.bf16 %v11315_v59, %v11314_v50  ;;  %v35824_v41 = vpack.c.bf16 %v11319_v46, %v11318_v17 }
 0x428   : > { %40496 = vst [vmem:[#allocation49_spill] sm:$0xff] %v35822_v6  ;;  %40497 = vst [vmem:[#allocation50_spill] sm:$0xff] %v35824_v41 }
 0x4ce   : > { %v29504_v31 = vpop.f32.mrb[32].mxu0 }
 0x4cf   : > { %v29514_v35 = vpop.f32.mrb[32].mxu1  ;;  %v2704_v53 = vpop.f32.mrb[33].mxu0 }
 0x4d0   : > { %v2792_v56 = vpop.f32.mrb[33].mxu1  ;;  %29582 = vmatprep.mubr.msk.f32.mxu0 %vm2621_vm3, %v2704_v53 }
 0x4d1   : > { %29592 = vmatprep.mubr.msk.f32.mxu1 %vm2621_vm3, %v2792_v56  ;;  %29583 = vmatmul.mubr.msk.f32.vlgmr.msra.gmra.mrb[48].mxu0 %vm2621_vm3, %v29504_v31  ;;  %v35913_v56 = vld [vmem:[#allocation17 + $0x8] sm:$0xff] }
 0x4d2   : > { %29593 = vmatmul.mubr.msk.f32.vlgmr.msra.gmra.mrb[48].mxu1 %vm2621_vm3, %v29514_v35  ;;  %v29507_v1 = vpop.f32.mrb[34].mxu0  ;;  %32043 = vmatpush3.bf16.msk.msra.mxu0 %vm35388_vm6, %v35423_v42 }
 0x4d3   : > { %v29517_v22 = vpop.f32.mrb[34].mxu1  ;;  %32049 = vmatpush3.bf16.msk.msra.mxu1 %vm35388_vm6, %v35423_v42  ;;  %v2714_v7 = vpop.f32.mrb[35].mxu0  ;;  %32052 = vmatprep.subr.msk.bf16.mxu0 %vm35388_vm6, %v35423_v42 }
 0x4d4   : > { %v2802_v48 = vpop.f32.mrb[35].mxu1  ;;  %32058 = vmatprep.subr.msk.bf16.mxu1 %vm35388_vm6, %v35423_v42  ;;  %29585 = vmatprep.mubr.msk.f32.mxu0 %vm2621_vm3, %v2714_v7 }
 0x4d5   : > { %29595 = vmatprep.mubr.msk.f32.mxu1 %vm2621_vm3, %v2802_v48  ;;  %29586 = vmatmul.mubr.msk.f32.gmra.mrb[50].mxu0 %vm2621_vm3, %v29507_v1  ;;  %v4122_v1 = vld [vmem:[%s40498_s7] sm:$0xff] }
 0x4d6   : > { %29596 = vmatmul.mubr.msk.f32.gmra.mrb[50].mxu1 %vm2621_vm3, %v29517_v22  ;;  %v4123_v22 = vld [vmem:[%s40498_s7 + $0x8] sm:$0x7f] }
 0x4d8   : > { %v29524_v24 = vpop.f32.mrb[36].mxu0  ;;  %v29534_v15 = vpop.f32.mrb[36].mxu1 }
 0x4d9   : > { %v2880_v43 = vpop.f32.mrb[37].mxu0  ;;  %v2968_v57 = vpop.f32.mrb[37].mxu1 }
 0x4da   : > { %29602 = vmatprep.mubr.msk.f32.mxu0 %vm2621_vm3, %v2880_v43  ;;  %29612 = vmatprep.mubr.msk.f32.mxu1 %vm2621_vm3, %v2968_v57  ;;  %v35930_v57 = vld [vmem:[#allocation17 + $0x10] sm:$0xff] }
 0x4db   : > { %29603 = vmatmul.mubr.msk.f32.vlgmr.msra.gmra.mrb[52].mxu0 %vm2621_vm3, %v29524_v24  ;;  %29613 = vmatmul.mubr.msk.f32.vlgmr.msra.gmra.mrb[52].mxu1 %vm2621_vm3, %v29534_v15 }
 0x4dc   : > { %v29527_v3 = vpop.f32.mrb[38].mxu0  ;;  %v29537_v45 = vpop.f32.mrb[38].mxu1  ;;  %32055 = vmatpush3.bf16.msk.msra.mxu0 %vm35388_vm6, %v35423_v42  ;;  %32061 = vmatpush3.bf16.msk.msra.mxu1 %vm35388_vm6, %v35423_v42 }
 0x4dd   : > { %v2890_v4 = vpop.f32.mrb[39].mxu0  ;;  %v2978_v32 = vpop.f32.mrb[39].mxu1  ;;  %32064 = vmatprep.subr.msk.bf16.mxu0 %vm35388_vm6, %v35423_v42  ;;  %32070 = vmatprep.subr.msk.bf16.mxu1 %vm35388_vm6, %v35423_v42 }
 0x4de   : > { %29605 = vmatprep.mubr.msk.f32.mxu0 %vm2621_vm3, %v2890_v4  ;;  %29615 = vmatprep.mubr.msk.f32.mxu1 %vm2621_vm3, %v2978_v32 }
 0x4df   : > { %29606 = vmatmul.mubr.msk.f32.gmra.mrb[54].mxu0 %vm2621_vm3, %v29527_v3  ;;  %29616 = vmatmul.mubr.msk.f32.gmra.mrb[54].mxu1 %vm2621_vm3, %v29537_v45 }
 0x4e0   : > { %v29544_v28 = vpop.f32.mrb[40].mxu0  ;;  %v29554_v5 = vpop.f32.mrb[40].mxu1 }
 0x4e1   : > { %v3056_v14 = vpop.f32.mrb[41].mxu0  ;;  %v3144_v10 = vpop.f32.mrb[41].mxu1 }
 0x4e2   : > { %29622 = vmatprep.mubr.msk.f32.mxu0 %vm2621_vm3, %v3056_v14  ;;  %29632 = vmatprep.mubr.msk.f32.mxu1 %vm2621_vm3, %v3144_v10 }
 0x4e3   : > { %29623 = vmatmul.mubr.msk.f32.vlgmr.msra.gmra.mrb[56].mxu0 %vm2621_vm3, %v29544_v28  ;;  %29633 = vmatmul.mubr.msk.f32.vlgmr.msra.gmra.mrb[56].mxu1 %vm2621_vm3, %v29554_v5 }
 0x4e4   : > { %v29547_v63 = vpop.f32.mrb[42].mxu0  ;;  %32067 = vmatpush3.bf16.msk.msra.mxu0 %vm35388_vm6, %v35423_v42  ;;  %v29557_v62 = vpop.f32.mrb[42].mxu1  ;;  %32073 = vmatpush3.bf16.msk.msra.mxu1 %vm35388_vm6, %v35423_v42 }
 0x4e5   : > { %v3066_v51 = vpop.f32.mrb[43].mxu0  ;;  %v3154_v36 = vpop.f32.mrb[43].mxu1 }
 0x4e6   : > { %29625 = vmatprep.mubr.msk.f32.mxu0 %vm2621_vm3, %v3066_v51  ;;  %29635 = vmatprep.mubr.msk.f32.mxu1 %vm2621_vm3, %v3154_v36 }
 0x4e7   : > { %29626 = vmatmul.mubr.msk.f32.gmra.mrb[58].mxu0 %vm2621_vm3, %v29547_v63  ;;  %29636 = vmatmul.mubr.msk.f32.gmra.mrb[58].mxu1 %vm2621_vm3, %v29557_v62  ;;  %v35945_v62 = vpack.c.bf16 %v4123_v22, %v4122_v1 }
 0x4e8   : > { %v29564_v61 = vpop.f32.mrb[44].mxu0  ;;  %v29574_v11 = vpop.f32.mrb[44].mxu1 }
 0x4e9   : > { %v3232_v0 = vpop.f32.mrb[45].mxu0  ;;  %v3320_v12 = vpop.f32.mrb[45].mxu1 }
 0x4ea   : > { %29642 = vmatprep.mubr.msk.f32.mxu0 %vm2621_vm3, %v3232_v0  ;;  %29652 = vmatprep.mubr.msk.f32.mxu1 %vm2621_vm3, %v3320_v12  ;;  %v35957_v0 = vld [vmem:[#allocation17 + $0x18] sm:$0x3f] }
 0x4eb   : > { %29643 = vmatmul.mubr.msk.f32.vlgmr.msra.gmra.mrb[60].mxu0 %vm2621_vm3, %v29564_v61  ;;  %29653 = vmatmul.mubr.msk.f32.vlgmr.msra.gmra.mrb[60].mxu1 %vm2621_vm3, %v29574_v11 }
 0x4ec   : > { %v29567_v42 = vpop.f32.mrb[46].mxu0 }
 0x4ed   : > { %v29577_v39 = vpop.f32.mrb[46].mxu1  ;;  %v3242_v8 = vpop.f32.mrb[47].mxu0 }
 0x4ee   : > { %v3330_v16 = vpop.f32.mrb[47].mxu1  ;;  %29645 = vmatprep.mubr.msk.f32.mxu0 %vm2621_vm3, %v3242_v8 }
 0x4ef   : > { %29655 = vmatprep.mubr.msk.f32.mxu1 %vm2621_vm3, %v3330_v16  ;;  %29646 = vmatmul.mubr.msk.f32.gmra.mrb[62].mxu0 %vm2621_vm3, %v29567_v42 }
 0x4f0   : > { %29656 = vmatmul.mubr.msk.f32.gmra.mrb[62].mxu1 %vm2621_vm3, %v29577_v39  ;;  %29662 = vmatprep.mubr.msk.f32.mxu0 %vm2621_vm3, %v35888_v30 }
 0x4f1   : > { %29672 = vmatprep.mubr.msk.f32.mxu1 %vm2621_vm3, %v35888_v30 }
 0x5a4   : > { %v29584_v27 = vpop.f32.mrb[48].mxu0 }
 0x5a5   : > { %v29594_v2 = vpop.f32.mrb[48].mxu1  ;;  %v3420_v20 = vpop.f32.mrb[49].mxu0  ;;  %v8403_v7 = vsub.f32 %v29584_v27, %v35385_v23  ;;  %v35923_v48 = vadd.f32 %v29584_v27, %v35385_v23 }
 0x5a6   : > { %v35894_v18 = vpop.f32.mrb[49].mxu1  ;;  %v32074_v38 = vpack.c.bf16 %v29584_v27, %v3420_v20  ;;  %v8402_v35 = vsub.f32 %v3420_v20, %v35385_v23  ;;  %v8466_v53 = vadd.f32 %v35385_v23, %v3420_v20  ;;  %v8407_v24 = vsub.f32 %v29594_v2, %v35385_v23 }
 0x5a7   : > { %v32080_v59 = vpack.c.bf16 %v29594_v2, %v35894_v18  ;;  %v35939_v14 = vadd.f32 %v29594_v2, %v35385_v23  ;;  %v8406_v61 = vsub.f32 %v35894_v18, %v35385_v23  ;;  %v35951_v11 = vadd.f32 %v35385_v23, %v35894_v18 }
 0x5a8   : > { %v29587_v52 = vpop.f32.mrb[50].mxu0  ;;  %32076 = vmatprep.subr.msk.bf16.mxu0 %vm35388_vm6, %v32074_v38  ;;  %v8434_v51 = vmax.f32 %v8402_v35, 0.0  ;;  %v8498_v36 = vmin.f32 %v8466_v53, 0.0  ;;  %v8435_v12 = vmax.f32 %v8403_v7, 0.0  ;;  %v8499_v42 = vmin.f32 %v35923_v48, 0.0 }
 0x5a9   : > { %v29597_v21 = vpop.f32.mrb[50].mxu1  ;;  %v3430_v29 = vpop.f32.mrb[51].mxu0  ;;  %v8405_v46 = vsub.f32 %v29587_v52, %v35385_v23  ;;  %v8469_v50 = vadd.f32 %v29587_v52, %v35385_v23  ;;  %32082 = vmatprep.subr.msk.bf16.mxu1 %vm35388_vm6, %v32080_v59  ;;  %32079 = vmatpush3.bf16.msk.msra.mxu0 %vm35388_vm6, %v32074_v38  ;;  %v35964_v2 = vmax.f32 %v8407_v24, 0.0 }
 0x5aa   : > { %v35896_v54 = vpop.f32.mrb[51].mxu1  ;;  %v8409_v17 = vsub.f32 %v29597_v21, %v35385_v23  ;;  %v8473_v31 = vadd.f32 %v29597_v21, %v35385_v23  ;;  %32085 = vmatpush3.bf16.msk.msra.mxu1 %vm35388_vm6, %v32080_v59  ;;  %v8404_v4 = vsub.f32 %v3430_v29, %v35385_v23  ;;  %v8468_v32 = vadd.f32 %v35385_v23, %v3430_v29 }
 0x5ab   : > { %v8437_v3 = vmax.f32 %v8405_v46, 0.0  ;;  %v8501_v45 = vmin.f32 %v8469_v50, 0.0  ;;  %v8408_v39 = vsub.f32 %v35896_v54, %v35385_v23  ;;  %v8472_v8 = vadd.f32 %v35385_v23, %v35896_v54 }
 0x5ac   : > { %v8441_v10 = vmax.f32 %v8409_v17, 0.0  ;;  %v8505_v63 = vmin.f32 %v8473_v31, 0.0  ;;  %29663 = vmatmul.mubr.msk.f32.vlgmr.msra.gmra.mrb[64].mxu0 %vm2621_vm3, %v35913_v56  ;;  %v8436_v18 = vmax.f32 %v8404_v4, 0.0  ;;  %v8500_v52 = vmin.f32 %v8468_v32, 0.0 }
 0x5ad   : > { %29673 = vmatmul.mubr.msk.f32.vlgmr.msra.gmra.mrb[64].mxu1 %vm2621_vm3, %v35913_v56  ;;  %29665 = vmatprep.mubr.msk.f32.mxu0 %vm2621_vm3, %v35930_v57  ;;  %v35966_v20 = vadd.f32 %v8501_v45, %v8437_v3  ;;  %v35981_v50 = vmax.f32 %v8406_v61, 0.0  ;;  %v35989_v35 = vadd.f32 %v8498_v36, %v8434_v51  ;;  %v8440_v53 = vmax.f32 %v8408_v39, 0.0 }
 0x5ae   : > { %v35926_v15 = vpop.f32.mrb[52].mxu0  ;;  %v35928_v43 = vpop.f32.mrb[52].mxu1  ;;  %29675 = vmatprep.mubr.msk.f32.mxu1 %vm2621_vm3, %v35930_v57  ;;  %v35971_v59 = vadd.f32 %v8505_v63, %v8441_v10  ;;  %v8504_v1 = vmin.f32 %v8472_v8, 0.0  ;;  %v36002_v24 = vadd.f32 %v8500_v52, %v8436_v18  ;;  %v36020_v36 = vadd.f32 %v8499_v42, %v8435_v12 }
 0x5af   : > { %v35934_v28 = vpop.f32.mrb[53].mxu0  ;;  %v35936_v5 = vpop.f32.mrb[53].mxu1  ;;  %v8411_v22 = vsub.f32 %v35926_v15, %v35385_v23  ;;  %v35995_v7 = vadd.f32 %v35926_v15, %v35385_v23  ;;  %v8415_v4 = vsub.f32 %v35928_v43, %v35385_v23  ;;  %v36024_v61 = vadd.f32 %v35928_v43, %v35385_v23 }
 0x5b0   : > { %29666 = vmatmul.mubr.msk.f32.gmra.mrb[66].mxu0 %vm2621_vm3, %v35957_v0  ;;  %v32086_v54 = vpack.c.bf16 %v35926_v15, %v35934_v28  ;;  %v32092_v46 = vpack.c.bf16 %v35928_v43, %v35936_v5  ;;  %v8410_v39 = vsub.f32 %v35934_v28, %v35385_v23  ;;  %v36030_v18 = vadd.f32 %v8504_v1, %v8440_v53 }
 0x5b1   : > { %29676 = vmatmul.mubr.msk.f32.gmra.mrb[66].mxu1 %vm2621_vm3, %v35957_v0  ;;  %29682 = vmatprep.mubr.msk.f32.mxu0 %vm2621_vm3, %v35888_v30  ;;  %v36032_v52 = vmax.f32 %v8411_v22, 0.0  ;;  %v36037_v12 = vadd.f32 %v35385_v23, %v35934_v28 }
 0x5b2   : > { %v29607_v16 = vpop.f32.mrb[54].mxu0  ;;  %v29617_v27 = vpop.f32.mrb[54].mxu1  ;;  %29692 = vmatprep.mubr.msk.f32.mxu1 %vm2621_vm3, %v35888_v30  ;;  %32088 = vmatprep.subr.msk.bf16.mxu0 %vm35388_vm6, %v32086_v54 }
 0x5b3   : > { %v3624_v21 = vpop.f32.mrb[55].mxu0  ;;  %v35968_v29 = vpop.f32.mrb[55].mxu1  ;;  %v8413_v17 = vsub.f32 %v29607_v16, %v35385_v23  ;;  %v8477_v31 = vadd.f32 %v29607_v16, %v35385_v23  ;;  %32094 = vmatprep.subr.msk.bf16.mxu1 %vm35388_vm6, %v32092_v46  ;;  %v8417_v3 = vsub.f32 %v29617_v27, %v35385_v23  ;;  %v8481_v45 = vadd.f32 %v29617_v27, %v35385_v23 }
 0x5b4   : > { %32091 = vmatpush3.bf16.msk.msra.mxu0 %vm35388_vm6, %v32086_v54  ;;  %32097 = vmatpush3.bf16.msk.msra.mxu1 %vm35388_vm6, %v32092_v46  ;;  %v8412_v32 = vsub.f32 %v3624_v21, %v35385_v23  ;;  %v8476_v10 = vadd.f32 %v35385_v23, %v3624_v21  ;;  %v8416_v54 = vsub.f32 %v35968_v29, %v35385_v23  ;;  %v36056_v21 = vmax.f32 %v8410_v39, 0.0 }
 0x5b5   : > { %v8445_v8 = vmax.f32 %v8413_v17, 0.0  ;;  %v8509_v16 = vmin.f32 %v8477_v31, 0.0  ;;  %v8449_v43 = vmax.f32 %v8417_v3, 0.0  ;;  %v8513_v42 = vmin.f32 %v8481_v45, 0.0 }
 0x5b6   : > { %v36010_v15 = vpop.f32.mrb[56].mxu0  ;;  %v36016_v63 = vpop.f32.mrb[56].mxu1  ;;  %v8480_v46 = vadd.f32 %v35385_v23, %v35968_v29  ;;  %v36051_v17 = vmax.f32 %v8415_v4, 0.0  ;;  %v8414_v31 = vsub.f32 %v35936_v5, %v35385_v23  ;;  %v8444_v53 = vmax.f32 %v8412_v32, 0.0 }
 0x5b7   : > { %v36018_v51 = vpop.f32.mrb[57].mxu0  ;;  %v36028_v27 = vpop.f32.mrb[57].mxu1  ;;  %29683 = vmatmul.mubr.msk.f32.vlgmr.msra.gmra.mrb[68].mxu0 %vm2621_vm3, %v35913_v56  ;;  %29693 = vmatmul.mubr.msk.f32.vlgmr.msra.gmra.mrb[68].mxu1 %vm2621_vm3, %v35913_v56  ;;  %v8508_v1 = vmin.f32 %v8476_v10, 0.0  ;;  %v36060_v29 = vadd.f32 %v35385_v23, %v35936_v5  ;;  %v36062_v38 = vadd.f32 %v8509_v16, %v8445_v8  ;;  %v8419_v41 = vsub.f32 %v36010_v15, %v35385_v23 }
 0x5b8   : > { %29685 = vmatprep.mubr.msk.f32.mxu0 %vm2621_vm3, %v35930_v57  ;;  %29695 = vmatprep.mubr.msk.f32.mxu1 %vm2621_vm3, %v35930_v57  ;;  %v32098_v32 = vpack.c.bf16 %v36010_v15, %v36018_v51  ;;  %v32104_v5 = vpack.c.bf16 %v36016_v63, %v36028_v27  ;;  %v36075_v10 = vadd.f32 %v8513_v42, %v8449_v43  ;;  %v8448_v39 = vmax.f32 %v8416_v54, 0.0 }
 0x5b9   : > { %v8512_v8 = vmin.f32 %v8480_v46, 0.0  ;;  %v36079_v16 = vadd.f32 %v36010_v15, %v35385_v23  ;;  %v36085_v45 = vmax.f32 %v8414_v31, 0.0  ;;  %v36087_v4 = vadd.f32 %v8508_v1, %v8444_v53 }
 0x5ba   : > { %v29627_v28 = vpop.f32.mrb[58].mxu0  ;;  %v29637_v22 = vpop.f32.mrb[58].mxu1  ;;  %v8423_v43 = vsub.f32 %v36016_v63, %v35385_v23  ;;  %v36093_v42 = vadd.f32 %v36016_v63, %v35385_v23  ;;  %32100 = vmatprep.subr.msk.bf16.mxu0 %vm35388_vm6, %v32098_v32  ;;  %32106 = vmatprep.subr.msk.bf16.mxu1 %vm35388_vm6, %v32104_v5  ;;  %v8418_v46 = vsub.f32 %v36018_v51, %v35385_v23  ;;  %v36112_v6 = vmax.f32 %v8419_v41, 0.0 }
 0x5bb   : > { %v3818_v3 = vpop.f32.mrb[59].mxu0  ;;  %v3915_v48 = vpop.f32.mrb[59].mxu1  ;;  %29686 = vmatmul.mubr.msk.f32.gmra.mrb[70].mxu0 %vm2621_vm3, %v35957_v0  ;;  %29696 = vmatmul.mubr.msk.f32.gmra.mrb[70].mxu1 %vm2621_vm3, %v35957_v0  ;;  %v8421_v31 = vsub.f32 %v29627_v28, %v35385_v23  ;;  %v8485_v53 = vadd.f32 %v29627_v28, %v35385_v23  ;;  %v8425_v54 = vsub.f32 %v29637_v22, %v35385_v23 }
 0x5bc   : > { %29702 = vmatprep.mubr.msk.f32.mxu0 %vm2621_vm3, %v35888_v30  ;;  %29712 = vmatprep.mubr.msk.f32.mxu1 %vm2621_vm3, %v35888_v30  ;;  %v8489_v47 = vadd.f32 %v29637_v22, %v35385_v23  ;;  %v8420_v26 = vsub.f32 %v3818_v3, %v35385_v23  ;;  %v36119_v28 = vadd.f32 %v8512_v8, %v8448_v39  ;;  %v36127_v41 = vmax.f32 %v8423_v43, 0.0 }
 0x5bd   : > { %32103 = vmatpush3.bf16.msk.msra.mxu0 %vm35388_vm6, %v32098_v32  ;;  %32109 = vmatpush3.bf16.msk.msra.mxu1 %vm35388_vm6, %v32104_v5  ;;  %v36124_v5 = vadd.f32 %v35385_v23, %v36018_v51  ;;  %v8484_v34 = vadd.f32 %v35385_v23, %v3818_v3  ;;  %v8424_v22 = vsub.f32 %v3915_v48, %v35385_v23  ;;  %v36138_v51 = vmax.f32 %v8418_v46, 0.0 }
 0x5be   : > { %v29644_v15 = vpop.f32.mrb[60].mxu0  ;;  %v36108_v63 = vpop.f32.mrb[60].mxu1  ;;  %v8488_v9 = vadd.f32 %v35385_v23, %v3915_v48  ;;  %v8422_v3 = vsub.f32 %v36028_v27, %v35385_v23  ;;  %v8453_v8 = vmax.f32 %v8421_v31, 0.0  ;;  %v8517_v43 = vmin.f32 %v8485_v53, 0.0 }
 0x5bf   : > { %v36110_v1 = vpop.f32.mrb[61].mxu0  ;;  %v36117_v60 = vpop.f32.mrb[61].mxu1  ;;  %v36152_v32 = vadd.f32 %v35385_v23, %v36028_v27  ;;  %v8457_v46 = vmax.f32 %v8425_v54, 0.0  ;;  %v8521_v19 = vmin.f32 %v8489_v47, 0.0  ;;  %v8452_v58 = vmax.f32 %v8420_v26, 0.0 }
 0x5c0   : > { %29703 = vmatmul.mubr.msk.f32.vlgmr.msra.gmra.mrb[72].mxu0 %vm2621_vm3, %v35913_v56  ;;  %29713 = vmatmul.mubr.msk.f32.vlgmr.msra.gmra.mrb[72].mxu1 %vm2621_vm3, %v35913_v56  ;;  %v8516_v31 = vmin.f32 %v8484_v34, 0.0  ;;  %v8427_v53 = vsub.f32 %v29644_v15, %v35385_v23  ;;  %v32110_v33 = vpack.c.bf16 %v29644_v15, %v36110_v1  ;;  %v32116_v40 = vpack.c.bf16 %v36108_v63, %v36117_v60 }
 0x5c1   : > { %29705 = vmatprep.mubr.msk.f32.mxu0 %vm2621_vm3, %v35930_v57  ;;  %29715 = vmatprep.mubr.msk.f32.mxu1 %vm2621_vm3, %v35930_v57  ;;  %v8514_v49 = vmin.f32 %v36124_v5, 0.0  ;;  %v8456_v44 = vmax.f32 %v8424_v22, 0.0  ;;  %v8520_v13 = vmin.f32 %v8488_v9, 0.0  ;;  %v36162_v27 = vadd.f32 %v29644_v15, %v35385_v23 }
 0x5c2   : > { %v36136_v39 = vpop.f32.mrb[62].mxu0  ;;  %v8454_v34 = vmax.f32 %v8422_v3, 0.0  ;;  %v8549_v26 = vadd.f32 %v8517_v43, %v8453_v8  ;;  %v8431_v47 = vsub.f32 %v36108_v63, %v35385_v23  ;;  %v8495_v54 = vadd.f32 %v36108_v63, %v35385_v23  ;;  %32112 = vmatprep.subr.msk.bf16.mxu0 %vm35388_vm6, %v32110_v33  ;;  %32118 = vmatprep.subr.msk.bf16.mxu1 %vm35388_vm6, %v32116_v40 }
 0x5c3   : > { %v36146_v48 = vpop.f32.mrb[62].mxu1  ;;  %v36148_v37 = vpop.f32.mrb[63].mxu0  ;;  %v8518_v9 = vmin.f32 %v36152_v32, 0.0  ;;  %v8553_v15 = vadd.f32 %v8521_v19, %v8457_v46  ;;  %v8426_v5 = vsub.f32 %v36110_v1, %v35385_v23  ;;  %v8490_v22 = vadd.f32 %v35385_v23, %v36110_v1  ;;  %32115 = vmatpush3.bf16.msk.msra.mxu0 %vm35388_vm6, %v32110_v33  ;;  %32121 = vmatpush3.bf16.msk.msra.mxu1 %vm35388_vm6, %v32116_v40 }
 0x5c4   : > { %v36154_v55 = vpop.f32.mrb[63].mxu1  ;;  %29706 = vmatmul.mubr.msk.f32.gmra.mrb[74].mxu0 %vm2621_vm3, %v35957_v0  ;;  %29716 = vmatmul.mubr.msk.f32.gmra.mrb[74].mxu1 %vm2621_vm3, %v35957_v0  ;;  %v8548_v63 = vadd.f32 %v8516_v31, %v8452_v58  ;;  %v8459_v3 = vmax.f32 %v8427_v53, 0.0  ;;  %v8430_v8 = vsub.f32 %v36117_v60, %v35385_v23  ;;  %v36193_v19 = vpack.c.bf16 %v36020_v36, %v35989_v35 }
 0x5c5   : > { %29722 = vmatprep.mubr.msk.f32.mxu0 %vm2621_vm3, %v35888_v30  ;;  %29732 = vmatprep.mubr.msk.f32.mxu1 %vm2621_vm3, %v35888_v30  ;;  %v8552_v1 = vadd.f32 %v8520_v13, %v8456_v44  ;;  %v8523_v33 = vmin.f32 %v36162_v27, 0.0  ;;  %v8494_v40 = vadd.f32 %v35385_v23, %v36117_v60  ;;  %v40499_v58 = vmin.f32 %v35951_v11, 0.0 }
 0x5c6   : > { %32124 = vmatprep.subr.msk.bf16.mxu0 %vm35388_vm6, %v35945_v62  ;;  %32130 = vmatprep.subr.msk.bf16.mxu1 %vm35388_vm6, %v35945_v62  ;;  %v8463_v35 = vmax.f32 %v8431_v47, 0.0  ;;  %v8527_v36 = vmin.f32 %v8495_v54, 0.0  ;;  %v40500_v13 = vmin.f32 %v35939_v14, 0.0  ;;  %v36216_v60 = vpack.c.bf16 %v35966_v20, %v36002_v24 }
 0x5c7   : > { %v8534_v30 = vadd.f32 %v40499_v58, %v35981_v50  ;;  %v8458_v32 = vmax.f32 %v8426_v5, 0.0  ;;  %v8522_v43 = vmin.f32 %v8490_v22, 0.0  ;;  %v36224_v11 = vpack.c.bf16 %v35971_v59, %v36030_v18 }
 0x5c8   : > { %29723 = vmatmul.mubr.msk.f32.vlgmr.msra.gmra.mrb[76].mxu0 %vm2621_vm3, %v35913_v56  ;;  %29733 = vmatmul.mubr.msk.f32.vlgmr.msra.gmra.mrb[76].mxu1 %vm2621_vm3, %v35913_v56  ;;  %v8535_v44 = vadd.f32 %v40500_v13, %v35964_v2  ;;  %v40501_v56 = vmin.f32 %v36037_v12, 0.0  ;;  %v8462_v2 = vmax.f32 %v8430_v8, 0.0  ;;  %v40503_v50 = vmin.f32 %v36060_v29, 0.0 }
 0x5c9   : > { %29725 = vmatprep.mubr.msk.f32.mxu0 %vm2621_vm3, %v35930_v57  ;;  %29735 = vmatprep.mubr.msk.f32.mxu1 %vm2621_vm3, %v35930_v57  ;;  %v40502_v57 = vmin.f32 %v35995_v7, 0.0  ;;  %v8526_v18 = vmin.f32 %v8494_v40, 0.0  ;;  %v36254_v7 = vpack.c.bf16 %v36062_v38, %v36087_v4  ;;  %v8546_v29 = vadd.f32 %v8514_v49, %v36138_v51 }
 0x5ca   : > { %v8538_v14 = vadd.f32 %v40501_v56, %v36056_v21  ;;  %32127 = vmatpush3.bf16.msk.msra.mxu0 %vm35388_vm6, %v35945_v62  ;;  %32133 = vmatpush3.bf16.msk.msra.mxu1 %vm35388_vm6, %v35945_v62  ;;  %v36235_v20 = vpack.c.bf16 %v8535_v44, %v8534_v30  ;;  %v8542_v24 = vadd.f32 %v40503_v50, %v36085_v45  ;;  %v40504_v21 = vmin.f32 %v36024_v61, 0.0 }
 0x5cb   : > { %v8539_v59 = vadd.f32 %v40502_v57, %v36032_v52  ;;  %32136 = vmatprep.subr.msk.bf16.mxu0 %vm35388_vm6, %v35945_v62  ;;  %32142 = vmatprep.subr.msk.bf16.mxu1 %vm35388_vm6, %v35945_v62  ;;  %40505 = vst [vmem:[#allocation65_spill] sm:$0xff] %v36254_v7  ;;  %v36258_v52 = vpack.c.bf16 %v36075_v10, %v36119_v28  ;;  %v40507_v61 = vmin.f32 %v36079_v16, 0.0  ;;  %v40508_v10 = vmin.f32 %v36093_v42, 0.0 }
 0x5cc   : > { %v8543_v12 = vadd.f32 %v40504_v21, %v36051_v17  ;;  %29726 = vmatmul.mubr.msk.f32.gmra.mrb[78].mxu0 %vm2621_vm3, %v35957_v0  ;;  %29736 = vmatmul.mubr.msk.f32.gmra.mrb[78].mxu1 %vm2621_vm3, %v35957_v0  ;;  %v8550_v4 = vadd.f32 %v8518_v9, %v8454_v34  ;;  %v36275_v46 = vpack.c.bf16 %v8549_v26, %v8548_v63 }
 0x5cd   : > { %40506 = vst [vmem:[#allocation66_spill] sm:$0xff] %v36258_v52  ;;  %v36264_v45 = vpack.c.bf16 %v8539_v59, %v8538_v14  ;;  %v8547_v17 = vadd.f32 %v40507_v61, %v36112_v6  ;;  %v8551_v28 = vadd.f32 %v40508_v10, %v36127_v41  ;;  %v36279_v0 = vpack.c.bf16 %v8553_v15, %v8552_v1 }
 0x5ce   : > { %v36270_v38 = vpack.c.bf16 %v8543_v12, %v8542_v24  ;;  %40509 = vst [vmem:[#allocation67_spill] sm:$0xff] %v36275_v46  ;;  %v8554_v53 = vadd.f32 %v8522_v43, %v8458_v32  ;;  %v8555_v27 = vadd.f32 %v8523_v33, %v8459_v3  ;;  %v8558_v51 = vadd.f32 %v8526_v18, %v8462_v2 }
 0x5cf   : > { %v36277_v31 = vpack.c.bf16 %v8547_v17, %v8546_v29  ;;  %40511 = vst [vmem:[#allocation69_spill] sm:$0xff] %v36279_v0  ;;  %v36281_v49 = vpack.c.bf16 %v8551_v28, %v8550_v4  ;;  %v8559_v16 = vadd.f32 %v8527_v36, %v8463_v35  ;;  %v8429_v42 = vsub.f32 %v36136_v39, %v35385_v23 }
 0x5d0   : > { %v36283_v6 = vpack.c.bf16 %v8555_v27, %v8554_v53  ;;  %v8493_v41 = vadd.f32 %v36136_v39, %v35385_v23  ;;  %v8433_v34 = vsub.f32 %v36146_v48, %v35385_v23  ;;  %v8497_v26 = vadd.f32 %v36146_v48, %v35385_v23 }
 0x5d1   : > { %40510 = vst [vmem:[#allocation68_spill] sm:$0xff] %v36277_v31  ;;  %40512 = vst [vmem:[#allocation70_spill] sm:$0xff] %v36281_v49  ;;  %v36285_v47 = vpack.c.bf16 %v8559_v16, %v8558_v51  ;;  %v8428_v54 = vsub.f32 %v36148_v37, %v35385_v23  ;;  %v8492_v9 = vadd.f32 %v35385_v23, %v36148_v37  ;;  %v8461_v22 = vmax.f32 %v8429_v42, 0.0 }
 0x5d2   : > { %40513 = vst [vmem:[#allocation71_spill] sm:$0xff] %v36283_v6  ;;  %v8432_v15 = vsub.f32 %v36154_v55, %v35385_v23  ;;  %v8496_v5 = vadd.f32 %v35385_v23, %v36154_v55  ;;  %v8525_v39 = vmin.f32 %v8493_v41, 0.0  ;;  %v8465_v63 = vmax.f32 %v8433_v34, 0.0 }
 0x5d3   : > { %40514 = vst [vmem:[#allocation72_spill] sm:$0xff] %v36285_v47  ;;  %v8529_v3 = vmin.f32 %v8497_v26, 0.0  ;;  %v8460_v8 = vmax.f32 %v8428_v54, 0.0  ;;  %v8524_v1 = vmin.f32 %v8492_v9, 0.0 }
 0x5d4   : > { %v8464_v33 = vmax.f32 %v8432_v15, 0.0  ;;  %v8528_v48 = vmin.f32 %v8496_v5, 0.0  ;;  %v8557_v40 = vadd.f32 %v8525_v39, %v8461_v22  ;;  %v36372_v15 = vld [vmem:[%s40517_s1] sm:$0xff]  ;;  %v5625_v5 = vlaneseq }
 0x5d5   : > { %v8561_v58 = vadd.f32 %v8529_v3, %v8465_v63  ;;  %v8556_v30 = vadd.f32 %v8524_v1, %v8460_v8 }
 0x5d6   : > { %v8560_v35 = vadd.f32 %v8528_v48, %v8464_v33  ;;  %v5626_v22 = vshrl.u32 %v5625_v5, 7  ;;  %v36380_v63 = vand.u32 127, %v5625_v5 }
 0x5d7   : > { %v36303_v36 = vpack.c.bf16 %v8557_v40, %v8556_v30 }
 0x5d8   : > { %v36305_v37 = vpack.c.bf16 %v8561_v58, %v8560_v35  ;;  %v36378_v39 = vadd.s32 8, %v5626_v22  ;;  %40519 = vst [vmem:[#allocation76_spill] sm:$0xff] %v36380_v63  ;;  %vm5636_vm9 = vcmp.ge.s32.totalorder %v36380_v63, 15 }
 0x5d9   : > { %40515 = vst [vmem:[#allocation73_spill] sm:$0xff] %v36303_v36 }
 0x5da   : > { %40516 = vst [vmem:[#allocation74_spill] sm:$0xff] %v36305_v37  ;;  %40518 = vst [vmem:[#allocation75_spill] sm:$0xff] %v36378_v39  ;;  %vm5633_vm8 = vcmp.ge.s32.totalorder %v36378_v39, 15 }
 0x5db   : > { %vm5638_vm11 = vmor %vm5633_vm8, %vm5636_vm9 }
 0x5dc   : > { %vm36455_vm12 = vmpackc.low %vm5638_vm11, %vm5636_vm9 }
 0x67f   : > { %v29664_v13 = vpop.f32.mrb[64].mxu0 }
 0x680   : > { %v29674_v44 = vpop.f32.mrb[64].mxu1  ;;  %v4205_v32 = vpop.f32.mrb[65].mxu0 }
 0x681   : > { %v4293_v55 = vpop.f32.mrb[65].mxu1  ;;  %29742 = vmatprep.mubr.msk.f32.mxu0 %vm2621_vm3, %v4205_v32 }
 0x682   : > { %29752 = vmatprep.mubr.msk.f32.mxu1 %vm2621_vm3, %v4293_v55  ;;  %29743 = vmatmul.mubr.msk.f32.vlgmr.msra.gmra.mrb[80].mxu0 %vm2621_vm3, %v29664_v13 }
 0x683   : > { %29753 = vmatmul.mubr.msk.f32.vlgmr.msra.gmra.mrb[80].mxu1 %vm2621_vm3, %v29674_v44  ;;  %v29667_v43 = vpop.f32.mrb[66].mxu0  ;;  %32139 = vmatpush3.bf16.msk.msra.mxu0 %vm35388_vm6, %v35945_v62 }
 0x684   : > { %v29677_v56 = vpop.f32.mrb[66].mxu1  ;;  %32145 = vmatpush3.bf16.msk.msra.mxu1 %vm35388_vm6, %v35945_v62  ;;  %v4215_v14 = vpop.f32.mrb[67].mxu0  ;;  %32148 = vmatprep.subr.msk.bf16.mxu0 %vm35388_vm6, %v35945_v62 }
 0x685   : > { %v4303_v2 = vpop.f32.mrb[67].mxu1  ;;  %32154 = vmatprep.subr.msk.bf16.mxu1 %vm35388_vm6, %v35945_v62  ;;  %29745 = vmatprep.mubr.msk.f32.mxu0 %vm2621_vm3, %v4215_v14 }
 0x686   : > { %29755 = vmatprep.mubr.msk.f32.mxu1 %vm2621_vm3, %v4303_v2  ;;  %29746 = vmatmul.mubr.msk.f32.gmra.mrb[82].mxu0 %vm2621_vm3, %v29667_v43 }
 0x687   : > { %29756 = vmatmul.mubr.msk.f32.gmra.mrb[82].mxu1 %vm2621_vm3, %v29677_v56 }
 0x68a   : > { %v29684_v57 = vpop.f32.mrb[68].mxu0  ;;  %v29694_v59 = vpop.f32.mrb[68].mxu1 }
 0x68b   : > { %v4381_v50 = vpop.f32.mrb[69].mxu0  ;;  %v4469_v24 = vpop.f32.mrb[69].mxu1 }
 0x68c   : > { %29762 = vmatprep.mubr.msk.f32.mxu0 %vm2621_vm3, %v4381_v50  ;;  %29772 = vmatprep.mubr.msk.f32.mxu1 %vm2621_vm3, %v4469_v24 }
 0x68d   : > { %29763 = vmatmul.mubr.msk.f32.vlgmr.msra.gmra.mrb[84].mxu0 %vm2621_vm3, %v29684_v57  ;;  %29773 = vmatmul.mubr.msk.f32.vlgmr.msra.gmra.mrb[84].mxu1 %vm2621_vm3, %v29694_v59 }
 0x68e   : > { %v29687_v18 = vpop.f32.mrb[70].mxu0  ;;  %v29697_v21 = vpop.f32.mrb[70].mxu1  ;;  %32151 = vmatpush3.bf16.msk.msra.mxu0 %vm35388_vm6, %v35945_v62  ;;  %32157 = vmatpush3.bf16.msk.msra.mxu1 %vm35388_vm6, %v35945_v62 }
 0x68f   : > { %v4391_v12 = vpop.f32.mrb[71].mxu0  ;;  %v4479_v29 = vpop.f32.mrb[71].mxu1  ;;  %32160 = vmatprep.subr.msk.bf16.mxu0 %vm35388_vm6, %v35945_v62  ;;  %32166 = vmatprep.subr.msk.bf16.mxu1 %vm35388_vm6, %v35945_v62 }
 0x690   : > { %29765 = vmatprep.mubr.msk.f32.mxu0 %vm2621_vm3, %v4391_v12  ;;  %29775 = vmatprep.mubr.msk.f32.mxu1 %vm2621_vm3, %v4479_v29 }
 0x691   : > { %29766 = vmatmul.mubr.msk.f32.gmra.mrb[86].mxu0 %vm2621_vm3, %v29687_v18  ;;  %29776 = vmatmul.mubr.msk.f32.gmra.mrb[86].mxu1 %vm2621_vm3, %v29697_v21 }
 0x693   : > { %v29704_v61 = vpop.f32.mrb[72].mxu0  ;;  %v29714_v17 = vpop.f32.mrb[72].mxu1 }
 0x694   : > { %v4557_v4 = vpop.f32.mrb[73].mxu0  ;;  %v4645_v10 = vpop.f32.mrb[73].mxu1 }
 0x695   : > { %29782 = vmatprep.mubr.msk.f32.mxu0 %vm2621_vm3, %v4557_v4  ;;  %29792 = vmatprep.mubr.msk.f32.mxu1 %vm2621_vm3, %v4645_v10 }
 0x696   : > { %29783 = vmatmul.mubr.msk.f32.vlgmr.msra.gmra.mrb[88].mxu0 %vm2621_vm3, %v29704_v61  ;;  %29793 = vmatmul.mubr.msk.f32.vlgmr.msra.gmra.mrb[88].mxu1 %vm2621_vm3, %v29714_v17 }
 0x697   : > { %v29707_v28 = vpop.f32.mrb[74].mxu0  ;;  %v29717_v53 = vpop.f32.mrb[74].mxu1  ;;  %32163 = vmatpush3.bf16.msk.msra.mxu0 %vm35388_vm6, %v35945_v62  ;;  %32169 = vmatpush3.bf16.msk.msra.mxu1 %vm35388_vm6, %v35945_v62 }
 0x698   : > { %v4567_v27 = vpop.f32.mrb[75].mxu0  ;;  %v4655_v51 = vpop.f32.mrb[75].mxu1 }
 0x699   : > { %29785 = vmatprep.mubr.msk.f32.mxu0 %vm2621_vm3, %v4567_v27  ;;  %29795 = vmatprep.mubr.msk.f32.mxu1 %vm2621_vm3, %v4655_v51 }
 0x69a   : > { %29786 = vmatmul.mubr.msk.f32.gmra.mrb[90].mxu0 %vm2621_vm3, %v29707_v28  ;;  %29796 = vmatmul.mubr.msk.f32.gmra.mrb[90].mxu1 %vm2621_vm3, %v29717_v53 }
 0x69b   : > { %v29724_v16 = vpop.f32.mrb[76].mxu0  ;;  %v29734_v42 = vpop.f32.mrb[76].mxu1 }
 0x69c   : > { %v4733_v41 = vpop.f32.mrb[77].mxu0  ;;  %v4821_v34 = vpop.f32.mrb[77].mxu1 }
 0x69d   : > { %29802 = vmatprep.mubr.msk.f32.mxu0 %vm2621_vm3, %v4733_v41  ;;  %29812 = vmatprep.mubr.msk.f32.mxu1 %vm2621_vm3, %v4821_v34 }
 0x69e   : > { %29803 = vmatmul.mubr.msk.f32.vlgmr.msra.gmra.mrb[92].mxu0 %vm2621_vm3, %v29724_v16  ;;  %29813 = vmatmul.mubr.msk.f32.vlgmr.msra.gmra.mrb[92].mxu1 %vm2621_vm3, %v29734_v42 }
 0x69f   : > { %v29727_v62 = vpop.f32.mrb[78].mxu0  ;;  %v29737_v26 = vpop.f32.mrb[78].mxu1 }
 0x6a0   : > { %v4743_v54 = vpop.f32.mrb[79].mxu0  ;;  %v4831_v9 = vpop.f32.mrb[79].mxu1 }
 0x6a1   : > { %29805 = vmatprep.mubr.msk.f32.mxu0 %vm2621_vm3, %v4743_v54  ;;  %29815 = vmatprep.mubr.msk.f32.mxu1 %vm2621_vm3, %v4831_v9 }
 0x6a2   : > { %29806 = vmatmul.mubr.msk.f32.gmra.mrb[94].mxu0 %vm2621_vm3, %v29727_v62  ;;  %29816 = vmatmul.mubr.msk.f32.gmra.mrb[94].mxu1 %vm2621_vm3, %v29737_v26 }
 0x6a3   : > { %29826 = vmatprep.mubr.msk.f32.mxu0 %vm5834_vm7, %v36372_v15  ;;  %29837 = vmatprep.mubr.msk.f32.mxu1 %vm5834_vm7, %v36372_v15 }
 0x755   : > { %v36382_v3 = vpop.f32.mrb[80].mxu0 }
 0x756   : > { %v36384_v8 = vpop.f32.mrb[80].mxu1  ;;  %v5643_v1 = vsub.f32 %v36382_v3, %v35385_v23  ;;  %v5707_v33 = vadd.f32 %v36382_v3, %v35385_v23  ;;  %v36396_v58 = vpop.f32.mrb[81].mxu0 }
 0x757   : > { %v5647_v48 = vsub.f32 %v36384_v8, %v35385_v23  ;;  %v5711_v40 = vadd.f32 %v36384_v8, %v35385_v23  ;;  %v36398_v30 = vpop.f32.mrb[81].mxu1  ;;  %v5642_v35 = vsub.f32 %v36396_v58, %v35385_v23  ;;  %v5706_v13 = vadd.f32 %v35385_v23, %v36396_v58 }
 0x758   : > { %v5646_v44 = vsub.f32 %v36398_v30, %v35385_v23  ;;  %v5710_v32 = vadd.f32 %v35385_v23, %v36398_v30  ;;  %v5675_v55 = vmax.f32 %v5643_v1, 0.0  ;;  %v5739_v43 = vmin.f32 %v5707_v33, 0.0 }
 0x759   : > { %v5679_v56 = vmax.f32 %v5647_v48, 0.0  ;;  %v5743_v14 = vmin.f32 %v5711_v40, 0.0  ;;  %v5674_v2 = vmax.f32 %v5642_v35, 0.0  ;;  %v5738_v57 = vmin.f32 %v5706_v13, 0.0  ;;  %v29747_v24 = vpop.f32.mrb[82].mxu0 }
 0x75a   : > { %v5678_v59 = vmax.f32 %v5646_v44, 0.0  ;;  %v5742_v50 = vmin.f32 %v5710_v32, 0.0  ;;  %v29757_v18 = vpop.f32.mrb[82].mxu1  ;;  %v5645_v21 = vsub.f32 %v29747_v24, %v35385_v23  ;;  %v5709_v12 = vadd.f32 %v29747_v24, %v35385_v23  ;;  %v4931_v17 = vpop.f32.mrb[83].mxu0 }
 0x75b   : > { %v5649_v29 = vsub.f32 %v29757_v18, %v35385_v23  ;;  %v5713_v61 = vadd.f32 %v29757_v18, %v35385_v23  ;;  %v5028_v4 = vpop.f32.mrb[83].mxu1  ;;  %v5644_v10 = vsub.f32 %v4931_v17, %v35385_v23  ;;  %v5708_v28 = vadd.f32 %v35385_v23, %v4931_v17 }
 0x75c   : > { %v5648_v53 = vsub.f32 %v5028_v4, %v35385_v23  ;;  %v5712_v27 = vadd.f32 %v35385_v23, %v5028_v4  ;;  %v5677_v51 = vmax.f32 %v5645_v21, 0.0  ;;  %v5741_v16 = vmin.f32 %v5709_v12, 0.0 }
 0x75d   : > { %v5681_v42 = vmax.f32 %v5649_v29, 0.0  ;;  %v5745_v41 = vmin.f32 %v5713_v61, 0.0  ;;  %v5676_v34 = vmax.f32 %v5644_v10, 0.0  ;;  %v5740_v62 = vmin.f32 %v5708_v28, 0.0 }
 0x75e   : > { %v5680_v26 = vmax.f32 %v5648_v53, 0.0  ;;  %v5744_v54 = vmin.f32 %v5712_v27, 0.0  ;;  %v5773_v9 = vadd.f32 %v5741_v16, %v5677_v51  ;;  %v5770_v22 = vadd.f32 %v5738_v57, %v5674_v2 }
 0x75f   : > { %v5777_v5 = vadd.f32 %v5745_v41, %v5681_v42  ;;  %v5771_v1 = vadd.f32 %v5739_v43, %v5675_v55  ;;  %v5772_v33 = vadd.f32 %v5740_v62, %v5676_v34  ;;  %v5774_v13 = vadd.f32 %v5742_v50, %v5678_v59 }
 0x760   : > { %v5776_v48 = vadd.f32 %v5744_v54, %v5680_v26  ;;  %v36416_v40 = vpop.f32.mrb[84].mxu0  ;;  %v36418_v35 = vpop.f32.mrb[84].mxu1  ;;  %v5775_v44 = vadd.f32 %v5743_v14, %v5679_v56 }
 0x761   : > { %v5651_v32 = vsub.f32 %v36416_v40, %v35385_v23  ;;  %v36424_v24 = vadd.f32 %v36416_v40, %v35385_v23  ;;  %v5655_v18 = vsub.f32 %v36418_v35, %v35385_v23  ;;  %v36430_v55 = vadd.f32 %v36418_v35, %v35385_v23  ;;  %v36432_v43 = vpop.f32.mrb[85].mxu0  ;;  %v36434_v2 = vpop.f32.mrb[85].mxu1 }
 0x762   : > { %v5650_v56 = vsub.f32 %v36432_v43, %v35385_v23  ;;  %v5714_v14 = vadd.f32 %v35385_v23, %v36432_v43  ;;  %v5654_v57 = vsub.f32 %v36434_v2, %v35385_v23  ;;  %v36448_v59 = vadd.f32 %v35385_v23, %v36434_v2 }
 0x763   : > { %v5683_v50 = vmax.f32 %v5651_v32, 0.0  ;;  %v5747_v21 = vmin.f32 %v36424_v24, 0.0  ;;  %v5687_v12 = vmax.f32 %v5655_v18, 0.0  ;;  %v5751_v29 = vmin.f32 %v36430_v55, 0.0 }
 0x764   : > { %v5682_v61 = vmax.f32 %v5650_v56, 0.0  ;;  %v5746_v17 = vmin.f32 %v5714_v14, 0.0  ;;  %v5686_v4 = vmax.f32 %v5654_v57, 0.0  ;;  %v5750_v10 = vmin.f32 %v36448_v59, 0.0  ;;  %v29767_v53 = vpop.f32.mrb[86].mxu0  ;;  %v29777_v27 = vpop.f32.mrb[86].mxu1 }
 0x765   : > { %v32170_v51 = vpack.c.bf16 %v5771_v1, %v5770_v22  ;;  %v32182_v16 = vpack.c.bf16 %v5775_v44, %v5774_v13  ;;  %v5653_v42 = vsub.f32 %v29767_v53, %v35385_v23  ;;  %v5717_v41 = vadd.f32 %v29767_v53, %v35385_v23  ;;  %v5125_v34 = vpop.f32.mrb[87].mxu0  ;;  %v5222_v62 = vpop.f32.mrb[87].mxu1 }
 0x766   : > { %v5657_v26 = vsub.f32 %v29777_v27, %v35385_v23  ;;  %v5721_v54 = vadd.f32 %v29777_v27, %v35385_v23  ;;  %v5652_v32 = vsub.f32 %v5125_v34, %v35385_v23  ;;  %v5716_v24 = vadd.f32 %v35385_v23, %v5125_v34 }
 0x767   : > { %32172 = vmatprep.subr.msk.bf16.mxu0 %vm36455_vm12, %v32170_v51  ;;  %32184 = vmatprep.subr.msk.bf16.mxu1 %vm36455_vm12, %v32182_v16  ;;  %v5685_v22 = vmax.f32 %v5653_v42, 0.0  ;;  %v5749_v1 = vmin.f32 %v5717_v41, 0.0  ;;  %v5656_v13 = vsub.f32 %v5222_v62, %v35385_v23  ;;  %v5720_v44 = vadd.f32 %v35385_v23, %v5222_v62 }
 0x768   : > { %32175 = vmatpush3.bf16.msk.msra.mxu0 %vm36455_vm12, %v32170_v51  ;;  %32187 = vmatpush3.bf16.msk.msra.mxu1 %vm36455_vm12, %v32182_v16  ;;  %v5689_v18 = vmax.f32 %v5657_v26, 0.0  ;;  %v5753_v55 = vmin.f32 %v5721_v54, 0.0  ;;  %v5684_v56 = vmax.f32 %v5652_v32, 0.0  ;;  %v5748_v14 = vmin.f32 %v5716_v24, 0.0 }
 0x769   : > { %v5781_v59 = vadd.f32 %v5749_v1, %v5685_v22  ;;  %v5688_v53 = vmax.f32 %v5656_v13, 0.0  ;;  %v5752_v27 = vmin.f32 %v5720_v44, 0.0  ;;  %v32176_v42 = vpack.c.bf16 %v5773_v9, %v5772_v33  ;;  %v36481_v62 = vpop.f32.mrb[88].mxu0  ;;  %v36483_v16 = vpop.f32.mrb[88].mxu1  ;;  %v36514_v22 = vld [vmem:[%s40517_s1 + $0x8] sm:$0x7f] }
 0x76a   : > { %v5785_v41 = vadd.f32 %v5753_v55, %v5689_v18  ;;  %v5780_v34 = vadd.f32 %v5748_v14, %v5684_v56  ;;  %v32188_v51 = vpack.c.bf16 %v5777_v5, %v5776_v48  ;;  %v5778_v26 = vadd.f32 %v5746_v17, %v5682_v61  ;;  %v36495_v5 = vpop.f32.mrb[89].mxu0  ;;  %v36497_v33 = vpop.f32.mrb[89].mxu1 }
 0x76b   : > { %v5784_v54 = vadd.f32 %v5752_v27, %v5688_v53  ;;  %32178 = vmatprep.subr.msk.bf16.mxu0 %vm36477_vm13, %v32176_v42  ;;  %v5659_v32 = vsub.f32 %v36481_v62, %v35385_v23  ;;  %v36491_v24 = vadd.f32 %v36481_v62, %v35385_v23  ;;  %v36505_v48 = vadd.f32 %v36483_v16, %v35385_v23 }
 0x76c   : > { %32190 = vmatprep.subr.msk.bf16.mxu1 %vm36477_vm13, %v32188_v51  ;;  %32181 = vmatpush3.bf16.msk.msra.mxu0 %vm36477_vm13, %v32176_v42  ;;  %v5658_v61 = vsub.f32 %v36495_v5, %v35385_v23  ;;  %v5722_v17 = vadd.f32 %v35385_v23, %v36495_v5  ;;  %v5662_v1 = vsub.f32 %v36497_v33, %v35385_v23 }
 0x76d   : > { %32193 = vmatpush3.bf16.msk.msra.mxu1 %vm36477_vm13, %v32188_v51  ;;  %v36522_v13 = vadd.f32 %v35385_v23, %v36497_v33  ;;  %v5779_v44 = vadd.f32 %v5747_v21, %v5683_v50  ;;  %v5782_v18 = vadd.f32 %v5750_v10, %v5686_v4  ;;  %v5783_v55 = vadd.f32 %v5751_v29, %v5687_v12  ;;  %v29787_v56 = vpop.f32.mrb[90].mxu0  ;;  %v29797_v14 = vpop.f32.mrb[90].mxu1 }
 0x76e   : > { %v32200_v53 = vpack.c.bf16 %v5781_v59, %v5780_v34  ;;  %v32212_v27 = vpack.c.bf16 %v5785_v41, %v5784_v54  ;;  %v5690_v42 = vmax.f32 %v5658_v61, 0.0  ;;  %v5661_v51 = vsub.f32 %v29787_v56, %v35385_v23  ;;  %v5319_v37 = vpop.f32.mrb[91].mxu0  ;;  %v5416_v50 = vpop.f32.mrb[91].mxu1 }
 0x76f   : > { %29827 = vmatmul.mubr.msk.f32.vlgmr.msra.gmra.mrb[96].mxu0 %vm5834_vm7, %v36514_v22  ;;  %v32194_v9 = vpack.c.bf16 %v5779_v44, %v5778_v26  ;;  %v36528_v39 = vadd.f32 %v29787_v56, %v35385_v23  ;;  %v5665_v63 = vsub.f32 %v29797_v14, %v35385_v23  ;;  %v32206_v21 = vpack.c.bf16 %v5783_v55, %v5782_v18 }
 0x770   : > { %29838 = vmatmul.mubr.msk.f32.vlgmr.msra.gmra.mrb[96].mxu1 %vm5834_vm7, %v36514_v22  ;;  %v36534_v12 = vadd.f32 %v29797_v14, %v35385_v23  ;;  %v5660_v29 = vsub.f32 %v5319_v37, %v35385_v23  ;;  %v5724_v4 = vadd.f32 %v35385_v23, %v5319_v37  ;;  %v36540_v10 = vmax.f32 %v5661_v51, 0.0  ;;  %29848 = vmatprep.mubr.msk.f32.mxu0 %vm5834_vm7, %v36372_v15 }
 0x771   : > { %32196 = vmatprep.subr.msk.bf16.mxu0 %vm36455_vm12, %v32194_v9  ;;  %v36543_v41 = vmax.f32 %v5665_v63, 0.0  ;;  %v5664_v34 = vsub.f32 %v5416_v50, %v35385_v23  ;;  %32208 = vmatprep.subr.msk.bf16.mxu1 %vm36455_vm12, %v32206_v21  ;;  %v5728_v61 = vadd.f32 %v35385_v23, %v5416_v50  ;;  %v36558_v44 = vpop.f32.mrb[92].mxu0  ;;  %v36560_v18 = vpop.f32.mrb[92].mxu1  ;;  %v5691_v55 = vmax.f32 %v5659_v32, 0.0 }
 0x772   : > { %32199 = vmatpush3.bf16.msk.msra.mxu0 %vm36455_vm12, %v32194_v9  ;;  %v5692_v26 = vmax.f32 %v5660_v29, 0.0  ;;  %v5756_v54 = vmin.f32 %v5724_v4, 0.0  ;;  %32211 = vmatpush3.bf16.msk.msra.mxu1 %vm36455_vm12, %v32206_v21  ;;  %v5754_v56 = vmin.f32 %v5722_v17, 0.0  ;;  %v5755_v9 = vmin.f32 %v36491_v24, 0.0  ;;  %v36573_v29 = vpop.f32.mrb[93].mxu0  ;;  %v36575_v32 = vpop.f32.mrb[93].mxu1 }
 0x773   : > { %v5696_v63 = vmax.f32 %v5664_v34, 0.0  ;;  %32202 = vmatprep.subr.msk.bf16.mxu0 %vm36477_vm13, %v32200_v53  ;;  %v5760_v14 = vmin.f32 %v5728_v61, 0.0  ;;  %32214 = vmatprep.subr.msk.bf16.mxu1 %vm36477_vm13, %v32212_v27  ;;  %v5667_v51 = vsub.f32 %v36558_v44, %v35385_v23  ;;  %v36569_v50 = vadd.f32 %v36558_v44, %v35385_v23 }
 0x774   : > { %v5671_v21 = vsub.f32 %v36560_v18, %v35385_v23  ;;  %29859 = vmatprep.mubr.msk.f32.mxu1 %vm5834_vm7, %v36372_v15  ;;  %v36581_v24 = vadd.f32 %v36560_v18, %v35385_v23  ;;  %v5666_v17 = vsub.f32 %v36573_v29, %v35385_v23  ;;  %v5730_v4 = vadd.f32 %v35385_v23, %v36573_v29 }
 0x775   : > { %v5670_v34 = vsub.f32 %v36575_v32, %v35385_v23  ;;  %v5734_v61 = vadd.f32 %v35385_v23, %v36575_v32  ;;  %v5786_v37 = vadd.f32 %v5754_v56, %v5690_v42  ;;  %v5787_v59 = vadd.f32 %v5755_v9, %v5691_v55  ;;  %v29807_v49 = vpop.f32.mrb[94].mxu0  ;;  %v29817_v31 = vpop.f32.mrb[94].mxu1 }
 0x776   : > { %32205 = vmatpush3.bf16.msk.msra.mxu0 %vm36477_vm13, %v32200_v53  ;;  %v5694_v36 = vmax.f32 %v5662_v1, 0.0  ;;  %32217 = vmatpush3.bf16.msk.msra.mxu1 %vm36477_vm13, %v32212_v27  ;;  %v40524_v47 = vsub.f32 %v36483_v16, %v35385_v23  ;;  %v5758_v0 = vmin.f32 %v36522_v13, 0.0  ;;  %v5759_v46 = vmin.f32 %v36505_v48, 0.0  ;;  %v5513_v55 = vpop.f32.mrb[95].mxu0  ;;  %v5610_v27 = vpop.f32.mrb[95].mxu1 }
 0x777   : > { %v5788_v53 = vadd.f32 %v5756_v54, %v5692_v26  ;;  %v32218_v52 = vpack.c.bf16 %v5787_v59, %v5786_v37  ;;  %v5669_v7 = vsub.f32 %v29807_v49, %v35385_v23  ;;  %v5733_v42 = vadd.f32 %v29807_v49, %v35385_v23 }
 0x778   : > { %v5695_v6 = vmax.f32 %v40524_v47, 0.0  ;;  %v5673_v1 = vsub.f32 %v29817_v31, %v35385_v23  ;;  %v5790_v47 = vadd.f32 %v5758_v0, %v5694_v36  ;;  %v5737_v13 = vadd.f32 %v29817_v31, %v35385_v23 }
 0x779   : > { %29849 = vmatmul.mubr.msk.f32.vlgmr.msra.gmra.mrb[98].mxu0 %vm5834_vm7, %v36514_v22  ;;  %v5668_v48 = vsub.f32 %v5513_v55, %v35385_v23  ;;  %29860 = vmatmul.mubr.msk.f32.vlgmr.msra.gmra.mrb[98].mxu1 %vm5834_vm7, %v36514_v22  ;;  %v5701_v49 = vmax.f32 %v5669_v7, 0.0  ;;  %v5765_v59 = vmin.f32 %v5733_v42, 0.0  ;;  %v5732_v26 = vadd.f32 %v35385_v23, %v5513_v55 }
 0x77a   : > { %v5791_v56 = vadd.f32 %v5759_v46, %v5695_v6  ;;  %32220 = vmatprep.subr.msk.bf16.mxu0 %vm36455_vm12, %v32218_v52  ;;  %v5705_v37 = vmax.f32 %v5673_v1, 0.0  ;;  %v5769_v46 = vmin.f32 %v5737_v13, 0.0  ;;  %v5672_v31 = vsub.f32 %v5610_v27, %v35385_v23  ;;  %29870 = vmatprep.mubr.msk.f32.mxu0 %vm5834_vm7, %v36372_v15 }
 0x77b   : > { %32223 = vmatpush3.bf16.msk.msra.mxu0 %vm36455_vm12, %v32218_v52  ;;  %v5700_v0 = vmax.f32 %v5668_v48, 0.0  ;;  %v5764_v6 = vmin.f32 %v5732_v26, 0.0  ;;  %v5736_v36 = vadd.f32 %v35385_v23, %v5610_v27  ;;  %v40525_v7 = vmin.f32 %v36528_v39, 0.0  ;;  %29881 = vmatprep.mubr.msk.f32.mxu1 %vm5834_vm7, %v36372_v15 }
 0x77c   : > { %v32230_v54 = vpack.c.bf16 %v5791_v56, %v5790_v47  ;;  %v5792_v42 = vadd.f32 %v5760_v14, %v5696_v63  ;;  %v5704_v52 = vmax.f32 %v5672_v31, 0.0  ;;  %v40526_v1 = vmin.f32 %v36534_v12, 0.0 }
 0x77d   : > { %v5789_v9 = vadd.f32 %v40525_v7, %v36540_v10  ;;  %v5698_v47 = vmax.f32 %v5666_v17, 0.0  ;;  %v5699_v56 = vmax.f32 %v5667_v51, 0.0  ;;  %v5768_v27 = vmin.f32 %v5736_v36, 0.0 }
 0x77e   : > { %32232 = vmatprep.subr.msk.bf16.mxu1 %vm36455_vm12, %v32230_v54  ;;  %v5793_v55 = vadd.f32 %v40526_v1, %v36543_v41  ;;  %v5762_v10 = vmin.f32 %v5730_v4, 0.0  ;;  %v5763_v63 = vmin.f32 %v36569_v50, 0.0  ;;  %v5702_v13 = vmax.f32 %v5670_v34, 0.0 }
 0x77f   : > { %32235 = vmatpush3.bf16.msk.msra.mxu1 %vm36455_vm12, %v32230_v54  ;;  %v32224_v39 = vpack.c.bf16 %v5789_v9, %v5788_v53  ;;  %v5703_v48 = vmax.f32 %v5671_v21, 0.0  ;;  %v5766_v26 = vmin.f32 %v5734_v61, 0.0  ;;  %v5767_v41 = vmin.f32 %v36581_v24, 0.0 }
 0x780   : > { %v32236_v14 = vpack.c.bf16 %v5793_v55, %v5792_v42  ;;  %v5794_v31 = vadd.f32 %v5762_v10, %v5698_v47  ;;  %v5795_v12 = vadd.f32 %v5763_v63, %v5699_v56  ;;  %v5796_v51 = vadd.f32 %v5764_v6, %v5700_v0 }
 0x781   : > { %32226 = vmatprep.subr.msk.bf16.mxu0 %vm36477_vm13, %v32224_v39  ;;  %v5798_v17 = vadd.f32 %v5766_v26, %v5702_v13  ;;  %v5797_v50 = vadd.f32 %v5765_v59, %v5701_v49  ;;  %v5800_v4 = vadd.f32 %v5768_v27, %v5704_v52  ;;  %v5799_v34 = vadd.f32 %v5767_v41, %v5703_v48  ;;  %v5623_v26 = vld [vmem:[#allocation19 + $0x10] sm:$0xff] }
 0x782   : > { %32238 = vmatprep.subr.msk.bf16.mxu1 %vm36477_vm13, %v32236_v14  ;;  %32229 = vmatpush3.bf16.msk.msra.mxu0 %vm36477_vm13, %v32224_v39  ;;  %v32242_v21 = vpack.c.bf16 %v5795_v12, %v5794_v31  ;;  %v5801_v61 = vadd.f32 %v5769_v46, %v5705_v37  ;;  %v32266_v53 = vpack.c.bf16 %v36382_v3, %v36396_v58  ;;  %v5624_v31 = vld [vmem:[#allocation19 + $0x18] sm:$0x3f] }
 0x783   : > { %32241 = vmatpush3.bf16.msk.msra.mxu1 %vm36477_vm13, %v32236_v14  ;;  %v32248_v24 = vpack.c.bf16 %v5797_v50, %v5796_v51  ;;  %v32272_v54 = vpack.c.bf16 %v36384_v8, %v36398_v30  ;;  %v32278_v0 = vpack.c.bf16 %v36416_v40, %v36432_v43  ;;  %v32284_v49 = vpack.c.bf16 %v36418_v35, %v36434_v2  ;;  %v5621_v40 = vld [vmem:[#allocation19] sm:$0xff]  ;;  %v5622_v35 = vld [vmem:[#allocation19 + $0x8] sm:$0xff] }
 0x784   : > { %32244 = vmatprep.subr.msk.bf16.mxu0 %vm36455_vm12, %v32242_v21  ;;  %v32254_v59 = vpack.c.bf16 %v5799_v34, %v5798_v17  ;;  %v32260_v37 = vpack.c.bf16 %v5801_v61, %v5800_v4  ;;  %v32290_v3 = vpack.c.bf16 %v36481_v62, %v36495_v5  ;;  %v32296_v8 = vpack.c.bf16 %v36483_v16, %v36497_v33  ;;  %v36923_v50 = vld [vmem:[%s40527_s4] sm:$0xff]  ;;  %v40533_v4 = vld [vmem:[#allocation69_spill] sm:$0xff]  ;;  %v40535_v34 = vld [vmem:[#allocation72_spill] sm:$0xff] }
 0x785   : > { %29871 = vmatmul.mubr.msk.f32.vlgmr.msra.gmra.mrb[100].mxu0 %vm5834_vm7, %v36514_v22  ;;  %v32302_v58 = vpack.c.bf16 %v36558_v44, %v36573_v29  ;;  %v32308_v30 = vpack.c.bf16 %v36560_v18, %v36575_v32  ;;  %v36748_v43 = vpack.c.bf16 %v5622_v35, %v5621_v40  ;;  %v32366_v17 = vpack.c.bf16 %v5624_v31, %v5623_v26  ;;  %v40536_v61 = vld [vmem:[#allocation73_spill] sm:$0xff] }
 0x786   : > { %29882 = vmatmul.mubr.msk.f32.vlgmr.msra.gmra.mrb[100].mxu1 %vm5834_vm7, %v36514_v22  ;;  %32247 = vmatpush3.bf16.msk.msra.mxu0 %vm36455_vm12, %v32242_v21  ;;  %v40534_v21 = vld [vmem:[#allocation71_spill] sm:$0xff] }
 0x787   : > { %32256 = vmatprep.subr.msk.bf16.mxu1 %vm36455_vm12, %v32254_v59  ;;  %32250 = vmatprep.subr.msk.bf16.mxu0 %vm36477_vm13, %v32248_v24 }
 0x788   : > { %32259 = vmatpush3.bf16.msk.msra.mxu1 %vm36455_vm12, %v32254_v59  ;;  %29892 = vmatprep.mubr.msk.f32.mxu0 %vm5834_vm7, %v36372_v15 }
 0x789   : > { %32262 = vmatprep.subr.msk.bf16.mxu1 %vm36477_vm13, %v32260_v37  ;;  %29903 = vmatprep.mubr.msk.f32.mxu1 %vm5834_vm7, %v36372_v15 }
 0x78a   : > { %32253 = vmatpush3.bf16.msk.msra.mxu0 %vm36477_vm13, %v32248_v24 }
 0x78b   : > { %32268 = vmatprep.subr.msk.bf16.mxu0 %vm35388_vm6, %v32266_v53 }
 0x78c   : > { %32265 = vmatpush3.bf16.msk.msra.mxu1 %vm36477_vm13, %v32260_v37 }
 0x78d   : > { %32274 = vmatprep.subr.msk.bf16.mxu1 %vm35388_vm6, %v32272_v54  ;;  %29893 = vmatmul.mubr.msk.f32.vlgmr.msra.gmra.mrb[102].mxu0 %vm5834_vm7, %v36514_v22 }
 0x78e   : > { %32271 = vmatpush3.bf16.msk.msra.mxu0 %vm35388_vm6, %v32266_v53  ;;  %29910 = vmatprep.mubr.msk.f32.mxu0 %vm2621_vm3, %v36372_v15  ;;  %v40537_v53 = vld [vmem:[#allocation74_spill] sm:$0xff] }
 0x78f   : > { %29904 = vmatmul.mubr.msk.f32.vlgmr.msra.gmra.mrb[102].mxu1 %vm5834_vm7, %v36514_v22  ;;  %32280 = vmatprep.subr.msk.bf16.mxu0 %vm35388_vm6, %v32278_v0 }
 0x790   : > { %32277 = vmatpush3.bf16.msk.msra.mxu1 %vm35388_vm6, %v32272_v54  ;;  %29917 = vmatprep.mubr.msk.f32.mxu1 %vm2621_vm3, %v36372_v15 }
 0x791   : > { %32286 = vmatprep.subr.msk.bf16.mxu1 %vm35388_vm6, %v32284_v49  ;;  %29911 = vmatmul.mubr.msk.f32.vlgmr.msra.gmra.mrb[104].mxu0 %vm2621_vm3, %v36514_v22 }
 0x792   : > { %32283 = vmatpush3.bf16.msk.msra.mxu0 %vm35388_vm6, %v32278_v0  ;;  %29924 = vmatprep.mubr.msk.f32.mxu0 %vm2621_vm3, %v36372_v15 }
 0x793   : > { %29918 = vmatmul.mubr.msk.f32.vlgmr.msra.gmra.mrb[104].mxu1 %vm2621_vm3, %v36514_v22  ;;  %32292 = vmatprep.subr.msk.bf16.mxu0 %vm35388_vm6, %v32290_v3 }
 0x794   : > { %32289 = vmatpush3.bf16.msk.msra.mxu1 %vm35388_vm6, %v32284_v49  ;;  %29931 = vmatprep.mubr.msk.f32.mxu1 %vm2621_vm3, %v36372_v15 }
 0x795   : > { %32298 = vmatprep.subr.msk.bf16.mxu1 %vm35388_vm6, %v32296_v8  ;;  %29925 = vmatmul.mubr.msk.f32.vlgmr.msra.gmra.mrb[106].mxu0 %vm2621_vm3, %v36514_v22 }
 0x796   : > { %32295 = vmatpush3.bf16.msk.msra.mxu0 %vm35388_vm6, %v32290_v3  ;;  %29938 = vmatprep.mubr.msk.f32.mxu0 %vm2621_vm3, %v36372_v15 }
 0x797   : > { %29932 = vmatmul.mubr.msk.f32.vlgmr.msra.gmra.mrb[106].mxu1 %vm2621_vm3, %v36514_v22  ;;  %32304 = vmatprep.subr.msk.bf16.mxu0 %vm35388_vm6, %v32302_v58 }
 0x798   : > { %32301 = vmatpush3.bf16.msk.msra.mxu1 %vm35388_vm6, %v32296_v8  ;;  %29945 = vmatprep.mubr.msk.f32.mxu1 %vm2621_vm3, %v36372_v15 }
 0x799   : > { %32310 = vmatprep.subr.msk.bf16.mxu1 %vm35388_vm6, %v32308_v30  ;;  %29939 = vmatmul.mubr.msk.f32.vlgmr.msra.gmra.mrb[108].mxu0 %vm2621_vm3, %v36514_v22 }
 0x79a   : > { %32307 = vmatpush3.bf16.msk.msra.mxu0 %vm35388_vm6, %v32302_v58  ;;  %29952 = vmatprep.mubr.msk.f32.mxu0 %vm2621_vm3, %v36372_v15 }
 0x79b   : > { %29946 = vmatmul.mubr.msk.f32.vlgmr.msra.gmra.mrb[108].mxu1 %vm2621_vm3, %v36514_v22  ;;  %32316 = vmatprep.subr.msk.bf16.mxu0 %vm35388_vm6, %v36748_v43 }
 0x79c   : > { %32313 = vmatpush3.bf16.msk.msra.mxu1 %vm35388_vm6, %v32308_v30  ;;  %29959 = vmatprep.mubr.msk.f32.mxu1 %vm2621_vm3, %v36372_v15 }
 0x79d   : > { %29953 = vmatmul.mubr.msk.f32.vlgmr.msra.gmra.mrb[110].mxu0 %vm2621_vm3, %v36514_v22  ;;  %32322 = vmatprep.subr.msk.bf16.mxu1 %vm35388_vm6, %v36748_v43 }
 0x79e   : > { %32319 = vmatpush3.bf16.msk.msra.mxu0 %vm35388_vm6, %v36748_v43 }
 0x79f   : > { %29960 = vmatmul.mubr.msk.f32.vlgmr.msra.gmra.mrb[110].mxu1 %vm2621_vm3, %v36514_v22  ;;  %32328 = vmatprep.subr.msk.bf16.mxu0 %vm35388_vm6, %v36748_v43 }
 0x7a0   : > { %32325 = vmatpush3.bf16.msk.msra.mxu1 %vm35388_vm6, %v36748_v43 }
 0x7a1   : > { %32334 = vmatprep.subr.msk.bf16.mxu1 %vm35388_vm6, %v36748_v43 }
 0x842   : > { %v36768_v15 = vpop.f32.mrb[96].mxu0 }
 0x843   : > { %v36770_v2 = vpop.f32.mrb[96].mxu1  ;;  %v5911_v62 = vpop.f32.mrb[97].mxu0 }
 0x844   : > { %v36772_v16 = vpop.f32.mrb[97].mxu1 }
 0x84c   : > { %v36774_v5 = vpop.f32.mrb[98].mxu0  ;;  %v36776_v33 = vpop.f32.mrb[98].mxu1 }
 0x84d   : > { %v36778_v22 = vpop.f32.mrb[99].mxu0  ;;  %v36780_v44 = vpop.f32.mrb[99].mxu1 }
 0x858   : > { %v36782_v18 = vpop.f32.mrb[100].mxu0 }
 0x859   : > { %v36784_v29 = vpop.f32.mrb[100].mxu1  ;;  %v36786_v32 = vpop.f32.mrb[101].mxu0 }
 0x85a   : > { %v36788_v46 = vpop.f32.mrb[101].mxu1 }
 0x860   : > { %v36790_v6 = vpop.f32.mrb[102].mxu0 }
 0x861   : > { %v36792_v36 = vpop.f32.mrb[103].mxu0 }
 0x862   : > { %v36794_v7 = vpop.f32.mrb[102].mxu1 }
 0x863   : > { %v36796_v9 = vpop.f32.mrb[103].mxu1 }
 0x864   : > { %v29912_v42 = vpop.f32.mrb[104].mxu0 }
 0x865   : > { %v6539_v52 = vpop.f32.mrb[105].mxu0 }
 0x866   : > { %v29919_v1 = vpop.f32.mrb[104].mxu1  ;;  %29966 = vmatprep.mubr.msk.f32.mxu0 %vm2621_vm3, %v6539_v52 }
 0x867   : > { %v6617_v55 = vpop.f32.mrb[105].mxu1  ;;  %29967 = vmatmul.mubr.msk.f32.vlgmr.msra.gmra.mrb[112].mxu0 %vm2621_vm3, %v29912_v42 }
 0x868   : > { %29973 = vmatprep.mubr.msk.f32.mxu1 %vm2621_vm3, %v6617_v55  ;;  %32331 = vmatpush3.bf16.msk.msra.mxu0 %vm35388_vm6, %v36748_v43  ;;  %v29926_v47 = vpop.f32.mrb[106].mxu0 }
 0x869   : > { %29974 = vmatmul.mubr.msk.f32.vlgmr.msra.gmra.mrb[112].mxu1 %vm2621_vm3, %v29919_v1  ;;  %v6695_v56 = vpop.f32.mrb[107].mxu0  ;;  %32340 = vmatprep.subr.msk.bf16.mxu0 %vm35388_vm6, %v36748_v43 }
 0x86a   : > { %32337 = vmatpush3.bf16.msk.msra.mxu1 %vm35388_vm6, %v36748_v43  ;;  %v29933_v27 = vpop.f32.mrb[106].mxu1  ;;  %29980 = vmatprep.mubr.msk.f32.mxu0 %vm2621_vm3, %v6695_v56 }
 0x86b   : > { %v6773_v39 = vpop.f32.mrb[107].mxu1  ;;  %32346 = vmatprep.subr.msk.bf16.mxu1 %vm35388_vm6, %v36748_v43  ;;  %29981 = vmatmul.mubr.msk.f32.vlgmr.msra.gmra.mrb[114].mxu0 %vm2621_vm3, %v29926_v47 }
 0x86c   : > { %29987 = vmatprep.mubr.msk.f32.mxu1 %vm2621_vm3, %v6773_v39  ;;  %32343 = vmatpush3.bf16.msk.msra.mxu0 %vm35388_vm6, %v36748_v43  ;;  %v29940_v10 = vpop.f32.mrb[108].mxu0 }
 0x86d   : > { %29988 = vmatmul.mubr.msk.f32.vlgmr.msra.gmra.mrb[114].mxu1 %vm2621_vm3, %v29933_v27  ;;  %v6851_v63 = vpop.f32.mrb[109].mxu0  ;;  %32352 = vmatprep.subr.msk.bf16.mxu0 %vm35388_vm6, %v36748_v43 }
 0x86e   : > { %32349 = vmatpush3.bf16.msk.msra.mxu1 %vm35388_vm6, %v36748_v43  ;;  %v29947_v14 = vpop.f32.mrb[108].mxu1  ;;  %29994 = vmatprep.mubr.msk.f32.mxu0 %vm2621_vm3, %v6851_v63 }
 0x86f   : > { %v6929_v13 = vpop.f32.mrb[109].mxu1  ;;  %32358 = vmatprep.subr.msk.bf16.mxu1 %vm35388_vm6, %v36748_v43  ;;  %29995 = vmatmul.mubr.msk.f32.vlgmr.msra.gmra.mrb[116].mxu0 %vm2621_vm3, %v29940_v10 }
 0x870   : > { %30001 = vmatprep.mubr.msk.f32.mxu1 %vm2621_vm3, %v6929_v13  ;;  %32355 = vmatpush3.bf16.msk.msra.mxu0 %vm35388_vm6, %v36748_v43  ;;  %v29954_v48 = vpop.f32.mrb[110].mxu0 }
 0x871   : > { %30002 = vmatmul.mubr.msk.f32.vlgmr.msra.gmra.mrb[116].mxu1 %vm2621_vm3, %v29947_v14  ;;  %v7007_v12 = vpop.f32.mrb[111].mxu0  ;;  %32363 = vmatprep.subr.bf16.mxu0 %v36748_v43 }
 0x872   : > { %32361 = vmatpush3.bf16.msk.msra.mxu1 %vm35388_vm6, %v36748_v43  ;;  %v29961_v41 = vpop.f32.mrb[110].mxu1  ;;  %30008 = vmatprep.mubr.msk.f32.mxu0 %vm2621_vm3, %v7007_v12 }
 0x873   : > { %v7085_v51 = vpop.f32.mrb[111].mxu1  ;;  %32373 = vmatprep.subr.bf16.mxu1 %v36748_v43  ;;  %30009 = vmatmul.mubr.msk.f32.vlgmr.msra.gmra.mrb[118].mxu0 %vm2621_vm3, %v29954_v48 }
 0x874   : > { %30015 = vmatprep.mubr.msk.f32.mxu1 %vm2621_vm3, %v7085_v51  ;;  %32365 = vmatpush3.bf16.msra.mxu0 %v36748_v43 }
 0x875   : > { %30016 = vmatmul.mubr.msk.f32.vlgmr.msra.gmra.mrb[118].mxu1 %vm2621_vm3, %v29961_v41  ;;  %30026 = vmatprep.mubr.msk.f32.mxu0 %vm5834_vm7, %v5911_v62 }
 0x876   : > { %32375 = vmatpush3.bf16.msra.mxu1 %v36748_v43  ;;  %30037 = vmatprep.mubr.msk.f32.mxu1 %vm5834_vm7, %v36772_v16 }
 0x877   : > { %32368 = vmatprep.subr.msk.bf16.mxu0 %vm36477_vm13, %v32366_v17  ;;  %32378 = vmatprep.subr.msk.bf16.mxu1 %vm36477_vm13, %v32366_v17 }
 0x878   : > { %32371 = vmatpush3.bf16.msk.msra.mxu0 %vm36477_vm13, %v32366_v17 }
 0x879   : > { %32383 = vmatprep.subr.bf16.mxu0 %v36748_v43 }
 0x87a   : > { %32381 = vmatpush3.bf16.msk.msra.mxu1 %vm36477_vm13, %v32366_v17 }
 0x87b   : > { %30027 = vmatmul.mubr.msk.f32.vlgmr.msra.gmra.mrb[112].mxu0 %vm5834_vm7, %v36768_v15  ;;  %32393 = vmatprep.subr.bf16.mxu1 %v36748_v43 }
 0x87c   : > { %32385 = vmatpush3.bf16.msra.mxu0 %v36748_v43  ;;  %30048 = vmatprep.mubr.msk.f32.mxu0 %vm5834_vm7, %v36778_v22  ;;  %v8399_v22 = vld [vmem:[#allocation16 + $0x8] sm:$0xff] }
 0x87d   : > { %30038 = vmatmul.mubr.msk.f32.vlgmr.msra.gmra.mrb[112].mxu1 %vm5834_vm7, %v36770_v2  ;;  %32388 = vmatprep.subr.msk.bf16.mxu0 %vm36477_vm13, %v32366_v17 }
 0x87e   : > { %32395 = vmatpush3.bf16.msra.mxu1 %v36748_v43  ;;  %30059 = vmatprep.mubr.msk.f32.mxu1 %vm5834_vm7, %v36780_v44 }
 0x87f   : > { %32398 = vmatprep.subr.msk.bf16.mxu1 %vm36477_vm13, %v32366_v17 }
 0x880   : > { %32391 = vmatpush3.bf16.msk.msra.mxu0 %vm36477_vm13, %v32366_v17 }
 0x881   : > { %32403 = vmatprep.subr.bf16.mxu0 %v36748_v43 }
 0x882   : > { %32401 = vmatpush3.bf16.msk.msra.mxu1 %vm36477_vm13, %v32366_v17 }
 0x883   : > { %30049 = vmatmul.mubr.msk.f32.vlgmr.msra.gmra.mrb[114].mxu0 %vm5834_vm7, %v36774_v5  ;;  %32413 = vmatprep.subr.bf16.mxu1 %v36748_v43 }
 0x884   : > { %32405 = vmatpush3.bf16.msra.mxu0 %v36748_v43  ;;  %30070 = vmatprep.mubr.msk.f32.mxu0 %vm5834_vm7, %v36786_v32 }
 0x885   : > { %30060 = vmatmul.mubr.msk.f32.vlgmr.msra.gmra.mrb[114].mxu1 %vm5834_vm7, %v36776_v33  ;;  %32408 = vmatprep.subr.msk.bf16.mxu0 %vm36477_vm13, %v32366_v17  ;;  %v8398_v33 = vld [vmem:[#allocation16] sm:$0xff] }
 0x886   : > { %32415 = vmatpush3.bf16.msra.mxu1 %v36748_v43  ;;  %30081 = vmatprep.mubr.msk.f32.mxu1 %vm5834_vm7, %v36788_v46  ;;  %v37111_v46 = vpack.c.bf16 %v8399_v22, %v8398_v33  ;;  %v40552_v33 = vld [vmem:[#allocation49_spill] sm:$0xff]  ;;  %v40553_v22 = vld [vmem:[#allocation50_spill] sm:$0xff] }
 0x887   : > { %32418 = vmatprep.subr.msk.bf16.mxu1 %vm36477_vm13, %v32366_v17 }
 0x888   : > { %32411 = vmatpush3.bf16.msk.msra.mxu0 %vm36477_vm13, %v32366_v17 }
 0x889   : > { %32423 = vmatprep.subr.bf16.mxu0 %v36748_v43 }
 0x88a   : > { %32421 = vmatpush3.bf16.msk.msra.mxu1 %vm36477_vm13, %v32366_v17 }
 0x88b   : > { %30071 = vmatmul.mubr.msk.f32.vlgmr.msra.gmra.mrb[116].mxu0 %vm5834_vm7, %v36782_v18  ;;  %32433 = vmatprep.subr.bf16.mxu1 %v36748_v43 }
 0x88c   : > { %32425 = vmatpush3.bf16.msra.mxu0 %v36748_v43  ;;  %30092 = vmatprep.mubr.msk.f32.mxu0 %vm5834_vm7, %v36792_v36 }
 0x88d   : > { %30082 = vmatmul.mubr.msk.f32.vlgmr.msra.gmra.mrb[116].mxu1 %vm5834_vm7, %v36784_v29  ;;  %32428 = vmatprep.subr.msk.bf16.mxu0 %vm36477_vm13, %v32366_v17 }
 0x88e   : > { %32435 = vmatpush3.bf16.msra.mxu1 %v36748_v43  ;;  %30103 = vmatprep.mubr.msk.f32.mxu1 %vm5834_vm7, %v36796_v9 }
 0x88f   : > { %32438 = vmatprep.subr.msk.bf16.mxu1 %vm36477_vm13, %v32366_v17 }
 0x890   : > { %32431 = vmatpush3.bf16.msk.msra.mxu0 %vm36477_vm13, %v32366_v17 }
 0x891   : > { %32444 = vmatprep.subr.msk.bf16.mxu0 %vm36455_vm12, %v36193_v19 }
 0x892   : > { %32441 = vmatpush3.bf16.msk.msra.mxu1 %vm36477_vm13, %v32366_v17 }
 0x893   : > { %32456 = vmatprep.subr.msk.bf16.mxu1 %vm36455_vm12, %v36235_v20  ;;  %30093 = vmatmul.mubr.msk.f32.vlgmr.msra.gmra.mrb[118].mxu0 %vm5834_vm7, %v36790_v6 }
 0x894   : > { %32447 = vmatpush3.bf16.msk.msra.mxu0 %vm36455_vm12, %v36193_v19  ;;  %30114 = vmatprep.mubr.msk.f32.mxu0 %vm5834_vm7, %v36923_v50  ;;  %v36956_v19 = vld [vmem:[%s40527_s4 + $0x8] sm:$0x7f] }
 0x895   : > { %30104 = vmatmul.mubr.msk.f32.vlgmr.msra.gmra.mrb[118].mxu1 %vm5834_vm7, %v36794_v7  ;;  %32450 = vmatprep.subr.msk.bf16.mxu0 %vm36477_vm13, %v36216_v60 }
 0x896   : > { %32459 = vmatpush3.bf16.msk.msra.mxu1 %vm36455_vm12, %v36235_v20  ;;  %30125 = vmatprep.mubr.msk.f32.mxu1 %vm5834_vm7, %v36923_v50  ;;  %v40530_v20 = vld [vmem:[#allocation68_spill] sm:$0xff] }
 0x897   : > { %32462 = vmatprep.subr.msk.bf16.mxu1 %vm36477_vm13, %v36224_v11 }
 0x898   : > { %32453 = vmatpush3.bf16.msk.msra.mxu0 %vm36477_vm13, %v36216_v60  ;;  %v40528_v60 = vld [vmem:[#allocation65_spill] sm:$0xff] }
 0x899   : > { %32468 = vmatprep.subr.msk.bf16.mxu0 %vm36455_vm12, %v36264_v45 }
 0x89a   : > { %32465 = vmatpush3.bf16.msk.msra.mxu1 %vm36477_vm13, %v36224_v11  ;;  %v40529_v11 = vld [vmem:[#allocation66_spill] sm:$0xff] }
 0x89b   : > { %32480 = vmatprep.subr.msk.bf16.mxu1 %vm36455_vm12, %v36270_v38  ;;  %30115 = vmatmul.mubr.msk.f32.vlgmr.msra.gmra.mrb[120].mxu0 %vm5834_vm7, %v36956_v19 }
 0x89c   : > { %32471 = vmatpush3.bf16.msk.msra.mxu0 %vm36455_vm12, %v36264_v45  ;;  %30136 = vmatprep.mubr.msk.f32.mxu0 %vm5834_vm7, %v36923_v50  ;;  %v40531_v45 = vld [vmem:[#allocation70_spill] sm:$0xff] }
 0x89d   : > { %30126 = vmatmul.mubr.msk.f32.vlgmr.msra.gmra.mrb[120].mxu1 %vm5834_vm7, %v36956_v19  ;;  %32474 = vmatprep.subr.msk.bf16.mxu0 %vm36477_vm13, %v40528_v60 }
 0x89e   : > { %32483 = vmatpush3.bf16.msk.msra.mxu1 %vm36455_vm12, %v36270_v38  ;;  %30147 = vmatprep.mubr.msk.f32.mxu1 %vm5834_vm7, %v36923_v50  ;;  %v40532_v38 = vld [vmem:[#allocation67_spill] sm:$0xff] }
 0x89f   : > { %32486 = vmatprep.subr.msk.bf16.mxu1 %vm36477_vm13, %v40529_v11 }
 0x8a0   : > { %32477 = vmatpush3.bf16.msk.msra.mxu0 %vm36477_vm13, %v40528_v60 }
 0x8a1   : > { %32492 = vmatprep.subr.msk.bf16.mxu0 %vm36455_vm12, %v40530_v20 }
 0x8a2   : > { %32489 = vmatpush3.bf16.msk.msra.mxu1 %vm36477_vm13, %v40529_v11 }
 0x8a3   : > { %32504 = vmatprep.subr.msk.bf16.mxu1 %vm36455_vm12, %v40531_v45  ;;  %30137 = vmatmul.mubr.msk.f32.vlgmr.msra.gmra.mrb[122].mxu0 %vm5834_vm7, %v36956_v19 }
 0x8a4   : > { %32495 = vmatpush3.bf16.msk.msra.mxu0 %vm36455_vm12, %v40530_v20  ;;  %30158 = vmatprep.mubr.msk.f32.mxu0 %vm5834_vm7, %v36923_v50 }
 0x8a5   : > { %30148 = vmatmul.mubr.msk.f32.vlgmr.msra.gmra.mrb[122].mxu1 %vm5834_vm7, %v36956_v19  ;;  %32498 = vmatprep.subr.msk.bf16.mxu0 %vm36477_vm13, %v40532_v38 }
 0x8a6   : > { %32507 = vmatpush3.bf16.msk.msra.mxu1 %vm36455_vm12, %v40531_v45  ;;  %30169 = vmatprep.mubr.msk.f32.mxu1 %vm5834_vm7, %v36923_v50 }
 0x8a7   : > { %32510 = vmatprep.subr.msk.bf16.mxu1 %vm36477_vm13, %v40533_v4 }
 0x8a8   : > { %32501 = vmatpush3.bf16.msk.msra.mxu0 %vm36477_vm13, %v40532_v38 }
 0x8a9   : > { %32516 = vmatprep.subr.msk.bf16.mxu0 %vm36455_vm12, %v40534_v21 }
 0x8aa   : > { %32513 = vmatpush3.bf16.msk.msra.mxu1 %vm36477_vm13, %v40533_v4 }
 0x8ab   : > { %32528 = vmatprep.subr.msk.bf16.mxu1 %vm36455_vm12, %v40535_v34  ;;  %30159 = vmatmul.mubr.msk.f32.vlgmr.msra.gmra.mrb[124].mxu0 %vm5834_vm7, %v36956_v19 }
 0x8ac   : > { %32519 = vmatpush3.bf16.msk.msra.mxu0 %vm36455_vm12, %v40534_v21  ;;  %30180 = vmatprep.mubr.msk.f32.mxu0 %vm5834_vm7, %v36923_v50  ;;  %v8400_v21 = vld [vmem:[#allocation16 + $0x10] sm:$0xff] }
 0x8ad   : > { %30170 = vmatmul.mubr.msk.f32.vlgmr.msra.gmra.mrb[124].mxu1 %vm5834_vm7, %v36956_v19  ;;  %32522 = vmatprep.subr.msk.bf16.mxu0 %vm36477_vm13, %v40536_v61 }
 0x8ae   : > { %32531 = vmatpush3.bf16.msk.msra.mxu1 %vm36455_vm12, %v40535_v34  ;;  %30191 = vmatprep.mubr.msk.f32.mxu1 %vm5834_vm7, %v36923_v50  ;;  %v8401_v34 = vld [vmem:[#allocation16 + $0x18] sm:$0x3f] }
 0x8af   : > { %32534 = vmatprep.subr.msk.bf16.mxu1 %vm36477_vm13, %v40537_v53 }
 0x8b0   : > { %32525 = vmatpush3.bf16.msk.msra.mxu0 %vm36477_vm13, %v40536_v61 }
 0x8b2   : > { %32537 = vmatpush3.bf16.msk.msra.mxu1 %vm36477_vm13, %v40537_v53 }
 0x8b3   : > { %30181 = vmatmul.mubr.msk.f32.vlgmr.msra.gmra.mrb[126].mxu0 %vm5834_vm7, %v36956_v19 }
 0x8b4   : > { %30198 = vmatprep.mubr.msk.f32.mxu0 %vm2621_vm3, %v36923_v50 }
 0x8b5   : > { %30192 = vmatmul.mubr.msk.f32.vlgmr.msra.gmra.mrb[126].mxu1 %vm5834_vm7, %v36956_v19 }
 0x8b6   : > { %30205 = vmatprep.mubr.msk.f32.mxu1 %vm2621_vm3, %v36923_v50 }
 0x94e   : > { %v30028_v24 = vpop.f32.mrb[112].mxu0 }
 0x94f   : > { %v7820_v54 = vpop.f32.mrb[113].mxu0 }
 0x950   : > { %v30039_v0 = vpop.f32.mrb[112].mxu1  ;;  %v32538_v49 = vpack.c.bf16 %v30028_v24, %v7820_v54  ;;  %v32638_v54 = vpack.c.bf16 %v8401_v34, %v8400_v21 }
 0x951   : > { %v7901_v59 = vpop.f32.mrb[113].mxu1 }
 0x952   : > { %v32544_v37 = vpack.c.bf16 %v30039_v0, %v7901_v59  ;;  %32540 = vmatprep.subr.msk.bf16.mxu0 %vm35388_vm6, %v32538_v49  ;;  %v40538_v0 = vld [vmem:[#allocation51_spill] sm:$0xff]  ;;  %v40539_v59 = vld [vmem:[#allocation53_spill] sm:$0xff] }
 0x953   : > { %32543 = vmatpush3.bf16.msk.msra.mxu0 %vm35388_vm6, %v32538_v49  ;;  %v37300_v49 = vld [vmem:[#allocation11] sm:$0xff] }
 0x954   : > { %32546 = vmatprep.subr.msk.bf16.mxu1 %vm35388_vm6, %v32544_v37 }
 0x955   : > { %32549 = vmatpush3.bf16.msk.msra.mxu1 %vm35388_vm6, %v32544_v37  ;;  %v40540_v37 = vld [vmem:[#allocation52_spill] sm:$0xff] }
 0x956   : > { %v30050_v3 = vpop.f32.mrb[114].mxu0  ;;  %30199 = vmatmul.mubr.msk.f32.vlgmr.msra.gmra.mrb[128].mxu0 %vm2621_vm3, %v36956_v19 }
 0x957   : > { %v7982_v8 = vpop.f32.mrb[115].mxu0  ;;  %30212 = vmatprep.mubr.msk.f32.mxu0 %vm2621_vm3, %v36923_v50 }
 0x958   : > { %v30061_v58 = vpop.f32.mrb[114].mxu1  ;;  %v32550_v30 = vpack.c.bf16 %v30050_v3, %v7982_v8  ;;  %30206 = vmatmul.mubr.msk.f32.vlgmr.msra.gmra.mrb[128].mxu1 %vm2621_vm3, %v36956_v19  ;;  %v40541_v3 = vld [vmem:[#allocation54_spill] sm:$0xff] }
 0x959   : > { %v8063_v40 = vpop.f32.mrb[115].mxu1  ;;  %30219 = vmatprep.mubr.msk.f32.mxu1 %vm2621_vm3, %v36923_v50  ;;  %v37330_v8 = vld [vmem:[#allocation11 + $0x8] sm:$0xff] }
 0x95a   : > { %v32556_v35 = vpack.c.bf16 %v30061_v58, %v8063_v40  ;;  %32552 = vmatprep.subr.msk.bf16.mxu0 %vm35388_vm6, %v32550_v30  ;;  %v40542_v58 = vld [vmem:[#allocation57_spill] sm:$0xff]  ;;  %v40544_v40 = vld [vmem:[#allocation55_spill] sm:$0xff] }
 0x95b   : > { %32555 = vmatpush3.bf16.msk.msra.mxu0 %vm35388_vm6, %v32550_v30  ;;  %v40543_v30 = vld [vmem:[#allocation58_spill] sm:$0xff] }
 0x95c   : > { %32558 = vmatprep.subr.msk.bf16.mxu1 %vm35388_vm6, %v32556_v35 }
 0x95d   : > { %32561 = vmatpush3.bf16.msk.msra.mxu1 %vm35388_vm6, %v32556_v35  ;;  %v40545_v35 = vld [vmem:[#allocation56_spill] sm:$0xff] }
 0x95e   : > { %v30072_v43 = vpop.f32.mrb[116].mxu0  ;;  %30213 = vmatmul.mubr.msk.f32.vlgmr.msra.gmra.mrb[130].mxu0 %vm2621_vm3, %v36956_v19 }
 0x95f   : > { %v8144_v15 = vpop.f32.mrb[117].mxu0  ;;  %30226 = vmatprep.mubr.msk.f32.mxu0 %vm2621_vm3, %v36923_v50 }
 0x960   : > { %v30083_v2 = vpop.f32.mrb[116].mxu1  ;;  %v32562_v62 = vpack.c.bf16 %v30072_v43, %v8144_v15  ;;  %30220 = vmatmul.mubr.msk.f32.vlgmr.msra.gmra.mrb[130].mxu1 %vm2621_vm3, %v36956_v19  ;;  %v40546_v43 = vld [vmem:[#allocation61_spill] sm:$0xff]  ;;  %v40547_v15 = vld [vmem:[#allocation62_spill] sm:$0xff] }
 0x961   : > { %v8225_v16 = vpop.f32.mrb[117].mxu1  ;;  %30233 = vmatprep.mubr.msk.f32.mxu1 %vm2621_vm3, %v36923_v50 }
 0x962   : > { %v32568_v5 = vpack.c.bf16 %v30083_v2, %v8225_v16  ;;  %32564 = vmatprep.subr.msk.bf16.mxu0 %vm35388_vm6, %v32562_v62  ;;  %v40548_v2 = vld [vmem:[#allocation59_spill] sm:$0xff] }
 0x963   : > { %32567 = vmatpush3.bf16.msk.msra.mxu0 %vm35388_vm6, %v32562_v62  ;;  %v40549_v62 = vld [vmem:[#allocation60_spill] sm:$0xff]  ;;  %v40550_v16 = vld [vmem:[#allocation63_spill] sm:$0xff] }
 0x964   : > { %32570 = vmatprep.subr.msk.bf16.mxu1 %vm35388_vm6, %v32568_v5 }
 0x965   : > { %32573 = vmatpush3.bf16.msk.msra.mxu1 %vm35388_vm6, %v32568_v5  ;;  %v40551_v5 = vld [vmem:[#allocation64_spill] sm:$0xff] }
 0x966   : > { %v30094_v44 = vpop.f32.mrb[118].mxu0  ;;  %30227 = vmatmul.mubr.msk.f32.vlgmr.msra.gmra.mrb[132].mxu0 %vm2621_vm3, %v36956_v19 }
 0x967   : > { %v8306_v18 = vpop.f32.mrb[119].mxu0  ;;  %30240 = vmatprep.mubr.msk.f32.mxu0 %vm2621_vm3, %v36923_v50 }
 0x968   : > { %v30105_v29 = vpop.f32.mrb[118].mxu1  ;;  %v32574_v32 = vpack.c.bf16 %v30094_v44, %v8306_v18  ;;  %30234 = vmatmul.mubr.msk.f32.vlgmr.msra.gmra.mrb[132].mxu1 %vm2621_vm3, %v36956_v19 }
 0x969   : > { %v8387_v6 = vpop.f32.mrb[119].mxu1  ;;  %30247 = vmatprep.mubr.msk.f32.mxu1 %vm2621_vm3, %v36923_v50 }
 0x96a   : > { %v32580_v36 = vpack.c.bf16 %v30105_v29, %v8387_v6  ;;  %32576 = vmatprep.subr.msk.bf16.mxu0 %vm35388_vm6, %v32574_v32 }
 0x96b   : > { %32579 = vmatpush3.bf16.msk.msra.mxu0 %vm35388_vm6, %v32574_v32 }
 0x96c   : > { %32582 = vmatprep.subr.msk.bf16.mxu1 %vm35388_vm6, %v32580_v36  ;;  %32588 = vmatprep.subr.msk.bf16.mxu0 %vm35388_vm6, %v37111_v46 }
 0x96d   : > { %32585 = vmatpush3.bf16.msk.msra.mxu1 %vm35388_vm6, %v32580_v36 }
 0x96e   : > { %30241 = vmatmul.mubr.msk.f32.vlgmr.msra.gmra.mrb[134].mxu0 %vm2621_vm3, %v36956_v19  ;;  %v37128_v7 = vpop.f32.mrb[120].mxu0  ;;  %32594 = vmatprep.subr.msk.bf16.mxu1 %vm35388_vm6, %v37111_v46 }
 0x96f   : > { %v37133_v9 = vpop.f32.mrb[121].mxu0  ;;  %32591 = vmatpush3.bf16.msk.msra.mxu0 %vm35388_vm6, %v37111_v46 }
 0x970   : > { %30248 = vmatmul.mubr.msk.f32.vlgmr.msra.gmra.mrb[134].mxu1 %vm2621_vm3, %v36956_v19  ;;  %v37140_v42 = vpop.f32.mrb[120].mxu1  ;;  %32600 = vmatprep.subr.msk.bf16.mxu0 %vm35388_vm6, %v37111_v46 }
 0x971   : > { %v37145_v52 = vpop.f32.mrb[121].mxu1  ;;  %32597 = vmatpush3.bf16.msk.msra.mxu1 %vm35388_vm6, %v37111_v46 }
 0x972   : > { %32606 = vmatprep.subr.msk.bf16.mxu1 %vm35388_vm6, %v37111_v46 }
 0x976   : > { %v37153_v1 = vpop.f32.mrb[122].mxu0 }
 0x977   : > { %v37155_v55 = vpop.f32.mrb[123].mxu0 }
 0x978   : > { %v37157_v47 = vpop.f32.mrb[122].mxu1 }
 0x979   : > { %v37159_v56 = vpop.f32.mrb[123].mxu1 }
 0x97e   : > { %v37161_v27 = vpop.f32.mrb[124].mxu0 }
 0x97f   : > { %v37163_v39 = vpop.f32.mrb[125].mxu0 }
 0x980   : > { %v37165_v10 = vpop.f32.mrb[124].mxu1 }
 0x981   : > { %v37167_v63 = vpop.f32.mrb[125].mxu1 }
 0x986   : > { %v37169_v14 = vpop.f32.mrb[126].mxu0 }
 0x987   : > { %v37171_v13 = vpop.f32.mrb[127].mxu0 }
 0x988   : > { %v37173_v48 = vpop.f32.mrb[126].mxu1 }
 0x989   : > { %v37175_v26 = vpop.f32.mrb[127].mxu1 }
 0xa29   : > { %v30200_v31 = vpop.f32.mrb[128].mxu0 }
 0xa2a   : > { %v9297_v12 = vpop.f32.mrb[129].mxu0 }
 0xa2b   : > { %v30207_v41 = vpop.f32.mrb[128].mxu1  ;;  %30254 = vmatprep.mubr.msk.f32.mxu0 %vm2621_vm3, %v9297_v12 }
 0xa2c   : > { %v9375_v51 = vpop.f32.mrb[129].mxu1  ;;  %30255 = vmatmul.mubr.msk.f32.vlgmr.msra.gmra.mrb[136].mxu0 %vm2621_vm3, %v30200_v31 }
 0xa2d   : > { %30261 = vmatprep.mubr.msk.f32.mxu1 %vm2621_vm3, %v9375_v51  ;;  %32603 = vmatpush3.bf16.msk.msra.mxu0 %vm35388_vm6, %v37111_v46 }
 0xa2e   : > { %30262 = vmatmul.mubr.msk.f32.vlgmr.msra.gmra.mrb[136].mxu1 %vm2621_vm3, %v30207_v41  ;;  %32612 = vmatprep.subr.msk.bf16.mxu0 %vm35388_vm6, %v37111_v46 }
 0xa2f   : > { %32609 = vmatpush3.bf16.msk.msra.mxu1 %vm35388_vm6, %v37111_v46 }
 0xa30   : > { %32618 = vmatprep.subr.msk.bf16.mxu1 %vm35388_vm6, %v37111_v46 }
 0xa31   : > { %v30214_v17 = vpop.f32.mrb[130].mxu0 }
 0xa32   : > { %v9453_v50 = vpop.f32.mrb[131].mxu0 }
 0xa33   : > { %v30221_v19 = vpop.f32.mrb[130].mxu1  ;;  %30268 = vmatprep.mubr.msk.f32.mxu0 %vm2621_vm3, %v9453_v50 }
 0xa34   : > { %v9531_v60 = vpop.f32.mrb[131].mxu1  ;;  %30269 = vmatmul.mubr.msk.f32.vlgmr.msra.gmra.mrb[138].mxu0 %vm2621_vm3, %v30214_v17 }
 0xa35   : > { %30275 = vmatprep.mubr.msk.f32.mxu1 %vm2621_vm3, %v9531_v60  ;;  %32615 = vmatpush3.bf16.msk.msra.mxu0 %vm35388_vm6, %v37111_v46 }
 0xa36   : > { %30276 = vmatmul.mubr.msk.f32.vlgmr.msra.gmra.mrb[138].mxu1 %vm2621_vm3, %v30221_v19  ;;  %32624 = vmatprep.subr.msk.bf16.mxu0 %vm35388_vm6, %v37111_v46 }
 0xa37   : > { %32621 = vmatpush3.bf16.msk.msra.mxu1 %vm35388_vm6, %v37111_v46 }
 0xa38   : > { %32630 = vmatprep.subr.msk.bf16.mxu1 %vm35388_vm6, %v37111_v46 }
 0xa39   : > { %v30228_v11 = vpop.f32.mrb[132].mxu0 }
 0xa3a   : > { %v9609_v20 = vpop.f32.mrb[133].mxu0 }
 0xa3b   : > { %v30235_v45 = vpop.f32.mrb[132].mxu1  ;;  %30282 = vmatprep.mubr.msk.f32.mxu0 %vm2621_vm3, %v9609_v20 }
 0xa3c   : > { %v9687_v38 = vpop.f32.mrb[133].mxu1  ;;  %30283 = vmatmul.mubr.msk.f32.vlgmr.msra.gmra.mrb[140].mxu0 %vm2621_vm3, %v30228_v11 }
 0xa3d   : > { %30289 = vmatprep.mubr.msk.f32.mxu1 %vm2621_vm3, %v9687_v38  ;;  %32627 = vmatpush3.bf16.msk.msra.mxu0 %vm35388_vm6, %v37111_v46 }
 0xa3e   : > { %30290 = vmatmul.mubr.msk.f32.vlgmr.msra.gmra.mrb[140].mxu1 %vm2621_vm3, %v30235_v45  ;;  %32635 = vmatprep.subr.bf16.mxu0 %v37111_v46 }
 0xa3f   : > { %32633 = vmatpush3.bf16.msk.msra.mxu1 %vm35388_vm6, %v37111_v46 }
 0xa40   : > { %32645 = vmatprep.subr.bf16.mxu1 %v37111_v46 }
 0xa41   : > { %v30242_v4 = vpop.f32.mrb[134].mxu0 }
 0xa42   : > { %v9765_v61 = vpop.f32.mrb[135].mxu0 }
 0xa43   : > { %v30249_v53 = vpop.f32.mrb[134].mxu1  ;;  %30296 = vmatprep.mubr.msk.f32.mxu0 %vm2621_vm3, %v9765_v61 }
 0xa44   : > { %v9843_v24 = vpop.f32.mrb[135].mxu1  ;;  %30297 = vmatmul.mubr.msk.f32.vlgmr.msra.gmra.mrb[142].mxu0 %vm2621_vm3, %v30242_v4 }
 0xa45   : > { %30303 = vmatprep.mubr.msk.f32.mxu1 %vm2621_vm3, %v9843_v24  ;;  %32637 = vmatpush3.bf16.msra.mxu0 %v37111_v46 }
 0xa46   : > { %30304 = vmatmul.mubr.msk.f32.vlgmr.msra.gmra.mrb[142].mxu1 %vm2621_vm3, %v30249_v53  ;;  %30314 = vmatprep.mubr.msk.f32.mxu0 %vm5834_vm7, %v37133_v9 }
 0xa47   : > { %32647 = vmatpush3.bf16.msra.mxu1 %v37111_v46  ;;  %30325 = vmatprep.mubr.msk.f32.mxu1 %vm5834_vm7, %v37145_v52 }
 0xa48   : > { %32640 = vmatprep.subr.msk.bf16.mxu0 %vm36477_vm13, %v32638_v54  ;;  %32650 = vmatprep.subr.msk.bf16.mxu1 %vm36477_vm13, %v32638_v54 }
 0xa49   : > { %32643 = vmatpush3.bf16.msk.msra.mxu0 %vm36477_vm13, %v32638_v54 }
 0xa4a   : > { %32655 = vmatprep.subr.bf16.mxu0 %v37111_v46 }
 0xa4b   : > { %32653 = vmatpush3.bf16.msk.msra.mxu1 %vm36477_vm13, %v32638_v54 }
 0xa4c   : > { %30315 = vmatmul.mubr.msk.f32.vlgmr.msra.gmra.mrb[136].mxu0 %vm5834_vm7, %v37128_v7  ;;  %32665 = vmatprep.subr.bf16.mxu1 %v37111_v46 }
 0xa4d   : > { %32657 = vmatpush3.bf16.msra.mxu0 %v37111_v46  ;;  %30336 = vmatprep.mubr.msk.f32.mxu0 %vm5834_vm7, %v37155_v55 }
 0xa4e   : > { %30326 = vmatmul.mubr.msk.f32.vlgmr.msra.gmra.mrb[136].mxu1 %vm5834_vm7, %v37140_v42  ;;  %32660 = vmatprep.subr.msk.bf16.mxu0 %vm36477_vm13, %v32638_v54 }
 0xa4f   : > { %32667 = vmatpush3.bf16.msra.mxu1 %v37111_v46  ;;  %30347 = vmatprep.mubr.msk.f32.mxu1 %vm5834_vm7, %v37159_v56 }
 0xa50   : > { %32670 = vmatprep.subr.msk.bf16.mxu1 %vm36477_vm13, %v32638_v54 }
 0xa51   : > { %32663 = vmatpush3.bf16.msk.msra.mxu0 %vm36477_vm13, %v32638_v54 }
 0xa52   : > { %32675 = vmatprep.subr.bf16.mxu0 %v37111_v46 }
 0xa53   : > { %32673 = vmatpush3.bf16.msk.msra.mxu1 %vm36477_vm13, %v32638_v54 }
 0xa54   : > { %30337 = vmatmul.mubr.msk.f32.vlgmr.msra.gmra.mrb[138].mxu0 %vm5834_vm7, %v37153_v1  ;;  %32685 = vmatprep.subr.bf16.mxu1 %v37111_v46 }
 0xa55   : > { %32677 = vmatpush3.bf16.msra.mxu0 %v37111_v46  ;;  %30358 = vmatprep.mubr.msk.f32.mxu0 %vm5834_vm7, %v37163_v39 }
 0xa56   : > { %30348 = vmatmul.mubr.msk.f32.vlgmr.msra.gmra.mrb[138].mxu1 %vm5834_vm7, %v37157_v47  ;;  %32680 = vmatprep.subr.msk.bf16.mxu0 %vm36477_vm13, %v32638_v54 }
 0xa57   : > { %32687 = vmatpush3.bf16.msra.mxu1 %v37111_v46  ;;  %30369 = vmatprep.mubr.msk.f32.mxu1 %vm5834_vm7, %v37167_v63  ;;  %v11157_v63 = vld [vmem:[#allocation13 + $0x8] sm:$0xff] }
 0xa58   : > { %32690 = vmatprep.subr.msk.bf16.mxu1 %vm36477_vm13, %v32638_v54 }
 0xa59   : > { %32683 = vmatpush3.bf16.msk.msra.mxu0 %vm36477_vm13, %v32638_v54 }
 0xa5a   : > { %32695 = vmatprep.subr.bf16.mxu0 %v37111_v46 }
 0xa5b   : > { %32693 = vmatpush3.bf16.msk.msra.mxu1 %vm36477_vm13, %v32638_v54 }
 0xa5c   : > { %30359 = vmatmul.mubr.msk.f32.vlgmr.msra.gmra.mrb[140].mxu0 %vm5834_vm7, %v37161_v27  ;;  %32705 = vmatprep.subr.bf16.mxu1 %v37111_v46 }
 0xa5d   : > { %32697 = vmatpush3.bf16.msra.mxu0 %v37111_v46  ;;  %30380 = vmatprep.mubr.msk.f32.mxu0 %vm5834_vm7, %v37171_v13 }
 0xa5e   : > { %30370 = vmatmul.mubr.msk.f32.vlgmr.msra.gmra.mrb[140].mxu1 %vm5834_vm7, %v37165_v10  ;;  %32700 = vmatprep.subr.msk.bf16.mxu0 %vm36477_vm13, %v32638_v54  ;;  %v11156_v10 = vld [vmem:[#allocation13] sm:$0xff] }
 0xa5f   : > { %32707 = vmatpush3.bf16.msra.mxu1 %v37111_v46  ;;  %30391 = vmatprep.mubr.msk.f32.mxu1 %vm5834_vm7, %v37175_v26  ;;  %v37485_v31 = vpack.c.bf16 %v11157_v63, %v11156_v10  ;;  %v13939_v10 = vld [vmem:[#allocation2 + $0xd0] sm:$0xff]  ;;  %v13940_v63 = vld [vmem:[#allocation2 + $0xd8] sm:$0xff] }
 0xa60   : > { %32710 = vmatprep.subr.msk.bf16.mxu1 %vm36477_vm13, %v32638_v54 }
 0xa61   : > { %32703 = vmatpush3.bf16.msk.msra.mxu0 %vm36477_vm13, %v32638_v54 }
 0xa62   : > { %32716 = vmatprep.subr.msk.bf16.mxu0 %vm36455_vm12, %v40538_v0 }
 0xa63   : > { %32713 = vmatpush3.bf16.msk.msra.mxu1 %vm36477_vm13, %v32638_v54 }
 0xa64   : > { %32728 = vmatprep.subr.msk.bf16.mxu1 %vm36455_vm12, %v40539_v59  ;;  %30381 = vmatmul.mubr.msk.f32.vlgmr.msra.gmra.mrb[142].mxu0 %vm5834_vm7, %v37169_v14 }
 0xa65   : > { %32719 = vmatpush3.bf16.msk.msra.mxu0 %vm36455_vm12, %v40538_v0  ;;  %30402 = vmatprep.mubr.msk.f32.mxu0 %vm5834_vm7, %v37300_v49 }
 0xa66   : > { %30392 = vmatmul.mubr.msk.f32.vlgmr.msra.gmra.mrb[142].mxu1 %vm5834_vm7, %v37173_v48  ;;  %32722 = vmatprep.subr.msk.bf16.mxu0 %vm36477_vm13, %v40540_v37 }
 0xa67   : > { %32731 = vmatpush3.bf16.msk.msra.mxu1 %vm36455_vm12, %v40539_v59  ;;  %30413 = vmatprep.mubr.msk.f32.mxu1 %vm5834_vm7, %v37300_v49 }
 0xa68   : > { %32734 = vmatprep.subr.msk.bf16.mxu1 %vm36477_vm13, %v40541_v3 }
 0xa69   : > { %32725 = vmatpush3.bf16.msk.msra.mxu0 %vm36477_vm13, %v40540_v37 }
 0xa6a   : > { %32740 = vmatprep.subr.msk.bf16.mxu0 %vm36455_vm12, %v40542_v58 }
 0xa6b   : > { %32737 = vmatpush3.bf16.msk.msra.mxu1 %vm36477_vm13, %v40541_v3 }
 0xa6c   : > { %32752 = vmatprep.subr.msk.bf16.mxu1 %vm36455_vm12, %v40543_v30  ;;  %30403 = vmatmul.mubr.msk.f32.vlgmr.msra.gmra.mrb[144].mxu0 %vm5834_vm7, %v37330_v8 }
 0xa6d   : > { %32743 = vmatpush3.bf16.msk.msra.mxu0 %vm36455_vm12, %v40542_v58  ;;  %30424 = vmatprep.mubr.msk.f32.mxu0 %vm5834_vm7, %v37300_v49 }
 0xa6e   : > { %30414 = vmatmul.mubr.msk.f32.vlgmr.msra.gmra.mrb[144].mxu1 %vm5834_vm7, %v37330_v8  ;;  %32746 = vmatprep.subr.msk.bf16.mxu0 %vm36477_vm13, %v40544_v40 }
 0xa6f   : > { %32755 = vmatpush3.bf16.msk.msra.mxu1 %vm36455_vm12, %v40543_v30  ;;  %30435 = vmatprep.mubr.msk.f32.mxu1 %vm5834_vm7, %v37300_v49 }
 0xa70   : > { %32758 = vmatprep.subr.msk.bf16.mxu1 %vm36477_vm13, %v40545_v35 }
 0xa71   : > { %32749 = vmatpush3.bf16.msk.msra.mxu0 %vm36477_vm13, %v40544_v40 }
 0xa72   : > { %32764 = vmatprep.subr.msk.bf16.mxu0 %vm36455_vm12, %v40546_v43 }
 0xa73   : > { %32761 = vmatpush3.bf16.msk.msra.mxu1 %vm36477_vm13, %v40545_v35 }
 0xa74   : > { %32776 = vmatprep.subr.msk.bf16.mxu1 %vm36455_vm12, %v40547_v15  ;;  %30425 = vmatmul.mubr.msk.f32.vlgmr.msra.gmra.mrb[146].mxu0 %vm5834_vm7, %v37330_v8 }
 0xa75   : > { %32767 = vmatpush3.bf16.msk.msra.mxu0 %vm36455_vm12, %v40546_v43  ;;  %30446 = vmatprep.mubr.msk.f32.mxu0 %vm5834_vm7, %v37300_v49 }
 0xa76   : > { %30436 = vmatmul.mubr.msk.f32.vlgmr.msra.gmra.mrb[146].mxu1 %vm5834_vm7, %v37330_v8  ;;  %32770 = vmatprep.subr.msk.bf16.mxu0 %vm36477_vm13, %v40548_v2 }
 0xa77   : > { %32779 = vmatpush3.bf16.msk.msra.mxu1 %vm36455_vm12, %v40547_v15  ;;  %30457 = vmatprep.mubr.msk.f32.mxu1 %vm5834_vm7, %v37300_v49 }
 0xa78   : > { %32782 = vmatprep.subr.msk.bf16.mxu1 %vm36477_vm13, %v40549_v62 }
 0xa79   : > { %32773 = vmatpush3.bf16.msk.msra.mxu0 %vm36477_vm13, %v40548_v2 }
 0xa7a   : > { %32788 = vmatprep.subr.msk.bf16.mxu0 %vm36455_vm12, %v40550_v16 }
 0xa7b   : > { %32785 = vmatpush3.bf16.msk.msra.mxu1 %vm36477_vm13, %v40549_v62  ;;  %v11158_v62 = vld [vmem:[#allocation13 + $0x10] sm:$0xff] }
 0xa7c   : > { %32800 = vmatprep.subr.msk.bf16.mxu1 %vm36455_vm12, %v40551_v5  ;;  %30447 = vmatmul.mubr.msk.f32.vlgmr.msra.gmra.mrb[148].mxu0 %vm5834_vm7, %v37330_v8 }
 0xa7d   : > { %32791 = vmatpush3.bf16.msk.msra.mxu0 %vm36455_vm12, %v40550_v16  ;;  %30468 = vmatprep.mubr.msk.f32.mxu0 %vm5834_vm7, %v37300_v49  ;;  %v11159_v16 = vld [vmem:[#allocation13 + $0x18] sm:$0x3f] }
 0xa7e   : > { %30458 = vmatmul.mubr.msk.f32.vlgmr.msra.gmra.mrb[148].mxu1 %vm5834_vm7, %v37330_v8  ;;  %32794 = vmatprep.subr.msk.bf16.mxu0 %vm36477_vm13, %v40552_v33 }
 0xa7f   : > { %32803 = vmatpush3.bf16.msk.msra.mxu1 %vm36455_vm12, %v40551_v5  ;;  %30479 = vmatprep.mubr.msk.f32.mxu1 %vm5834_vm7, %v37300_v49 }
 0xa80   : > { %32806 = vmatprep.subr.msk.bf16.mxu1 %vm36477_vm13, %v40553_v22 }
 0xa81   : > { %32797 = vmatpush3.bf16.msk.msra.mxu0 %vm36477_vm13, %v40552_v33 }
 0xa83   : > { %32809 = vmatpush3.bf16.msk.msra.mxu1 %vm36477_vm13, %v40553_v22 }
 0xa84   : > { %30469 = vmatmul.mubr.msk.f32.vlgmr.msra.gmra.mrb[150].mxu0 %vm5834_vm7, %v37330_v8 }
 0xa85   : > { %30486 = vmatprep.mubr.msk.f32.mxu0 %vm2621_vm3, %v37300_v49 }
 0xa86   : > { %30480 = vmatmul.mubr.msk.f32.vlgmr.msra.gmra.mrb[150].mxu1 %vm5834_vm7, %v37330_v8 }
 0xa87   : > { %30493 = vmatprep.mubr.msk.f32.mxu1 %vm2621_vm3, %v37300_v49 }
 0xb1f   : > { %v30316_v28 = vpop.f32.mrb[136].mxu0 }
 0xb20   : > { %v10578_v44 = vpop.f32.mrb[137].mxu0 }
 0xb21   : > { %v30327_v18 = vpop.f32.mrb[136].mxu1  ;;  %v32810_v29 = vpack.c.bf16 %v30316_v28, %v10578_v44  ;;  %v32910_v28 = vpack.c.bf16 %v11159_v16, %v11158_v62  ;;  %v13930_v44 = vld [vmem:[#allocation2 + $0x88] sm:$0xff] }
 0xb22   : > { %v10659_v32 = vpop.f32.mrb[137].mxu1 }
 0xb23   : > { %v32816_v46 = vpack.c.bf16 %v30327_v18, %v10659_v32  ;;  %32812 = vmatprep.subr.msk.bf16.mxu0 %vm35388_vm6, %v32810_v29  ;;  %v13931_v18 = vld [vmem:[#allocation2 + $0x90] sm:$0xff]  ;;  %v32987_v32 = vpack.c.bf16 %v13930_v44, %v13929_v25 }
 0xb24   : > { %32815 = vmatpush3.bf16.msk.msra.mxu0 %vm35388_vm6, %v32810_v29  ;;  %v13932_v29 = vld [vmem:[#allocation2 + $0x98] sm:$0xff] }
 0xb25   : > { %32818 = vmatprep.subr.msk.bf16.mxu1 %vm35388_vm6, %v32816_v46 }
 0xb26   : > { %32821 = vmatpush3.bf16.msk.msra.mxu1 %vm35388_vm6, %v32816_v46  ;;  %v34583_v46 = vmov 0.0|0.0  }
 0xb27   : > { %v30338_v6 = vpop.f32.mrb[138].mxu0  ;;  %30487 = vmatmul.mubr.msk.f32.vlgmr.msra.gmra.mrb[152].mxu0 %vm2621_vm3, %v37330_v8 }
 0xb28   : > { %v10740_v36 = vpop.f32.mrb[139].mxu0  ;;  %30500 = vmatprep.mubr.msk.f32.mxu0 %vm2621_vm3, %v37300_v49 }
 0xb29   : > { %v30349_v7 = vpop.f32.mrb[138].mxu1  ;;  %v32822_v9 = vpack.c.bf16 %v30338_v6, %v10740_v36  ;;  %30494 = vmatmul.mubr.msk.f32.vlgmr.msra.gmra.mrb[152].mxu1 %vm2621_vm3, %v37330_v8  ;;  %v13933_v6 = vld [vmem:[#allocation2 + $0xa0] sm:$0xff]  ;;  %v13934_v36 = vld [vmem:[#allocation2 + $0xa8] sm:$0xff] }
 0xb2a   : > { %v10821_v42 = vpop.f32.mrb[139].mxu1  ;;  %30507 = vmatprep.mubr.msk.f32.mxu1 %vm2621_vm3, %v37300_v49 }
 0xb2b   : > { %v32828_v52 = vpack.c.bf16 %v30349_v7, %v10821_v42  ;;  %32824 = vmatprep.subr.msk.bf16.mxu0 %vm35388_vm6, %v32822_v9  ;;  %v32990_v7 = vpack.c.bf16 %v13932_v29, %v13931_v18  ;;  %v13936_v42 = vld [vmem:[#allocation2 + $0xb8] sm:$0xff] }
 0xb2c   : > { %32827 = vmatpush3.bf16.msk.msra.mxu0 %vm35388_vm6, %v32822_v9  ;;  %v13935_v9 = vld [vmem:[#allocation2 + $0xb0] sm:$0xff] }
 0xb2d   : > { %32830 = vmatprep.subr.msk.bf16.mxu1 %vm35388_vm6, %v32828_v52  ;;  %v32996_v57 = vpack.c.bf16 %v13936_v42, %v13935_v9 }
 0xb2e   : > { %32833 = vmatpush3.bf16.msk.msra.mxu1 %vm35388_vm6, %v32828_v52  ;;  %v34585_v52 = vmov 0.0  }
 0xb2f   : > { %v30360_v1 = vpop.f32.mrb[140].mxu0  ;;  %30501 = vmatmul.mubr.msk.f32.vlgmr.msra.gmra.mrb[154].mxu0 %vm2621_vm3, %v37330_v8 }
 0xb30   : > { %v10902_v55 = vpop.f32.mrb[141].mxu0  ;;  %30514 = vmatprep.mubr.msk.f32.mxu0 %vm2621_vm3, %v37300_v49 }
 0xb31   : > { %v30371_v47 = vpop.f32.mrb[140].mxu1  ;;  %v32834_v56 = vpack.c.bf16 %v30360_v1, %v10902_v55  ;;  %30508 = vmatmul.mubr.msk.f32.vlgmr.msra.gmra.mrb[154].mxu1 %vm2621_vm3, %v37330_v8  ;;  %v37679_v1 = vld [vmem:[#allocation20] sm:$0xff]  ;;  %v32993_v55 = vpack.c.bf16 %v13934_v36, %v13933_v6 }
 0xb32   : > { %v10983_v27 = vpop.f32.mrb[141].mxu1  ;;  %30521 = vmatprep.mubr.msk.f32.mxu1 %vm2621_vm3, %v37300_v49 }
 0xb33   : > { %v32840_v39 = vpack.c.bf16 %v30371_v47, %v10983_v27  ;;  %32836 = vmatprep.subr.msk.bf16.mxu0 %vm35388_vm6, %v32834_v56  ;;  %v37691_v47 = vld [vmem:[#allocation20 + $0x8] sm:$0xff]  ;;  %v13937_v27 = vld [vmem:[#allocation2 + $0xc0] sm:$0xff] }
 0xb34   : > { %32839 = vmatpush3.bf16.msk.msra.mxu0 %vm35388_vm6, %v32834_v56  ;;  %v13947_v56 = vld [vmem:[#allocation20 + $0x10] sm:$0x3f] }
 0xb35   : > { %32842 = vmatprep.subr.msk.bf16.mxu1 %vm35388_vm6, %v32840_v39 }
 0xb36   : > { %32845 = vmatpush3.bf16.msk.msra.mxu1 %vm35388_vm6, %v32840_v39  ;;  %v13938_v39 = vld [vmem:[#allocation2 + $0xc8] sm:$0xff] }
 0xb37   : > { %v30382_v14 = vpop.f32.mrb[142].mxu0  ;;  %30515 = vmatmul.mubr.msk.f32.vlgmr.msra.gmra.mrb[156].mxu0 %vm2621_vm3, %v37330_v8 }
 0xb38   : > { %v11064_v13 = vpop.f32.mrb[143].mxu0  ;;  %30528 = vmatprep.mubr.msk.f32.mxu0 %vm2621_vm3, %v37300_v49 }
 0xb39   : > { %v30393_v48 = vpop.f32.mrb[142].mxu1  ;;  %v32846_v26 = vpack.c.bf16 %v30382_v14, %v11064_v13  ;;  %30522 = vmatmul.mubr.msk.f32.vlgmr.msra.gmra.mrb[156].mxu1 %vm2621_vm3, %v37330_v8  ;;  %v32999_v14 = vpack.c.bf16 %v13938_v39, %v13937_v27  ;;  %v33002_v13 = vpack.c.bf16 %v13940_v63, %v13939_v10 }
 0xb3a   : > { %v11145_v12 = vpop.f32.mrb[143].mxu1  ;;  %30535 = vmatprep.mubr.msk.f32.mxu1 %vm2621_vm3, %v37300_v49 }
 0xb3b   : > { %v32852_v41 = vpack.c.bf16 %v30393_v48, %v11145_v12  ;;  %32848 = vmatprep.subr.msk.bf16.mxu0 %vm35388_vm6, %v32846_v26  ;;  %v13941_v48 = vld [vmem:[#allocation2 + $0xe0] sm:$0xff]  ;;  %v13944_v12 = vld [vmem:[#allocation2 + $0xf8] sm:$0xff] }
 0xb3c   : > { %32851 = vmatpush3.bf16.msk.msra.mxu0 %vm35388_vm6, %v32846_v26  ;;  %v13942_v26 = vld [vmem:[#allocation2 + $0xe8] sm:$0xff] }
 0xb3d   : > { %32854 = vmatprep.subr.msk.bf16.mxu1 %vm35388_vm6, %v32852_v41  ;;  %32860 = vmatprep.subr.msk.bf16.mxu0 %vm35388_vm6, %v37485_v31 }
 0xb3e   : > { %32857 = vmatpush3.bf16.msk.msra.mxu1 %vm35388_vm6, %v32852_v41  ;;  %v33005_v41 = vpack.c.bf16 %v13942_v26, %v13941_v48 }
 0xb3f   : > { %30529 = vmatmul.mubr.msk.f32.vlgmr.msra.gmra.mrb[158].mxu0 %vm2621_vm3, %v37330_v8  ;;  %v37502_v51 = vpop.f32.mrb[144].mxu0  ;;  %32866 = vmatprep.subr.msk.bf16.mxu1 %vm35388_vm6, %v37485_v31 }
 0xb40   : > { %v37507_v17 = vpop.f32.mrb[145].mxu0  ;;  %32863 = vmatpush3.bf16.msk.msra.mxu0 %vm35388_vm6, %v37485_v31 }
 0xb41   : > { %30536 = vmatmul.mubr.msk.f32.vlgmr.msra.gmra.mrb[158].mxu1 %vm2621_vm3, %v37330_v8  ;;  %v37514_v50 = vpop.f32.mrb[144].mxu1  ;;  %32872 = vmatprep.subr.msk.bf16.mxu0 %vm35388_vm6, %v37485_v31 }
 0xb42   : > { %v37519_v19 = vpop.f32.mrb[145].mxu1  ;;  %32869 = vmatpush3.bf16.msk.msra.mxu1 %vm35388_vm6, %v37485_v31 }
 0xb43   : > { %32878 = vmatprep.subr.msk.bf16.mxu1 %vm35388_vm6, %v37485_v31 }
 0xb47   : > { %v37527_v60 = vpop.f32.mrb[146].mxu0 }
 0xb48   : > { %v37529_v11 = vpop.f32.mrb[147].mxu0 }
 0xb49   : > { %v37531_v20 = vpop.f32.mrb[146].mxu1 }
 0xb4a   : > { %v37533_v45 = vpop.f32.mrb[147].mxu1 }
 0xb4f   : > { %v37535_v38 = vpop.f32.mrb[148].mxu0 }
 0xb50   : > { %v37537_v4 = vpop.f32.mrb[149].mxu0 }
 0xb51   : > { %v37539_v21 = vpop.f32.mrb[148].mxu1 }
 0xb52   : > { %v37541_v34 = vpop.f32.mrb[149].mxu1 }
 0xb57   : > { %v37543_v61 = vpop.f32.mrb[150].mxu0 }
 0xb58   : > { %v37545_v53 = vpop.f32.mrb[151].mxu0 }
 0xb59   : > { %v37547_v24 = vpop.f32.mrb[150].mxu1 }
 0xb5a   : > { %v37549_v54 = vpop.f32.mrb[151].mxu1 }
 0xbfa   : > { %v30488_v0 = vpop.f32.mrb[152].mxu0 }
 0xbfb   : > { %v12055_v49 = vpop.f32.mrb[153].mxu0 }
 0xbfc   : > { %v30495_v59 = vpop.f32.mrb[152].mxu1  ;;  %30542 = vmatprep.mubr.msk.f32.mxu0 %vm2621_vm3, %v12055_v49 }
 0xbfd   : > { %v12133_v37 = vpop.f32.mrb[153].mxu1  ;;  %30543 = vmatmul.mubr.msk.f32.vlgmr.msra.gmra.mrb[160].mxu0 %vm2621_vm3, %v30488_v0 }
 0xbfe   : > { %30549 = vmatprep.mubr.msk.f32.mxu1 %vm2621_vm3, %v12133_v37  ;;  %32875 = vmatpush3.bf16.msk.msra.mxu0 %vm35388_vm6, %v37485_v31 }
 0xbff   : > { %30550 = vmatmul.mubr.msk.f32.vlgmr.msra.gmra.mrb[160].mxu1 %vm2621_vm3, %v30495_v59  ;;  %32884 = vmatprep.subr.msk.bf16.mxu0 %vm35388_vm6, %v37485_v31 }
 0xc00   : > { %32881 = vmatpush3.bf16.msk.msra.mxu1 %vm35388_vm6, %v37485_v31 }
 0xc01   : > { %32890 = vmatprep.subr.msk.bf16.mxu1 %vm35388_vm6, %v37485_v31 }
 0xc02   : > { %v30502_v3 = vpop.f32.mrb[154].mxu0 }
 0xc03   : > { %v12211_v8 = vpop.f32.mrb[155].mxu0 }
 0xc04   : > { %v30509_v58 = vpop.f32.mrb[154].mxu1  ;;  %30556 = vmatprep.mubr.msk.f32.mxu0 %vm2621_vm3, %v12211_v8 }
 0xc05   : > { %v12289_v30 = vpop.f32.mrb[155].mxu1  ;;  %30557 = vmatmul.mubr.msk.f32.vlgmr.msra.gmra.mrb[162].mxu0 %vm2621_vm3, %v30502_v3 }
 0xc06   : > { %30563 = vmatprep.mubr.msk.f32.mxu1 %vm2621_vm3, %v12289_v30  ;;  %32887 = vmatpush3.bf16.msk.msra.mxu0 %vm35388_vm6, %v37485_v31 }
 0xc07   : > { %30564 = vmatmul.mubr.msk.f32.vlgmr.msra.gmra.mrb[162].mxu1 %vm2621_vm3, %v30509_v58  ;;  %32896 = vmatprep.subr.msk.bf16.mxu0 %vm35388_vm6, %v37485_v31 }
 0xc08   : > { %32893 = vmatpush3.bf16.msk.msra.mxu1 %vm35388_vm6, %v37485_v31 }
 0xc09   : > { %32902 = vmatprep.subr.msk.bf16.mxu1 %vm35388_vm6, %v37485_v31 }
 0xc0a   : > { %v30516_v40 = vpop.f32.mrb[156].mxu0 }
 0xc0b   : > { %v12367_v35 = vpop.f32.mrb[157].mxu0 }
 0xc0c   : > { %v30523_v43 = vpop.f32.mrb[156].mxu1  ;;  %30570 = vmatprep.mubr.msk.f32.mxu0 %vm2621_vm3, %v12367_v35 }
 0xc0d   : > { %v12445_v15 = vpop.f32.mrb[157].mxu1  ;;  %30571 = vmatmul.mubr.msk.f32.vlgmr.msra.gmra.mrb[164].mxu0 %vm2621_vm3, %v30516_v40 }
 0xc0e   : > { %30577 = vmatprep.mubr.msk.f32.mxu1 %vm2621_vm3, %v12445_v15  ;;  %32899 = vmatpush3.bf16.msk.msra.mxu0 %vm35388_vm6, %v37485_v31 }
 0xc0f   : > { %30578 = vmatmul.mubr.msk.f32.vlgmr.msra.gmra.mrb[164].mxu1 %vm2621_vm3, %v30523_v43  ;;  %32907 = vmatprep.subr.bf16.mxu0 %v37485_v31 }
 0xc10   : > { %32905 = vmatpush3.bf16.msk.msra.mxu1 %vm35388_vm6, %v37485_v31  ;;  %vm38220_vm6 = vmpackc.low %vm16717_vm4, %vm34582_vm5 }
 0xc11   : > { %32917 = vmatprep.subr.bf16.mxu1 %v37485_v31 }
 0xc12   : > { %v30530_v2 = vpop.f32.mrb[158].mxu0 }
 0xc13   : > { %v12523_v5 = vpop.f32.mrb[159].mxu0 }
 0xc14   : > { %v30537_v33 = vpop.f32.mrb[158].mxu1  ;;  %30584 = vmatprep.mubr.msk.f32.mxu0 %vm2621_vm3, %v12523_v5 }
 0xc15   : > { %v12601_v22 = vpop.f32.mrb[159].mxu1  ;;  %30585 = vmatmul.mubr.msk.f32.vlgmr.msra.gmra.mrb[166].mxu0 %vm2621_vm3, %v30530_v2 }
 0xc16   : > { %30591 = vmatprep.mubr.msk.f32.mxu1 %vm2621_vm3, %v12601_v22  ;;  %32909 = vmatpush3.bf16.msra.mxu0 %v37485_v31 }
 0xc17   : > { %30592 = vmatmul.mubr.msk.f32.vlgmr.msra.gmra.mrb[166].mxu1 %vm2621_vm3, %v30537_v33  ;;  %30602 = vmatprep.mubr.msk.f32.mxu0 %vm5834_vm7, %v37507_v17  ;;  %v13948_v17 = vld [vmem:[#allocation22] sm:$0xff]  ;;  %vm16710_vm3 = vcmask 72704  }
 0xc18   : > { %32919 = vmatpush3.bf16.msra.mxu1 %v37485_v31  ;;  %30613 = vmatprep.mubr.msk.f32.mxu1 %vm5834_vm7, %v37519_v19 }
 0xc19   : > { %32912 = vmatprep.subr.msk.bf16.mxu0 %vm36477_vm13, %v32910_v28  ;;  %32922 = vmatprep.subr.msk.bf16.mxu1 %vm36477_vm13, %v32910_v28 }
 0xc1a   : > { %32915 = vmatpush3.bf16.msk.msra.mxu0 %vm36477_vm13, %v32910_v28 }
 0xc1b   : > { %32927 = vmatprep.subr.bf16.mxu0 %v37485_v31 }
 0xc1c   : > { %32925 = vmatpush3.bf16.msk.msra.mxu1 %vm36477_vm13, %v32910_v28 }
 0xc1d   : > { %30603 = vmatmul.mubr.msk.f32.vlgmr.msra.gmra.mrb[160].mxu0 %vm5834_vm7, %v37502_v51  ;;  %32937 = vmatprep.subr.bf16.mxu1 %v37485_v31 }
 0xc1e   : > { %32929 = vmatpush3.bf16.msra.mxu0 %v37485_v31  ;;  %30624 = vmatprep.mubr.msk.f32.mxu0 %vm5834_vm7, %v37529_v11 }
 0xc1f   : > { %30614 = vmatmul.mubr.msk.f32.vlgmr.msra.gmra.mrb[160].mxu1 %vm5834_vm7, %v37514_v50  ;;  %32932 = vmatprep.subr.msk.bf16.mxu0 %vm36477_vm13, %v32910_v28  ;;  %v13949_v50 = vld [vmem:[#allocation22 + $0x8] sm:$0xff] }
 0xc20   : > { %32939 = vmatpush3.bf16.msra.mxu1 %v37485_v31  ;;  %30635 = vmatprep.mubr.msk.f32.mxu1 %vm5834_vm7, %v37533_v45  ;;  %v37783_v19 = vpack.c.bf16 %v13949_v50, %v13948_v17 }
 0xc21   : > { %32942 = vmatprep.subr.msk.bf16.mxu1 %vm36477_vm13, %v32910_v28 }
 0xc22   : > { %32935 = vmatpush3.bf16.msk.msra.mxu0 %vm36477_vm13, %v32910_v28 }
 0xc23   : > { %32947 = vmatprep.subr.bf16.mxu0 %v37485_v31 }
 0xc24   : > { %32945 = vmatpush3.bf16.msk.msra.mxu1 %vm36477_vm13, %v32910_v28 }
 0xc25   : > { %30625 = vmatmul.mubr.msk.f32.vlgmr.msra.gmra.mrb[162].mxu0 %vm5834_vm7, %v37527_v60  ;;  %32957 = vmatprep.subr.bf16.mxu1 %v37485_v31 }
 0xc26   : > { %32949 = vmatpush3.bf16.msra.mxu0 %v37485_v31  ;;  %30646 = vmatprep.mubr.msk.f32.mxu0 %vm5834_vm7, %v37537_v4 }
 0xc27   : > { %30636 = vmatmul.mubr.msk.f32.vlgmr.msra.gmra.mrb[162].mxu1 %vm5834_vm7, %v37531_v20  ;;  %32952 = vmatprep.subr.msk.bf16.mxu0 %vm36477_vm13, %v32910_v28 }
 0xc28   : > { %32959 = vmatpush3.bf16.msra.mxu1 %v37485_v31  ;;  %30657 = vmatprep.mubr.msk.f32.mxu1 %vm5834_vm7, %v37541_v34 }
 0xc29   : > { %32962 = vmatprep.subr.msk.bf16.mxu1 %vm36477_vm13, %v32910_v28 }
 0xc2a   : > { %32955 = vmatpush3.bf16.msk.msra.mxu0 %vm36477_vm13, %v32910_v28 }
 0xc2b   : > { %32967 = vmatprep.subr.bf16.mxu0 %v37485_v31 }
 0xc2c   : > { %32965 = vmatpush3.bf16.msk.msra.mxu1 %vm36477_vm13, %v32910_v28 }
 0xc2d   : > { %30647 = vmatmul.mubr.msk.f32.vlgmr.msra.gmra.mrb[164].mxu0 %vm5834_vm7, %v37535_v38  ;;  %32977 = vmatprep.subr.bf16.mxu1 %v37485_v31 }
 0xc2e   : > { %32969 = vmatpush3.bf16.msra.mxu0 %v37485_v31  ;;  %30668 = vmatprep.mubr.msk.f32.mxu0 %vm5834_vm7, %v37545_v53 }
 0xc2f   : > { %30658 = vmatmul.mubr.msk.f32.vlgmr.msra.gmra.mrb[164].mxu1 %vm5834_vm7, %v37539_v21  ;;  %32972 = vmatprep.subr.msk.bf16.mxu0 %vm36477_vm13, %v32910_v28 }
 0xc30   : > { %32979 = vmatpush3.bf16.msra.mxu1 %v37485_v31  ;;  %30679 = vmatprep.mubr.msk.f32.mxu1 %vm5834_vm7, %v37549_v54  ;;  %v13943_v31 = vld [vmem:[#allocation2 + $0xf0] sm:$0xff] }
 0xc31   : > { %32982 = vmatprep.subr.msk.bf16.mxu1 %vm36477_vm13, %v32910_v28  ;;  %v33008_v51 = vpack.c.bf16 %v13944_v12, %v13943_v31 }
 0xc32   : > { %32975 = vmatpush3.bf16.msk.msra.mxu0 %vm36477_vm13, %v32910_v28 }
 0xc33   : > { %32986 = vmatprep.subr.bf16.mxu0 %v34583_v46 }
 0xc34   : > { %32985 = vmatpush3.bf16.msk.msra.mxu1 %vm36477_vm13, %v32910_v28 }
 0xc35   : > { %30669 = vmatmul.mubr.msk.f32.vlgmr.msra.gmra.mrb[166].mxu0 %vm5834_vm7, %v37543_v61  ;;  %32989 = vmatprep.subr.bf16.mxu1 %v34583_v46 }
 0xc36   : > { %32988 = vmatpush3.bf16.msra.mxu0 %v32987_v32  ;;  %30686 = vmatprep.mubr.msk.f32.mxu0 %vm34584_vm14, %v34585_v52 }
 0xc37   : > { %30680 = vmatmul.mubr.msk.f32.vlgmr.msra.gmra.mrb[166].mxu1 %vm5834_vm7, %v37547_v24  ;;  %32992 = vmatprep.subr.bf16.mxu0 %v34583_v46 }
 0xc38   : > { %32991 = vmatpush3.bf16.msra.mxu1 %v32990_v7  ;;  %30699 = vmatprep.mubr.msk.f32.mxu1 %vm34584_vm14, %v34585_v52 }
 0xc39   : > { %30687 = vmatmul.mubr.msk.f32.vlgmr.msra.gmra.mrb[168].mxu0 %vm1146_vm2, %v37679_v1  ;;  %32995 = vmatprep.subr.bf16.mxu1 %v34583_v46 }
 0xc3a   : > { %30689 = vmatprep.mubr.msk.f32.mxu0 %vm34584_vm14, %v34585_v52  ;;  %32994 = vmatpush3.bf16.msra.mxu0 %v32993_v55 }
 0xc3b   : > { %30700 = vmatmul.mubr.msk.f32.vlgmr.msra.gmra.mrb[168].mxu1 %vm1146_vm2, %v37679_v1  ;;  %32998 = vmatprep.subr.bf16.mxu0 %v34583_v46 }
 0xc3c   : > { %30702 = vmatprep.mubr.msk.f32.mxu1 %vm34584_vm14, %v34585_v52  ;;  %32997 = vmatpush3.bf16.msra.mxu1 %v32996_v57 }
 0xc3d   : > { %30690 = vmatmul.mubr.msk.f32.gmra.mrb[170].mxu0 %vm1146_vm2, %v37691_v47  ;;  %33001 = vmatprep.subr.bf16.mxu1 %v34583_v46 }
 0xc3e   : > { %30692 = vmatprep.mubr.msk.f32.mxu0 %vm34584_vm14, %v34585_v52 }
 0xc3f   : > { %30703 = vmatmul.mubr.msk.f32.gmra.mrb[170].mxu1 %vm1146_vm2, %v37691_v47 }
 0xc40   : > { %30705 = vmatprep.mubr.msk.f32.mxu1 %vm34584_vm14, %v34585_v52 }
 0xc41   : > { %30693 = vmatmul.mubr.msk.f32.gmra.mrb[172].mxu0 %vm1146_vm2, %v13947_v56 }
 0xc42   : > { %30712 = vmatprep.mubr.msk.f32.mxu0 %vm34584_vm14, %v34585_v52 }
 0xc43   : > { %30706 = vmatmul.mubr.msk.f32.gmra.mrb[172].mxu1 %vm1146_vm2, %v13947_v56 }
 0xc44   : > { %30725 = vmatprep.mubr.msk.f32.mxu1 %vm34584_vm14, %v34585_v52 }
 0xc45   : > { %30713 = vmatmul.mubr.msk.f32.vlgmr.msra.gmra.mrb[174].mxu0 %vm1146_vm2, %v37679_v1 }
 0xc46   : > { %30715 = vmatprep.mubr.msk.f32.mxu0 %vm34584_vm14, %v34585_v52  ;;  %33000 = vmatpush3.bf16.msra.mxu0 %v32999_v14 }
 0xc47   : > { %30726 = vmatmul.mubr.msk.f32.vlgmr.msra.gmra.mrb[174].mxu1 %vm1146_vm2, %v37679_v1  ;;  %33004 = vmatprep.subr.bf16.mxu0 %v34583_v46 }
 0xc48   : > { %30728 = vmatprep.mubr.msk.f32.mxu1 %vm34584_vm14, %v34585_v52  ;;  %33003 = vmatpush3.bf16.msra.mxu1 %v33002_v13 }
 0xc49   : > { %30716 = vmatmul.mubr.msk.f32.gmra.mrb[176].mxu0 %vm1146_vm2, %v37691_v47  ;;  %33007 = vmatprep.subr.bf16.mxu1 %v34583_v46 }
 0xc4a   : > { %30718 = vmatprep.mubr.msk.f32.mxu0 %vm34584_vm14, %v34585_v52 }
 0xc4b   : > { %30729 = vmatmul.mubr.msk.f32.gmra.mrb[176].mxu1 %vm1146_vm2, %v37691_v47 }
 0xc4c   : > { %30731 = vmatprep.mubr.msk.f32.mxu1 %vm34584_vm14, %v34585_v52 }
 0xc4d   : > { %30719 = vmatmul.mubr.msk.f32.gmra.mrb[178].mxu0 %vm1146_vm2, %v13947_v56 }
 0xc4e   : > { %30738 = vmatprep.mubr.msk.f32.mxu0 %vm34584_vm14, %v34585_v52 }
 0xc4f   : > { %30732 = vmatmul.mubr.msk.f32.gmra.mrb[178].mxu1 %vm1146_vm2, %v13947_v56 }
 0xc50   : > { %30751 = vmatprep.mubr.msk.f32.mxu1 %vm34584_vm14, %v34585_v52 }
 0xc51   : > { %30739 = vmatmul.mubr.msk.f32.vlgmr.msra.gmra.mrb[180].mxu0 %vm1146_vm2, %v37679_v1 }
 0xc52   : > { %30741 = vmatprep.mubr.msk.f32.mxu0 %vm34584_vm14, %v34585_v52  ;;  %33006 = vmatpush3.bf16.msra.mxu0 %v33005_v41 }
 0xc53   : > { %30752 = vmatmul.mubr.msk.f32.vlgmr.msra.gmra.mrb[180].mxu1 %vm1146_vm2, %v37679_v1  ;;  %33010 = vmatprep.subr.bf16.mxu0 %v34583_v46 }
 0xc54   : > { %30754 = vmatprep.mubr.msk.f32.mxu1 %vm34584_vm14, %v34585_v52  ;;  %33009 = vmatpush3.bf16.msra.mxu1 %v33008_v51 }
 0xc55   : > { %30742 = vmatmul.mubr.msk.f32.gmra.mrb[182].mxu0 %vm1146_vm2, %v37691_v47  ;;  %33013 = vmatprep.subr.bf16.mxu1 %v34583_v46 }
 0xc56   : > { %30744 = vmatprep.mubr.msk.f32.mxu0 %vm34584_vm14, %v34585_v52 }
 0xc57   : > { %30755 = vmatmul.mubr.msk.f32.gmra.mrb[182].mxu1 %vm1146_vm2, %v37691_v47 }
 0xc58   : > { %30757 = vmatprep.mubr.msk.f32.mxu1 %vm34584_vm14, %v34585_v52 }
 0xc59   : > { %30745 = vmatmul.mubr.msk.f32.gmra.mrb[184].mxu0 %vm1146_vm2, %v13947_v56 }
 0xc5a   : > { %30764 = vmatprep.mubr.msk.f32.mxu0 %vm34584_vm14, %v34585_v52 }
 0xc5b   : > { %30758 = vmatmul.mubr.msk.f32.gmra.mrb[184].mxu1 %vm1146_vm2, %v13947_v56 }
 0xc5c   : > { %30777 = vmatprep.mubr.msk.f32.mxu1 %vm34584_vm14, %v34585_v52 }
 0xc5d   : > { %30765 = vmatmul.mubr.msk.f32.vlgmr.msra.gmra.mrb[186].mxu0 %vm1146_vm2, %v37679_v1 }
 0xc5e   : > { %30767 = vmatprep.mubr.msk.f32.mxu0 %vm34584_vm14, %v34585_v52  ;;  %33012 = vmatpush3.bf16.msra.mxu0 %v37783_v19 }
 0xc5f   : > { %30778 = vmatmul.mubr.msk.f32.vlgmr.msra.gmra.mrb[186].mxu1 %vm1146_vm2, %v37679_v1  ;;  %33016 = vmatprep.subr.bf16.mxu0 %v34583_v46 }
 0xc60   : > { %30780 = vmatprep.mubr.msk.f32.mxu1 %vm34584_vm14, %v34585_v52  ;;  %33015 = vmatpush3.bf16.msra.mxu1 %v37783_v19 }
 0xc61   : > { %30768 = vmatmul.mubr.msk.f32.gmra.mrb[188].mxu0 %vm1146_vm2, %v37691_v47  ;;  %33019 = vmatprep.subr.bf16.mxu1 %v34583_v46 }
 0xc62   : > { %30770 = vmatprep.mubr.msk.f32.mxu0 %vm34584_vm14, %v34585_v52 }
 0xc63   : > { %30781 = vmatmul.mubr.msk.f32.gmra.mrb[188].mxu1 %vm1146_vm2, %v37691_v47 }
 0xc64   : > { %30783 = vmatprep.mubr.msk.f32.mxu1 %vm34584_vm14, %v34585_v52 }
 0xc65   : > { %30771 = vmatmul.mubr.msk.f32.gmra.mrb[190].mxu0 %vm1146_vm2, %v13947_v56 }
 0xc66   : > { %30790 = vmatprep.mubr.msk.f32.mxu0 %vm34584_vm14, %v34585_v52 }
 0xc67   : > { %30784 = vmatmul.mubr.msk.f32.gmra.mrb[190].mxu1 %vm1146_vm2, %v13947_v56 }
 0xc68   : > { %30803 = vmatprep.mubr.msk.f32.mxu1 %vm34584_vm14, %v34585_v52 }
 0xcf0   : > { %v37789_v60 = vpop.f32.mrb[160].mxu0 }
 0xcf1   : > { %40554 = vst [vmem:[#allocation65_spill] sm:$0xff] %v37789_v60  ;;  %v37791_v11 = vpop.f32.mrb[161].mxu0 }
 0xcf2   : > { %40555 = vst [vmem:[#allocation66_spill] sm:$0xff] %v37791_v11  ;;  %v37793_v20 = vpop.f32.mrb[160].mxu1 }
 0xcf3   : > { %40556 = vst [vmem:[#allocation68_spill] sm:$0xff] %v37793_v20  ;;  %v37795_v45 = vpop.f32.mrb[161].mxu1 }
 0xcf4   : > { %40557 = vst [vmem:[#allocation70_spill] sm:$0xff] %v37795_v45 }
 0xcf8   : > { %v37797_v38 = vpop.f32.mrb[162].mxu0 }
 0xcf9   : > { %40558 = vst [vmem:[#allocation67_spill] sm:$0xff] %v37797_v38  ;;  %v37799_v4 = vpop.f32.mrb[163].mxu0 }
 0xcfa   : > { %40559 = vst [vmem:[#allocation69_spill] sm:$0xff] %v37799_v4  ;;  %v37801_v21 = vpop.f32.mrb[162].mxu1 }
 0xcfb   : > { %40560 = vst [vmem:[#allocation71_spill] sm:$0xff] %v37801_v21  ;;  %v37803_v34 = vpop.f32.mrb[163].mxu1 }
 0xcfc   : > { %40561 = vst [vmem:[#allocation72_spill] sm:$0xff] %v37803_v34 }
 0xd00   : > { %v37805_v61 = vpop.f32.mrb[164].mxu0 }
 0xd01   : > { %40562 = vst [vmem:[#allocation73_spill] sm:$0xff] %v37805_v61  ;;  %v37807_v53 = vpop.f32.mrb[165].mxu0 }
 0xd02   : > { %40563 = vst [vmem:[#allocation74_spill] sm:$0xff] %v37807_v53  ;;  %v37809_v24 = vpop.f32.mrb[164].mxu1 }
 0xd03   : > { %40564 = vst [vmem:[#allocation51_spill] sm:$0xff] %v37809_v24  ;;  %v37811_v54 = vpop.f32.mrb[165].mxu1 }
 0xd04   : > { %40565 = vst [vmem:[#allocation53_spill] sm:$0xff] %v37811_v54 }
 0xd08   : > { %v37813_v0 = vpop.f32.mrb[166].mxu0 }
 0xd09   : > { %40566 = vst [vmem:[#allocation52_spill] sm:$0xff] %v37813_v0  ;;  %v37815_v49 = vpop.f32.mrb[167].mxu0 }
 0xd0a   : > { %40567 = vst [vmem:[#allocation54_spill] sm:$0xff] %v37815_v49  ;;  %v37817_v59 = vpop.f32.mrb[166].mxu1 }
 0xd0b   : > { %40568 = vst [vmem:[#allocation57_spill] sm:$0xff] %v37817_v59  ;;  %v37819_v37 = vpop.f32.mrb[167].mxu1 }
 0xd0c   : > { %40569 = vst [vmem:[#allocation58_spill] sm:$0xff] %v37819_v37  ;;  %v14025_v3 = vpop.f32.mrb[168].mxu0 }
 0xd0d   : > { %v30688_v8 = vpop.f32.mrb[169].mxu0  ;;  %30791 = vmatmul.mubr.msk.f32.vlgmr.msra.gmra.mrb[192].mxu0 %vm1146_vm2, %v14025_v3 }
 0xd0e   : > { %v14105_v58 = vpop.f32.mrb[168].mxu1  ;;  %30793 = vmatprep.mubr.msk.f32.mxu0 %vm34584_vm14, %v34585_v52  ;;  %33018 = vmatpush3.bf16.msra.mxu0 %v37783_v19 }
 0xd0f   : > { %v30701_v30 = vpop.f32.mrb[169].mxu1  ;;  %30804 = vmatmul.mubr.msk.f32.vlgmr.msra.gmra.mrb[192].mxu1 %vm1146_vm2, %v14105_v58  ;;  %33022 = vmatprep.subr.bf16.mxu0 %v34583_v46 }
 0xd10   : > { %v14030_v40 = vpop.f32.mrb[170].mxu0  ;;  %30806 = vmatprep.mubr.msk.f32.mxu1 %vm34584_vm14, %v34585_v52  ;;  %33021 = vmatpush3.bf16.msra.mxu1 %v37783_v19 }
 0xd11   : > { %v30691_v35 = vpop.f32.mrb[171].mxu0  ;;  %30794 = vmatmul.mubr.msk.f32.gmra.mrb[194].mxu0 %vm1146_vm2, %v14030_v40  ;;  %33025 = vmatprep.subr.bf16.mxu1 %v34583_v46 }
 0xd12   : > { %v14110_v43 = vpop.f32.mrb[170].mxu1  ;;  %30796 = vmatprep.mubr.msk.f32.mxu0 %vm34584_vm14, %v34585_v52 }
 0xd13   : > { %v30704_v15 = vpop.f32.mrb[171].mxu1  ;;  %30807 = vmatmul.mubr.msk.f32.gmra.mrb[194].mxu1 %vm1146_vm2, %v14110_v43 }
 0xd14   : > { %v14035_v2 = vpop.f32.mrb[172].mxu0  ;;  %30809 = vmatprep.mubr.msk.f32.mxu1 %vm34584_vm14, %v34585_v52 }
 0xd15   : > { %v30694_v62 = vpop.f32.mrb[173].mxu0  ;;  %30797 = vmatmul.mubr.msk.f32.gmra.mrb[196].mxu0 %vm1146_vm2, %v14035_v2 }
 0xd16   : > { %v14115_v16 = vpop.f32.mrb[172].mxu1  ;;  %30816 = vmatprep.mubr.msk.f32.mxu0 %vm34584_vm14, %v34585_v52 }
 0xd17   : > { %v30707_v5 = vpop.f32.mrb[173].mxu1  ;;  %30810 = vmatmul.mubr.msk.f32.gmra.mrb[196].mxu1 %vm1146_vm2, %v14115_v16 }
 0xd18   : > { %v14185_v33 = vpop.f32.mrb[174].mxu0  ;;  %30829 = vmatprep.mubr.msk.f32.mxu1 %vm34584_vm14, %v34585_v52 }
 0xd19   : > { %v30714_v22 = vpop.f32.mrb[175].mxu0  ;;  %30817 = vmatmul.mubr.msk.f32.vlgmr.msra.gmra.mrb[198].mxu0 %vm1146_vm2, %v14185_v33  ;;  %v40570_v33 = vmov 0 }
 0xd1a   : > { %v14265_v28 = vpop.f32.mrb[174].mxu1  ;;  %30819 = vmatprep.mubr.msk.f32.mxu0 %vm34584_vm14, %v34585_v52  ;;  %33024 = vmatpush3.bf16.msra.mxu0 %v37783_v19  ;;  %v40571_v33 = vsel %vm37910_vm0, 4294967295, %v40570_v33 }
 0xd1b   : > { %v30727_v25 = vpop.f32.mrb[175].mxu1  ;;  %30830 = vmatmul.mubr.msk.f32.vlgmr.msra.gmra.mrb[198].mxu1 %vm1146_vm2, %v14265_v28  ;;  %33028 = vmatprep.subr.bf16.mxu0 %v34583_v46  ;;  %40572 = vst [vmem:[#allocation55_spill] sm:$0xff] %v40571_v33 }
 0xd1c   : > { %v14190_v44 = vpop.f32.mrb[176].mxu0  ;;  %30832 = vmatprep.mubr.msk.f32.mxu1 %vm34584_vm14, %v34585_v52  ;;  %33027 = vmatpush3.bf16.msra.mxu1 %v37783_v19 }
 0xd1d   : > { %v30717_v18 = vpop.f32.mrb[177].mxu0  ;;  %30820 = vmatmul.mubr.msk.f32.gmra.mrb[200].mxu0 %vm1146_vm2, %v14190_v44  ;;  %33031 = vmatprep.subr.bf16.mxu1 %v34583_v46 }
 0xd1e   : > { %v14270_v29 = vpop.f32.mrb[176].mxu1  ;;  %30822 = vmatprep.mubr.msk.f32.mxu0 %vm34584_vm14, %v34585_v52 }
 0xd1f   : > { %v30730_v32 = vpop.f32.mrb[177].mxu1  ;;  %30833 = vmatmul.mubr.msk.f32.gmra.mrb[200].mxu1 %vm1146_vm2, %v14270_v29 }
 0xd20   : > { %v14195_v6 = vpop.f32.mrb[178].mxu0  ;;  %30835 = vmatprep.mubr.msk.f32.mxu1 %vm34584_vm14, %v34585_v52 }
 0xd21   : > { %v30720_v36 = vpop.f32.mrb[179].mxu0  ;;  %30823 = vmatmul.mubr.msk.f32.gmra.mrb[202].mxu0 %vm1146_vm2, %v14195_v6 }
 0xd22   : > { %v14275_v7 = vpop.f32.mrb[178].mxu1  ;;  %30842 = vmatprep.mubr.msk.f32.mxu0 %vm34584_vm14, %v34585_v52 }
 0xd23   : > { %v30733_v9 = vpop.f32.mrb[179].mxu1  ;;  %30836 = vmatmul.mubr.msk.f32.gmra.mrb[202].mxu1 %vm1146_vm2, %v14275_v7 }
 0xd24   : > { %v14345_v42 = vpop.f32.mrb[180].mxu0  ;;  %30855 = vmatprep.mubr.msk.f32.mxu1 %vm34584_vm14, %v34585_v52 }
 0xd25   : > { %v30740_v1 = vpop.f32.mrb[181].mxu0  ;;  %30843 = vmatmul.mubr.msk.f32.vlgmr.msra.gmra.mrb[204].mxu0 %vm1146_vm2, %v14345_v42  ;;  %v37923_v42 = vld [vmem:[%s40573_s30] sm:$0xff] }
 0xd26   : > { %v14425_v55 = vpop.f32.mrb[180].mxu1  ;;  %30845 = vmatprep.mubr.msk.f32.mxu0 %vm34584_vm14, %v34585_v52  ;;  %33030 = vmatpush3.bf16.msra.mxu0 %v37783_v19 }
 0xd27   : > { %v30753_v57 = vpop.f32.mrb[181].mxu1  ;;  %30856 = vmatmul.mubr.msk.f32.vlgmr.msra.gmra.mrb[204].mxu1 %vm1146_vm2, %v14425_v55  ;;  %33034 = vmatprep.subr.bf16.mxu0 %v34583_v46 }
 0xd28   : > { %v14350_v47 = vpop.f32.mrb[182].mxu0  ;;  %30858 = vmatprep.mubr.msk.f32.mxu1 %vm34584_vm14, %v34585_v52  ;;  %33033 = vmatpush3.bf16.msra.mxu1 %v37783_v19 }
 0xd29   : > { %v30743_v56 = vpop.f32.mrb[183].mxu0  ;;  %30846 = vmatmul.mubr.msk.f32.gmra.mrb[206].mxu0 %vm1146_vm2, %v14350_v47  ;;  %33038 = vmatprep.subr.bf16.mxu1 %v34583_v46 }
 0xd2a   : > { %v14430_v27 = vpop.f32.mrb[182].mxu1  ;;  %30848 = vmatprep.mubr.msk.f32.mxu0 %vm34584_vm14, %v34585_v52 }
 0xd2b   : > { %v30756_v39 = vpop.f32.mrb[183].mxu1  ;;  %30859 = vmatmul.mubr.msk.f32.gmra.mrb[206].mxu1 %vm1146_vm2, %v14430_v27 }
 0xd2c   : > { %v14355_v10 = vpop.f32.mrb[184].mxu0  ;;  %30861 = vmatprep.mubr.msk.f32.mxu1 %vm34584_vm14, %v34585_v52 }
 0xd2d   : > { %v30746_v63 = vpop.f32.mrb[185].mxu0  ;;  %30849 = vmatmul.mubr.msk.f32.gmra.mrb[208].mxu0 %vm1146_vm2, %v14355_v10 }
 0xd2e   : > { %v14435_v14 = vpop.f32.mrb[184].mxu1  ;;  %30868 = vmatprep.mubr.msk.f32.mxu0 %vm34584_vm14, %v34585_v52 }
 0xd2f   : > { %v30759_v13 = vpop.f32.mrb[185].mxu1  ;;  %30862 = vmatmul.mubr.msk.f32.gmra.mrb[208].mxu1 %vm1146_vm2, %v14435_v14 }
 0xd30   : > { %v14505_v48 = vpop.f32.mrb[186].mxu0  ;;  %30881 = vmatprep.mubr.msk.f32.mxu1 %vm34584_vm14, %v34585_v52 }
 0xd31   : > { %v30766_v26 = vpop.f32.mrb[187].mxu0  ;;  %30869 = vmatmul.mubr.msk.f32.vlgmr.msra.gmra.mrb[210].mxu0 %vm1146_vm2, %v14505_v48 }
 0xd32   : > { %v14585_v31 = vpop.f32.mrb[186].mxu1  ;;  %30871 = vmatprep.mubr.msk.f32.mxu0 %vm34584_vm14, %v34585_v52 }
 0xd33   : > { %v30779_v12 = vpop.f32.mrb[187].mxu1  ;;  %30882 = vmatmul.mubr.msk.f32.vlgmr.msra.gmra.mrb[210].mxu1 %vm1146_vm2, %v14585_v31  ;;  %v37940_v31 = vld [vmem:[%s40573_s30 + $0x8] sm:$0xff] }
 0xd34   : > { %v14510_v41 = vpop.f32.mrb[188].mxu0  ;;  %30884 = vmatprep.mubr.msk.f32.mxu1 %vm34584_vm14, %v34585_v52 }
 0xd35   : > { %v30769_v51 = vpop.f32.mrb[189].mxu0  ;;  %30872 = vmatmul.mubr.msk.f32.gmra.mrb[212].mxu0 %vm1146_vm2, %v14510_v41 }
 0xd36   : > { %v14590_v17 = vpop.f32.mrb[188].mxu1  ;;  %30874 = vmatprep.mubr.msk.f32.mxu0 %vm34584_vm14, %v34585_v52 }
 0xd37   : > { %v30782_v50 = vpop.f32.mrb[189].mxu1  ;;  %30885 = vmatmul.mubr.msk.f32.gmra.mrb[212].mxu1 %vm1146_vm2, %v14590_v17 }
 0xd38   : > { %v14515_v19 = vpop.f32.mrb[190].mxu0  ;;  %30887 = vmatprep.mubr.msk.f32.mxu1 %vm34584_vm14, %v34585_v52 }
 0xd39   : > { %v30772_v3 = vpop.f32.mrb[191].mxu0  ;;  %30875 = vmatmul.mubr.msk.f32.gmra.mrb[214].mxu0 %vm1146_vm2, %v14515_v19 }
 0xd3a   : > { %v14595_v8 = vpop.f32.mrb[190].mxu1  ;;  %30894 = vmatprep.mubr.msk.f32.mxu0 %vm34584_vm14, %v34585_v52 }
 0xd3b   : > { %v30785_v58 = vpop.f32.mrb[191].mxu1  ;;  %30888 = vmatmul.mubr.msk.f32.gmra.mrb[214].mxu1 %vm1146_vm2, %v14595_v8 }
 0xd3c   : > { %30907 = vmatprep.mubr.msk.f32.mxu1 %vm34584_vm14, %v34585_v52 }
 0xde0   : > { %v14674_v30 = vpop.f32.mrb[192].mxu0 }
 0xde1   : > { %v30792_v40 = vpop.f32.mrb[193].mxu0  ;;  %v23335_v35 = vsub.f32 %v14674_v30, %v35385_v23  ;;  %v23383_v43 = vadd.f32 %v14674_v30, %v35385_v23 }
 0xde2   : > { %v14763_v15 = vpop.f32.mrb[192].mxu1 }
 0xde3   : > { %v30805_v2 = vpop.f32.mrb[193].mxu1  ;;  %v23338_v62 = vsub.f32 %v14763_v15, %v35385_v23  ;;  %v23386_v16 = vadd.f32 %v14763_v15, %v35385_v23  ;;  %v23359_v25 = vmax.f32 %v23335_v35, 0.0  ;;  %v23407_v44 = vmin.f32 %v23383_v43, 0.0 }
 0xde4   : > { %v14679_v5 = vpop.f32.mrb[194].mxu0 }
 0xde5   : > { %v33035_v22 = vpack.c.bf16 %v14679_v5, %v14674_v30  ;;  %v30795_v28 = vpop.f32.mrb[195].mxu0  ;;  %v23336_v18 = vsub.f32 %v14679_v5, %v35385_v23  ;;  %v23384_v29 = vadd.f32 %v14679_v5, %v35385_v23  ;;  %v23362_v1 = vmax.f32 %v23338_v62, 0.0  ;;  %v37959_v30 = vld [vmem:[%s40573_s30 + $0x10] sm:$0x3] }
 0xde6   : > { %v14768_v32 = vpop.f32.mrb[194].mxu1  ;;  %v23410_v55 = vmin.f32 %v23386_v16, 0.0  ;;  %v23431_v63 = vadd.f32 %v23407_v44, %v23359_v25 }
 0xde7   : > { %v33039_v6 = vpack.c.bf16 %v14768_v32, %v14763_v15  ;;  %v23339_v36 = vsub.f32 %v14768_v32, %v35385_v23  ;;  %v23387_v7 = vadd.f32 %v14768_v32, %v35385_v23  ;;  %v30808_v9 = vpop.f32.mrb[195].mxu1  ;;  %33037 = vmatpush3.bf16.msk.msra.mxu0 %vm37910_vm0, %v33035_v22  ;;  %v23360_v57 = vmax.f32 %v23336_v18, 0.0 }
 0xde8   : > { %v23408_v47 = vmin.f32 %v23384_v29, 0.0  ;;  %v37925_v56 = vpop.f32.mrb[196].mxu0  ;;  %33042 = vmatprep.subr.bf16.mxu0 %v34583_v46  ;;  %v23434_v12 = vadd.f32 %v23410_v55, %v23362_v1 }
 0xde9   : > { %v23363_v27 = vmax.f32 %v23339_v36, 0.0  ;;  %v23411_v39 = vmin.f32 %v23387_v7, 0.0  ;;  %33041 = vmatpush3.bf16.msk.msra.mxu1 %vm37910_vm0, %v33039_v6  ;;  %v30798_v10 = vpop.f32.mrb[197].mxu0 }
 0xdea   : > { %v23432_v14 = vadd.f32 %v23408_v47, %v23360_v57  ;;  %v37930_v13 = vpop.f32.mrb[196].mxu1  ;;  %30895 = vmatmul.mubr.msk.f32.vlgmr.msra.gmra.mrb[216].mxu0 %vm15316_vm1, %v37923_v42  ;;  %33046 = vmatprep.subr.bf16.mxu1 %v34583_v46 }
 0xdeb   : > { %v23435_v48 = vadd.f32 %v23411_v39, %v23363_v27  ;;  %v30811_v26 = vpop.f32.mrb[197].mxu1  ;;  %30897 = vmatprep.mubr.msk.f32.mxu0 %vm34584_vm14, %v34585_v52 }
 0xdec   : > { %30908 = vmatmul.mubr.msk.f32.vlgmr.msra.gmra.mrb[216].mxu1 %vm15316_vm1, %v37923_v42  ;;  %v14852_v41 = vpop.f32.mrb[198].mxu0  ;;  %v37944_v51 = vpack.c.bf16 %v23432_v14, %v23431_v63 }
 0xded   : > { %v30818_v17 = vpop.f32.mrb[199].mxu0  ;;  %30910 = vmatprep.mubr.msk.f32.mxu1 %vm34584_vm14, %v34585_v52  ;;  %v23341_v50 = vsub.f32 %v14852_v41, %v35385_v23  ;;  %v23389_v19 = vadd.f32 %v14852_v41, %v35385_v23  ;;  %v37952_v8 = vpack.c.bf16 %v23435_v48, %v23434_v12 }
 0xdee   : > { %v14941_v3 = vpop.f32.mrb[198].mxu1  ;;  %30898 = vmatmul.mubr.msk.f32.gmra.mrb[218].mxu0 %vm15316_vm1, %v37940_v31 }
 0xdef   : > { %v30831_v58 = vpop.f32.mrb[199].mxu1  ;;  %30900 = vmatprep.mubr.msk.f32.mxu0 %vm34584_vm14, %v34585_v52  ;;  %v23344_v40 = vsub.f32 %v14941_v3, %v35385_v23  ;;  %v23392_v35 = vadd.f32 %v14941_v3, %v35385_v23  ;;  %v23365_v62 = vmax.f32 %v23341_v50, 0.0  ;;  %v23413_v16 = vmin.f32 %v23389_v19, 0.0 }
 0xdf0   : > { %30911 = vmatmul.mubr.msk.f32.gmra.mrb[218].mxu1 %vm15316_vm1, %v37940_v31  ;;  %v14857_v43 = vpop.f32.mrb[200].mxu0 }
 0xdf1   : > { %v33043_v15 = vpack.c.bf16 %v14857_v43, %v14852_v41  ;;  %v30821_v2 = vpop.f32.mrb[201].mxu0  ;;  %30913 = vmatprep.mubr.msk.f32.mxu1 %vm34584_vm14, %v34585_v52  ;;  %v23342_v5 = vsub.f32 %v14857_v43, %v35385_v23  ;;  %v23390_v22 = vadd.f32 %v14857_v43, %v35385_v23  ;;  %v23368_v32 = vmax.f32 %v23344_v40, 0.0 }
 0xdf2   : > { %v14946_v28 = vpop.f32.mrb[200].mxu1  ;;  %30901 = vmatmul.mubr.msk.f32.gmra.mrb[220].mxu0 %vm15316_vm1, %v37959_v30  ;;  %v23416_v6 = vmin.f32 %v23392_v35, 0.0  ;;  %v23437_v47 = vadd.f32 %v23413_v16, %v23365_v62 }
 0xdf3   : > { %v33047_v25 = vpack.c.bf16 %v14946_v28, %v14941_v3  ;;  %v23345_v44 = vsub.f32 %v14946_v28, %v35385_v23  ;;  %v23393_v18 = vadd.f32 %v14946_v28, %v35385_v23  ;;  %v30834_v29 = vpop.f32.mrb[201].mxu1  ;;  %33045 = vmatpush3.bf16.msk.msra.mxu0 %vm37910_vm0, %v33043_v15  ;;  %v23366_v36 = vmax.f32 %v23342_v5, 0.0  ;;  %30920 = vmatprep.mubr.msk.f32.mxu0 %vm34584_vm14, %v34585_v52 }
 0xdf4   : > { %v23414_v7 = vmin.f32 %v23390_v22, 0.0  ;;  %30914 = vmatmul.mubr.msk.f32.gmra.mrb[220].mxu1 %vm15316_vm1, %v37959_v30  ;;  %v37977_v9 = vpop.f32.mrb[202].mxu0  ;;  %33050 = vmatprep.subr.bf16.mxu0 %v34583_v46  ;;  %v23440_v14 = vadd.f32 %v23416_v6, %v23368_v32 }
 0xdf5   : > { %v23369_v1 = vmax.f32 %v23345_v44, 0.0  ;;  %v23417_v55 = vmin.f32 %v23393_v18, 0.0  ;;  %33049 = vmatpush3.bf16.msk.msra.mxu1 %vm37910_vm0, %v33047_v25  ;;  %v30824_v57 = vpop.f32.mrb[203].mxu0  ;;  %30933 = vmatprep.mubr.msk.f32.mxu1 %vm34584_vm14, %v34585_v52 }
 0xdf6   : > { %v23438_v27 = vadd.f32 %v23414_v7, %v23366_v36  ;;  %v37985_v39 = vpop.f32.mrb[202].mxu1  ;;  %30921 = vmatmul.mubr.msk.f32.vlgmr.msra.gmra.mrb[222].mxu0 %vm15316_vm1, %v37923_v42  ;;  %33054 = vmatprep.subr.bf16.mxu1 %v34583_v46 }
 0xdf7   : > { %v23441_v10 = vadd.f32 %v23417_v55, %v23369_v1  ;;  %v30837_v63 = vpop.f32.mrb[203].mxu1  ;;  %30923 = vmatprep.mubr.msk.f32.mxu0 %vm34584_vm14, %v34585_v52 }
 0xdf8   : > { %30934 = vmatmul.mubr.msk.f32.vlgmr.msra.gmra.mrb[222].mxu1 %vm15316_vm1, %v37923_v42  ;;  %v15030_v48 = vpop.f32.mrb[204].mxu0  ;;  %v37995_v26 = vpack.c.bf16 %v23438_v27, %v23437_v47 }
 0xdf9   : > { %v30844_v12 = vpop.f32.mrb[205].mxu0  ;;  %30936 = vmatprep.mubr.msk.f32.mxu1 %vm34584_vm14, %v34585_v52  ;;  %v23347_v41 = vsub.f32 %v15030_v48, %v35385_v23  ;;  %v23395_v17 = vadd.f32 %v15030_v48, %v35385_v23  ;;  %v38003_v19 = vpack.c.bf16 %v23441_v10, %v23440_v14 }
 0xdfa   : > { %v15119_v50 = vpop.f32.mrb[204].mxu1  ;;  %30924 = vmatmul.mubr.msk.f32.gmra.mrb[224].mxu0 %vm15316_vm1, %v37940_v31 }
 0xdfb   : > { %v30857_v3 = vpop.f32.mrb[205].mxu1  ;;  %30926 = vmatprep.mubr.msk.f32.mxu0 %vm34584_vm14, %v34585_v52  ;;  %v23350_v58 = vsub.f32 %v15119_v50, %v35385_v23  ;;  %v23398_v40 = vadd.f32 %v15119_v50, %v35385_v23  ;;  %v23371_v2 = vmax.f32 %v23347_v41, 0.0  ;;  %v23419_v62 = vmin.f32 %v23395_v17, 0.0 }
 0xdfc   : > { %30937 = vmatmul.mubr.msk.f32.gmra.mrb[224].mxu1 %vm15316_vm1, %v37940_v31  ;;  %v15035_v35 = vpop.f32.mrb[206].mxu0 }
 0xdfd   : > { %v33051_v43 = vpack.c.bf16 %v15035_v35, %v15030_v48  ;;  %v30847_v15 = vpop.f32.mrb[207].mxu0  ;;  %30939 = vmatprep.mubr.msk.f32.mxu1 %vm34584_vm14, %v34585_v52  ;;  %v23348_v16 = vsub.f32 %v15035_v35, %v35385_v23  ;;  %v23396_v5 = vadd.f32 %v15035_v35, %v35385_v23  ;;  %v23374_v29 = vmax.f32 %v23350_v58, 0.0 }
 0xdfe   : > { %v15124_v22 = vpop.f32.mrb[206].mxu1  ;;  %30927 = vmatmul.mubr.msk.f32.gmra.mrb[226].mxu0 %vm15316_vm1, %v37959_v30  ;;  %v23422_v32 = vmin.f32 %v23398_v40, 0.0  ;;  %v23443_v47 = vadd.f32 %v23419_v62, %v23371_v2 }
 0xdff   : > { %v33055_v28 = vpack.c.bf16 %v15124_v22, %v15119_v50  ;;  %v23351_v25 = vsub.f32 %v15124_v22, %v35385_v23  ;;  %v23399_v44 = vadd.f32 %v15124_v22, %v35385_v23  ;;  %v30860_v18 = vpop.f32.mrb[207].mxu1  ;;  %33053 = vmatpush3.bf16.msk.msra.mxu0 %vm37910_vm0, %v33051_v43  ;;  %v23372_v6 = vmax.f32 %v23348_v16, 0.0  ;;  %30946 = vmatprep.mubr.msk.f32.mxu0 %vm34584_vm14, %v34585_v52  ;;  %v15314_v22 = vld [vmem:[#allocation26] sm:$0xff] }
 0xe00   : > { %v23420_v36 = vmin.f32 %v23396_v5, 0.0  ;;  %30940 = vmatmul.mubr.msk.f32.gmra.mrb[226].mxu1 %vm15316_vm1, %v37959_v30  ;;  %v38023_v7 = vpop.f32.mrb[208].mxu0  ;;  %33058 = vmatprep.subr.bf16.mxu0 %v34583_v46  ;;  %v23446_v48 = vadd.f32 %v23422_v32, %v23374_v29 }
 0xe01   : > { %v23375_v1 = vmax.f32 %v23351_v25, 0.0  ;;  %v23423_v55 = vmin.f32 %v23399_v44, 0.0  ;;  %33057 = vmatpush3.bf16.msk.msra.mxu1 %vm37910_vm0, %v33055_v28  ;;  %v30850_v57 = vpop.f32.mrb[209].mxu0  ;;  %30959 = vmatprep.mubr.msk.f32.mxu1 %vm34584_vm14, %v34585_v52  ;;  %v15315_v28 = vld [vmem:[#allocation26 + $0x8] sm:$0x7] }
 0xe02   : > { %v23444_v27 = vadd.f32 %v23420_v36, %v23372_v6  ;;  %v38031_v10 = vpop.f32.mrb[208].mxu1  ;;  %30947 = vmatmul.mubr.msk.f32.vlgmr.msra.gmra.mrb[228].mxu0 %vm15316_vm1, %v37923_v42  ;;  %33062 = vmatprep.subr.bf16.mxu1 %v34583_v46 }
 0xe03   : > { %v23447_v63 = vadd.f32 %v23423_v55, %v23375_v1  ;;  %v30863_v14 = vpop.f32.mrb[209].mxu1  ;;  %30949 = vmatprep.mubr.msk.f32.mxu0 %vm34584_vm14, %v34585_v52 }
 0xe04   : > { %30960 = vmatmul.mubr.msk.f32.vlgmr.msra.gmra.mrb[228].mxu1 %vm15316_vm1, %v37923_v42  ;;  %v15208_v12 = vpop.f32.mrb[210].mxu0  ;;  %v38041_v41 = vpack.c.bf16 %v23444_v27, %v23443_v47  ;;  %v38073_v14 = vpack.c.bf16 %v15315_v28, %v15314_v22 }
 0xe05   : > { %v23353_v17 = vsub.f32 %v15208_v12, %v35385_v23  ;;  %v30870_v50 = vpop.f32.mrb[211].mxu0  ;;  %30962 = vmatprep.mubr.msk.f32.mxu1 %vm34584_vm14, %v34585_v52  ;;  %v23401_v3 = vadd.f32 %v15208_v12, %v35385_v23  ;;  %v38049_v40 = vpack.c.bf16 %v23447_v63, %v23446_v48 }
 0xe06   : > { %v15297_v58 = vpop.f32.mrb[210].mxu1  ;;  %30950 = vmatmul.mubr.msk.f32.gmra.mrb[230].mxu0 %vm15316_vm1, %v37940_v31 }
 0xe07   : > { %v23356_v35 = vsub.f32 %v15297_v58, %v35385_v23  ;;  %v23404_v43 = vadd.f32 %v15297_v58, %v35385_v23  ;;  %v30883_v15 = vpop.f32.mrb[211].mxu1  ;;  %30952 = vmatprep.mubr.msk.f32.mxu0 %vm34584_vm14, %v34585_v52  ;;  %v23377_v62 = vmax.f32 %v23353_v17, 0.0  ;;  %v23425_v25 = vmin.f32 %v23401_v3, 0.0 }
 0xe08   : > { %30963 = vmatmul.mubr.msk.f32.gmra.mrb[230].mxu1 %vm15316_vm1, %v37940_v31  ;;  %v15213_v2 = vpop.f32.mrb[212].mxu0 }
 0xe09   : > { %v33059_v16 = vpack.c.bf16 %v15213_v2, %v15208_v12  ;;  %v30873_v5 = vpop.f32.mrb[213].mxu0  ;;  %30965 = vmatprep.mubr.msk.f32.mxu1 %vm34584_vm14, %v34585_v52  ;;  %v23380_v44 = vmax.f32 %v23356_v35, 0.0  ;;  %v23354_v18 = vsub.f32 %v15213_v2, %v35385_v23  ;;  %v23402_v29 = vadd.f32 %v15213_v2, %v35385_v23 }
 0xe0a   : > { %v15302_v32 = vpop.f32.mrb[212].mxu1  ;;  %30953 = vmatmul.mubr.msk.f32.gmra.mrb[232].mxu0 %vm15316_vm1, %v37959_v30  ;;  %v23428_v6 = vmin.f32 %v23404_v43, 0.0  ;;  %v23449_v50 = vadd.f32 %v23425_v25, %v23377_v62 }
 0xe0b   : > { %v33063_v36 = vpack.c.bf16 %v15302_v32, %v15297_v58  ;;  %v23357_v1 = vsub.f32 %v15302_v32, %v35385_v23  ;;  %v23405_v55 = vadd.f32 %v15302_v32, %v35385_v23  ;;  %v30886_v57 = vpop.f32.mrb[213].mxu1  ;;  %33061 = vmatpush3.bf16.msk.msra.mxu0 %vm37910_vm0, %v33059_v16  ;;  %v23378_v47 = vmax.f32 %v23354_v18, 0.0  ;;  %30972 = vmatprep.mubr.msk.f32.mxu0 %vm34584_vm14, %v34585_v52 }
 0xe0c   : > { %v23426_v27 = vmin.f32 %v23402_v29, 0.0  ;;  %30966 = vmatmul.mubr.msk.f32.gmra.mrb[232].mxu1 %vm15316_vm1, %v37959_v30  ;;  %v38071_v63 = vpop.f32.mrb[214].mxu0  ;;  %33066 = vmatprep.subr.bf16.mxu0 %v34583_v46  ;;  %v23452_v35 = vadd.f32 %v23428_v6, %v23380_v44 }
 0xe0d   : > { %v23381_v48 = vmax.f32 %v23357_v1, 0.0  ;;  %v23429_v12 = vmin.f32 %v23405_v55, 0.0  ;;  %33065 = vmatpush3.bf16.msk.msra.mxu1 %vm37910_vm0, %v33063_v36  ;;  %30985 = vmatprep.mubr.msk.f32.mxu1 %vm34584_vm14, %v34585_v52  ;;  %v30876_v17 = vpop.f32.mrb[215].mxu0 }
 0xe0e   : > { %v23450_v3 = vadd.f32 %v23426_v27, %v23378_v47  ;;  %30973 = vmatmul.mubr.msk.f32.vlgmr.msra.gmra.mrb[234].mxu0 %vm15316_vm1, %v37923_v42  ;;  %v38081_v58 = vpop.f32.mrb[214].mxu1  ;;  %33070 = vmatprep.subr.bf16.mxu1 %v34583_v46 }
 0xe0f   : > { %v23453_v43 = vadd.f32 %v23429_v12, %v23381_v48  ;;  %30975 = vmatprep.mubr.msk.f32.mxu0 %vm34584_vm14, %v34585_v52  ;;  %v30889_v15 = vpop.f32.mrb[215].mxu1  ;;  %33069 = vmatpush3.bf16.msk.msra.mxu0 %vm37910_vm0, %v38073_v14 }
 0xe10   : > { %30986 = vmatmul.mubr.msk.f32.vlgmr.msra.gmra.mrb[234].mxu1 %vm15316_vm1, %v37923_v42  ;;  %v38092_v2 = vpack.c.bf16 %v23450_v3, %v23449_v50  ;;  %33074 = vmatprep.subr.bf16.mxu0 %v34583_v46 }
 0xe11   : > { %30988 = vmatprep.mubr.msk.f32.mxu1 %vm34584_vm14, %v34585_v52  ;;  %33073 = vmatpush3.bf16.msk.msra.mxu1 %vm37910_vm0, %v38073_v14  ;;  %v38099_v62 = vpack.c.bf16 %v23453_v43, %v23452_v35 }
 0xe12   : > { %30976 = vmatmul.mubr.msk.f32.gmra.mrb[236].mxu0 %vm15316_vm1, %v37940_v31  ;;  %33078 = vmatprep.subr.bf16.mxu1 %v34583_v46 }
 0xe13   : > { %30978 = vmatprep.mubr.msk.f32.mxu0 %vm34584_vm14, %v34585_v52 }
 0xe14   : > { %30989 = vmatmul.mubr.msk.f32.gmra.mrb[236].mxu1 %vm15316_vm1, %v37940_v31 }
 0xe15   : > { %30991 = vmatprep.mubr.msk.f32.mxu1 %vm34584_vm14, %v34585_v52 }
 0xe16   : > { %30979 = vmatmul.mubr.msk.f32.gmra.mrb[238].mxu0 %vm15316_vm1, %v37959_v30 }
 0xe17   : > { %30998 = vmatprep.mubr.msk.f32.mxu0 %vm34584_vm14, %v34585_v52 }
 0xe18   : > { %30992 = vmatmul.mubr.msk.f32.gmra.mrb[238].mxu1 %vm15316_vm1, %v37959_v30 }
 0xe19   : > { %31011 = vmatprep.mubr.msk.f32.mxu1 %vm34584_vm14, %v34585_v52 }
 0xebd   : > { %v15396_v42 = vpop.f32.mrb[216].mxu0 }
 0xebe   : > { %30999 = vmatmul.mubr.msk.f32.vlgmr.msra.gmra.mrb[240].mxu0 %vm15316_vm1, %v15396_v42  ;;  %v30896_v16 = vpop.f32.mrb[217].mxu0 }
 0xebf   : > { %v15479_v31 = vpop.f32.mrb[216].mxu1  ;;  %31001 = vmatprep.mubr.msk.f32.mxu0 %vm34584_vm14, %v34585_v52  ;;  %33077 = vmatpush3.bf16.msk.msra.mxu0 %vm37910_vm0, %v38073_v14 }
 0xec0   : > { %31012 = vmatmul.mubr.msk.f32.vlgmr.msra.gmra.mrb[240].mxu1 %vm15316_vm1, %v15479_v31  ;;  %v30909_v5 = vpop.f32.mrb[217].mxu1  ;;  %33082 = vmatprep.subr.bf16.mxu0 %v34583_v46 }
 0xec1   : > { %v15401_v30 = vpop.f32.mrb[218].mxu0  ;;  %31014 = vmatprep.mubr.msk.f32.mxu1 %vm34584_vm14, %v34585_v52  ;;  %33081 = vmatpush3.bf16.msk.msra.mxu1 %vm37910_vm0, %v38073_v14 }
 0xec2   : > { %31002 = vmatmul.mubr.msk.f32.gmra.mrb[242].mxu0 %vm15316_vm1, %v15401_v30  ;;  %v30899_v22 = vpop.f32.mrb[219].mxu0  ;;  %33086 = vmatprep.subr.bf16.mxu1 %v34583_v46 }
 0xec3   : > { %v15484_v28 = vpop.f32.mrb[218].mxu1  ;;  %31004 = vmatprep.mubr.msk.f32.mxu0 %vm34584_vm14, %v34585_v52 }
 0xec4   : > { %31015 = vmatmul.mubr.msk.f32.gmra.mrb[242].mxu1 %vm15316_vm1, %v15484_v28  ;;  %v30912_v25 = vpop.f32.mrb[219].mxu1 }
 0xec5   : > { %v15406_v44 = vpop.f32.mrb[220].mxu0  ;;  %31017 = vmatprep.mubr.msk.f32.mxu1 %vm34584_vm14, %v34585_v52 }
 0xec6   : > { %31005 = vmatmul.mubr.msk.f32.gmra.mrb[244].mxu0 %vm15316_vm1, %v15406_v44  ;;  %v30902_v18 = vpop.f32.mrb[221].mxu0 }
 0xec7   : > { %v15489_v29 = vpop.f32.mrb[220].mxu1  ;;  %31024 = vmatprep.mubr.msk.f32.mxu0 %vm34584_vm14, %v34585_v52 }
 0xec8   : > { %31018 = vmatmul.mubr.msk.f32.gmra.mrb[244].mxu1 %vm15316_vm1, %v15489_v29  ;;  %v30915_v32 = vpop.f32.mrb[221].mxu1 }
 0xec9   : > { %v15562_v6 = vpop.f32.mrb[222].mxu0  ;;  %31037 = vmatprep.mubr.msk.f32.mxu1 %vm34584_vm14, %v34585_v52 }
 0xeca   : > { %31025 = vmatmul.mubr.msk.f32.vlgmr.msra.gmra.mrb[246].mxu0 %vm15316_vm1, %v15562_v6  ;;  %v30922_v36 = vpop.f32.mrb[223].mxu0 }
 0xecb   : > { %v15645_v1 = vpop.f32.mrb[222].mxu1  ;;  %31027 = vmatprep.mubr.msk.f32.mxu0 %vm34584_vm14, %v34585_v52  ;;  %33085 = vmatpush3.bf16.msk.msra.mxu0 %vm37910_vm0, %v38073_v14 }
 0xecc   : > { %31038 = vmatmul.mubr.msk.f32.vlgmr.msra.gmra.mrb[246].mxu1 %vm15316_vm1, %v15645_v1  ;;  %v30935_v55 = vpop.f32.mrb[223].mxu1  ;;  %33090 = vmatprep.subr.bf16.mxu0 %v34583_v46 }
 0xecd   : > { %v15567_v57 = vpop.f32.mrb[224].mxu0  ;;  %31040 = vmatprep.mubr.msk.f32.mxu1 %vm34584_vm14, %v34585_v52  ;;  %33089 = vmatpush3.bf16.msk.msra.mxu1 %vm37910_vm0, %v38073_v14 }
 0xece   : > { %31028 = vmatmul.mubr.msk.f32.gmra.mrb[248].mxu0 %vm15316_vm1, %v15567_v57  ;;  %v30925_v47 = vpop.f32.mrb[225].mxu0  ;;  %33094 = vmatprep.subr.bf16.mxu1 %v34583_v46 }
 0xecf   : > { %v15650_v27 = vpop.f32.mrb[224].mxu1  ;;  %31030 = vmatprep.mubr.msk.f32.mxu0 %vm34584_vm14, %v34585_v52 }
 0xed0   : > { %31041 = vmatmul.mubr.msk.f32.gmra.mrb[248].mxu1 %vm15316_vm1, %v15650_v27  ;;  %v30938_v48 = vpop.f32.mrb[225].mxu1 }
 0xed1   : > { %v15572_v12 = vpop.f32.mrb[226].mxu0  ;;  %31043 = vmatprep.mubr.msk.f32.mxu1 %vm34584_vm14, %v34585_v52  ;;  %v38209_v48 = vld [vmem:[#allocation29] sm:$0xff] }
 0xed2   : > { %31031 = vmatmul.mubr.msk.f32.gmra.mrb[250].mxu0 %vm15316_vm1, %v15572_v12  ;;  %v30928_v17 = vpop.f32.mrb[227].mxu0 }
 0xed3   : > { %v15655_v50 = vpop.f32.mrb[226].mxu1  ;;  %31050 = vmatprep.mubr.msk.f32.mxu0 %vm34584_vm14, %v34585_v52 }
 0xed4   : > { %31044 = vmatmul.mubr.msk.f32.gmra.mrb[250].mxu1 %vm15316_vm1, %v15655_v50  ;;  %v30941_v46 = vpop.f32.mrb[227].mxu1 }
 0xed5   : > { %v15728_v3 = vpop.f32.mrb[228].mxu0  ;;  %31063 = vmatprep.mubr.msk.f32.mxu1 %vm34584_vm14, %v34585_v52 }
 0xed6   : > { %31051 = vmatmul.mubr.msk.f32.vlgmr.msra.gmra.mrb[252].mxu0 %vm15316_vm1, %v15728_v3  ;;  %v30948_v35 = vpop.f32.mrb[229].mxu0 }
 0xed7   : > { %v15811_v43 = vpop.f32.mrb[228].mxu1  ;;  %31053 = vmatprep.mubr.msk.f32.mxu0 %vm34584_vm14, %v34585_v52  ;;  %33093 = vmatpush3.bf16.msk.msra.mxu0 %vm37910_vm0, %v38073_v14 }
 0xed8   : > { %31064 = vmatmul.mubr.msk.f32.vlgmr.msra.gmra.mrb[252].mxu1 %vm15316_vm1, %v15811_v43  ;;  %v30961_v15 = vpop.f32.mrb[229].mxu1 }
 0xed9   : > { %v15733_v42 = vpop.f32.mrb[230].mxu0  ;;  %31066 = vmatprep.mubr.msk.f32.mxu1 %vm34584_vm14, %v34585_v52  ;;  %33097 = vmatpush3.bf16.msk.msra.mxu1 %vm37910_vm0, %v38073_v14 }
 0xeda   : > { %31054 = vmatmul.mubr.msk.f32.gmra.mrb[254].mxu0 %vm15316_vm1, %v15733_v42  ;;  %v30951_v16 = vpop.f32.mrb[231].mxu0  ;;  %v23337_v42 = vsub.f32 %v37925_v56, %v35385_v23 }
 0xedb   : > { %v15816_v31 = vpop.f32.mrb[230].mxu1  ;;  %31056 = vmatprep.mubr.msk.f32.mxu0 %vm34584_vm14, %v34585_v52 }
 0xedc   : > { %31067 = vmatmul.mubr.msk.f32.gmra.mrb[254].mxu1 %vm15316_vm1, %v15816_v31  ;;  %v30964_v5 = vpop.f32.mrb[231].mxu1 }
 0xedd   : > { %v15738_v30 = vpop.f32.mrb[232].mxu0  ;;  %31069 = vmatprep.mubr.msk.f32.mxu1 %vm34584_vm14, %v34585_v52 }
 0xede   : > { %31057 = vmatmul.mubr.msk.f32.gmra.mrb[0].mxu0 %vm15316_vm1, %v15738_v30  ;;  %v30954_v22 = vpop.f32.mrb[233].mxu0 }
 0xedf   : > { %v15821_v28 = vpop.f32.mrb[232].mxu1  ;;  %31076 = vmatprep.mubr.msk.f32.mxu0 %vm34584_vm14, %v34585_v52 }
 0xee0   : > { %31070 = vmatmul.mubr.msk.f32.gmra.mrb[0].mxu1 %vm15316_vm1, %v15821_v28  ;;  %v30967_v14 = vpop.f32.mrb[233].mxu1 }
 0xee1   : > { %v15894_v25 = vpop.f32.mrb[234].mxu0  ;;  %31089 = vmatprep.mubr.msk.f32.mxu1 %vm34584_vm14, %v34585_v52 }
 0xee2   : > { %31077 = vmatmul.mubr.msk.f32.vlgmr.msra.gmra.mrb[2].mxu0 %vm15316_vm1, %v15894_v25  ;;  %v30974_v44 = vpop.f32.mrb[235].mxu0 }
 0xee3   : > { %v15977_v18 = vpop.f32.mrb[234].mxu1  ;;  %31079 = vmatprep.mubr.msk.f32.mxu0 %vm34584_vm14, %v34585_v52 }
 0xee4   : > { %31090 = vmatmul.mubr.msk.f32.vlgmr.msra.gmra.mrb[2].mxu1 %vm15316_vm1, %v15977_v18  ;;  %v30987_v29 = vpop.f32.mrb[235].mxu1 }
 0xee5   : > { %v15899_v32 = vpop.f32.mrb[236].mxu0  ;;  %31092 = vmatprep.mubr.msk.f32.mxu1 %vm34584_vm14, %v34585_v52 }
 0xee6   : > { %31080 = vmatmul.mubr.msk.f32.gmra.mrb[4].mxu0 %vm15316_vm1, %v15899_v32  ;;  %v30977_v6 = vpop.f32.mrb[237].mxu0 }
 0xee7   : > { %v15982_v36 = vpop.f32.mrb[236].mxu1  ;;  %31082 = vmatprep.mubr.msk.f32.mxu0 %vm34584_vm14, %v34585_v52 }
 0xee8   : > { %31093 = vmatmul.mubr.msk.f32.gmra.mrb[4].mxu1 %vm15316_vm1, %v15982_v36  ;;  %v30990_v1 = vpop.f32.mrb[237].mxu1 }
 0xee9   : > { %v15904_v55 = vpop.f32.mrb[238].mxu0  ;;  %31095 = vmatprep.mubr.msk.f32.mxu1 %vm34584_vm14, %v34585_v52  ;;  %vm20768_vm14 = vcmask 1041408  }
 0xeea   : > { %v30980_v57 = vpop.f32.mrb[239].mxu0  ;;  %31083 = vmatmul.mubr.msk.f32.gmra.mrb[6].mxu0 %vm15316_vm1, %v15904_v55 }
 0xeeb   : > { %v15987_v47 = vpop.f32.mrb[238].mxu1  ;;  %31102 = vmatprep.mubr.msk.f32.mxu0 %vm16710_vm3, %v38209_v48  ;;  %v38234_v57 = vld [vmem:[#allocation29 + $0x8] sm:$0xff] }
 0xeec   : > { %v30993_v27 = vpop.f32.mrb[239].mxu1  ;;  %31096 = vmatmul.mubr.msk.f32.gmra.mrb[6].mxu1 %vm15316_vm1, %v15987_v47 }
 0xeed   : > { %31109 = vmatprep.mubr.msk.f32.mxu1 %vm16710_vm3, %v38209_v48 }
 0xf91   : > { %v16069_v12 = vpop.f32.mrb[240].mxu0 }
 0xf92   : > { %v31000_v17 = vpop.f32.mrb[241].mxu0  ;;  %v20617_v52 = vsub.f32 %v16069_v12, %v35385_v23  ;;  %v20665_v50 = vadd.f32 %v16069_v12, %v35385_v23 }
 0xf93   : > { %v16158_v46 = vpop.f32.mrb[240].mxu1 }
 0xf94   : > { %v31013_v3 = vpop.f32.mrb[241].mxu1  ;;  %v20620_v35 = vsub.f32 %v16158_v46, %v35385_v23  ;;  %v20668_v43 = vadd.f32 %v16158_v46, %v35385_v23  ;;  %v20641_v5 = vmax.f32 %v20617_v52, 0.0  ;;  %v20689_v30 = vmin.f32 %v20665_v50, 0.0 }
 0xf95   : > { %v16074_v15 = vpop.f32.mrb[242].mxu0 }
 0xf96   : > { %v33098_v16 = vpack.c.bf16 %v16074_v15, %v16069_v12  ;;  %v31003_v31 = vpop.f32.mrb[243].mxu0  ;;  %v20618_v22 = vsub.f32 %v16074_v15, %v35385_v23  ;;  %v20666_v28 = vadd.f32 %v16074_v15, %v35385_v23  ;;  %v20644_v32 = vmax.f32 %v20620_v35, 0.0 }
 0xf97   : > { %v16163_v14 = vpop.f32.mrb[242].mxu1  ;;  %v20692_v6 = vmin.f32 %v20668_v43, 0.0  ;;  %v20713_v17 = vadd.f32 %v20689_v30, %v20641_v5 }
 0xf98   : > { %v33104_v25 = vpack.c.bf16 %v16163_v14, %v16158_v46  ;;  %v20621_v44 = vsub.f32 %v16163_v14, %v35385_v23  ;;  %v20669_v18 = vadd.f32 %v16163_v14, %v35385_v23  ;;  %33100 = vmatprep.subr.msk.bf16.mxu0 %vm38220_vm6, %v33098_v16  ;;  %v31016_v29 = vpop.f32.mrb[243].mxu1  ;;  %v20642_v36 = vmax.f32 %v20618_v22, 0.0 }
 0xf99   : > { %v20690_v1 = vmin.f32 %v20666_v28, 0.0  ;;  %33103 = vmatpush3.bf16.msk.msra.mxu0 %vm38220_vm6, %v33098_v16  ;;  %v38232_v55 = vpop.f32.mrb[244].mxu0  ;;  %v20716_v35 = vadd.f32 %v20692_v6, %v20644_v32 }
 0xf9a   : > { %v20645_v47 = vmax.f32 %v20621_v44, 0.0  ;;  %v20693_v27 = vmin.f32 %v20669_v18, 0.0  ;;  %33106 = vmatprep.subr.msk.bf16.mxu1 %vm38220_vm6, %v33104_v25  ;;  %v31006_v12 = vpop.f32.mrb[245].mxu0 }
 0xf9b   : > { %v20714_v52 = vadd.f32 %v20690_v1, %v20642_v36  ;;  %33109 = vmatpush3.bf16.msk.msra.mxu1 %vm38220_vm6, %v33104_v25  ;;  %v38240_v50 = vpop.f32.mrb[244].mxu1 }
 0xf9c   : > { %v20717_v46 = vadd.f32 %v20693_v27, %v20645_v47  ;;  %v31019_v3 = vpop.f32.mrb[245].mxu1  ;;  %31103 = vmatmul.mubr.msk.f32.vlgmr.msra.gmra.mrb[8].mxu0 %vm16710_vm3, %v38234_v57 }
 0xf9d   : > { %v16247_v43 = vpop.f32.mrb[246].mxu0  ;;  %31116 = vmatprep.mubr.msk.f32.mxu0 %vm16710_vm3, %v38209_v48  ;;  %v38246_v15 = vpack.c.bf16 %v20714_v52, %v20713_v17 }
 0xf9e   : > { %v31026_v16 = vpop.f32.mrb[247].mxu0  ;;  %31110 = vmatmul.mubr.msk.f32.vlgmr.msra.gmra.mrb[8].mxu1 %vm16710_vm3, %v38234_v57  ;;  %v20623_v31 = vsub.f32 %v16247_v43, %v35385_v23  ;;  %v20671_v5 = vadd.f32 %v16247_v43, %v35385_v23  ;;  %v38254_v22 = vpack.c.bf16 %v20717_v46, %v20716_v35 }
 0xf9f   : > { %v16336_v30 = vpop.f32.mrb[246].mxu1  ;;  %31123 = vmatprep.mubr.msk.f32.mxu1 %vm16710_vm3, %v38209_v48 }
 0xfa0   : > { %v31039_v28 = vpop.f32.mrb[247].mxu1  ;;  %v20626_v14 = vsub.f32 %v16336_v30, %v35385_v23  ;;  %v20674_v25 = vadd.f32 %v16336_v30, %v35385_v23  ;;  %v20647_v32 = vmax.f32 %v20623_v31, 0.0  ;;  %v20695_v6 = vmin.f32 %v20671_v5, 0.0 }
 0xfa1   : > { %v16252_v44 = vpop.f32.mrb[248].mxu0 }
 0xfa2   : > { %v33110_v18 = vpack.c.bf16 %v16252_v44, %v16247_v43  ;;  %v31029_v29 = vpop.f32.mrb[249].mxu0  ;;  %v20624_v36 = vsub.f32 %v16252_v44, %v35385_v23  ;;  %v20672_v1 = vadd.f32 %v16252_v44, %v35385_v23  ;;  %v20650_v46 = vmax.f32 %v20626_v14, 0.0 }
 0xfa3   : > { %v16341_v47 = vpop.f32.mrb[248].mxu1  ;;  %v20698_v3 = vmin.f32 %v20674_v25, 0.0  ;;  %v20719_v28 = vadd.f32 %v20695_v6, %v20647_v32 }
 0xfa4   : > { %v33116_v27 = vpack.c.bf16 %v16341_v47, %v16336_v30  ;;  %v20627_v12 = vsub.f32 %v16341_v47, %v35385_v23  ;;  %v20675_v17 = vadd.f32 %v16341_v47, %v35385_v23  ;;  %33112 = vmatprep.subr.msk.bf16.mxu0 %vm38220_vm6, %v33110_v18  ;;  %v31042_v52 = vpop.f32.mrb[249].mxu1  ;;  %v20648_v35 = vmax.f32 %v20624_v36, 0.0 }
 0xfa5   : > { %v20696_v43 = vmin.f32 %v20672_v1, 0.0  ;;  %33115 = vmatpush3.bf16.msk.msra.mxu0 %vm38220_vm6, %v33110_v18  ;;  %v38266_v16 = vpop.f32.mrb[250].mxu0  ;;  %v20722_v18 = vadd.f32 %v20698_v3, %v20650_v46 }
 0xfa6   : > { %v20651_v31 = vmax.f32 %v20627_v12, 0.0  ;;  %v20699_v5 = vmin.f32 %v20675_v17, 0.0  ;;  %33118 = vmatprep.subr.msk.bf16.mxu1 %vm38220_vm6, %v33116_v27  ;;  %v31032_v30 = vpop.f32.mrb[251].mxu0 }
 0xfa7   : > { %v20720_v44 = vadd.f32 %v20696_v43, %v20648_v35  ;;  %33121 = vmatpush3.bf16.msk.msra.mxu1 %vm38220_vm6, %v33116_v27  ;;  %v38272_v14 = vpop.f32.mrb[250].mxu1 }
 0xfa8   : > { %v20723_v25 = vadd.f32 %v20699_v5, %v20651_v31  ;;  %v31045_v29 = vpop.f32.mrb[251].mxu1  ;;  %31117 = vmatmul.mubr.msk.f32.vlgmr.msra.gmra.mrb[10].mxu0 %vm16710_vm3, %v38234_v57 }
 0xfa9   : > { %v16425_v36 = vpop.f32.mrb[252].mxu0  ;;  %31130 = vmatprep.mubr.msk.f32.mxu0 %vm16710_vm3, %v38209_v48  ;;  %v38278_v1 = vpack.c.bf16 %v20720_v44, %v20719_v28 }
 0xfaa   : > { %v31052_v47 = vpop.f32.mrb[253].mxu0  ;;  %31124 = vmatmul.mubr.msk.f32.vlgmr.msra.gmra.mrb[10].mxu1 %vm16710_vm3, %v38234_v57  ;;  %v20629_v32 = vsub.f32 %v16425_v36, %v35385_v23  ;;  %v20677_v6 = vadd.f32 %v16425_v36, %v35385_v23  ;;  %v38286_v12 = vpack.c.bf16 %v20723_v25, %v20722_v18 }
 0xfab   : > { %v16514_v27 = vpop.f32.mrb[252].mxu1  ;;  %31137 = vmatprep.mubr.msk.f32.mxu1 %vm16710_vm3, %v38209_v48 }
 0xfac   : > { %v31065_v17 = vpop.f32.mrb[253].mxu1  ;;  %v20632_v52 = vsub.f32 %v16514_v27, %v35385_v23  ;;  %v20680_v46 = vadd.f32 %v16514_v27, %v35385_v23  ;;  %v20653_v31 = vmax.f32 %v20629_v32, 0.0  ;;  %v20701_v5 = vmin.f32 %v20677_v6, 0.0 }
 0xfad   : > { %v16430_v3 = vpop.f32.mrb[254].mxu0 }
 0xfae   : > { %v33122_v35 = vpack.c.bf16 %v16430_v3, %v16425_v36  ;;  %v31055_v43 = vpop.f32.mrb[255].mxu0  ;;  %v20630_v30 = vsub.f32 %v16430_v3, %v35385_v23  ;;  %v20678_v28 = vadd.f32 %v16430_v3, %v35385_v23  ;;  %v20656_v17 = vmax.f32 %v20632_v52, 0.0 }
 0xfaf   : > { %v16519_v44 = vpop.f32.mrb[254].mxu1  ;;  %v20704_v37 = vmin.f32 %v20680_v46, 0.0 }
 0xfb0   : > { %v33128_v29 = vpack.c.bf16 %v16519_v44, %v16514_v27  ;;  %v20633_v47 = vsub.f32 %v16519_v44, %v35385_v23  ;;  %v20681_v25 = vadd.f32 %v16519_v44, %v35385_v23  ;;  %33124 = vmatprep.subr.msk.bf16.mxu0 %vm38220_vm6, %v33122_v35  ;;  %v31068_v18 = vpop.f32.mrb[255].mxu1  ;;  %v20654_v36 = vmax.f32 %v20630_v30, 0.0 }
 0xfb1   : > { %v20702_v43 = vmin.f32 %v20678_v28, 0.0  ;;  %33127 = vmatpush3.bf16.msk.msra.mxu0 %vm38220_vm6, %v33122_v35  ;;  %v38298_v32 = vpop.f32.mrb[0].mxu0  ;;  %v20725_v44 = vadd.f32 %v20701_v5, %v20653_v31  ;;  %v20728_v35 = vadd.f32 %v20704_v37, %v20656_v17  ;;  %v16708_v18 = vld [vmem:[#allocation31] sm:$0xff]  ;;  %v16709_v37 = vld [vmem:[#allocation31 + $0x8] sm:$0x1] }
 0xfb2   : > { %v20657_v6 = vmax.f32 %v20633_v47, 0.0  ;;  %v20705_v3 = vmin.f32 %v20681_v25, 0.0  ;;  %33130 = vmatprep.subr.msk.bf16.mxu1 %vm38220_vm6, %v33128_v29  ;;  %v31058_v27 = vpop.f32.mrb[1].mxu0 }
 0xfb3   : > { %v20726_v49 = vadd.f32 %v20702_v43, %v20654_v36  ;;  %33133 = vmatpush3.bf16.msk.msra.mxu1 %vm38220_vm6, %v33128_v29  ;;  %v38304_v52 = vpop.f32.mrb[0].mxu1 }
 0xfb4   : > { %v20729_v46 = vadd.f32 %v20705_v3, %v20657_v6  ;;  %v31071_v30 = vpop.f32.mrb[1].mxu1  ;;  %31131 = vmatmul.mubr.msk.f32.vlgmr.msra.gmra.mrb[12].mxu0 %vm16710_vm3, %v38234_v57 }
 0xfb5   : > { %v16603_v28 = vpop.f32.mrb[2].mxu0  ;;  %31144 = vmatprep.mubr.msk.f32.mxu0 %vm16710_vm3, %v38209_v48  ;;  %v38310_v47 = vpack.c.bf16 %v20726_v49, %v20725_v44  ;;  %v38322_v30 = vpack.c.bf16 %v16709_v37, %v16708_v18 }
 0xfb6   : > { %v20635_v31 = vsub.f32 %v16603_v28, %v35385_v23  ;;  %v31078_v5 = vpop.f32.mrb[3].mxu0  ;;  %31138 = vmatmul.mubr.msk.f32.vlgmr.msra.gmra.mrb[12].mxu1 %vm16710_vm3, %v38234_v57  ;;  %v20683_v29 = vadd.f32 %v16603_v28, %v35385_v23  ;;  %v38318_v17 = vpack.c.bf16 %v20729_v46, %v20728_v35 }
 0xfb7   : > { %v16692_v25 = vpop.f32.mrb[2].mxu1  ;;  %31151 = vmatprep.mubr.msk.f32.mxu1 %vm16710_vm3, %v38209_v48 }
 0xfb8   : > { %v20638_v36 = vsub.f32 %v16692_v25, %v35385_v23  ;;  %v20686_v49 = vadd.f32 %v16692_v25, %v35385_v23  ;;  %v31091_v43 = vpop.f32.mrb[3].mxu1  ;;  %v20659_v3 = vmax.f32 %v20635_v31, 0.0  ;;  %v20707_v5 = vmin.f32 %v20683_v29, 0.0 }
 0xfb9   : > { %v16608_v6 = vpop.f32.mrb[4].mxu0 }
 0xfba   : > { %v33134_v27 = vpack.c.bf16 %v16608_v6, %v16603_v28  ;;  %v31081_v44 = vpop.f32.mrb[5].mxu0  ;;  %v20662_v0 = vmax.f32 %v20638_v36, 0.0  ;;  %v20636_v59 = vsub.f32 %v16608_v6, %v35385_v23  ;;  %v20684_v48 = vadd.f32 %v16608_v6, %v35385_v23 }
 0xfbb   : > { %v16697_v54 = vpop.f32.mrb[4].mxu1  ;;  %v20710_v46 = vmin.f32 %v20686_v49, 0.0 }
 0xfbc   : > { %v33140_v35 = vpack.c.bf16 %v16697_v54, %v16692_v25  ;;  %v20639_v53 = vsub.f32 %v16697_v54, %v35385_v23  ;;  %v20687_v24 = vadd.f32 %v16697_v54, %v35385_v23  ;;  %33136 = vmatprep.subr.msk.bf16.mxu0 %vm38220_vm6, %v33134_v27  ;;  %v31094_v28 = vpop.f32.mrb[5].mxu1  ;;  %v20660_v31 = vmax.f32 %v20636_v59, 0.0 }
 0xfbd   : > { %v20708_v18 = vmin.f32 %v20684_v48, 0.0  ;;  %33139 = vmatpush3.bf16.msk.msra.mxu0 %vm38220_vm6, %v33134_v27  ;;  %v38332_v29 = vpop.f32.mrb[6].mxu0  ;;  %v20731_v54 = vadd.f32 %v20707_v5, %v20659_v3  ;;  %v20734_v43 = vadd.f32 %v20710_v46, %v20662_v0 }
 0xfbe   : > { %v20663_v37 = vmax.f32 %v20639_v53, 0.0  ;;  %v20711_v36 = vmin.f32 %v20687_v24, 0.0  ;;  %33142 = vmatprep.subr.msk.bf16.mxu1 %vm38220_vm6, %v33140_v35  ;;  %v31084_v25 = vpop.f32.mrb[7].mxu0  ;;  %33148 = vmatprep.subr.msk.bf16.mxu0 %vm38220_vm6, %v38322_v30 }
 0xfbf   : > { %v20732_v49 = vadd.f32 %v20708_v18, %v20660_v31  ;;  %33145 = vmatpush3.bf16.msk.msra.mxu1 %vm38220_vm6, %v33140_v35  ;;  %v38341_v59 = vpop.f32.mrb[6].mxu1 }
 0xfc0   : > { %v20735_v6 = vadd.f32 %v20711_v36, %v20663_v37  ;;  %31145 = vmatmul.mubr.msk.f32.vlgmr.msra.gmra.mrb[14].mxu0 %vm16710_vm3, %v38234_v57  ;;  %v31097_v53 = vpop.f32.mrb[7].mxu1  ;;  %33154 = vmatprep.subr.msk.bf16.mxu1 %vm38220_vm6, %v38322_v30 }
 0xfc1   : > { %33151 = vmatpush3.bf16.msk.msra.mxu0 %vm38220_vm6, %v38322_v30  ;;  %v38351_v24 = vpack.c.bf16 %v20732_v49, %v20731_v54 }
 0xfc2   : > { %31152 = vmatmul.mubr.msk.f32.vlgmr.msra.gmra.mrb[14].mxu1 %vm16710_vm3, %v38234_v57  ;;  %33160 = vmatprep.subr.msk.bf16.mxu0 %vm38220_vm6, %v38322_v30  ;;  %v38358_v0 = vpack.c.bf16 %v20735_v6, %v20734_v43  ;;  %v38412_v43 = vld [vmem:[#allocation32] sm:$0xff] }
 0xfc3   : > { %33157 = vmatpush3.bf16.msk.msra.mxu1 %vm38220_vm6, %v38322_v30 }
 0xfc4   : > { %33166 = vmatprep.subr.msk.bf16.mxu1 %vm38220_vm6, %v38322_v30 }
0x106f   : > { %v31104_v3 = vpop.f32.mrb[8].mxu0 }
0x1070   : > { %v16787_v27 = vpop.f32.mrb[9].mxu0 }
0x1071   : > { %v31111_v44 = vpop.f32.mrb[8].mxu1  ;;  %31158 = vmatprep.mubr.msk.f32.mxu0 %vm16710_vm3, %v16787_v27 }
0x1072   : > { %v16865_v57 = vpop.f32.mrb[9].mxu1  ;;  %31159 = vmatmul.mubr.msk.f32.vlgmr.msra.gmra.mrb[16].mxu0 %vm16710_vm3, %v31104_v3 }
0x1073   : > { %31165 = vmatprep.mubr.msk.f32.mxu1 %vm16710_vm3, %v16865_v57  ;;  %33163 = vmatpush3.bf16.msk.msra.mxu0 %vm38220_vm6, %v38322_v30 }
0x1074   : > { %31166 = vmatmul.mubr.msk.f32.vlgmr.msra.gmra.mrb[16].mxu1 %vm16710_vm3, %v31111_v44  ;;  %33172 = vmatprep.subr.msk.bf16.mxu0 %vm38220_vm6, %v38322_v30 }
0x1075   : > { %33169 = vmatpush3.bf16.msk.msra.mxu1 %vm38220_vm6, %v38322_v30 }
0x1076   : > { %33178 = vmatprep.subr.msk.bf16.mxu1 %vm38220_vm6, %v38322_v30 }
0x107b   : > { %v31118_v5 = vpop.f32.mrb[10].mxu0 }
0x107c   : > { %v16943_v48 = vpop.f32.mrb[11].mxu0 }
0x107d   : > { %v31125_v46 = vpop.f32.mrb[10].mxu1  ;;  %31172 = vmatprep.mubr.msk.f32.mxu0 %vm16710_vm3, %v16943_v48 }
0x107e   : > { %v17021_v35 = vpop.f32.mrb[11].mxu1  ;;  %31173 = vmatmul.mubr.msk.f32.vlgmr.msra.gmra.mrb[18].mxu0 %vm16710_vm3, %v31118_v5  ;;  %v40576_v5 = vld [vmem:[#allocation76_spill] sm:$0xff] }
0x107f   : > { %31179 = vmatprep.mubr.msk.f32.mxu1 %vm16710_vm3, %v17021_v35  ;;  %33175 = vmatpush3.bf16.msk.msra.mxu0 %vm38220_vm6, %v38322_v30  ;;  %vm17999_vm7 = vcmp.ge.s32.totalorder %v40576_v5, 8  ;;  %vm20613_vm11 = vcmp.ge.s32.totalorder %v40576_v5, 9  ;;  %vm23331_vm4 = vcmp.ge.s32.totalorder %v40576_v5, 11  ;;  %v23346_v5 = vsub.f32 %v37985_v39, %v35385_v23 }
0x1080   : > { %31180 = vmatmul.mubr.msk.f32.vlgmr.msra.gmra.mrb[18].mxu1 %vm16710_vm3, %v31125_v46  ;;  %33184 = vmatprep.subr.msk.bf16.mxu0 %vm38220_vm6, %v38322_v30  ;;  %vm38438_vm8 = vmpackc.low %vm34582_vm5, %vm17999_vm7  ;;  %vm18704_vm5 = vcmask 64512  }
0x1081   : > { %33181 = vmatpush3.bf16.msk.msra.mxu1 %vm38220_vm6, %v38322_v30 }
0x1082   : > { %33190 = vmatprep.subr.msk.bf16.mxu1 %vm38220_vm6, %v38322_v30 }
0x1087   : > { %v31132_v28 = vpop.f32.mrb[12].mxu0 }
0x1088   : > { %v17099_v31 = vpop.f32.mrb[13].mxu0 }
0x1089   : > { %v31139_v18 = vpop.f32.mrb[12].mxu1  ;;  %31186 = vmatprep.mubr.msk.f32.mxu0 %vm16710_vm3, %v17099_v31 }
0x108a   : > { %v17177_v37 = vpop.f32.mrb[13].mxu1  ;;  %31187 = vmatmul.mubr.msk.f32.vlgmr.msra.gmra.mrb[20].mxu0 %vm16710_vm3, %v31132_v28 }
0x108b   : > { %31193 = vmatprep.mubr.msk.f32.mxu1 %vm16710_vm3, %v17177_v37  ;;  %33187 = vmatpush3.bf16.msk.msra.mxu0 %vm38220_vm6, %v38322_v30 }
0x108c   : > { %31194 = vmatmul.mubr.msk.f32.vlgmr.msra.gmra.mrb[20].mxu1 %vm16710_vm3, %v31139_v18 }
0x108d   : > { %33193 = vmatpush3.bf16.msk.msra.mxu1 %vm38220_vm6, %v38322_v30 }
0x1093   : > { %v31146_v36 = vpop.f32.mrb[14].mxu0 }
0x1094   : > { %v17255_v25 = vpop.f32.mrb[15].mxu0 }
0x1095   : > { %v31153_v54 = vpop.f32.mrb[14].mxu1  ;;  %31200 = vmatprep.mubr.msk.f32.mxu0 %vm16710_vm3, %v17255_v25 }
0x1096   : > { %v17333_v49 = vpop.f32.mrb[15].mxu1  ;;  %31201 = vmatmul.mubr.msk.f32.vlgmr.msra.gmra.mrb[22].mxu0 %vm16710_vm3, %v31146_v36 }
0x1097   : > { %31207 = vmatprep.mubr.msk.f32.mxu1 %vm16710_vm3, %v17333_v49  ;;  %31214 = vmatprep.mubr.msk.f32.mxu0 %vm1146_vm2, %v38412_v43 }
0x1098   : > { %31208 = vmatmul.mubr.msk.f32.vlgmr.msra.gmra.mrb[22].mxu1 %vm16710_vm3, %v31153_v54 }
0x1099   : > { %31221 = vmatprep.mubr.msk.f32.mxu1 %vm1146_vm2, %v38412_v43 }
0x1145   : > { %v31160_v30 = vpop.f32.mrb[16].mxu0 }
0x1146   : > { %v18003_v6 = vsub.f32 %v31160_v30, %v35385_v23  ;;  %v18035_v53 = vadd.f32 %v31160_v30, %v35385_v23  ;;  %v38420_v3 = vpop.f32.mrb[17].mxu0 }
0x1147   : > { %v31167_v27 = vpop.f32.mrb[16].mxu1  ;;  %v18002_v44 = vsub.f32 %v38420_v3, %v35385_v23  ;;  %v18034_v57 = vadd.f32 %v38420_v3, %v35385_v23 }
0x1148   : > { %v18019_v48 = vmax.f32 %v18003_v6, 0.0  ;;  %v18051_v46 = vmin.f32 %v18035_v53, 0.0  ;;  %v18005_v35 = vsub.f32 %v31167_v27, %v35385_v23  ;;  %v18037_v28 = vadd.f32 %v31167_v27, %v35385_v23  ;;  %v38429_v31 = vpop.f32.mrb[17].mxu1 }
0x1149   : > { %v18018_v18 = vmax.f32 %v18002_v44, 0.0  ;;  %v18050_v37 = vmin.f32 %v18034_v57, 0.0  ;;  %v18004_v36 = vsub.f32 %v38429_v31, %v35385_v23  ;;  %v18036_v25 = vadd.f32 %v38429_v31, %v35385_v23 }
0x114a   : > { %v18067_v54 = vadd.f32 %v18051_v46, %v18019_v48  ;;  %v18021_v49 = vmax.f32 %v18005_v35, 0.0  ;;  %v18053_v30 = vmin.f32 %v18037_v28, 0.0  ;;  %v38446_v48 = vld [vmem:[#allocation32 + $0x8] sm:$0x1] }
0x114b   : > { %v18066_v61 = vadd.f32 %v18050_v37, %v18018_v18  ;;  %v18020_v6 = vmax.f32 %v18004_v36, 0.0  ;;  %v18052_v53 = vmin.f32 %v18036_v25, 0.0 }
0x114c   : > { %v18069_v34 = vadd.f32 %v18053_v30, %v18021_v49 }
0x114d   : > { %v18068_v44 = vadd.f32 %v18052_v53, %v18020_v6  ;;  %v33194_v57 = vpack.c.bf16 %v18067_v54, %v18066_v61 }
0x114f   : > { %33196 = vmatprep.subr.msk.bf16.mxu0 %vm38438_vm8, %v33194_v57  ;;  %v33200_v4 = vpack.c.bf16 %v18069_v34, %v18068_v44 }
0x1150   : > { %33199 = vmatpush3.bf16.msk.msra.mxu0 %vm38438_vm8, %v33194_v57 }
0x1151   : > { %v31174_v46 = vpop.f32.mrb[18].mxu0  ;;  %33202 = vmatprep.subr.msk.bf16.mxu1 %vm38438_vm8, %v33200_v4 }
0x1152   : > { %v18007_v35 = vsub.f32 %v31174_v46, %v35385_v23  ;;  %v18039_v28 = vadd.f32 %v31174_v46, %v35385_v23  ;;  %v38452_v18 = vpop.f32.mrb[19].mxu0  ;;  %33205 = vmatpush3.bf16.msk.msra.mxu1 %vm38438_vm8, %v33200_v4 }
0x1153   : > { %v31181_v61 = vpop.f32.mrb[18].mxu1  ;;  %v18006_v34 = vsub.f32 %v38452_v18, %v35385_v23  ;;  %v18038_v37 = vadd.f32 %v38452_v18, %v35385_v23  ;;  %31215 = vmatmul.mubr.msk.f32.vlgmr.msra.gmra.mrb[24].mxu0 %vm1146_vm2, %v38446_v48 }
0x1154   : > { %v18023_v36 = vmax.f32 %v18007_v35, 0.0  ;;  %v18055_v25 = vmin.f32 %v18039_v28, 0.0  ;;  %v18009_v54 = vsub.f32 %v31181_v61, %v35385_v23  ;;  %v18041_v49 = vadd.f32 %v31181_v61, %v35385_v23  ;;  %v38464_v30 = vpop.f32.mrb[19].mxu1  ;;  %31228 = vmatprep.mubr.msk.f32.mxu0 %vm1146_vm2, %v38412_v43 }
0x1155   : > { %v18022_v4 = vmax.f32 %v18006_v34, 0.0  ;;  %v18054_v6 = vmin.f32 %v18038_v37, 0.0  ;;  %v18008_v53 = vsub.f32 %v38464_v30, %v35385_v23  ;;  %v18040_v44 = vadd.f32 %v38464_v30, %v35385_v23  ;;  %31222 = vmatmul.mubr.msk.f32.vlgmr.msra.gmra.mrb[24].mxu1 %vm1146_vm2, %v38446_v48 }
0x1156   : > { %v18071_v57 = vadd.f32 %v18055_v25, %v18023_v36  ;;  %v18025_v46 = vmax.f32 %v18009_v54, 0.0  ;;  %v18057_v35 = vmin.f32 %v18041_v49, 0.0  ;;  %31235 = vmatprep.mubr.msk.f32.mxu1 %vm1146_vm2, %v38412_v43 }
0x1157   : > { %v18070_v28 = vadd.f32 %v18054_v6, %v18022_v4  ;;  %v18024_v61 = vmax.f32 %v18008_v53, 0.0  ;;  %v18056_v21 = vmin.f32 %v18040_v44, 0.0 }
0x1158   : > { %v18073_v34 = vadd.f32 %v18057_v35, %v18025_v46 }
0x1159   : > { %v18072_v37 = vadd.f32 %v18056_v21, %v18024_v61  ;;  %v33206_v38 = vpack.c.bf16 %v18071_v57, %v18070_v28 }
0x115b   : > { %33208 = vmatprep.subr.msk.bf16.mxu0 %vm38438_vm8, %v33206_v38  ;;  %v33212_v45 = vpack.c.bf16 %v18073_v34, %v18072_v37 }
0x115c   : > { %33211 = vmatpush3.bf16.msk.msra.mxu0 %vm38438_vm8, %v33206_v38 }
0x115d   : > { %v31188_v11 = vpop.f32.mrb[20].mxu0  ;;  %33214 = vmatprep.subr.msk.bf16.mxu1 %vm38438_vm8, %v33212_v45 }
0x115e   : > { %v18011_v36 = vsub.f32 %v31188_v11, %v35385_v23  ;;  %v18043_v25 = vadd.f32 %v31188_v11, %v35385_v23  ;;  %v38484_v54 = vpop.f32.mrb[21].mxu0  ;;  %33217 = vmatpush3.bf16.msk.msra.mxu1 %vm38438_vm8, %v33212_v45 }
0x115f   : > { %v31195_v21 = vpop.f32.mrb[20].mxu1  ;;  %v18010_v49 = vsub.f32 %v38484_v54, %v35385_v23  ;;  %v18042_v38 = vadd.f32 %v38484_v54, %v35385_v23  ;;  %31229 = vmatmul.mubr.msk.f32.vlgmr.msra.gmra.mrb[26].mxu0 %vm1146_vm2, %v38446_v48 }
0x1160   : > { %v18027_v4 = vmax.f32 %v18011_v36, 0.0  ;;  %v18059_v6 = vmin.f32 %v18043_v25, 0.0  ;;  %v18013_v53 = vsub.f32 %v31195_v21, %v35385_v23  ;;  %v18045_v11 = vadd.f32 %v31195_v21, %v35385_v23  ;;  %v38496_v44 = vpop.f32.mrb[21].mxu1  ;;  %31242 = vmatprep.mubr.msk.f32.mxu0 %vm1146_vm2, %v38412_v43 }
0x1161   : > { %v18026_v45 = vmax.f32 %v18010_v49, 0.0  ;;  %v18058_v57 = vmin.f32 %v18042_v38, 0.0  ;;  %v18012_v46 = vsub.f32 %v38496_v44, %v35385_v23  ;;  %v18044_v35 = vadd.f32 %v38496_v44, %v35385_v23  ;;  %31236 = vmatmul.mubr.msk.f32.vlgmr.msra.gmra.mrb[26].mxu1 %vm1146_vm2, %v38446_v48 }
0x1162   : > { %v18075_v28 = vadd.f32 %v18059_v6, %v18027_v4  ;;  %v18029_v61 = vmax.f32 %v18013_v53, 0.0  ;;  %v18061_v34 = vmin.f32 %v18045_v11, 0.0  ;;  %31249 = vmatprep.mubr.msk.f32.mxu1 %vm1146_vm2, %v38412_v43 }
0x1163   : > { %v18074_v37 = vadd.f32 %v18058_v57, %v18026_v45  ;;  %v18028_v36 = vmax.f32 %v18012_v46, 0.0  ;;  %v18060_v25 = vmin.f32 %v18044_v35, 0.0 }
0x1164   : > { %v18077_v21 = vadd.f32 %v18061_v34, %v18029_v61 }
0x1165   : > { %v18076_v49 = vadd.f32 %v18060_v25, %v18028_v36  ;;  %v33218_v38 = vpack.c.bf16 %v18075_v28, %v18074_v37 }
0x1167   : > { %33220 = vmatprep.subr.msk.bf16.mxu0 %vm38438_vm8, %v33218_v38  ;;  %v33224_v20 = vpack.c.bf16 %v18077_v21, %v18076_v49 }
0x1168   : > { %33223 = vmatpush3.bf16.msk.msra.mxu0 %vm38438_vm8, %v33218_v38 }
0x1169   : > { %v31202_v60 = vpop.f32.mrb[22].mxu0  ;;  %33226 = vmatprep.subr.msk.bf16.mxu1 %vm38438_vm8, %v33224_v20 }
0x116a   : > { %v18015_v4 = vsub.f32 %v31202_v60, %v35385_v23  ;;  %v18047_v6 = vadd.f32 %v31202_v60, %v35385_v23  ;;  %v17903_v53 = vpop.f32.mrb[23].mxu0  ;;  %33229 = vmatpush3.bf16.msk.msra.mxu1 %vm38438_vm8, %v33224_v20 }
0x116b   : > { %v31209_v11 = vpop.f32.mrb[22].mxu1  ;;  %v18014_v45 = vsub.f32 %v17903_v53, %v35385_v23  ;;  %v18046_v57 = vadd.f32 %v17903_v53, %v35385_v23  ;;  %31243 = vmatmul.mubr.msk.f32.vlgmr.msra.gmra.mrb[28].mxu0 %vm1146_vm2, %v38446_v48 }
0x116c   : > { %v18031_v46 = vmax.f32 %v18015_v4, 0.0  ;;  %v18063_v35 = vmin.f32 %v18047_v6, 0.0  ;;  %v18017_v28 = vsub.f32 %v31209_v11, %v35385_v23  ;;  %v18049_v61 = vadd.f32 %v31209_v11, %v35385_v23  ;;  %v17984_v34 = vpop.f32.mrb[23].mxu1  ;;  %31256 = vmatprep.mubr.msk.f32.mxu0 %vm1146_vm2, %v38412_v43 }
0x116d   : > { %v18030_v60 = vmax.f32 %v18014_v45, 0.0  ;;  %v18062_v20 = vmin.f32 %v18046_v57, 0.0  ;;  %v18016_v37 = vsub.f32 %v17984_v34, %v35385_v23  ;;  %v18048_v36 = vadd.f32 %v17984_v34, %v35385_v23  ;;  %31250 = vmatmul.mubr.msk.f32.vlgmr.msra.gmra.mrb[28].mxu1 %vm1146_vm2, %v38446_v48 }
0x116e   : > { %v18079_v25 = vadd.f32 %v18063_v35, %v18031_v46  ;;  %v18033_v21 = vmax.f32 %v18017_v28, 0.0  ;;  %v18065_v49 = vmin.f32 %v18049_v61, 0.0  ;;  %31263 = vmatprep.mubr.msk.f32.mxu1 %vm1146_vm2, %v38412_v43 }
0x116f   : > { %v18078_v38 = vadd.f32 %v18062_v20, %v18030_v60  ;;  %v18032_v4 = vmax.f32 %v18016_v37, 0.0  ;;  %v18064_v6 = vmin.f32 %v18048_v36, 0.0 }
0x1170   : > { %v18081_v11 = vadd.f32 %v18065_v49, %v18033_v21 }
0x1171   : > { %v18080_v33 = vadd.f32 %v18064_v6, %v18032_v4  ;;  %v33230_v45 = vpack.c.bf16 %v18079_v25, %v18078_v38  ;;  %v17996_v4 = vld [vmem:[#allocation34 + $0x8] sm:$0xff] }
0x1173   : > { %33232 = vmatprep.subr.msk.bf16.mxu0 %vm38438_vm8, %v33230_v45  ;;  %v33236_v57 = vpack.c.bf16 %v18081_v11, %v18080_v33  ;;  %v17995_v33 = vld [vmem:[#allocation34] sm:$0xff] }
0x1174   : > { %33235 = vmatpush3.bf16.msk.msra.mxu0 %vm38438_vm8, %v33230_v45 }
0x1175   : > { %33238 = vmatprep.subr.msk.bf16.mxu1 %vm38438_vm8, %v33236_v57  ;;  %31266 = vmatprep.subr.mxu0 %v38420_v3 }
0x1176   : > { %33241 = vmatpush3.bf16.msk.msra.mxu1 %vm38438_vm8, %v33236_v57  ;;  %v33242_v57 = vpack.c.bf16 %v17996_v4, %v17995_v33  ;;  %vm23479_vm8 = vcmask 179200  }
0x1177   : > { %31271 = vmatprep.subr.mxu1 %v38429_v31  ;;  %31257 = vmatmul.mubr.msk.f32.vlgmr.msra.gmra.mrb[30].mxu0 %vm1146_vm2, %v38446_v48 }
0x1178   : > { %31267 = vmatpush3.msra.mxu0 %v38420_v3  ;;  %31268 = vmatprep.mubr.msk.f32.mxu0 %vm18704_vm5, %v38412_v43 }
0x1179   : > { %31264 = vmatmul.mubr.msk.f32.vlgmr.msra.gmra.mrb[30].mxu1 %vm1146_vm2, %v38446_v48  ;;  %31276 = vmatprep.subr.mxu0 %v38452_v18 }
0x117a   : > { %31272 = vmatpush3.msra.mxu1 %v38429_v31  ;;  %31273 = vmatprep.mubr.msk.f32.mxu1 %vm18704_vm5, %v38412_v43 }
0x117b   : > { %31281 = vmatprep.subr.mxu1 %v38464_v30  ;;  %31269 = vmatmul.mubr.msk.f32.vlgmr.msra.gmra.mrb[32].mxu0 %vm18704_vm5, %v38446_v48 }
0x117c   : > { %31277 = vmatpush3.msra.mxu0 %v38452_v18  ;;  %31278 = vmatprep.mubr.msk.f32.mxu0 %vm18704_vm5, %v38412_v43 }
0x117d   : > { %31274 = vmatmul.mubr.msk.f32.vlgmr.msra.gmra.mrb[32].mxu1 %vm18704_vm5, %v38446_v48  ;;  %31286 = vmatprep.subr.mxu0 %v38484_v54 }
0x117e   : > { %31282 = vmatpush3.msra.mxu1 %v38464_v30  ;;  %31283 = vmatprep.mubr.msk.f32.mxu1 %vm18704_vm5, %v38412_v43 }
0x117f   : > { %31291 = vmatprep.subr.mxu1 %v38496_v44  ;;  %31279 = vmatmul.mubr.msk.f32.vlgmr.msra.gmra.mrb[34].mxu0 %vm18704_vm5, %v38446_v48 }
0x1180   : > { %31287 = vmatpush3.msra.mxu0 %v38484_v54  ;;  %31288 = vmatprep.mubr.msk.f32.mxu0 %vm18704_vm5, %v38412_v43 }
0x1181   : > { %31284 = vmatmul.mubr.msk.f32.vlgmr.msra.gmra.mrb[34].mxu1 %vm18704_vm5, %v38446_v48  ;;  %31296 = vmatprep.subr.mxu0 %v17903_v53 }
0x1182   : > { %31292 = vmatpush3.msra.mxu1 %v38496_v44  ;;  %31293 = vmatprep.mubr.msk.f32.mxu1 %vm18704_vm5, %v38412_v43 }
0x1183   : > { %31301 = vmatprep.subr.mxu1 %v17984_v34  ;;  %31289 = vmatmul.mubr.msk.f32.vlgmr.msra.gmra.mrb[36].mxu0 %vm18704_vm5, %v38446_v48 }
0x1184   : > { %31297 = vmatpush3.msra.mxu0 %v17903_v53  ;;  %31298 = vmatprep.mubr.msk.f32.mxu0 %vm18704_vm5, %v38412_v43 }
0x1185   : > { %31294 = vmatmul.mubr.msk.f32.vlgmr.msra.gmra.mrb[36].mxu1 %vm18704_vm5, %v38446_v48  ;;  %31306 = vmatprep.subr.mxu0 %v17995_v33 }
0x1186   : > { %31302 = vmatpush3.msra.mxu1 %v17984_v34  ;;  %31303 = vmatprep.mubr.msk.f32.mxu1 %vm18704_vm5, %v38412_v43 }
0x1187   : > { %31299 = vmatmul.mubr.msk.f32.vlgmr.msra.gmra.mrb[38].mxu0 %vm18704_vm5, %v38446_v48  ;;  %31311 = vmatprep.subr.mxu1 %v17995_v33 }
0x1188   : > { %31307 = vmatpush3.msra.mxu0 %v17995_v33 }
0x1189   : > { %31304 = vmatmul.mubr.msk.f32.vlgmr.msra.gmra.mrb[38].mxu1 %vm18704_vm5, %v38446_v48  ;;  %31316 = vmatprep.subr.mxu0 %v17995_v33 }
0x118a   : > { %31312 = vmatpush3.msra.mxu1 %v17995_v33 }
0x118b   : > { %31321 = vmatprep.subr.mxu1 %v17995_v33 }
0x1226   : > { %v38588_v3 = vpop.f32.mrb[24].mxu0 }
0x1227   : > { %v18170_v31 = vpop.f32.mrb[25].mxu0 }
0x1228   : > { %v38590_v27 = vpop.f32.mrb[24].mxu1 }
0x1229   : > { %v18245_v18 = vpop.f32.mrb[25].mxu1 }
0x1232   : > { %v38592_v43 = vpop.f32.mrb[26].mxu0 }
0x1233   : > { %v38594_v30 = vpop.f32.mrb[27].mxu0 }
0x1234   : > { %v38596_v54 = vpop.f32.mrb[26].mxu1 }
0x1235   : > { %v38598_v48 = vpop.f32.mrb[27].mxu1 }
0x123e   : > { %v38600_v44 = vpop.f32.mrb[28].mxu0 }
0x123f   : > { %v38602_v53 = vpop.f32.mrb[29].mxu0 }
0x1240   : > { %v38604_v46 = vpop.f32.mrb[28].mxu1 }
0x1241   : > { %v38606_v35 = vpop.f32.mrb[29].mxu1 }
0x124a   : > { %v38608_v28 = vpop.f32.mrb[30].mxu0 }
0x124b   : > { %v38610_v61 = vpop.f32.mrb[31].mxu0 }
0x124c   : > { %v38612_v34 = vpop.f32.mrb[30].mxu1 }
0x124d   : > { %v38614_v60 = vpop.f32.mrb[31].mxu1 }
0x124e   : > { %v31270_v20 = vpop.f32.mrb[32].mxu0 }
0x124f   : > { %v18775_v37 = vpop.f32.mrb[33].mxu0 }
0x1250   : > { %v31275_v36 = vpop.f32.mrb[32].mxu1  ;;  %31308 = vmatprep.mubr.msk.f32.mxu0 %vm18704_vm5, %v18775_v37 }
0x1251   : > { %v18850_v25 = vpop.f32.mrb[33].mxu1  ;;  %31309 = vmatmul.mubr.msk.f32.vlgmr.msra.gmra.mrb[40].mxu0 %vm18704_vm5, %v31270_v20 }
0x1252   : > { %31313 = vmatprep.mubr.msk.f32.mxu1 %vm18704_vm5, %v18850_v25  ;;  %v31280_v21 = vpop.f32.mrb[34].mxu0  ;;  %31317 = vmatpush3.msra.mxu0 %v17995_v33 }
0x1253   : > { %31314 = vmatmul.mubr.msk.f32.vlgmr.msra.gmra.mrb[40].mxu1 %vm18704_vm5, %v31275_v36  ;;  %v18925_v49 = vpop.f32.mrb[35].mxu0  ;;  %31326 = vmatprep.subr.mxu0 %v17995_v33 }
0x1254   : > { %v31285_v38 = vpop.f32.mrb[34].mxu1  ;;  %31318 = vmatprep.mubr.msk.f32.mxu0 %vm18704_vm5, %v18925_v49  ;;  %31322 = vmatpush3.msra.mxu1 %v17995_v33 }
0x1255   : > { %v19000_v6 = vpop.f32.mrb[35].mxu1  ;;  %31319 = vmatmul.mubr.msk.f32.vlgmr.msra.gmra.mrb[42].mxu0 %vm18704_vm5, %v31280_v21  ;;  %31331 = vmatprep.subr.mxu1 %v17995_v33 }
0x1256   : > { %31323 = vmatprep.mubr.msk.f32.mxu1 %vm18704_vm5, %v19000_v6  ;;  %v31290_v11 = vpop.f32.mrb[36].mxu0  ;;  %31327 = vmatpush3.msra.mxu0 %v17995_v33  ;;  %v20634_v6 = vsub.f32 %v38304_v52, %v35385_v23 }
0x1257   : > { %31324 = vmatmul.mubr.msk.f32.vlgmr.msra.gmra.mrb[42].mxu1 %vm18704_vm5, %v31285_v38  ;;  %v19075_v45 = vpop.f32.mrb[37].mxu0  ;;  %31336 = vmatprep.subr.mxu0 %v17995_v33 }
0x1258   : > { %v31295_v20 = vpop.f32.mrb[36].mxu1  ;;  %31328 = vmatprep.mubr.msk.f32.mxu0 %vm18704_vm5, %v19075_v45  ;;  %31332 = vmatpush3.msra.mxu1 %v17995_v33 }
0x1259   : > { %v19150_v37 = vpop.f32.mrb[37].mxu1  ;;  %31329 = vmatmul.mubr.msk.f32.vlgmr.msra.gmra.mrb[44].mxu0 %vm18704_vm5, %v31290_v11  ;;  %31341 = vmatprep.subr.mxu1 %v17995_v33  ;;  %v20682_v11 = vadd.f32 %v38304_v52, %v35385_v23 }
0x125a   : > { %31333 = vmatprep.mubr.msk.f32.mxu1 %vm18704_vm5, %v19150_v37  ;;  %v31300_v36 = vpop.f32.mrb[38].mxu0  ;;  %31337 = vmatpush3.msra.mxu0 %v17995_v33 }
0x125b   : > { %31334 = vmatmul.mubr.msk.f32.vlgmr.msra.gmra.mrb[44].mxu1 %vm18704_vm5, %v31295_v20  ;;  %v19225_v25 = vpop.f32.mrb[39].mxu0  ;;  %33243 = vmatprep.subr.bf16.mxu0 %v33242_v57  ;;  %v20706_v20 = vmin.f32 %v20682_v11, 0.0 }
0x125c   : > { %v31305_v21 = vpop.f32.mrb[38].mxu1  ;;  %31342 = vmatpush3.msra.mxu1 %v17995_v33  ;;  %31338 = vmatprep.mubr.msk.f32.mxu0 %vm18704_vm5, %v19225_v25  ;;  %v40579_v33 = vld [vmem:[#allocation75_spill] sm:$0xff]  ;;  %v20688_v25 = vadd.f32 %v38341_v59, %v35385_v23 }
0x125d   : > { %v19300_v49 = vpop.f32.mrb[39].mxu1  ;;  %33247 = vmatprep.subr.bf16.mxu1 %v33242_v57  ;;  %31339 = vmatmul.mubr.msk.f32.vlgmr.msra.gmra.mrb[46].mxu0 %vm18704_vm5, %v31300_v36  ;;  %vm20611_vm9 = vcmp.ge.s32.totalorder %v40579_v33, 9  ;;  %v20640_v36 = vsub.f32 %v38341_v59, %v35385_v23 }
0x125e   : > { %31343 = vmatprep.mubr.msk.f32.mxu1 %vm18704_vm5, %v19300_v49  ;;  %33245 = vmatpush3.bf16.msra.mxu0 %v33242_v57  ;;  %vm20615_vm12 = vmor %vm20611_vm9, %vm20613_vm11 }
0x125f   : > { %31344 = vmatmul.mubr.msk.f32.vlgmr.msra.gmra.mrb[46].mxu1 %vm18704_vm5, %v31305_v21  ;;  %31350 = vmatprep.mubr.msk.f32.mxu0 %vm1146_vm2, %v18170_v31  ;;  %v20619_v31 = vsub.f32 %v38232_v55, %v35385_v23  ;;  %vm38666_vm13 = vmpackc.low %vm20615_vm12, %vm20613_vm11  ;;  %v20664_v49 = vmax.f32 %v20640_v36, 0.0 }
0x1260   : > { %33249 = vmatpush3.bf16.msra.mxu1 %v33242_v57  ;;  %31357 = vmatprep.mubr.msk.f32.mxu1 %vm1146_vm2, %v18245_v18  ;;  %v20670_v18 = vadd.f32 %v38240_v50, %v35385_v23 }
0x1261   : > { %33251 = vmatprep.subr.bf16.mxu0 %v33242_v57  ;;  %33255 = vmatprep.subr.bf16.mxu1 %v33242_v57 }
0x1262   : > { %31351 = vmatmul.mubr.msk.f32.vlgmr.msra.gmra.mrb[40].mxu0 %vm1146_vm2, %v38588_v3  ;;  %v20667_v3 = vadd.f32 %v38232_v55, %v35385_v23  ;;  %v20643_v55 = vmax.f32 %v20619_v31, 0.0  ;;  %v20712_v31 = vmin.f32 %v20688_v25, 0.0 }
0x1263   : > { %31358 = vmatmul.mubr.msk.f32.vlgmr.msra.gmra.mrb[40].mxu1 %vm1146_vm2, %v38590_v27  ;;  %33253 = vmatpush3.bf16.msra.mxu0 %v33242_v57  ;;  %v20622_v27 = vsub.f32 %v38240_v50, %v35385_v23 }
0x1264   : > { %33257 = vmatpush3.bf16.msra.mxu1 %v33242_v57  ;;  %31364 = vmatprep.mubr.msk.f32.mxu0 %vm1146_vm2, %v38594_v30 }
0x1265   : > { %31371 = vmatprep.mubr.msk.f32.mxu1 %vm1146_vm2, %v38598_v48  ;;  %33259 = vmatprep.subr.bf16.mxu0 %v33242_v57  ;;  %v20646_v30 = vmax.f32 %v20622_v27, 0.0  ;;  %v20625_v48 = vsub.f32 %v38266_v16, %v35385_v23 }
0x1266   : > { %33263 = vmatprep.subr.bf16.mxu1 %v33242_v57  ;;  %31365 = vmatmul.mubr.msk.f32.vlgmr.msra.gmra.mrb[42].mxu0 %vm1146_vm2, %v38592_v43  ;;  %v20691_v43 = vmin.f32 %v20667_v3, 0.0 }
0x1267   : > { %31372 = vmatmul.mubr.msk.f32.vlgmr.msra.gmra.mrb[42].mxu1 %vm1146_vm2, %v38596_v54  ;;  %33261 = vmatpush3.bf16.msra.mxu0 %v33242_v57  ;;  %v20694_v54 = vmin.f32 %v20670_v18, 0.0 }
0x1268   : > { %33265 = vmatpush3.bf16.msra.mxu1 %v33242_v57  ;;  %31378 = vmatprep.mubr.msk.f32.mxu0 %vm1146_vm2, %v38602_v53  ;;  %v20715_v53 = vadd.f32 %v20691_v43, %v20643_v55 }
0x1269   : > { %31385 = vmatprep.mubr.msk.f32.mxu1 %vm1146_vm2, %v38606_v35  ;;  %33267 = vmatprep.subr.bf16.mxu0 %v33242_v57  ;;  %v20676_v35 = vadd.f32 %v38272_v14, %v35385_v23 }
0x126a   : > { %33271 = vmatprep.subr.bf16.mxu1 %v33242_v57  ;;  %31379 = vmatmul.mubr.msk.f32.vlgmr.msra.gmra.mrb[44].mxu0 %vm1146_vm2, %v38600_v44  ;;  %v20673_v44 = vadd.f32 %v38266_v16, %v35385_v23  ;;  %v38692_v16 = vld [vmem:[#allocation28] sm:$0xff] }
0x126b   : > { %31386 = vmatmul.mubr.msk.f32.vlgmr.msra.gmra.mrb[44].mxu1 %vm1146_vm2, %v38604_v46  ;;  %33269 = vmatpush3.bf16.msra.mxu0 %v33242_v57  ;;  %v20628_v46 = vsub.f32 %v38272_v14, %v35385_v23  ;;  %v20649_v14 = vmax.f32 %v20625_v48, 0.0  ;;  %v20700_v38 = vmin.f32 %v20676_v35, 0.0 }
0x126c   : > { %33273 = vmatpush3.bf16.msra.mxu1 %v33242_v57  ;;  %31392 = vmatprep.mubr.msk.f32.mxu0 %vm1146_vm2, %v38610_v61  ;;  %v20718_v61 = vadd.f32 %v20694_v54, %v20646_v30  ;;  %v20658_v57 = vmax.f32 %v20634_v6, 0.0 }
0x126d   : > { %31399 = vmatprep.mubr.msk.f32.mxu1 %vm1146_vm2, %v38614_v60  ;;  %33276 = vmatprep.subr.msk.bf16.mxu0 %vm38666_vm13, %v38246_v15  ;;  %v20697_v60 = vmin.f32 %v20673_v44, 0.0 }
0x126e   : > { %33282 = vmatprep.subr.msk.bf16.mxu1 %vm38666_vm13, %v38254_v22  ;;  %31393 = vmatmul.mubr.msk.f32.vlgmr.msra.gmra.mrb[46].mxu0 %vm1146_vm2, %v38608_v28  ;;  %v20652_v28 = vmax.f32 %v20628_v46, 0.0 }
0x126f   : > { %31400 = vmatmul.mubr.msk.f32.vlgmr.msra.gmra.mrb[46].mxu1 %vm1146_vm2, %v38612_v34  ;;  %33279 = vmatpush3.bf16.msk.msra.mxu0 %vm38666_vm13, %v38246_v15  ;;  %v38708_v34 = vld [vmem:[#allocation28 + $0x8] sm:$0x7]  ;;  %v20631_v15 = vsub.f32 %v38298_v32, %v35385_v23  ;;  %v20721_v4 = vadd.f32 %v20697_v60, %v20649_v14 }
0x1270   : > { %33285 = vmatpush3.bf16.msk.msra.mxu1 %vm38666_vm13, %v38254_v22  ;;  %31406 = vmatprep.subr.msk.mxu0 %vm20768_vm14, %v20715_v53  ;;  %v20679_v22 = vadd.f32 %v38298_v32, %v35385_v23  ;;  %v20724_v32 = vadd.f32 %v20700_v38, %v20652_v28 }
0x1271   : > { %31415 = vmatprep.subr.msk.mxu1 %vm20768_vm14, %v20718_v61  ;;  %31408 = vmatprep.mubr.msk.f32.mxu0 %vm20761_vm15, %v38692_v16  ;;  %v20655_v52 = vmax.f32 %v20631_v15, 0.0 }
0x1272   : > { %31417 = vmatprep.mubr.msk.f32.mxu1 %vm20761_vm15, %v38692_v16  ;;  %v20703_v45 = vmin.f32 %v20679_v22, 0.0  ;;  %v20607_v22 = vld [vmem:[%s40582_s8] sm:$0xff] }
0x1273   : > { %31407 = vmatpush3.msk.msra.mxu0 %vm20768_vm14, %v20715_v53 }
0x1274   : > { %31416 = vmatpush3.msk.msra.mxu1 %vm20768_vm14, %v20718_v61  ;;  %33288 = vmatprep.subr.msk.bf16.mxu0 %vm38666_vm13, %v38278_v1  ;;  %v20727_v37 = vadd.f32 %v20703_v45, %v20655_v52 }
0x1275   : > { %33294 = vmatprep.subr.msk.bf16.mxu1 %vm38666_vm13, %v38286_v12  ;;  %31409 = vmatmul.mubr.msk.f32.vlgmr.msra.gmra.mrb[48].mxu0 %vm20761_vm15, %v38708_v34 }
0x1276   : > { %31418 = vmatmul.mubr.msk.f32.vlgmr.msra.gmra.mrb[48].mxu1 %vm20761_vm15, %v38708_v34  ;;  %33291 = vmatpush3.bf16.msk.msra.mxu0 %vm38666_vm13, %v38278_v1  ;;  %v20637_v1 = vsub.f32 %v38332_v29, %v35385_v23 }
0x1277   : > { %33297 = vmatpush3.bf16.msk.msra.mxu1 %vm38666_vm13, %v38286_v12  ;;  %31424 = vmatprep.subr.msk.mxu0 %vm20768_vm14, %v20721_v4  ;;  %v20685_v12 = vadd.f32 %v38332_v29, %v35385_v23  ;;  %v20730_v29 = vadd.f32 %v20706_v20, %v20658_v57 }
0x1278   : > { %31433 = vmatprep.subr.msk.mxu1 %vm20768_vm14, %v20724_v32  ;;  %31426 = vmatprep.mubr.msk.f32.mxu0 %vm20761_vm15, %v38692_v16  ;;  %v20661_v59 = vmax.f32 %v20637_v1, 0.0 }
0x1279   : > { %31435 = vmatprep.mubr.msk.f32.mxu1 %vm20761_vm15, %v38692_v16  ;;  %v20709_v21 = vmin.f32 %v20685_v12, 0.0 }
0x127a   : > { %31425 = vmatpush3.msk.msra.mxu0 %vm20768_vm14, %v20721_v4  ;;  %v20608_v4 = vld [vmem:[%s40582_s8 + $0x8] sm:$0xff] }
0x127b   : > { %31434 = vmatpush3.msk.msra.mxu1 %vm20768_vm14, %v20724_v32  ;;  %33300 = vmatprep.subr.msk.bf16.mxu0 %vm38666_vm13, %v38310_v47  ;;  %v38856_v52 = vpack.c.bf16 %v20608_v4, %v20607_v22  ;;  %v23343_v22 = vsub.f32 %v37977_v9, %v35385_v23  ;;  %v23391_v4 = vadd.f32 %v37977_v9, %v35385_v23  ;;  %v39068_v9 = vld [vmem:[#allocation23] sm:$0xff] }
0x127c   : > { %33306 = vmatprep.subr.msk.bf16.mxu1 %vm38666_vm13, %v38318_v17  ;;  %31427 = vmatmul.mubr.msk.f32.vlgmr.msra.gmra.mrb[50].mxu0 %vm20761_vm15, %v38708_v34 }
0x127d   : > { %31436 = vmatmul.mubr.msk.f32.vlgmr.msra.gmra.mrb[50].mxu1 %vm20761_vm15, %v38708_v34  ;;  %33303 = vmatpush3.bf16.msk.msra.mxu0 %vm38666_vm13, %v38310_v47  ;;  %v20733_v47 = vadd.f32 %v20709_v21, %v20661_v59 }
0x127e   : > { %33309 = vmatpush3.bf16.msk.msra.mxu1 %vm38666_vm13, %v38318_v17  ;;  %31442 = vmatprep.subr.msk.mxu0 %vm20768_vm14, %v20727_v37  ;;  %v20736_v17 = vadd.f32 %v20712_v31, %v20664_v49 }
0x127f   : > { %31451 = vmatprep.subr.msk.mxu1 %vm20768_vm14, %v20730_v29  ;;  %31444 = vmatprep.mubr.msk.f32.mxu0 %vm20761_vm15, %v38692_v16 }
0x1280   : > { %31453 = vmatprep.mubr.msk.f32.mxu1 %vm20761_vm15, %v38692_v16 }
0x1281   : > { %31443 = vmatpush3.msk.msra.mxu0 %vm20768_vm14, %v20727_v37 }
0x1282   : > { %31452 = vmatpush3.msk.msra.mxu1 %vm20768_vm14, %v20730_v29  ;;  %33312 = vmatprep.subr.msk.bf16.mxu0 %vm38666_vm13, %v38351_v24 }
0x1283   : > { %33318 = vmatprep.subr.msk.bf16.mxu1 %vm38666_vm13, %v38358_v0  ;;  %31445 = vmatmul.mubr.msk.f32.vlgmr.msra.gmra.mrb[52].mxu0 %vm20761_vm15, %v38708_v34 }
0x1284   : > { %31454 = vmatmul.mubr.msk.f32.vlgmr.msra.gmra.mrb[52].mxu1 %vm20761_vm15, %v38708_v34  ;;  %33315 = vmatpush3.bf16.msk.msra.mxu0 %vm38666_vm13, %v38351_v24 }
0x1285   : > { %33321 = vmatpush3.bf16.msk.msra.mxu1 %vm38666_vm13, %v38358_v0  ;;  %31460 = vmatprep.subr.msk.mxu0 %vm20768_vm14, %v20733_v47 }
0x1286   : > { %31469 = vmatprep.subr.msk.mxu1 %vm20768_vm14, %v20736_v17  ;;  %31462 = vmatprep.mubr.msk.f32.mxu0 %vm20761_vm15, %v38692_v16 }
0x1287   : > { %31471 = vmatprep.mubr.msk.f32.mxu1 %vm20761_vm15, %v38692_v16 }
0x1288   : > { %31461 = vmatpush3.msk.msra.mxu0 %vm20768_vm14, %v20733_v47 }
0x1289   : > { %31470 = vmatpush3.msk.msra.mxu1 %vm20768_vm14, %v20736_v17  ;;  %31463 = vmatmul.mubr.msk.f32.vlgmr.msra.gmra.mrb[54].mxu0 %vm20761_vm15, %v38708_v34 }
0x128a   : > { %31472 = vmatmul.mubr.msk.f32.vlgmr.msra.gmra.mrb[54].mxu1 %vm20761_vm15, %v38708_v34  ;;  %31478 = vmatprep.mubr.msk.f32.mxu0 %vm16710_vm3, %v38692_v16 }
0x128b   : > { %31485 = vmatprep.mubr.msk.f32.mxu1 %vm16710_vm3, %v38692_v16 }
0x1335   : > { %v31352_v24 = vpop.f32.mrb[40].mxu0 }
0x1336   : > { %v31359_v0 = vpop.f32.mrb[40].mxu1  ;;  %v20029_v3 = vpop.f32.mrb[41].mxu0 }
0x1337   : > { %v33322_v27 = vpack.c.bf16 %v31352_v24, %v20029_v3  ;;  %v20110_v18 = vpop.f32.mrb[41].mxu1 }
0x1338   : > { %v33328_v55 = vpack.c.bf16 %v31359_v0, %v20110_v18 }
0x1339   : > { %v31366_v43 = vpop.f32.mrb[42].mxu0  ;;  %33324 = vmatprep.subr.msk.bf16.mxu0 %vm38220_vm6, %v33322_v27 }
0x133a   : > { %v31373_v50 = vpop.f32.mrb[42].mxu1  ;;  %33330 = vmatprep.subr.msk.bf16.mxu1 %vm38220_vm6, %v33328_v55  ;;  %v20191_v30 = vpop.f32.mrb[43].mxu0  ;;  %33327 = vmatpush3.bf16.msk.msra.mxu0 %vm38220_vm6, %v33322_v27 }
0x133b   : > { %v33334_v54 = vpack.c.bf16 %v31366_v43, %v20191_v30  ;;  %v20272_v48 = vpop.f32.mrb[43].mxu1  ;;  %33333 = vmatpush3.bf16.msk.msra.mxu1 %vm38220_vm6, %v33328_v55 }
0x133c   : > { %v33340_v44 = vpack.c.bf16 %v31373_v50, %v20272_v48 }
0x133d   : > { %v31380_v53 = vpop.f32.mrb[44].mxu0  ;;  %31479 = vmatmul.mubr.msk.f32.vlgmr.msra.gmra.mrb[56].mxu0 %vm16710_vm3, %v38708_v34  ;;  %33336 = vmatprep.subr.msk.bf16.mxu0 %vm38220_vm6, %v33334_v54 }
0x133e   : > { %v31387_v46 = vpop.f32.mrb[44].mxu1  ;;  %31486 = vmatmul.mubr.msk.f32.vlgmr.msra.gmra.mrb[56].mxu1 %vm16710_vm3, %v38708_v34  ;;  %33342 = vmatprep.subr.msk.bf16.mxu1 %vm38220_vm6, %v33340_v44  ;;  %v20353_v35 = vpop.f32.mrb[45].mxu0 }
0x133f   : > { %v33346_v61 = vpack.c.bf16 %v31380_v53, %v20353_v35  ;;  %v20434_v14 = vpop.f32.mrb[45].mxu1  ;;  %33339 = vmatpush3.bf16.msk.msra.mxu0 %vm38220_vm6, %v33334_v54  ;;  %33345 = vmatpush3.bf16.msk.msra.mxu1 %vm38220_vm6, %v33340_v44 }
0x1340   : > { %v33352_v60 = vpack.c.bf16 %v31387_v46, %v20434_v14  ;;  %31492 = vmatprep.mubr.msk.f32.mxu0 %vm16710_vm3, %v38692_v16  ;;  %31499 = vmatprep.mubr.msk.f32.mxu1 %vm16710_vm3, %v38692_v16  ;;  %v23385_v14 = vadd.f32 %v37925_v56, %v35385_v23  ;;  %v23361_v56 = vmax.f32 %v23337_v42, 0.0 }
0x1341   : > { %v31394_v28 = vpop.f32.mrb[46].mxu0  ;;  %33348 = vmatprep.subr.msk.bf16.mxu0 %vm38220_vm6, %v33346_v61 }
0x1342   : > { %v31401_v38 = vpop.f32.mrb[46].mxu1  ;;  %31493 = vmatmul.mubr.msk.f32.vlgmr.msra.gmra.mrb[58].mxu0 %vm16710_vm3, %v38708_v34  ;;  %31500 = vmatmul.mubr.msk.f32.vlgmr.msra.gmra.mrb[58].mxu1 %vm16710_vm3, %v38708_v34  ;;  %v20515_v15 = vpop.f32.mrb[47].mxu0 }
0x1343   : > { %33354 = vmatprep.subr.msk.bf16.mxu1 %vm38220_vm6, %v33352_v60  ;;  %v33358_v6 = vpack.c.bf16 %v31394_v28, %v20515_v15  ;;  %v20596_v11 = vpop.f32.mrb[47].mxu1  ;;  %33351 = vmatpush3.bf16.msk.msra.mxu0 %vm38220_vm6, %v33346_v61  ;;  %v20609_v61 = vld [vmem:[%s40582_s8 + $0x10] sm:$0x3]  ;;  %v23388_v28 = vadd.f32 %v37930_v13, %v35385_v23 }
0x1344   : > { %v33364_v32 = vpack.c.bf16 %v31401_v38, %v20596_v11  ;;  %33357 = vmatpush3.bf16.msk.msra.mxu1 %vm38220_vm6, %v33352_v60  ;;  %31506 = vmatprep.mubr.msk.f32.mxu0 %vm16710_vm3, %v38692_v16  ;;  %v23340_v60 = vsub.f32 %v37930_v13, %v35385_v23  ;;  %v23394_v11 = vadd.f32 %v37985_v39, %v35385_v23  ;;  %v23367_v39 = vmax.f32 %v23343_v22, 0.0 }
0x1345   : > { %31513 = vmatprep.mubr.msk.f32.mxu1 %vm16710_vm3, %v38692_v16  ;;  %33360 = vmatprep.subr.msk.bf16.mxu0 %vm38220_vm6, %v33358_v6  ;;  %v23412_v38 = vmin.f32 %v23388_v28, 0.0 }
0x1346   : > { %31507 = vmatmul.mubr.msk.f32.vlgmr.msra.gmra.mrb[60].mxu0 %vm16710_vm3, %v38708_v34  ;;  %33366 = vmatprep.subr.msk.bf16.mxu1 %vm38220_vm6, %v33364_v32  ;;  %v23364_v13 = vmax.f32 %v23340_v60, 0.0 }
0x1347   : > { %31514 = vmatmul.mubr.msk.f32.vlgmr.msra.gmra.mrb[60].mxu1 %vm16710_vm3, %v38708_v34  ;;  %33363 = vmatpush3.bf16.msk.msra.mxu0 %vm38220_vm6, %v33358_v6 }
0x1348   : > { %33369 = vmatpush3.bf16.msk.msra.mxu1 %vm38220_vm6, %v33364_v32  ;;  %31520 = vmatprep.mubr.msk.f32.mxu0 %vm16710_vm3, %v38692_v16  ;;  %v38870_v45 = vpop.f32.mrb[48].mxu0  ;;  %v23436_v32 = vadd.f32 %v23412_v38, %v23364_v13 }
0x1349   : > { %31527 = vmatprep.mubr.msk.f32.mxu1 %vm16710_vm3, %v38692_v16  ;;  %v38874_v57 = vpop.f32.mrb[48].mxu1  ;;  %v38876_v20 = vpop.f32.mrb[49].mxu0  ;;  %33372 = vmatprep.subr.msk.bf16.mxu0 %vm38220_vm6, %v38856_v52 }
0x134a   : > { %31521 = vmatmul.mubr.msk.f32.vlgmr.msra.gmra.mrb[62].mxu0 %vm16710_vm3, %v38708_v34  ;;  %v38883_v1 = vpop.f32.mrb[49].mxu1  ;;  %33378 = vmatprep.subr.msk.bf16.mxu1 %vm38220_vm6, %v38856_v52 }
0x134b   : > { %31528 = vmatmul.mubr.msk.f32.vlgmr.msra.gmra.mrb[62].mxu1 %vm16710_vm3, %v38708_v34  ;;  %33375 = vmatpush3.bf16.msk.msra.mxu0 %vm38220_vm6, %v38856_v52 }
0x134c   : > { %33381 = vmatpush3.bf16.msk.msra.mxu1 %vm38220_vm6, %v38856_v52  ;;  %33384 = vmatprep.subr.msk.bf16.mxu0 %vm38220_vm6, %v38856_v52 }
0x134d   : > { %33390 = vmatprep.subr.msk.bf16.mxu1 %vm38220_vm6, %v38856_v52 }
0x134f   : > { %v38902_v16 = vpop.f32.mrb[50].mxu0 }
0x1350   : > { %v38904_v12 = vpop.f32.mrb[50].mxu1  ;;  %v38906_v34 = vpop.f32.mrb[51].mxu0 }
0x1351   : > { %v38908_v37 = vpop.f32.mrb[51].mxu1 }
0x1356   : > { %v38910_v36 = vpop.f32.mrb[52].mxu0 }
0x1357   : > { %v38912_v25 = vpop.f32.mrb[52].mxu1  ;;  %v38914_v29 = vpop.f32.mrb[53].mxu0 }
0x1358   : > { %v38916_v59 = vpop.f32.mrb[53].mxu1 }
0x135c   : > { %v38918_v21 = vpop.f32.mrb[54].mxu0 }
0x135d   : > { %v38920_v49 = vpop.f32.mrb[54].mxu1  ;;  %v38922_v31 = vpop.f32.mrb[55].mxu0 }
0x135e   : > { %v38924_v47 = vpop.f32.mrb[55].mxu1 }
0x1410   : > { %v31480_v17 = vpop.f32.mrb[56].mxu0 }
0x1411   : > { %v31487_v24 = vpop.f32.mrb[56].mxu1  ;;  %v21466_v0 = vpop.f32.mrb[57].mxu0 }
0x1412   : > { %v21544_v3 = vpop.f32.mrb[57].mxu1  ;;  %31534 = vmatprep.mubr.msk.f32.mxu0 %vm16710_vm3, %v21466_v0 }
0x1413   : > { %31541 = vmatprep.mubr.msk.f32.mxu1 %vm16710_vm3, %v21544_v3  ;;  %31535 = vmatmul.mubr.msk.f32.vlgmr.msra.gmra.mrb[64].mxu0 %vm16710_vm3, %v31480_v17 }
0x1414   : > { %31542 = vmatmul.mubr.msk.f32.vlgmr.msra.gmra.mrb[64].mxu1 %vm16710_vm3, %v31487_v24  ;;  %33387 = vmatpush3.bf16.msk.msra.mxu0 %vm38220_vm6, %v38856_v52 }
0x1415   : > { %33393 = vmatpush3.bf16.msk.msra.mxu1 %vm38220_vm6, %v38856_v52  ;;  %v31494_v27 = vpop.f32.mrb[58].mxu0  ;;  %v31501_v18 = vpop.f32.mrb[58].mxu1  ;;  %33396 = vmatprep.subr.msk.bf16.mxu0 %vm38220_vm6, %v38856_v52 }
0x1416   : > { %v21622_v55 = vpop.f32.mrb[59].mxu0  ;;  %v21700_v43 = vpop.f32.mrb[59].mxu1  ;;  %33402 = vmatprep.subr.msk.bf16.mxu1 %vm38220_vm6, %v38856_v52 }
0x1417   : > { %31548 = vmatprep.mubr.msk.f32.mxu0 %vm16710_vm3, %v21622_v55  ;;  %31555 = vmatprep.mubr.msk.f32.mxu1 %vm16710_vm3, %v21700_v43 }
0x1418   : > { %31549 = vmatmul.mubr.msk.f32.vlgmr.msra.gmra.mrb[66].mxu0 %vm16710_vm3, %v31494_v27  ;;  %31556 = vmatmul.mubr.msk.f32.vlgmr.msra.gmra.mrb[66].mxu1 %vm16710_vm3, %v31501_v18 }
0x1419   : > { %33399 = vmatpush3.bf16.msk.msra.mxu0 %vm38220_vm6, %v38856_v52  ;;  %33405 = vmatpush3.bf16.msk.msra.mxu1 %vm38220_vm6, %v38856_v52  ;;  %v31508_v50 = vpop.f32.mrb[60].mxu0 }
0x141a   : > { %v31515_v30 = vpop.f32.mrb[60].mxu1  ;;  %v21778_v54 = vpop.f32.mrb[61].mxu0  ;;  %33408 = vmatprep.subr.msk.bf16.mxu0 %vm38220_vm6, %v38856_v52  ;;  %33414 = vmatprep.subr.msk.bf16.mxu1 %vm38220_vm6, %v38856_v52 }
0x141b   : > { %v21856_v48 = vpop.f32.mrb[61].mxu1  ;;  %31562 = vmatprep.mubr.msk.f32.mxu0 %vm16710_vm3, %v21778_v54 }
0x141c   : > { %31569 = vmatprep.mubr.msk.f32.mxu1 %vm16710_vm3, %v21856_v48  ;;  %31563 = vmatmul.mubr.msk.f32.vlgmr.msra.gmra.mrb[68].mxu0 %vm16710_vm3, %v31508_v50 }
0x141d   : > { %31570 = vmatmul.mubr.msk.f32.vlgmr.msra.gmra.mrb[68].mxu1 %vm16710_vm3, %v31515_v30  ;;  %33411 = vmatpush3.bf16.msk.msra.mxu0 %vm38220_vm6, %v38856_v52  ;;  %v31522_v44 = vpop.f32.mrb[62].mxu0 }
0x141e   : > { %33417 = vmatpush3.bf16.msk.msra.mxu1 %vm38220_vm6, %v38856_v52  ;;  %v31529_v53 = vpop.f32.mrb[62].mxu1  ;;  %v21934_v46 = vpop.f32.mrb[63].mxu0  ;;  %33419 = vmatprep.subr.bf16.mxu0 %v38856_v52 }
0x141f   : > { %v22012_v35 = vpop.f32.mrb[63].mxu1  ;;  %31576 = vmatprep.mubr.msk.f32.mxu0 %vm16710_vm3, %v21934_v46  ;;  %33423 = vmatprep.subr.bf16.mxu1 %v38856_v52 }
0x1420   : > { %31583 = vmatprep.mubr.msk.f32.mxu1 %vm16710_vm3, %v22012_v35  ;;  %31577 = vmatmul.mubr.msk.f32.vlgmr.msra.gmra.mrb[70].mxu0 %vm16710_vm3, %v31522_v44  ;;  %v23325_v35 = vld [vmem:[#allocation25] sm:$0xff] }
0x1421   : > { %31584 = vmatmul.mubr.msk.f32.vlgmr.msra.gmra.mrb[70].mxu1 %vm16710_vm3, %v31529_v53  ;;  %33421 = vmatpush3.bf16.msra.mxu0 %v38856_v52  ;;  %vm23329_vm3 = vcmp.ge.s32.totalorder %v40579_v33, 11  ;;  %v23409_v33 = vmin.f32 %v23385_v14, 0.0 }
0x1422   : > { %33425 = vmatpush3.bf16.msra.mxu1 %v38856_v52  ;;  %31592 = vmatprep.mubr.msk.f32.mxu0 %vm20761_vm15, %v38876_v20  ;;  %vm23333_vm6 = vmor %vm23329_vm3, %vm23331_vm4  ;;  %v39085_v20 = vld [vmem:[#allocation23 + $0x8] sm:$0xff] }
0x1423   : > { %31601 = vmatprep.mubr.msk.f32.mxu1 %vm20761_vm15, %v38883_v1  ;;  %31590 = vmatprep.subr.msk.mxu0 %vm20768_vm14, %v20609_v61  ;;  %vm39047_vm7 = vmpackc.low %vm23333_vm6, %vm23331_vm4  ;;  %v23433_v6 = vadd.f32 %v23409_v33, %v23361_v56 }
0x1424   : > { %31599 = vmatprep.subr.msk.mxu1 %vm20768_vm14, %v20609_v61 }
0x1425   : > { %31591 = vmatpush3.msk.msra.mxu0 %vm20768_vm14, %v20609_v61 }
0x1426   : > { %31600 = vmatpush3.msk.msra.mxu1 %vm20768_vm14, %v20609_v61  ;;  %31593 = vmatmul.mubr.msk.f32.vlgmr.msra.gmra.mrb[64].mxu0 %vm20761_vm15, %v38870_v45  ;;  %v23370_v45 = vmax.f32 %v23346_v5, 0.0 }
0x1427   : > { %31602 = vmatmul.mubr.msk.f32.vlgmr.msra.gmra.mrb[64].mxu1 %vm20761_vm15, %v38874_v57  ;;  %33427 = vmatprep.subr.bf16.mxu0 %v38856_v52  ;;  %v23418_v57 = vmin.f32 %v23394_v11, 0.0 }
0x1428   : > { %33431 = vmatprep.subr.bf16.mxu1 %v38856_v52  ;;  %33429 = vmatpush3.bf16.msra.mxu0 %v38856_v52 }
0x1429   : > { %31610 = vmatprep.mubr.msk.f32.mxu0 %vm20761_vm15, %v38906_v34  ;;  %33433 = vmatpush3.bf16.msra.mxu1 %v38856_v52 }
0x142a   : > { %31619 = vmatprep.mubr.msk.f32.mxu1 %vm20761_vm15, %v38908_v37  ;;  %31608 = vmatprep.subr.msk.mxu0 %vm20768_vm14, %v20609_v61 }
0x142b   : > { %31617 = vmatprep.subr.msk.mxu1 %vm20768_vm14, %v20609_v61 }
0x142c   : > { %31609 = vmatpush3.msk.msra.mxu0 %vm20768_vm14, %v20609_v61 }
0x142d   : > { %31618 = vmatpush3.msk.msra.mxu1 %vm20768_vm14, %v20609_v61  ;;  %31611 = vmatmul.mubr.msk.f32.vlgmr.msra.gmra.mrb[66].mxu0 %vm20761_vm15, %v38902_v16  ;;  %v23352_v16 = vsub.f32 %v38031_v10, %v35385_v23 }
0x142e   : > { %31620 = vmatmul.mubr.msk.f32.vlgmr.msra.gmra.mrb[66].mxu1 %vm20761_vm15, %v38904_v12  ;;  %33435 = vmatprep.subr.bf16.mxu0 %v38856_v52  ;;  %v23400_v12 = vadd.f32 %v38031_v10, %v35385_v23 }
0x142f   : > { %33439 = vmatprep.subr.bf16.mxu1 %v38856_v52  ;;  %33437 = vmatpush3.bf16.msra.mxu0 %v38856_v52  ;;  %v23376_v37 = vmax.f32 %v23352_v16, 0.0 }
0x1430   : > { %31628 = vmatprep.mubr.msk.f32.mxu0 %vm20761_vm15, %v38914_v29  ;;  %33441 = vmatpush3.bf16.msra.mxu1 %v38856_v52  ;;  %v23358_v29 = vsub.f32 %v38081_v58, %v35385_v23 }
0x1431   : > { %31637 = vmatprep.mubr.msk.f32.mxu1 %vm20761_vm15, %v38916_v59  ;;  %31626 = vmatprep.subr.msk.mxu0 %vm20768_vm14, %v20609_v61  ;;  %v23406_v59 = vadd.f32 %v38081_v58, %v35385_v23 }
0x1432   : > { %31635 = vmatprep.subr.msk.mxu1 %vm20768_vm14, %v20609_v61 }
0x1433   : > { %31627 = vmatpush3.msk.msra.mxu0 %vm20768_vm14, %v20609_v61 }
0x1434   : > { %31636 = vmatpush3.msk.msra.mxu1 %vm20768_vm14, %v20609_v61  ;;  %31629 = vmatmul.mubr.msk.f32.vlgmr.msra.gmra.mrb[68].mxu0 %vm20761_vm15, %v38910_v36  ;;  %v23424_v36 = vmin.f32 %v23400_v12, 0.0 }
0x1435   : > { %31638 = vmatmul.mubr.msk.f32.vlgmr.msra.gmra.mrb[68].mxu1 %vm20761_vm15, %v38912_v25  ;;  %33443 = vmatprep.subr.bf16.mxu0 %v38856_v52 }
0x1436   : > { %33447 = vmatprep.subr.bf16.mxu1 %v38856_v52  ;;  %33445 = vmatpush3.bf16.msra.mxu0 %v38856_v52 }
0x1437   : > { %31646 = vmatprep.mubr.msk.f32.mxu0 %vm20761_vm15, %v38922_v31  ;;  %33449 = vmatpush3.bf16.msra.mxu1 %v38856_v52  ;;  %v23415_v52 = vmin.f32 %v23391_v4, 0.0 }
0x1438   : > { %31655 = vmatprep.mubr.msk.f32.mxu1 %vm20761_vm15, %v38924_v47  ;;  %31644 = vmatprep.subr.msk.mxu0 %vm20768_vm14, %v20609_v61 }
0x1439   : > { %31653 = vmatprep.subr.msk.mxu1 %vm20768_vm14, %v20609_v61  ;;  %v23439_v1 = vadd.f32 %v23415_v52, %v23367_v39 }
0x143a   : > { %31645 = vmatpush3.msk.msra.mxu0 %vm20768_vm14, %v20609_v61 }
0x143b   : > { %31654 = vmatpush3.msk.msra.mxu1 %vm20768_vm14, %v20609_v61  ;;  %31647 = vmatmul.mubr.msk.f32.vlgmr.msra.gmra.mrb[70].mxu0 %vm20761_vm15, %v38918_v21  ;;  %v23382_v21 = vmax.f32 %v23358_v29, 0.0  ;;  %v23326_v61 = vld [vmem:[#allocation25 + $0x8] sm:$0xff] }
0x143c   : > { %31656 = vmatmul.mubr.msk.f32.vlgmr.msra.gmra.mrb[70].mxu1 %vm20761_vm15, %v38920_v49  ;;  %33452 = vmatprep.subr.msk.bf16.mxu0 %vm39047_vm7, %v37944_v51  ;;  %v23430_v49 = vmin.f32 %v23406_v59, 0.0  ;;  %v39231_v33 = vpack.c.bf16 %v23326_v61, %v23325_v35  ;;  %v40601_v35 = vld [vmem:[#allocation71_spill] sm:$0xff] }
0x143d   : > { %33458 = vmatprep.subr.msk.bf16.mxu1 %vm39047_vm7, %v37952_v8  ;;  %33455 = vmatpush3.bf16.msk.msra.mxu0 %vm39047_vm7, %v37944_v51  ;;  %v23349_v51 = vsub.f32 %v38023_v7, %v35385_v23 }
0x143e   : > { %33461 = vmatpush3.bf16.msk.msra.mxu1 %vm39047_vm7, %v37952_v8  ;;  %31662 = vmatprep.subr.msk.mxu0 %vm5841_vm10, %v23433_v6  ;;  %v23397_v8 = vadd.f32 %v38023_v7, %v35385_v23  ;;  %v23442_v7 = vadd.f32 %v23418_v57, %v23370_v45 }
0x143f   : > { %31671 = vmatprep.subr.msk.mxu1 %vm5841_vm10, %v23436_v32  ;;  %31664 = vmatprep.mubr.msk.f32.mxu0 %vm23479_vm8, %v39068_v9  ;;  %v23373_v10 = vmax.f32 %v23349_v51, 0.0 }
0x1440   : > { %31673 = vmatprep.mubr.msk.f32.mxu1 %vm23479_vm8, %v39068_v9  ;;  %v23421_v34 = vmin.f32 %v23397_v8, 0.0 }
0x1441   : > { %31663 = vmatpush3.msk.msra.mxu0 %vm5841_vm10, %v23433_v6 }
0x1442   : > { %31672 = vmatpush3.msk.msra.mxu1 %vm5841_vm10, %v23436_v32  ;;  %33464 = vmatprep.subr.msk.bf16.mxu0 %vm39047_vm7, %v37995_v26  ;;  %v23445_v25 = vadd.f32 %v23421_v34, %v23373_v10 }
0x1443   : > { %33470 = vmatprep.subr.msk.bf16.mxu1 %vm39047_vm7, %v38003_v19  ;;  %31665 = vmatmul.mubr.msk.f32.vlgmr.msra.gmra.mrb[72].mxu0 %vm23479_vm8, %v39085_v20 }
0x1444   : > { %31674 = vmatmul.mubr.msk.f32.vlgmr.msra.gmra.mrb[72].mxu1 %vm23479_vm8, %v39085_v20  ;;  %33467 = vmatpush3.bf16.msk.msra.mxu0 %vm39047_vm7, %v37995_v26  ;;  %v23355_v26 = vsub.f32 %v38071_v63, %v35385_v23 }
0x1445   : > { %33473 = vmatpush3.bf16.msk.msra.mxu1 %vm39047_vm7, %v38003_v19  ;;  %31680 = vmatprep.subr.msk.mxu0 %vm5841_vm10, %v23439_v1  ;;  %v23403_v19 = vadd.f32 %v38071_v63, %v35385_v23  ;;  %v23448_v63 = vadd.f32 %v23424_v36, %v23376_v37 }
0x1446   : > { %31689 = vmatprep.subr.msk.mxu1 %vm5841_vm10, %v23442_v7  ;;  %31682 = vmatprep.mubr.msk.f32.mxu0 %vm23479_vm8, %v39068_v9  ;;  %v23379_v23 = vmax.f32 %v23355_v26, 0.0 }
0x1447   : > { %31691 = vmatprep.mubr.msk.f32.mxu1 %vm23479_vm8, %v39068_v9  ;;  %v23427_v58 = vmin.f32 %v23403_v19, 0.0 }
0x1448   : > { %31681 = vmatpush3.msk.msra.mxu0 %vm5841_vm10, %v23439_v1 }
0x1449   : > { %31690 = vmatpush3.msk.msra.mxu1 %vm5841_vm10, %v23442_v7  ;;  %33476 = vmatprep.subr.msk.bf16.mxu0 %vm39047_vm7, %v38041_v41 }
0x144a   : > { %33482 = vmatprep.subr.msk.bf16.mxu1 %vm39047_vm7, %v38049_v40  ;;  %31683 = vmatmul.mubr.msk.f32.vlgmr.msra.gmra.mrb[74].mxu0 %vm23479_vm8, %v39085_v20 }
0x144b   : > { %31692 = vmatmul.mubr.msk.f32.vlgmr.msra.gmra.mrb[74].mxu1 %vm23479_vm8, %v39085_v20  ;;  %33479 = vmatpush3.bf16.msk.msra.mxu0 %vm39047_vm7, %v38041_v41  ;;  %v23451_v41 = vadd.f32 %v23427_v58, %v23379_v23 }
0x144c   : > { %33485 = vmatpush3.bf16.msk.msra.mxu1 %vm39047_vm7, %v38049_v40  ;;  %31698 = vmatprep.subr.msk.mxu0 %vm5841_vm10, %v23445_v25  ;;  %v23454_v40 = vadd.f32 %v23430_v49, %v23382_v21  ;;  %v23327_v21 = vld [vmem:[#allocation25 + $0x10] sm:$0x3f]  ;;  %v34586_v49 = vmov 0  }
0x144d   : > { %31707 = vmatprep.subr.msk.mxu1 %vm5841_vm10, %v23448_v63  ;;  %31700 = vmatprep.mubr.msk.f32.mxu0 %vm23479_vm8, %v39068_v9 }
0x144e   : > { %31709 = vmatprep.mubr.msk.f32.mxu1 %vm23479_vm8, %v39068_v9  ;;  %33940 = vset.pattern.permute.xlu0 %v34586_v49 }
0x144f   : > { %31699 = vmatpush3.msk.msra.mxu0 %vm5841_vm10, %v23445_v25 }
0x1450   : > { %31708 = vmatpush3.msk.msra.mxu1 %vm5841_vm10, %v23448_v63  ;;  %33488 = vmatprep.subr.msk.bf16.mxu0 %vm39047_vm7, %v38092_v2 }
0x1451   : > { %33494 = vmatprep.subr.msk.bf16.mxu1 %vm39047_vm7, %v38099_v62  ;;  %31701 = vmatmul.mubr.msk.f32.vlgmr.msra.gmra.mrb[76].mxu0 %vm23479_vm8, %v39085_v20 }
0x1452   : > { %31710 = vmatmul.mubr.msk.f32.vlgmr.msra.gmra.mrb[76].mxu1 %vm23479_vm8, %v39085_v20  ;;  %33491 = vmatpush3.bf16.msk.msra.mxu0 %vm39047_vm7, %v38092_v2 }
0x1453   : > { %33497 = vmatpush3.bf16.msk.msra.mxu1 %vm39047_vm7, %v38099_v62  ;;  %31716 = vmatprep.subr.msk.mxu0 %vm5841_vm10, %v23451_v41 }
0x1454   : > { %31725 = vmatprep.subr.msk.mxu1 %vm5841_vm10, %v23454_v40  ;;  %31718 = vmatprep.mubr.msk.f32.mxu0 %vm23479_vm8, %v39068_v9 }
0x1455   : > { %31727 = vmatprep.mubr.msk.f32.mxu1 %vm23479_vm8, %v39068_v9 }
0x1456   : > { %31717 = vmatpush3.msk.msra.mxu0 %vm5841_vm10, %v23451_v41 }
0x1457   : > { %31726 = vmatpush3.msk.msra.mxu1 %vm5841_vm10, %v23454_v40  ;;  %31719 = vmatmul.mubr.msk.f32.vlgmr.msra.gmra.mrb[78].mxu0 %vm23479_vm8, %v39085_v20  ;;  %v40587_v40 = vld [vmem:[#allocation65_spill] sm:$0xff] }
0x1458   : > { %31728 = vmatmul.mubr.msk.f32.vlgmr.msra.gmra.mrb[78].mxu1 %vm23479_vm8, %v39085_v20  ;;  %31734 = vmatprep.mubr.msk.f32.mxu0 %vm15316_vm1, %v39068_v9 }
0x1459   : > { %31741 = vmatprep.mubr.msk.f32.mxu1 %vm15316_vm1, %v39068_v9 }
0x14f9   : > { %v31594_v2 = vpop.f32.mrb[64].mxu0 }
0x14fa   : > { %v31603_v62 = vpop.f32.mrb[64].mxu1  ;;  %v22747_v31 = vpop.f32.mrb[65].mxu0 }
0x14fb   : > { %v33498_v47 = vpack.c.bf16 %v31594_v2, %v22747_v31  ;;  %v22828_v17 = vpop.f32.mrb[65].mxu1 }
0x14fc   : > { %v33504_v24 = vpack.c.bf16 %v31603_v62, %v22828_v17 }
0x14fd   : > { %33500 = vmatprep.subr.msk.bf16.mxu0 %vm37910_vm0, %v33498_v47 }
0x14fe   : > { %33506 = vmatprep.subr.msk.bf16.mxu1 %vm37910_vm0, %v33504_v24  ;;  %33503 = vmatpush3.bf16.msk.msra.mxu0 %vm37910_vm0, %v33498_v47  ;;  %v40590_v47 = vld [vmem:[#allocation68_spill] sm:$0xff] }
0x14ff   : > { %33509 = vmatpush3.bf16.msk.msra.mxu1 %vm37910_vm0, %v33504_v24  ;;  %v40591_v24 = vld [vmem:[#allocation66_spill] sm:$0xff] }
0x1500   : > { %v31612_v3 = vpop.f32.mrb[66].mxu0 }
0x1501   : > { %v31621_v27 = vpop.f32.mrb[66].mxu1  ;;  %v22909_v18 = vpop.f32.mrb[67].mxu0  ;;  %31735 = vmatmul.mubr.msk.f32.vlgmr.msra.gmra.mrb[80].mxu0 %vm15316_vm1, %v39085_v20 }
0x1502   : > { %v33510_v55 = vpack.c.bf16 %v31612_v3, %v22909_v18  ;;  %v22990_v43 = vpop.f32.mrb[67].mxu1  ;;  %31742 = vmatmul.mubr.msk.f32.vlgmr.msra.gmra.mrb[80].mxu1 %vm15316_vm1, %v39085_v20  ;;  %31748 = vmatprep.mubr.msk.f32.mxu0 %vm15316_vm1, %v39068_v9  ;;  %v40594_v18 = vld [vmem:[#allocation70_spill] sm:$0xff] }
0x1503   : > { %v33516_v50 = vpack.c.bf16 %v31621_v27, %v22990_v43  ;;  %31755 = vmatprep.mubr.msk.f32.mxu1 %vm15316_vm1, %v39068_v9 }
0x1504   : > { %33512 = vmatprep.subr.msk.bf16.mxu0 %vm37910_vm0, %v33510_v55 }
0x1505   : > { %33518 = vmatprep.subr.msk.bf16.mxu1 %vm37910_vm0, %v33516_v50  ;;  %33515 = vmatpush3.bf16.msk.msra.mxu0 %vm37910_vm0, %v33510_v55 }
0x1506   : > { %33521 = vmatpush3.bf16.msk.msra.mxu1 %vm37910_vm0, %v33516_v50 }
0x1507   : > { %v31630_v30 = vpop.f32.mrb[68].mxu0 }
0x1508   : > { %v31639_v54 = vpop.f32.mrb[68].mxu1  ;;  %v23071_v48 = vpop.f32.mrb[69].mxu0  ;;  %31749 = vmatmul.mubr.msk.f32.vlgmr.msra.gmra.mrb[82].mxu0 %vm15316_vm1, %v39085_v20 }
0x1509   : > { %v33522_v44 = vpack.c.bf16 %v31630_v30, %v23071_v48  ;;  %v23152_v53 = vpop.f32.mrb[69].mxu1  ;;  %31756 = vmatmul.mubr.msk.f32.vlgmr.msra.gmra.mrb[82].mxu1 %vm15316_vm1, %v39085_v20  ;;  %31762 = vmatprep.mubr.msk.f32.mxu0 %vm15316_vm1, %v39068_v9 }
0x150a   : > { %v33528_v46 = vpack.c.bf16 %v31639_v54, %v23152_v53  ;;  %31769 = vmatprep.mubr.msk.f32.mxu1 %vm15316_vm1, %v39068_v9  ;;  %v40600_v53 = vld [vmem:[#allocation67_spill] sm:$0xff] }
0x150b   : > { %33524 = vmatprep.subr.msk.bf16.mxu0 %vm37910_vm0, %v33522_v44 }
0x150c   : > { %33530 = vmatprep.subr.msk.bf16.mxu1 %vm37910_vm0, %v33528_v46  ;;  %33527 = vmatpush3.bf16.msk.msra.mxu0 %vm37910_vm0, %v33522_v44 }
0x150d   : > { %33533 = vmatpush3.bf16.msk.msra.mxu1 %vm37910_vm0, %v33528_v46 }
0x150e   : > { %v31648_v42 = vpop.f32.mrb[70].mxu0 }
0x150f   : > { %v31657_v14 = vpop.f32.mrb[70].mxu1  ;;  %v23233_v60 = vpop.f32.mrb[71].mxu0  ;;  %31763 = vmatmul.mubr.msk.f32.vlgmr.msra.gmra.mrb[84].mxu0 %vm15316_vm1, %v39085_v20 }
0x1510   : > { %v33534_v28 = vpack.c.bf16 %v31648_v42, %v23233_v60  ;;  %v23314_v56 = vpop.f32.mrb[71].mxu1  ;;  %31770 = vmatmul.mubr.msk.f32.vlgmr.msra.gmra.mrb[84].mxu1 %vm15316_vm1, %v39085_v20  ;;  %31776 = vmatprep.mubr.msk.f32.mxu0 %vm15316_vm1, %v39068_v9 }
0x1511   : > { %v33540_v13 = vpack.c.bf16 %v31657_v14, %v23314_v56  ;;  %31783 = vmatprep.mubr.msk.f32.mxu1 %vm15316_vm1, %v39068_v9  ;;  %v40603_v14 = vld [vmem:[#allocation69_spill] sm:$0xff] }
0x1512   : > { %33536 = vmatprep.subr.msk.bf16.mxu0 %vm37910_vm0, %v33534_v28 }
0x1513   : > { %33542 = vmatprep.subr.msk.bf16.mxu1 %vm37910_vm0, %v33540_v13  ;;  %33539 = vmatpush3.bf16.msk.msra.mxu0 %vm37910_vm0, %v33534_v28  ;;  %v40604_v28 = vld [vmem:[#allocation72_spill] sm:$0xff] }
0x1514   : > { %33545 = vmatpush3.bf16.msk.msra.mxu1 %vm37910_vm0, %v33540_v13  ;;  %33548 = vmatprep.subr.msk.bf16.mxu0 %vm37910_vm0, %v39231_v33 }
0x1515   : > { %33554 = vmatprep.subr.msk.bf16.mxu1 %vm37910_vm0, %v39231_v33 }
0x1516   : > { %31777 = vmatmul.mubr.msk.f32.vlgmr.msra.gmra.mrb[86].mxu0 %vm15316_vm1, %v39085_v20  ;;  %v39251_v38 = vpop.f32.mrb[72].mxu0 }
0x1517   : > { %31784 = vmatmul.mubr.msk.f32.vlgmr.msra.gmra.mrb[86].mxu1 %vm15316_vm1, %v39085_v20  ;;  %v39255_v15 = vpop.f32.mrb[72].mxu1  ;;  %v39257_v22 = vpop.f32.mrb[73].mxu0  ;;  %33551 = vmatpush3.bf16.msk.msra.mxu0 %vm37910_vm0, %v39231_v33 }
0x1518   : > { %v39262_v4 = vpop.f32.mrb[73].mxu1  ;;  %33557 = vmatpush3.bf16.msk.msra.mxu1 %vm37910_vm0, %v39231_v33  ;;  %33560 = vmatprep.subr.msk.bf16.mxu0 %vm37910_vm0, %v39231_v33 }
0x1519   : > { %33566 = vmatprep.subr.msk.bf16.mxu1 %vm37910_vm0, %v39231_v33 }
0x151d   : > { %v39273_v6 = vpop.f32.mrb[74].mxu0 }
0x151e   : > { %v39275_v5 = vpop.f32.mrb[74].mxu1  ;;  %v39277_v11 = vpop.f32.mrb[75].mxu0 }
0x151f   : > { %v39279_v9 = vpop.f32.mrb[75].mxu1 }
0x1524   : > { %v39281_v32 = vpop.f32.mrb[76].mxu0 }
0x1525   : > { %v39283_v39 = vpop.f32.mrb[76].mxu1  ;;  %v39285_v52 = vpop.f32.mrb[77].mxu0 }
0x1526   : > { %v39287_v45 = vpop.f32.mrb[77].mxu1 }
0x152a   : > { %v39289_v57 = vpop.f32.mrb[78].mxu0 }
0x152b   : > { %v39291_v20 = vpop.f32.mrb[78].mxu1  ;;  %v39293_v51 = vpop.f32.mrb[79].mxu0 }
0x152c   : > { %v39295_v8 = vpop.f32.mrb[79].mxu1 }
0x15d4   : > { %v31736_v1 = vpop.f32.mrb[80].mxu0 }
0x15d5   : > { %v31743_v16 = vpop.f32.mrb[80].mxu1  ;;  %v24183_v12 = vpop.f32.mrb[81].mxu0 }
0x15d6   : > { %v24261_v7 = vpop.f32.mrb[81].mxu1  ;;  %31790 = vmatprep.mubr.msk.f32.mxu0 %vm15316_vm1, %v24183_v12 }
0x15d7   : > { %31797 = vmatprep.mubr.msk.f32.mxu1 %vm15316_vm1, %v24261_v7  ;;  %31791 = vmatmul.mubr.msk.f32.vlgmr.msra.gmra.mrb[88].mxu0 %vm15316_vm1, %v31736_v1 }
0x15d8   : > { %31798 = vmatmul.mubr.msk.f32.vlgmr.msra.gmra.mrb[88].mxu1 %vm15316_vm1, %v31743_v16  ;;  %33563 = vmatpush3.bf16.msk.msra.mxu0 %vm37910_vm0, %v39231_v33  ;;  %v40612_v16 = vld [vmem:[#allocation53_spill] sm:$0xff] }
0x15d9   : > { %33569 = vmatpush3.bf16.msk.msra.mxu1 %vm37910_vm0, %v39231_v33  ;;  %33572 = vmatprep.subr.msk.bf16.mxu0 %vm37910_vm0, %v39231_v33 }
0x15da   : > { %33578 = vmatprep.subr.msk.bf16.mxu1 %vm37910_vm0, %v39231_v33 }
0x15db   : > { %v31750_v10 = vpop.f32.mrb[82].mxu0 }
0x15dc   : > { %v31757_v34 = vpop.f32.mrb[82].mxu1  ;;  %v24339_v37 = vpop.f32.mrb[83].mxu0 }
0x15dd   : > { %v24417_v36 = vpop.f32.mrb[83].mxu1  ;;  %31804 = vmatprep.mubr.msk.f32.mxu0 %vm15316_vm1, %v24339_v37  ;;  %v1108_v37 = vld [vmem:[#allocation35] sm:$0xff] }
0x15de   : > { %31811 = vmatprep.mubr.msk.f32.mxu1 %vm15316_vm1, %v24417_v36  ;;  %31805 = vmatmul.mubr.msk.f32.vlgmr.msra.gmra.mrb[90].mxu0 %vm15316_vm1, %v31750_v10 }
0x15df   : > { %31812 = vmatmul.mubr.msk.f32.vlgmr.msra.gmra.mrb[90].mxu1 %vm15316_vm1, %v31757_v34  ;;  %33575 = vmatpush3.bf16.msk.msra.mxu0 %vm37910_vm0, %v39231_v33 }
0x15e0   : > { %33581 = vmatpush3.bf16.msk.msra.mxu1 %vm37910_vm0, %v39231_v33  ;;  %33584 = vmatprep.subr.msk.bf16.mxu0 %vm37910_vm0, %v39231_v33 }
0x15e1   : > { %33590 = vmatprep.subr.msk.bf16.mxu1 %vm37910_vm0, %v39231_v33 }
0x15e2   : > { %v31764_v26 = vpop.f32.mrb[84].mxu0 }
0x15e3   : > { %v31771_v19 = vpop.f32.mrb[84].mxu1  ;;  %v24495_v25 = vpop.f32.mrb[85].mxu0 }
0x15e4   : > { %v24573_v29 = vpop.f32.mrb[85].mxu1  ;;  %31818 = vmatprep.mubr.msk.f32.mxu0 %vm15316_vm1, %v24495_v25 }
0x15e5   : > { %31825 = vmatprep.mubr.msk.f32.mxu1 %vm15316_vm1, %v24573_v29  ;;  %31819 = vmatmul.mubr.msk.f32.vlgmr.msra.gmra.mrb[92].mxu0 %vm15316_vm1, %v31764_v26 }
0x15e6   : > { %31826 = vmatmul.mubr.msk.f32.vlgmr.msra.gmra.mrb[92].mxu1 %vm15316_vm1, %v31771_v19  ;;  %33587 = vmatpush3.bf16.msk.msra.mxu0 %vm37910_vm0, %v39231_v33 }
0x15e7   : > { %33593 = vmatpush3.bf16.msk.msra.mxu1 %vm37910_vm0, %v39231_v33  ;;  %33595 = vmatprep.subr.bf16.mxu0 %v39231_v33 }
0x15e8   : > { %33599 = vmatprep.subr.bf16.mxu1 %v39231_v33 }
0x15e9   : > { %v31778_v59 = vpop.f32.mrb[86].mxu0 }
0x15ea   : > { %v31785_v63 = vpop.f32.mrb[86].mxu1  ;;  %v24651_v23 = vpop.f32.mrb[87].mxu0 }
0x15eb   : > { %v24729_v58 = vpop.f32.mrb[87].mxu1  ;;  %31832 = vmatprep.mubr.msk.f32.mxu0 %vm15316_vm1, %v24651_v23 }
0x15ec   : > { %31839 = vmatprep.mubr.msk.f32.mxu1 %vm15316_vm1, %v24729_v58  ;;  %31833 = vmatmul.mubr.msk.f32.vlgmr.msra.gmra.mrb[94].mxu0 %vm15316_vm1, %v31778_v59 }
0x15ed   : > { %31840 = vmatmul.mubr.msk.f32.vlgmr.msra.gmra.mrb[94].mxu1 %vm15316_vm1, %v31785_v63  ;;  %33597 = vmatpush3.bf16.msra.mxu0 %v39231_v33 }
0x15ee   : > { %33601 = vmatpush3.bf16.msra.mxu1 %v39231_v33  ;;  %31848 = vmatprep.mubr.msk.f32.mxu0 %vm23479_vm8, %v39257_v22 }
0x15ef   : > { %31857 = vmatprep.mubr.msk.f32.mxu1 %vm23479_vm8, %v39262_v4  ;;  %31846 = vmatprep.subr.msk.mxu0 %vm5841_vm10, %v23327_v21 }
0x15f0   : > { %31855 = vmatprep.subr.msk.mxu1 %vm5841_vm10, %v23327_v21 }
0x15f1   : > { %31847 = vmatpush3.msk.msra.mxu0 %vm5841_vm10, %v23327_v21 }
0x15f2   : > { %31856 = vmatpush3.msk.msra.mxu1 %vm5841_vm10, %v23327_v21  ;;  %31849 = vmatmul.mubr.msk.f32.vlgmr.msra.gmra.mrb[88].mxu0 %vm23479_vm8, %v39251_v38  ;;  %v1109_v38 = vld [vmem:[#allocation35 + $0x8] sm:$0xff] }
0x15f3   : > { %31858 = vmatmul.mubr.msk.f32.vlgmr.msra.gmra.mrb[88].mxu1 %vm23479_vm8, %v39255_v15  ;;  %33603 = vmatprep.subr.bf16.mxu0 %v39231_v33 }
0x15f4   : > { %33607 = vmatprep.subr.bf16.mxu1 %v39231_v33  ;;  %33605 = vmatpush3.bf16.msra.mxu0 %v39231_v33 }
0x15f5   : > { %31866 = vmatprep.mubr.msk.f32.mxu0 %vm23479_vm8, %v39277_v11  ;;  %33609 = vmatpush3.bf16.msra.mxu1 %v39231_v33 }
0x15f6   : > { %31875 = vmatprep.mubr.msk.f32.mxu1 %vm23479_vm8, %v39279_v9  ;;  %31864 = vmatprep.subr.msk.mxu0 %vm5841_vm10, %v23327_v21 }
0x15f7   : > { %31873 = vmatprep.subr.msk.mxu1 %vm5841_vm10, %v23327_v21 }
0x15f8   : > { %31865 = vmatpush3.msk.msra.mxu0 %vm5841_vm10, %v23327_v21 }
0x15f9   : > { %31874 = vmatpush3.msk.msra.mxu1 %vm5841_vm10, %v23327_v21  ;;  %31867 = vmatmul.mubr.msk.f32.vlgmr.msra.gmra.mrb[90].mxu0 %vm23479_vm8, %v39273_v6 }
0x15fa   : > { %31876 = vmatmul.mubr.msk.f32.vlgmr.msra.gmra.mrb[90].mxu1 %vm23479_vm8, %v39275_v5  ;;  %33611 = vmatprep.subr.bf16.mxu0 %v39231_v33 }
0x15fb   : > { %33615 = vmatprep.subr.bf16.mxu1 %v39231_v33  ;;  %33613 = vmatpush3.bf16.msra.mxu0 %v39231_v33 }
0x15fc   : > { %31884 = vmatprep.mubr.msk.f32.mxu0 %vm23479_vm8, %v39285_v52  ;;  %33617 = vmatpush3.bf16.msra.mxu1 %v39231_v33 }
0x15fd   : > { %31893 = vmatprep.mubr.msk.f32.mxu1 %vm23479_vm8, %v39287_v45  ;;  %31882 = vmatprep.subr.msk.mxu0 %vm5841_vm10, %v23327_v21  ;;  %v40609_v45 = vld [vmem:[#allocation73_spill] sm:$0xff] }
0x15fe   : > { %31891 = vmatprep.subr.msk.mxu1 %vm5841_vm10, %v23327_v21 }
0x15ff   : > { %31883 = vmatpush3.msk.msra.mxu0 %vm5841_vm10, %v23327_v21 }
0x1600   : > { %31892 = vmatpush3.msk.msra.mxu1 %vm5841_vm10, %v23327_v21  ;;  %31885 = vmatmul.mubr.msk.f32.vlgmr.msra.gmra.mrb[92].mxu0 %vm23479_vm8, %v39281_v32  ;;  %v1111_v32 = vld [vmem:[#allocation35 + $0x18] sm:$0xff] }
0x1601   : > { %31894 = vmatmul.mubr.msk.f32.vlgmr.msra.gmra.mrb[92].mxu1 %vm23479_vm8, %v39283_v39  ;;  %33619 = vmatprep.subr.bf16.mxu0 %v39231_v33 }
0x1602   : > { %33623 = vmatprep.subr.bf16.mxu1 %v39231_v33  ;;  %33621 = vmatpush3.bf16.msra.mxu0 %v39231_v33 }
0x1603   : > { %31902 = vmatprep.mubr.msk.f32.mxu0 %vm23479_vm8, %v39293_v51  ;;  %33625 = vmatpush3.bf16.msra.mxu1 %v39231_v33 }
0x1604   : > { %31911 = vmatprep.mubr.msk.f32.mxu1 %vm23479_vm8, %v39295_v8  ;;  %31900 = vmatprep.subr.msk.mxu0 %vm5841_vm10, %v23327_v21  ;;  %v40611_v8 = vld [vmem:[#allocation74_spill] sm:$0xff] }
0x1605   : > { %31909 = vmatprep.subr.msk.mxu1 %vm5841_vm10, %v23327_v21 }
0x1606   : > { %31901 = vmatpush3.msk.msra.mxu0 %vm5841_vm10, %v23327_v21 }
0x1607   : > { %31910 = vmatpush3.msk.msra.mxu1 %vm5841_vm10, %v23327_v21  ;;  %31903 = vmatmul.mubr.msk.f32.vlgmr.msra.gmra.mrb[94].mxu0 %vm23479_vm8, %v39289_v57  ;;  %v1110_v21 = vld [vmem:[#allocation35 + $0x10] sm:$0xff]  ;;  %vm26662_vm10 = vcmask 0  }
0x1608   : > { %31912 = vmatmul.mubr.msk.f32.vlgmr.msra.gmra.mrb[94].mxu1 %vm23479_vm8, %v39291_v20  ;;  %v40610_v20 = vld [vmem:[#allocation51_spill] sm:$0xff] }
0x16c5   : > { %v39407_v41 = vpop.f32.mrb[88].mxu0 }
0x16c6   : > { %40586 = vst [vmem:[#allocation56_spill] sm:$0xff] %v39407_v41  ;;  %v26041_v2 = vadd.f32 %v39407_v41, %v40587_v40  ;;  %v39411_v62 = vpop.f32.mrb[88].mxu1  ;;  %v39413_v31 = vpop.f32.mrb[89].mxu0 }
0x16c7   : > { %40588 = vst [vmem:[#allocation61_spill] sm:$0xff] %v39411_v62  ;;  %40589 = vst [vmem:[#allocation62_spill] sm:$0xff] %v39413_v31  ;;  %v26043_v17 = vadd.f32 %v39411_v62, %v40590_v47  ;;  %v26040_v0 = vadd.f32 %v39413_v31, %v40591_v24  ;;  %v39419_v3 = vpop.f32.mrb[89].mxu1 }
0x16c8   : > { %40592 = vst [vmem:[#allocation59_spill] sm:$0xff] %v39419_v3  ;;  %v39421_v27 = vmul.f32 0.5, %v26041_v2  ;;  %v26042_v55 = vadd.f32 %v39419_v3, %v40594_v18  ;;  %v40619_v2 = vld [vmem:[#allocation57_spill] sm:$0xff] }
0x16c9   : > { %v39425_v43 = vmul.f32 0.5, %v26043_v17  ;;  %v39434_v44 = vmul.f32 0.5, %v26040_v0 }
0x16ca   : > { %40593 = vst [vmem:[#allocation60_spill] sm:$0xff] %v39421_v27  ;;  %v26515_v50 = vadd.f32 1e-06, %v39421_v27  ;;  %v26372_v6 = vsub.f32 %v39421_v27, %v1109_v38  ;;  %v39477_v59 = vmul.f32 0.5, %v26042_v55 }
0x16cb   : > { %40595 = vst [vmem:[#allocation63_spill] sm:$0xff] %v39425_v43  ;;  %40599 = vst [vmem:[#allocation76_spill] sm:$0xff] %v39434_v44  ;;  %v26517_v33 = vadd.f32 1e-06, %v39425_v43  ;;  %v26514_v5 = vadd.f32 1e-06, %v39434_v44  ;;  %v26374_v34 = vsub.f32 %v39425_v43, %v1111_v32  ;;  %v26371_v25 = vsub.f32 %v39434_v44, %v1108_v37 }
0x16cc   : > { %v39428_v30 = vpop.f32.mrb[90].mxu0  ;;  %v26531_v13 = vmul.f32 %v26515_v50, %v26515_v50  ;;  %v26388_v7 = vmul.f32 %v26372_v6, %v26372_v6  ;;  %40614 = vst [vmem:[#allocation67_spill] sm:$0xff] %v39477_v59  ;;  %v26373_v6 = vsub.f32 %v39477_v59, %v1110_v21  ;;  %v1112_v37 = vld [vmem:[#allocation35 + $0x20] sm:$0xff] }
0x16cd   : > { %40596 = vst [vmem:[#allocation64_spill] sm:$0xff] %v39428_v30  ;;  %v39430_v54 = vpop.f32.mrb[90].mxu1  ;;  %v39432_v48 = vpop.f32.mrb[91].mxu0  ;;  %v26045_v46 = vadd.f32 %v39428_v30, %v40600_v53  ;;  %v26533_v22 = vmul.f32 %v26517_v33, %v26517_v33  ;;  %v26530_v10 = vmul.f32 %v26514_v5, %v26514_v5  ;;  %v26390_v19 = vmul.f32 %v26374_v34, %v26374_v34  ;;  %v40620_v33 = vld [vmem:[#allocation52_spill] sm:$0xff]  ;;  %v1113_v34 = vld [vmem:[#allocation35 + $0x28] sm:$0xff] }
0x16ce   : > { %40597 = vst [vmem:[#allocation49_spill] sm:$0xff] %v39430_v54  ;;  %40598 = vst [vmem:[#allocation50_spill] sm:$0xff] %v39432_v48  ;;  %v26047_v61 = vadd.f32 %v39430_v54, %v40601_v35  ;;  %v39440_v42 = vpop.f32.mrb[91].mxu1  ;;  %v26044_v60 = vadd.f32 %v39432_v48, %v40603_v14  ;;  %v26549_v15 = vsel %vm1146_vm2, %v26531_v13, 0.0  ;;  %v26406_v26 = vsel %vm1146_vm2, %v26388_v7, 0.0  ;;  %v40621_v13 = vld [vmem:[#allocation54_spill] sm:$0xff] }
0x16cf   : > { %40602 = vst [vmem:[#allocation75_spill] sm:$0xff] %v39440_v42  ;;  %v26046_v56 = vadd.f32 %v39440_v42, %v40604_v28  ;;  %26550 = vadd.xlane.f32.xlu0 %v26549_v15  ;;  %v26555_v52 = vsel %vm1146_vm2, %v26533_v22, 0.0  ;;  %v26546_v36 = vsel %vm1146_vm2, %v26530_v10, 0.0  ;;  %v39485_v49 = vmul.f32 0.5, %v26045_v46  ;;  %v40622_v15 = vld [vmem:[#allocation58_spill] sm:$0xff] }
0x16d0   : > { %26556 = vadd.xlane.f32.xlu1 %v26555_v52  ;;  %v26412_v0 = vsel %vm1146_vm2, %v26390_v19, 0.0  ;;  %v26387_v50 = vmul.f32 %v26371_v25, %v26371_v25  ;;  %v26516_v22 = vadd.f32 1e-06, %v39477_v59  ;;  %v39507_v32 = vmul.f32 0.5, %v26044_v60 }
0x16d1   : > { %40618 = vst [vmem:[#allocation77_spill] sm:$0xff] %v39485_v49  ;;  %v26389_v7 = vmul.f32 %v26373_v6, %v26373_v6  ;;  %v26519_v10 = vadd.f32 1e-06, %v39485_v49  ;;  %v26376_v60 = vsub.f32 %v39485_v49, %v1113_v34 }
0x16d2   : > { %v26403_v5 = vsel %vm1146_vm2, %v26387_v50, 0.0  ;;  %40623 = vst [vmem:[#allocation78_spill] sm:$0xff] %v39507_v32  ;;  %v26532_v52 = vmul.f32 %v26516_v22, %v26516_v22  ;;  %v26375_v50 = vsub.f32 %v39507_v32, %v1112_v37 }
0x16d3   : > { %v39448_v4 = vpop.f32.mrb[92].mxu0  ;;  %26547 = vadd.xlane.f32.xlu0 %v26546_v36  ;;  %v39510_v36 = vmul.f32 0.5, %v26047_v61  ;;  %v26409_v25 = vsel %vm1146_vm2, %v26389_v7, 0.0  ;;  %v26535_v21 = vmul.f32 %v26519_v10, %v26519_v10  ;;  %v1115_v10 = vld [vmem:[#allocation35 + $0x38] sm:$0xff] }
0x16d4   : > { %40605 = vst [vmem:[#allocation55_spill] sm:$0xff] %v39448_v4  ;;  %v39452_v11 = vpop.f32.mrb[92].mxu1  ;;  %v39454_v9 = vpop.f32.mrb[93].mxu0  ;;  %v26049_v57 = vadd.f32 %v39448_v4, %v40609_v45  ;;  %26407 = vadd.xlane.f32.xlu1 %v26406_v26  ;;  %v39512_v26 = vmul.f32 0.5, %v26046_v56  ;;  %v26552_v19 = vsel %vm1146_vm2, %v26532_v52, 0.0  ;;  %v26392_v52 = vmul.f32 %v26376_v60, %v26376_v60 }
0x16d5   : > { %40606 = vst [vmem:[#allocation65_spill] sm:$0xff] %v39452_v11  ;;  %40607 = vst [vmem:[#allocation68_spill] sm:$0xff] %v39454_v9  ;;  %v39456_v39 = vpop.f32.mrb[93].mxu1  ;;  %v39463_v51 = vadd.f32 %v39452_v11, %v40610_v20  ;;  %v26048_v1 = vadd.f32 %v39454_v9, %v40611_v8  ;;  %v26521_v6 = vadd.f32 1e-06, %v39510_v36  ;;  %v26561_v56 = vsel %vm1146_vm2, %v26535_v21, 0.0 }
0x16d6   : > { %40608 = vst [vmem:[#allocation66_spill] sm:$0xff] %v39456_v39  ;;  %v39469_v12 = vadd.f32 %v39456_v39, %v40612_v16  ;;  %40624 = vst [vmem:[#allocation79_spill] sm:$0xff] %v39510_v36  ;;  %v26520_v61 = vadd.f32 1e-06, %v39512_v26  ;;  %v26391_v7 = vmul.f32 %v26375_v50, %v26375_v50  ;;  %v26378_v37 = vsub.f32 %v39510_v36, %v1115_v10  ;;  %v39685_v16 = vld [vmem:[#allocation2 + $0xb0] sm:$0xff] }
0x16d7   : > { %26404 = vadd.xlane.f32.xlu0 %v26403_v5  ;;  %40625 = vst [vmem:[#allocation80_spill] sm:$0xff] %v39512_v26  ;;  %v39525_v34 = vmul.f32 0.5, %v26048_v1  ;;  %40661 = vst [vmem:[#allocation116_spill] sm:$0xff] %v39685_v16 }
0x16d8   : > { %26413 = vadd.xlane.f32.xlu1 %v26412_v0  ;;  %v26518_v0 = vadd.f32 1e-06, %v39507_v32  ;;  %v26415_v21 = vsel %vm1146_vm2, %v26391_v7, 0.0  ;;  %v26394_v60 = vmul.f32 %v26378_v37, %v26378_v37 }
0x16d9   : > { %40627 = vst [vmem:[#allocation82_spill] sm:$0xff] %v39525_v34 }
0x16da   : > { %v39475_v29 = vpop.f32.mrb[94].mxu0  ;;  %v26534_v22 = vmul.f32 %v26518_v0, %v26518_v0  ;;  %v26418_v0 = vsel %vm1146_vm2, %v26392_v52, 0.0  ;;  %v39537_v52 = vld [vmem:[#allocation35 + $0x40] sm:$0xff] }
0x16db   : > { %40613 = vst [vmem:[#allocation70_spill] sm:$0xff] %v39475_v29  ;;  %v39479_v63 = vpop.f32.mrb[94].mxu1  ;;  %v39481_v23 = vpop.f32.mrb[95].mxu0  ;;  %v39494_v55 = vadd.f32 %v39475_v29, %v40620_v33  ;;  %26410 = vadd.xlane.f32.xlu0 %v26409_v25  ;;  %40629 = vst [vmem:[#allocation84_spill] sm:$0xff] %v39537_v52  ;;  %v39643_v29 = vld [vmem:[#allocation2 + $0x80] sm:$0xff]  ;;  %v39647_v33 = vld [vmem:[#allocation2 + $0x90] sm:$0xff] }
0x16dc   : > { %40615 = vst [vmem:[#allocation71_spill] sm:$0xff] %v39479_v63  ;;  %40616 = vst [vmem:[#allocation69_spill] sm:$0xff] %v39481_v23  ;;  %v39483_v58 = vpop.f32.mrb[95].mxu1  ;;  %v39489_v17 = vadd.f32 %v39479_v63, %v40619_v2  ;;  %v39498_v38 = vadd.f32 %v39481_v23, %v40621_v13  ;;  %26553 = vadd.xlane.f32.xlu1 %v26552_v19  ;;  %v26558_v5 = vsel %vm1146_vm2, %v26534_v22, 0.0  ;;  %v39523_v19 = vmul.f32 0.5, %v26049_v57  ;;  %v39649_v63 = vld [vmem:[#allocation2 + $0x28] sm:$0xff] }
0x16dd   : > { %40617 = vst [vmem:[#allocation72_spill] sm:$0xff] %v39483_v58  ;;  %v39502_v46 = vadd.f32 %v39483_v58, %v40622_v15  ;;  %v1114_v58 = vld [vmem:[#allocation35 + $0x30] sm:$0xff]  ;;  %v26537_v15 = vmul.f32 %v26521_v6, %v26521_v6  ;;  %v26536_v22 = vmul.f32 %v26520_v61, %v26520_v61  ;;  %v39540_v6 = vmul.f32 0.5, %v39463_v51  ;;  %40648 = vst [vmem:[#allocation103_spill] sm:$0xff] %v39643_v29 }
0x16de   : > { %40626 = vst [vmem:[#allocation81_spill] sm:$0xff] %v39523_v19  ;;  %v26377_v25 = vsub.f32 %v39512_v26, %v1114_v58  ;;  %v26523_v1 = vadd.f32 1e-06, %v39523_v19  ;;  %v39535_v58 = vld [vmem:[#allocation35 + $0x48] sm:$0xff]  ;;  %v39543_v61 = vmul.f32 0.5, %v39469_v12  ;;  %40650 = vst [vmem:[#allocation105_spill] sm:$0xff] %v39647_v33  ;;  %v39673_v39 = vadd.f32 %v39643_v29, %v39434_v44 }
0x16df   : > { %26559 = vadd.xlane.f32.xlu0 %v26558_v5  ;;  %v26564_v57 = vsel %vm1146_vm2, %v26536_v22, 0.0  ;;  %v26522_v5 = vadd.f32 1e-06, %v39525_v34  ;;  %40628 = vst [vmem:[#allocation83_spill] sm:$0xff] %v39535_v58  ;;  %40630 = vst [vmem:[#allocation85_spill] sm:$0xff] %v39540_v6  ;;  %v39651_v2 = vld [vmem:[#allocation2 + $0xa8] sm:$0xff]  ;;  %v39693_v29 = vadd.f32 %v39649_v63, %v39485_v49 }
0x16e0   : > { %26562 = vadd.xlane.f32.xlu1 %v26561_v56  ;;  %v26393_v50 = vmul.f32 %v26377_v25, %v26377_v25  ;;  %v26567_v56 = vsel %vm1146_vm2, %v26537_v15, 0.0  ;;  %40631 = vst [vmem:[#allocation86_spill] sm:$0xff] %v39543_v61  ;;  %v26424_v15 = vsel %vm1146_vm2, %v26394_v60, 0.0  ;;  %v26539_v10 = vmul.f32 %v26523_v1, %v26523_v1  ;;  %40651 = vst [vmem:[#allocation106_spill] sm:$0xff] %v39649_v63 }
0x16e1   : > { %v26538_v37 = vmul.f32 %v26522_v5, %v26522_v5  ;;  %v26380_v25 = vsub.f32 %v39523_v19, %v39535_v58  ;;  %v26525_v51 = vadd.f32 1e-06, %v39540_v6  ;;  %v39560_v1 = vmul.f32 0.5, %v39494_v55  ;;  %40652 = vst [vmem:[#allocation107_spill] sm:$0xff] %v39651_v2  ;;  %40658 = vst [vmem:[#allocation113_spill] sm:$0xff] %v39673_v39 }
0x16e2   : > { %v26421_v7 = vsel %vm1146_vm2, %v26393_v50, 0.0  ;;  %v26573_v12 = vsel %vm1146_vm2, %v26539_v10, 0.0  ;;  %v39563_v5 = vmul.f32 0.5, %v39498_v38 }
0x16e3   : > { %26416 = vadd.xlane.f32.xlu0 %v26415_v21  ;;  %v26524_v21 = vadd.f32 1e-06, %v39543_v61  ;;  %v26570_v22 = vsel %vm1146_vm2, %v26538_v37, 0.0  ;;  %v26396_v60 = vmul.f32 %v26380_v25, %v26380_v25  ;;  %40634 = vst [vmem:[#allocation89_spill] sm:$0xff] %v39560_v1  ;;  %v26541_v25 = vmul.f32 %v26525_v51, %v26525_v51 }
0x16e4   : > { %26419 = vadd.xlane.f32.xlu1 %v26418_v0  ;;  %v26379_v0 = vsub.f32 %v39525_v34, %v39537_v52  ;;  %40635 = vst [vmem:[#allocation90_spill] sm:$0xff] %v39563_v5  ;;  %v26527_v55 = vadd.f32 1e-06, %v39560_v1  ;;  %v39580_v51 = vmul.f32 0.5, %v39489_v17 }
0x16e5   : > { %v26430_v10 = vsel %vm1146_vm2, %v26396_v60, 0.0  ;;  %v26579_v38 = vsel %vm1146_vm2, %v26541_v25, 0.0  ;;  %v39577_v60 = vld [vmem:[#allocation35 + $0x60] sm:$0xff] }
0x16e6   : > { %v26395_v50 = vmul.f32 %v26379_v0, %v26379_v0  ;;  %v26540_v0 = vmul.f32 %v26524_v21, %v26524_v21  ;;  %40637 = vst [vmem:[#allocation92_spill] sm:$0xff] %v39577_v60  ;;  %40638 = vst [vmem:[#allocation93_spill] sm:$0xff] %v39580_v51  ;;  %v39583_v21 = vmul.f32 0.5, %v39502_v46  ;;  %v26383_v25 = vsub.f32 %v39563_v5, %v39577_v60 }
0x16e7   : > { %26565 = vadd.xlane.f32.xlu0 %v26564_v57  ;;  %v39557_v57 = vld [vmem:[#allocation35 + $0x50] sm:$0xff] }
0x16e8   : > { %26568 = vadd.xlane.f32.xlu1 %v26567_v56  ;;  %v39555_v56 = vld [vmem:[#allocation35 + $0x58] sm:$0xff]  ;;  %40633 = vst [vmem:[#allocation88_spill] sm:$0xff] %v39557_v57  ;;  %v26427_v37 = vsel %vm1146_vm2, %v26395_v50, 0.0  ;;  %40639 = vst [vmem:[#allocation94_spill] sm:$0xff] %v39583_v21 }
0x16e9   : > { %40632 = vst [vmem:[#allocation87_spill] sm:$0xff] %v39555_v56 }
0x16eb   : > { %26422 = vadd.xlane.f32.xlu0 %v26421_v7  ;;  %v26381_v7 = vsub.f32 %v39543_v61, %v39557_v57  ;;  %v39575_v57 = vld [vmem:[#allocation35 + $0x68] sm:$0xff] }
0x16ec   : > { %26425 = vadd.xlane.f32.xlu1 %v26424_v15  ;;  %v26382_v15 = vsub.f32 %v39540_v6, %v39555_v56  ;;  %v26526_v56 = vadd.f32 1e-06, %v39563_v5  ;;  %40636 = vst [vmem:[#allocation91_spill] sm:$0xff] %v39575_v57  ;;  %v39665_v5 = vld [vmem:[#allocation2 + $0x20] sm:$0xff] }
0x16ed   : > { %v26397_v58 = vmul.f32 %v26381_v7, %v26381_v7  ;;  %40656 = vst [vmem:[#allocation111_spill] sm:$0xff] %v39665_v5 }
0x16ee   : > { %v26542_v7 = vmul.f32 %v26526_v56, %v26526_v56  ;;  %v39597_v56 = vld [vmem:[#allocation35 + $0x70] sm:$0xff] }
0x16ef   : > { %26571 = vadd.xlane.f32.xlu0 %v26570_v22  ;;  %v26576_v22 = vsel %vm1146_vm2, %v26540_v0, 0.0  ;;  %v26529_v0 = vadd.f32 1e-06, %v39580_v51  ;;  %40641 = vst [vmem:[#allocation96_spill] sm:$0xff] %v39597_v56 }
0x16f0   : > { %26574 = vadd.xlane.f32.xlu1 %v26573_v12  ;;  %v26398_v12 = vmul.f32 %v26382_v15, %v26382_v15  ;;  %v26543_v15 = vmul.f32 %v26527_v55, %v26527_v55  ;;  %v26582_v46 = vsel %vm1146_vm2, %v26542_v7, 0.0  ;;  %v26528_v55 = vadd.f32 1e-06, %v39583_v21 }
0x16f1   : > { %v26545_v7 = vmul.f32 %v26529_v0, %v26529_v0 }
0x16f2   : > { %v26436_v50 = vsel %vm1146_vm2, %v26398_v12, 0.0  ;;  %v26585_v17 = vsel %vm1146_vm2, %v26543_v15, 0.0  ;;  %v26399_v12 = vmul.f32 %v26383_v25, %v26383_v25 }
0x16f3   : > { %26428 = vadd.xlane.f32.xlu0 %v26427_v37  ;;  %v26384_v37 = vsub.f32 %v39560_v1, %v39575_v57  ;;  %v26591_v25 = vsel %vm1146_vm2, %v26545_v7, 0.0  ;;  %v39667_v1 = vld [vmem:[#allocation2 + $0xa0] sm:$0xff] }
0x16f4   : > { %26431 = vadd.xlane.f32.xlu1 %v26430_v10  ;;  %v26433_v10 = vsel %vm1146_vm2, %v26397_v58, 0.0  ;;  %v39595_v58 = vld [vmem:[#allocation35 + $0x78] sm:$0xff]  ;;  %40657 = vst [vmem:[#allocation112_spill] sm:$0xff] %v39667_v1 }
0x16f5   : > { %40640 = vst [vmem:[#allocation95_spill] sm:$0xff] %v39595_v58 }
0x16f7   : > { %26577 = vadd.xlane.f32.xlu0 %v26576_v22  ;;  %v26386_v22 = vsub.f32 %v39580_v51, %v39595_v58  ;;  %v39709_v51 = vadd.f32 %v39665_v5, %v39507_v32 }
0x16f8   : > { %26580 = vadd.xlane.f32.xlu1 %v26579_v38  ;;  %v26400_v38 = vmul.f32 %v26384_v37, %v26384_v37  ;;  %v26544_v37 = vmul.f32 %v26528_v55, %v26528_v55 }
0x16fa   : > { %v26442_v15 = vsel %vm1146_vm2, %v26400_v38, 0.0  ;;  %v26588_v57 = vsel %vm1146_vm2, %v26544_v37, 0.0  ;;  %v27941_v38 = vld [vmem:[#allocation3] ss:$0 sm:$0xff] }
0x16fb   : > { %26434 = vadd.xlane.f32.xlu0 %v26433_v10  ;;  %v26439_v10 = vsel %vm1146_vm2, %v26399_v12, 0.0 }
0x16fc   : > { %26437 = vadd.xlane.f32.xlu1 %v26436_v50  ;;  %v26385_v50 = vsub.f32 %v39583_v21, %v39597_v56  ;;  %v39653_v21 = vld [vmem:[#allocation2 + $0x38] sm:$0xff] }
0x16fd   : > { %40653 = vst [vmem:[#allocation108_spill] sm:$0xff] %v39653_v21 }
0x16ff   : > { %26583 = vadd.xlane.f32.xlu0 %v26582_v46  ;;  %v26401_v46 = vmul.f32 %v26385_v50, %v26385_v50 }
0x1700   : > { %26586 = vadd.xlane.f32.xlu1 %v26585_v17  ;;  %v26402_v17 = vmul.f32 %v26386_v22, %v26386_v22 }
0x1701   : > { %v26445_v56 = vsel %vm1146_vm2, %v26401_v46, 0.0  ;;  %v39627_v46 = vld [vmem:[#allocation2 + $0x98] sm:$0xff] }
0x1702   : > { %v26448_v58 = vsel %vm1146_vm2, %v26402_v17, 0.0  ;;  %40645 = vst [vmem:[#allocation100_spill] sm:$0xff] %v39627_v46 }
0x1703   : > { %26440 = vadd.xlane.f32.xlu0 %v26439_v10 }
0x1704   : > { %26443 = vadd.xlane.f32.xlu1 %v26442_v15 }
0x1707   : > { %26589 = vadd.xlane.f32.xlu0 %v26588_v57 }
0x1708   : > { %26592 = vadd.xlane.f32.xlu1 %v26591_v25  ;;  %v39617_v25 = vld [vmem:[#allocation2 + $0x8] sm:$0xff] }
0x1709   : > { %40642 = vst [vmem:[#allocation97_spill] sm:$0xff] %v39617_v25  ;;  %v39625_v17 = vadd.f32 %v39617_v25, %v39421_v27  ;;  %v39645_v25 = vld [vmem:[#allocation2 + $0x10] sm:$0xff] }
0x170a   : > { %40649 = vst [vmem:[#allocation104_spill] sm:$0xff] %v39645_v25 }
0x170b   : > { %26446 = vadd.xlane.f32.xlu0 %v26445_v56  ;;  %v39621_v56 = vld [vmem:[#allocation2 + $0x18] sm:$0xff] }
0x170c   : > { %26449 = vadd.xlane.f32.xlu1 %v26448_v58  ;;  %v39619_v58 = vld [vmem:[#allocation2 + $0x88] sm:$0xff]  ;;  %40644 = vst [vmem:[#allocation99_spill] sm:$0xff] %v39621_v56  ;;  %v39641_v13 = vadd.f32 %v39621_v56, %v39425_v43  ;;  %v39663_v56 = vld [vmem:[#allocation2 + $0xb8] sm:$0xff] }
0x170d   : > { %40643 = vst [vmem:[#allocation98_spill] sm:$0xff] %v39619_v58  ;;  %v39637_v23 = vadd.f32 %v39619_v58, %v39421_v27  ;;  %v39657_v27 = vadd.f32 %v39627_v46, %v39425_v43  ;;  %40655 = vst [vmem:[#allocation110_spill] sm:$0xff] %v39663_v56  ;;  %v39677_v43 = vadd.f32 %v39645_v25, %v39477_v59 }
0x170e   : > { %v39681_v46 = vadd.f32 %v39647_v33, %v39477_v59  ;;  %v39697_v59 = vadd.f32 %v39651_v2, %v39485_v49  ;;  %v39701_v33 = vadd.f32 %v39653_v21, %v39510_v36  ;;  %v39705_v25 = vadd.f32 %v39663_v56, %v39510_v36  ;;  %v40692_v21 = vld [vmem:[#allocation89_spill] sm:$0xff] }
0x170f   : > { %40647 = vst [vmem:[#allocation102_spill] sm:$0xff] %v39637_v23  ;;  %40654 = vst [vmem:[#allocation109_spill] sm:$0xff] %v39657_v27  ;;  %v39725_v36 = vadd.f32 %v39685_v16, %v39512_v26  ;;  %v39739_v16 = vld [vmem:[#allocation2 + $0xc8] sm:$0xff]  ;;  %v39749_v27 = vld [vmem:[#allocation2 + $0x58] sm:$0xff] }
0x1710   : > { %40659 = vst [vmem:[#allocation114_spill] sm:$0xff] %v39681_v46  ;;  %40662 = vst [vmem:[#allocation117_spill] sm:$0xff] %v39697_v59  ;;  %v39751_v23 = vld [vmem:[#allocation2 + $0xd8] sm:$0xff] }
0x1711   : > { %40663 = vst [vmem:[#allocation118_spill] sm:$0xff] %v39705_v25  ;;  %40665 = vst [vmem:[#allocation120_spill] sm:$0xff] %v39725_v36 }
0x1712   : > { %40667 = vst [vmem:[#allocation122_spill] sm:$0xff] %v39739_v16  ;;  %40668 = vst [vmem:[#allocation123_spill] sm:$0xff] %v39749_v27 }
0x1713   : > { %40669 = vst [vmem:[#allocation124_spill] sm:$0xff] %v39751_v23 }
0x1721   : > { %26079 = vperm.xlu0 %33940, %v27941_v38   ;;  %v39629_v38 = vld [vmem:[#allocation2] sm:$0xff] }
0x1722   : > { %40646 = vst [vmem:[#allocation101_spill] sm:$0xff] %v39629_v38  ;;  %v39661_v58 = vadd.f32 %v39629_v38, %v39434_v44  ;;  %v39683_v38 = vld [vmem:[#allocation2 + $0x30] sm:$0xff]  ;;  %v39713_v44 = vadd.f32 %v39667_v1, %v39507_v32 }
0x1723   : > { %40660 = vst [vmem:[#allocation115_spill] sm:$0xff] %v39683_v38  ;;  %v39721_v41 = vadd.f32 %v39683_v38, %v39512_v26  ;;  %v39737_v26 = vld [vmem:[#allocation2 + $0x48] sm:$0xff] }
0x1724   : > { %40664 = vst [vmem:[#allocation119_spill] sm:$0xff] %v39713_v44  ;;  %40666 = vst [vmem:[#allocation121_spill] sm:$0xff] %v39737_v26  ;;  %v39767_v32 = vadd.f32 %v39737_v26, %v39523_v19 }
0x1726   : > { %40672 = vst [vmem:[#allocation127_spill] sm:$0xff] %v39767_v32 }
0x175c   : > { %v26551_v0 = vpop.xlane.xlu0 %26550 }
0x175d   : > { %v26557_v12 = vpop.xlane.xlu1 %26556 }
0x1760   : > { %v26548_v15 = vpop.xlane.xlu0 %26547 }
0x1761   : > { %v39609_v55 = vpop.xlane.xlu1 %26407  ;;  %v26594_v56 = vadd.f32 %v26551_v0, %v26548_v15  ;;  %v39771_v0 = vadd.f32 %v39739_v16, %v39523_v19  ;;  %v39775_v15 = vld [vmem:[#allocation2 + $0xd0] sm:$0xff] }
0x1762   : > { %40675 = vst [vmem:[#allocation130_spill] sm:$0xff] %v39775_v15 }
0x1763   : > { %40673 = vst [vmem:[#allocation128_spill] sm:$0xff] %v39771_v0  ;;  %v26595_v19 = vrot.slane %v26594_v56, 4 }
0x1764   : > { %v39611_v7 = vpop.xlane.xlu0 %26404 }
0x1765   : > { %v26414_v10 = vpop.xlane.xlu1 %26413 }
0x1768   : > { %v26411_v50 = vpop.xlane.xlu0 %26410 }
0x1769   : > { %v26554_v22 = vpop.xlane.xlu1 %26553  ;;  %v26458_v31 = vadd.f32 %v26414_v10, %v26411_v50  ;;  %v39757_v10 = vld [vmem:[#allocation2 + $0x40] sm:$0xff] }
0x176a   : > { %v26601_v1 = vadd.f32 %v26557_v12, %v26554_v22  ;;  %40670 = vst [vmem:[#allocation125_spill] sm:$0xff] %v39757_v10  ;;  %v39759_v50 = vld [vmem:[#allocation2 + $0xc0] sm:$0xff]  ;;  %v26451_v12 = vadd.f32 %v39609_v55, %v39611_v7  ;;  %v39773_v22 = vld [vmem:[#allocation2 + $0x50] sm:$0xff]  ;;  %v39789_v42 = vadd.f32 %v39757_v10, %v39525_v34 }
0x176b   : > { %40671 = vst [vmem:[#allocation126_spill] sm:$0xff] %v39759_v50  ;;  %40674 = vst [vmem:[#allocation129_spill] sm:$0xff] %v39773_v22  ;;  %v26459_v16 = vrot.slane %v26458_v31, 4  ;;  %v39793_v36 = vadd.f32 %v39759_v50, %v39525_v34  ;;  %v39797_v30 = vadd.f32 %v39773_v22, %v39543_v61 }
0x176c   : > { %v39615_v57 = vpop.xlane.xlu0 %26559  ;;  %v26602_v54 = vrot.slane %v26601_v1, 4  ;;  %40678 = vst [vmem:[#allocation133_spill] sm:$0xff] %v39789_v42  ;;  %v39855_v42 = vld [vmem:[#allocation2 + $0x70] sm:$0xff] }
0x176d   : > { %v39613_v37 = vpop.xlane.xlu1 %26562  ;;  %40679 = vst [vmem:[#allocation134_spill] sm:$0xff] %v39793_v36  ;;  %40680 = vst [vmem:[#allocation135_spill] sm:$0xff] %v39797_v30 }
0x176e   : > { %v26608_v49 = vadd.f32 %v39613_v37, %v39615_v57  ;;  %v39781_v37 = vadd.f32 %v39749_v27, %v39540_v6  ;;  %v39785_v57 = vadd.f32 %v39751_v23, %v39540_v6  ;;  %v39801_v6 = vadd.f32 %v39775_v15, %v39543_v61 }
0x176f   : > { %v26452_v23 = vrot.slane %v26451_v12, 4  ;;  %v26603_v44 = vadd.f32 %v26602_v54, %v26601_v1  ;;  %v40688_v1 = vld [vmem:[#allocation93_spill] sm:$0xff] }
0x1770   : > { %v39633_v52 = vpop.xlane.xlu0 %26416  ;;  %40676 = vst [vmem:[#allocation131_spill] sm:$0xff] %v39781_v37  ;;  %40677 = vst [vmem:[#allocation132_spill] sm:$0xff] %v39785_v57  ;;  %v26609_v59 = vrot.slane %v26608_v49, 4 }
0x1771   : > { %v39631_v60 = vpop.xlane.xlu1 %26419  ;;  %40681 = vst [vmem:[#allocation136_spill] sm:$0xff] %v39801_v6 }
0x1772   : > { %v26465_v25 = vadd.f32 %v39631_v60, %v39633_v52 }
0x1774   : > { %v26566_v8 = vpop.xlane.xlu0 %26565  ;;  %v26466_v3 = vrot.slane %v26465_v25, 4 }
0x1775   : > { %v26569_v9 = vpop.xlane.xlu1 %26568 }
0x1776   : > { %v26615_v52 = vadd.f32 %v26569_v9, %v26566_v8  ;;  %v26596_v9 = vadd.f32 %v26595_v19, %v26594_v56  ;;  %v26460_v8 = vadd.f32 %v26459_v16, %v26458_v31  ;;  %v26610_v19 = vadd.f32 %v26609_v59, %v26608_v49  ;;  %v39817_v31 = vld [vmem:[#allocation2 + $0xf8] sm:$0xff] }
0x1777   : > { %40685 = vst [vmem:[#allocation138_spill] sm:$0xff] %v39817_v31  ;;  %v26604_v16 = vrot.slane %v26603_v44, 2 }
0x1778   : > { %v26423_v2 = vpop.xlane.xlu0 %26422  ;;  %v26616_v39 = vrot.slane %v26615_v52, 4  ;;  %v26597_v4 = vrot.slane %v26596_v9, 2  ;;  %v26461_v54 = vrot.slane %v26460_v8, 2  ;;  %v26611_v36 = vrot.slane %v26610_v19, 2 }
0x1779   : > { %v26426_v62 = vpop.xlane.xlu1 %26425 }
0x177a   : > { %v26472_v60 = vadd.f32 %v26426_v62, %v26423_v2  ;;  %v26453_v62 = vadd.f32 %v26452_v23, %v26451_v12  ;;  %v39827_v23 = vld [vmem:[#allocation2 + $0x68] sm:$0xff] }
0x177b   : > { %40689 = vst [vmem:[#allocation139_spill] sm:$0xff] %v39827_v23  ;;  %v39833_v12 = vld [vmem:[#allocation2 + $0xe8] sm:$0xff] }
0x177c   : > { %v26572_v7 = vpop.xlane.xlu0 %26571  ;;  %v26473_v27 = vrot.slane %v26472_v60, 4  ;;  %40690 = vst [vmem:[#allocation140_spill] sm:$0xff] %v39833_v12  ;;  %v26454_v57 = vrot.slane %v26453_v62, 2 }
0x177d   : > { %v26575_v55 = vpop.xlane.xlu1 %26574 }
0x177e   : > { %v26622_v46 = vadd.f32 %v26575_v55, %v26572_v7  ;;  %v39815_v7 = vld [vmem:[#allocation2 + $0x78] sm:$0xff]  ;;  %v26474_v49 = vadd.f32 %v26473_v27, %v26472_v60  ;;  %v26605_v55 = vadd.f32 %v26604_v16, %v26603_v44  ;;  %v39839_v27 = vadd.f32 %v39827_v23, %v40692_v21 }
0x177f   : > { %40684 = vst [vmem:[#allocation137_spill] sm:$0xff] %v39815_v7  ;;  %v39825_v59 = vadd.f32 %v39815_v7, %v40688_v1  ;;  %v40693_v44 = vld [vmem:[#allocation90_spill] sm:$0xff]  ;;  %v26455_v16 = vadd.f32 %v26454_v57, %v26453_v62 }
0x1780   : > { %v26429_v50 = vpop.xlane.xlu0 %26428  ;;  %v26623_v56 = vrot.slane %v26622_v46, 4  ;;  %v26475_v38 = vrot.slane %v26474_v49, 2  ;;  %v26606_v23 = vrot.slane %v26605_v55, 1 }
0x1781   : > { %v26432_v34 = vpop.xlane.xlu1 %26431  ;;  %v26456_v57 = vrot.slane %v26455_v16, 1 }
0x1782   : > { %v26479_v2 = vadd.f32 %v26432_v34, %v26429_v50  ;;  %v26467_v34 = vadd.f32 %v26466_v3, %v26465_v25  ;;  %v26617_v3 = vadd.f32 %v26616_v39, %v26615_v52  ;;  %v39831_v25 = vadd.f32 %v39817_v31, %v40688_v1 }
0x1783   : > { %v26624_v6 = vadd.f32 %v26623_v56, %v26622_v46  ;;  %v26598_v39 = vadd.f32 %v26597_v4, %v26596_v9  ;;  %v26462_v52 = vadd.f32 %v26461_v54, %v26460_v8  ;;  %v39843_v1 = vadd.f32 %v39833_v12, %v40692_v21 }
0x1784   : > { %v26480_v50 = vrot.slane %v26479_v2, 4  ;;  %v26578_v15 = vpop.xlane.xlu0 %26577  ;;  %v26468_v22 = vrot.slane %v26467_v34, 2  ;;  %v26618_v31 = vrot.slane %v26617_v3, 2  ;;  %v26612_v56 = vadd.f32 %v26611_v36, %v26610_v19 }
0x1785   : > { %v26581_v61 = vpop.xlane.xlu1 %26580  ;;  %v26625_v9 = vrot.slane %v26624_v6, 2  ;;  %v26599_v54 = vrot.slane %v26598_v39, 1  ;;  %v26463_v21 = vrot.slane %v26462_v52, 1 }
0x1786   : > { %v26629_v0 = vadd.f32 %v26581_v61, %v26578_v15  ;;  %v39835_v15 = vld [vmem:[#allocation2 + $0x60] sm:$0xff]  ;;  %v26481_v7 = vadd.f32 %v26480_v50, %v26479_v2  ;;  %v26469_v4 = vadd.f32 %v26468_v22, %v26467_v34  ;;  %v26613_v36 = vrot.slane %v26612_v56, 1 }
0x1787   : > { %40691 = vst [vmem:[#allocation141_spill] sm:$0xff] %v39835_v15  ;;  %v39847_v46 = vadd.f32 %v39835_v15, %v40693_v44  ;;  %v39849_v2 = vld [vmem:[#allocation2 + $0xe0] sm:$0xff]  ;;  %v26476_v15 = vadd.f32 %v26475_v38, %v26474_v49  ;;  %v26607_v22 = vadd.f32 %v26606_v23, %v26605_v55  ;;  %v26626_v37 = vadd.f32 %v26625_v9, %v26624_v6 }
0x1788   : > { %v26630_v61 = vrot.slane %v26629_v0, 4  ;;  %v26435_v10 = vpop.xlane.xlu0 %26434  ;;  %40694 = vst [vmem:[#allocation142_spill] sm:$0xff] %v39849_v2  ;;  %v26470_v34 = vrot.slane %v26469_v4, 1  ;;  %v26600_v32 = vadd.f32 %v26599_v54, %v26598_v39  ;;  %v26457_v38 = vadd.f32 %v26456_v57, %v26455_v16  ;;  %v40695_v16 = vld [vmem:[#allocation94_spill] sm:$0xff] }
0x1789   : > { %v26438_v26 = vpop.xlane.xlu1 %26437  ;;  %v26627_v6 = vrot.slane %v26626_v37, 1 }
0x178a   : > { %v26486_v60 = vadd.f32 %v26438_v26, %v26435_v10  ;;  %v26631_v63 = vadd.f32 %v26630_v61, %v26629_v0  ;;  %v26482_v26 = vrot.slane %v26481_v7, 2  ;;  %v39853_v0 = vadd.f32 %v39849_v2, %v40693_v44 }
0x178b   : > { %v26619_v61 = vadd.f32 %v26618_v31, %v26617_v3  ;;  %v26477_v44 = vrot.slane %v26476_v15, 1  ;;  %v26614_v3 = vadd.f32 %v26613_v36, %v26612_v56  ;;  %v26650_v55 = vadd.f32 %v26607_v22, %v26600_v32 }
0x178c   : > { %v26487_v50 = vrot.slane %v26486_v60, 4  ;;  %v26584_v8 = vpop.xlane.xlu0 %26583  ;;  %v26632_v20 = vrot.slane %v26631_v63, 2  ;;  %v26483_v11 = vadd.f32 %v26482_v26, %v26481_v7  ;;  %v26471_v23 = vadd.f32 %v26470_v34, %v26469_v4 }
0x178d   : > { %v26587_v10 = vpop.xlane.xlu1 %26586  ;;  %v39861_v56 = vadd.f32 %v39855_v42, %v40695_v16  ;;  %v26651_v32 = vadd.f32 %v26650_v55, %v26614_v3  ;;  %v26628_v36 = vadd.f32 %v26627_v6, %v26626_v37  ;;  %v40697_v55 = vld [vmem:[#allocation71_spill] sm:$0xff] }
0x178e   : > { %v26488_v12 = vadd.f32 %v26487_v50, %v26486_v60  ;;  %v26636_v5 = vadd.f32 %v26587_v10, %v26584_v8  ;;  %v26464_v60 = vadd.f32 %v26463_v21, %v26462_v52  ;;  %v26620_v8 = vrot.slane %v26619_v61, 1 }
0x178f   : > { %v26633_v2 = vadd.f32 %v26632_v20, %v26631_v63  ;;  %v26484_v7 = vrot.slane %v26483_v11, 1  ;;  %v26478_v63 = vadd.f32 %v26477_v44, %v26476_v15 }
0x1790   : > { %v26489_v62 = vrot.slane %v26488_v12, 2  ;;  %v26637_v19 = vrot.slane %v26636_v5, 4  ;;  %v26441_v45 = vpop.xlane.xlu0 %26440  ;;  %v26507_v39 = vadd.f32 %v26464_v60, %v26457_v38  ;;  %v26621_v20 = vadd.f32 %v26620_v8, %v26619_v61  ;;  %v40696_v38 = vld [vmem:[#allocation57_spill] sm:$0xff] }
0x1791   : > { %v26444_v30 = vpop.xlane.xlu1 %26443  ;;  %v26194_v3 = vsub.f32 %v39825_v59, %v40696_v38  ;;  %v40707_v38 = vsub.f32 %v39641_v13, %v40590_v47  ;;  %v40711_v47 = vsub.f32 %v39701_v33, %v40601_v35  ;;  %v40721_v35 = vld [vmem:[#allocation131_spill] sm:$0xff] }
0x1792   : > { %v26638_v50 = vadd.f32 %v26637_v19, %v26636_v5  ;;  %v26493_v10 = vadd.f32 %v26444_v30, %v26441_v45  ;;  %v26490_v31 = vadd.f32 %v26489_v62, %v26488_v12  ;;  %v39857_v45 = vld [vmem:[#allocation2 + $0xf0] sm:$0xff]  ;;  %v26634_v12 = vrot.slane %v26633_v2, 1  ;;  %v40722_v33 = vld [vmem:[#allocation51_spill] sm:$0xff] }
0x1793   : > { %v26508_v57 = vadd.f32 %v26507_v39, %v26471_v23  ;;  %v26485_v62 = vadd.f32 %v26484_v7, %v26483_v11  ;;  %v39865_v34 = vadd.f32 %v39857_v45, %v40695_v16  ;;  %v26652_v60 = vadd.f32 %v26651_v32, %v26621_v20  ;;  %v40701_v32 = vld [vmem:[#allocation69_spill] sm:$0xff] }
0x1794   : > { %v26639_v49 = vrot.slane %v26638_v50, 2  ;;  %v26494_v48 = vrot.slane %v26493_v10, 4  ;;  %v26590_v26 = vpop.xlane.xlu0 %26589  ;;  %v26491_v52 = vrot.slane %v26490_v31, 1  ;;  %v26306_v23 = vsub.f32 %v39831_v25, %v40697_v55  ;;  %v40781_v25 = vld [vmem:[#allocation116_spill] sm:$0xff] }
0x1795   : > { %v26593_v9 = vpop.xlane.xlu1 %26592  ;;  %v26653_v6 = vadd.f32 %v26652_v60, %v26628_v36 }
0x1796   : > { %v26640_v21 = vadd.f32 %v26639_v49, %v26638_v50  ;;  %v26495_v5 = vadd.f32 %v26494_v48, %v26493_v10  ;;  %v26643_v30 = vadd.f32 %v26593_v9, %v26590_v26  ;;  %v26509_v50 = vadd.f32 %v26508_v57, %v26478_v63  ;;  %v40698_v26 = vld [vmem:[#allocation52_spill] sm:$0xff]  ;;  %v40700_v63 = vld [vmem:[#allocation54_spill] sm:$0xff] }
0x1797   : > { %v26635_v10 = vadd.f32 %v26634_v12, %v26633_v2  ;;  %v26492_v8 = vadd.f32 %v26491_v52, %v26490_v31  ;;  %v26192_v39 = vsub.f32 %v39839_v27, %v40698_v26  ;;  %v40699_v2 = vld [vmem:[#allocation70_spill] sm:$0xff]  ;;  %v26191_v59 = vsub.f32 %v39847_v46, %v40700_v63  ;;  %v40703_v27 = vld [vmem:[#allocation72_spill] sm:$0xff]  ;;  %v40716_v26 = vld [vmem:[#allocation73_spill] sm:$0xff] }
0x1798   : > { %v26496_v4 = vrot.slane %v26495_v5, 2  ;;  %v26644_v54 = vrot.slane %v26643_v30, 4  ;;  %v26641_v19 = vrot.slane %v26640_v21, 1  ;;  %v26447_v48 = vpop.xlane.xlu0 %26446  ;;  %v26510_v7 = vadd.f32 %v26509_v50, %v26485_v62 }
0x1799   : > { %v26450_v22 = vpop.xlane.xlu1 %26449  ;;  %v26304_v31 = vsub.f32 %v39843_v1, %v40699_v2  ;;  %v26654_v12 = vadd.f32 %v26653_v6, %v26635_v10  ;;  %v26305_v62 = vsub.f32 %v39865_v34, %v40703_v27  ;;  %v40706_v10 = vsub.f32 %v39677_v43, %v40594_v18  ;;  %v40778_v2 = vld [vmem:[#allocation100_spill] sm:$0xff] }
0x179a   : > { %v26497_v15 = vadd.f32 %v26496_v4, %v26495_v5  ;;  %v26645_v44 = vadd.f32 %v26644_v54, %v26643_v30  ;;  %v26500_v61 = vadd.f32 %v26450_v22, %v26447_v48  ;;  %v26642_v9 = vadd.f32 %v26641_v19, %v26640_v21  ;;  %v40702_v54 = vld [vmem:[#allocation58_spill] sm:$0xff]  ;;  %v40779_v34 = vld [vmem:[#allocation112_spill] sm:$0xff] }
0x179b   : > { %v26511_v52 = vadd.f32 %v26510_v7, %v26492_v8  ;;  %v26303_v4 = vsub.f32 %v39853_v0, %v40701_v32  ;;  %v26193_v21 = vsub.f32 %v39861_v56, %v40702_v54  ;;  %v40705_v56 = vsub.f32 %v39625_v17, %v40587_v40  ;;  %v40776_v0 = vld [vmem:[#allocation98_spill] sm:$0xff] }
0x179c   : > { %v26498_v49 = vrot.slane %v26497_v15, 1  ;;  %v26646_v37 = vrot.slane %v26645_v44, 2  ;;  %v26501_v11 = vrot.slane %v26500_v61, 4  ;;  %v26655_v19 = vadd.f32 %v26654_v12, %v26642_v9  ;;  %v40715_v9 = vld [vmem:[#allocation127_spill] sm:$0xff] }
0x179d   : > { %v40709_v40 = vsub.f32 %v39693_v29, %v40600_v53  ;;  %v40710_v18 = vsub.f32 %v39721_v41, %v40604_v28  ;;  %v40717_v53 = vsub.f32 %v40715_v9, %v40716_v26  ;;  %v40723_v12 = vsub.f32 %v40721_v35, %v40722_v33  ;;  %v40733_v9 = vld [vmem:[#allocation121_spill] sm:$0xff] }
0x179e   : > { %v26499_v5 = vadd.f32 %v26498_v49, %v26497_v15  ;;  %v26647_v30 = vadd.f32 %v26646_v37, %v26645_v44  ;;  %v26502_v20 = vadd.f32 %v26501_v11, %v26500_v61  ;;  %v40704_v61 = vsub.f32 %v39661_v58, %v40591_v24  ;;  %v40736_v33 = vld [vmem:[#allocation141_spill] sm:$0xff] }
0x179f   : > { %v40708_v24 = vsub.f32 %v39709_v51, %v40603_v14  ;;  %v40712_v14 = vld [vmem:[#allocation133_spill] sm:$0xff]  ;;  %v40713_v51 = vld [vmem:[#allocation74_spill] sm:$0xff] }
0x17a0   : > { %v26648_v57 = vrot.slane %v26647_v30, 1  ;;  %v26503_v36 = vrot.slane %v26502_v20, 2  ;;  %v26512_v22 = vadd.f32 %v26511_v52, %v26499_v5  ;;  %v39883_v48 = vpop.permute.xlu0 %26079  ;;  %v40714_v6 = vsub.f32 %v40712_v14, %v40713_v51  ;;  %v40718_v5 = vld [vmem:[#allocation135_spill] sm:$0xff]  ;;  %v40732_v51 = vld [vmem:[#allocation125_spill] sm:$0xff] }
0x17a1   : > { %v39886_v46 = vsub.f32 1.0, %v39883_v48  ;;  %v26195_v60 = vmul.f32 %v40704_v61, %v39883_v48  ;;  %v26196_v50 = vmul.f32 %v40705_v56, %v39883_v48  ;;  %v26197_v8 = vmul.f32 %v40706_v10, %v39883_v48  ;;  %v40725_v10 = vld [vmem:[#allocation97_spill] sm:$0xff] }
0x17a2   : > { %v26649_v15 = vadd.f32 %v26648_v57, %v26647_v30  ;;  %v26504_v44 = vadd.f32 %v26503_v36, %v26502_v20  ;;  %v26198_v49 = vmul.f32 %v40707_v38, %v39883_v48  ;;  %v26199_v58 = vmul.f32 %v40708_v24, %v39883_v48  ;;  %v40719_v30 = vld [vmem:[#allocation53_spill] sm:$0xff]  ;;  %v40726_v38 = vld [vmem:[#allocation104_spill] sm:$0xff] }
0x17a3   : > { %v26200_v17 = vmul.f32 %v40709_v40, %v39883_v48  ;;  %v26201_v43 = vmul.f32 %v40710_v18, %v39883_v48  ;;  %v26202_v13 = vmul.f32 %v40711_v47, %v39883_v48  ;;  %v26203_v7 = vmul.f32 %v40714_v6, %v39883_v48  ;;  %v40730_v18 = vld [vmem:[#allocation115_spill] sm:$0xff] }
0x17a4   : > { %v26656_v37 = vadd.f32 %v26655_v19, %v26649_v15  ;;  %v26505_v11 = vrot.slane %v26504_v44, 1  ;;  %v26204_v29 = vmul.f32 %v40717_v53, %v39883_v48  ;;  %v40720_v41 = vsub.f32 %v40718_v5, %v40719_v30  ;;  %v40724_v15 = vld [vmem:[#allocation101_spill] sm:$0xff] }
0x17a5   : > { %v26206_v52 = vmul.f32 %v40723_v12, %v39883_v48  ;;  %v26207_v54 = vmul.f32 %v26191_v59, %v39883_v48  ;;  %v26208_v57 = vmul.f32 %v26192_v39, %v39883_v48  ;;  %v26209_v36 = vmul.f32 %v26193_v21, %v39883_v48  ;;  %v26659_v59 = vld [vmem:[#allocation3] sm:$0x1]  ;;  %v40728_v39 = vld [vmem:[#allocation111_spill] sm:$0xff]  ;;  %v40734_v53 = vld [vmem:[#allocation129_spill] sm:$0xff] }
0x17a6   : > { %v26205_v28 = vmul.f32 %v40720_v41, %v39883_v48  ;;  %v26657_v20 = vmul.f32 1e-06, %v26656_v37  ;;  %v26506_v63 = vadd.f32 %v26505_v11, %v26504_v44  ;;  %v26210_v19 = vmul.f32 %v26194_v3, %v39883_v48  ;;  %v40727_v37 = vld [vmem:[#allocation99_spill] sm:$0xff]  ;;  %v40729_v21 = vld [vmem:[#allocation106_spill] sm:$0xff] }
0x17a7   : > { %v26211_v61 = vmul.f32 %v40724_v15, %v39886_v46  ;;  %v26212_v44 = vmul.f32 %v40725_v10, %v39886_v46  ;;  %v26213_v24 = vmul.f32 %v40726_v38, %v39886_v46  ;;  %v26214_v11 = vmul.f32 %v40727_v37, %v39886_v46  ;;  %v40737_v15 = vld [vmem:[#allocation139_spill] sm:$0xff]  ;;  %v40738_v38 = vld [vmem:[#allocation137_spill] sm:$0xff] }
0x17a8   : > { %v26513_v56 = vadd.f32 %v26512_v22, %v26506_v63  ;;  %v26215_v40 = vmul.f32 %v40728_v39, %v39886_v46  ;;  %v26216_v3 = vmul.f32 %v40729_v21, %v39886_v46  ;;  %v26217_v47 = vmul.f32 %v40730_v18, %v39886_v46  ;;  %v40731_v22 = vld [vmem:[#allocation108_spill] sm:$0xff]  ;;  %v40735_v63 = vld [vmem:[#allocation123_spill] sm:$0xff] }
0x17a9   : > { %v26218_v14 = vmul.f32 %v40731_v22, %v39886_v46  ;;  %v26219_v6 = vmul.f32 %v40732_v51, %v39886_v46  ;;  %v26220_v26 = vmul.f32 %v40733_v9, %v39886_v46  ;;  %v26221_v5 = vmul.f32 %v40734_v53, %v39886_v46 }
0x17aa   : > { %vm26658_vm0 = vcmp.lt.f32.partialorder %v26513_v56, %v26657_v20  ;;  %v34587_v30 = vmov 1.0   ;;  %v26222_v35 = vmul.f32 %v40735_v63, %v39886_v46  ;;  %v26223_v12 = vmul.f32 %v40736_v33, %v39886_v46 }
0x17ab   : > { %v26660_v41 = vsel %vm26658_vm0, 0.0, %v34587_v30  ;;  %v26224_v20 = vmul.f32 %v40737_v15, %v39886_v46  ;;  %v26225_v10 = vmul.f32 %v39855_v42, %v39886_v46  ;;  %v26226_v37 = vmul.f32 %v40738_v38, %v39886_v46 }
0x17ac   : > { %v26661_v56 = vmul.f32 %v26660_v41, %v26659_v59  ;;  %v26227_v39 = vadd.f32 %v26211_v61, %v26195_v60  ;;  %v26228_v21 = vadd.f32 %v26212_v44, %v26196_v50  ;;  %v26229_v18 = vadd.f32 %v26213_v24, %v26197_v8  ;;  %v40749_v61 = vld [vmem:[#allocation61_spill] sm:$0xff] }
0x17ad   : > { %v26230_v22 = vadd.f32 %v26214_v11, %v26198_v49  ;;  %v26231_v51 = vadd.f32 %v26215_v40, %v26199_v58  ;;  %v26232_v9 = vadd.f32 %v26216_v3, %v26200_v17  ;;  %v26233_v53 = vadd.f32 %v26217_v47, %v26201_v43  ;;  %v40739_v49 = vld [vmem:[#allocation113_spill] sm:$0xff]  ;;  %v40740_v58 = vld [vmem:[#allocation62_spill] sm:$0xff]  ;;  %v40751_v11 = vld [vmem:[#allocation119_spill] sm:$0xff] }
0x17ae   : > { %26663 = vst.msk [vmem:[#allocation3] sm:$0x1] %vm26662_vm10, %v26661_v56  ;;  %v26234_v30 = vadd.f32 %v26218_v14, %v26202_v13  ;;  %v26235_v63 = vadd.f32 %v26219_v6, %v26203_v7  ;;  %v26236_v59 = vadd.f32 %v26220_v26, %v26204_v29  ;;  %v26237_v41 = vadd.f32 %v26221_v5, %v26205_v28  ;;  %v40742_v13 = vld [vmem:[#allocation102_spill] sm:$0xff]  ;;  %v40743_v7 = vld [vmem:[#allocation56_spill] sm:$0xff]  ;;  %v40754_v14 = vld [vmem:[#allocation117_spill] sm:$0xff] }
0x17af   : > { %26243 = vst.msk [vmem:[#allocation2] sm:$0xff] %vm1146_vm2, %v26227_v39  ;;  %v26238_v33 = vadd.f32 %v26222_v35, %v26206_v52  ;;  %v26239_v42 = vadd.f32 %v26223_v12, %v26207_v54  ;;  %26244 = vst.msk [vmem:[#allocation2 + $0x8] sm:$0xff] %vm1146_vm2, %v26228_v21  ;;  %v26240_v60 = vadd.f32 %v26224_v20, %v26208_v57  ;;  %v40745_v52 = vld [vmem:[#allocation114_spill] sm:$0xff]  ;;  %v40746_v54 = vld [vmem:[#allocation59_spill] sm:$0xff] }
0x17b0   : > { %26245 = vst.msk [vmem:[#allocation2 + $0x10] sm:$0xff] %vm1146_vm2, %v26229_v18  ;;  %26246 = vst.msk [vmem:[#allocation2 + $0x18] sm:$0xff] %vm1146_vm2, %v26230_v22  ;;  %v26241_v50 = vadd.f32 %v26225_v10, %v26209_v36  ;;  %v26242_v8 = vadd.f32 %v26226_v37, %v26210_v19  ;;  %v40741_v17 = vsub.f32 %v40739_v49, %v40740_v58  ;;  %v40748_v19 = vld [vmem:[#allocation109_spill] sm:$0xff]  ;;  %v40752_v40 = vld [vmem:[#allocation50_spill] sm:$0xff] }
0x17b1   : > { %26247 = vst.msk [vmem:[#allocation2 + $0x20] sm:$0xff] %vm1146_vm2, %v26231_v51  ;;  %26248 = vst.msk [vmem:[#allocation2 + $0x28] sm:$0xff] %vm1146_vm2, %v26232_v9  ;;  %v40744_v29 = vsub.f32 %v40742_v13, %v40743_v7  ;;  %v40747_v57 = vsub.f32 %v40745_v52, %v40746_v54  ;;  %v40750_v44 = vsub.f32 %v40748_v19, %v40749_v61  ;;  %v40755_v6 = vld [vmem:[#allocation64_spill] sm:$0xff]  ;;  %v40758_v12 = vld [vmem:[#allocation75_spill] sm:$0xff] }
0x17b2   : > { %26249 = vst.msk [vmem:[#allocation2 + $0x30] sm:$0xff] %vm1146_vm2, %v26233_v53  ;;  %26250 = vst.msk [vmem:[#allocation2 + $0x38] sm:$0xff] %vm1146_vm2, %v26234_v30  ;;  %v26307_v43 = vmul.f32 %v40741_v17, %v39883_v48  ;;  %v40753_v3 = vsub.f32 %v40751_v11, %v40752_v40  ;;  %v40756_v26 = vsub.f32 %v40754_v14, %v40755_v6  ;;  %v40757_v35 = vld [vmem:[#allocation120_spill] sm:$0xff]  ;;  %v40760_v56 = vld [vmem:[#allocation118_spill] sm:$0xff] }
0x17b3   : > { %26251 = vst.msk [vmem:[#allocation2 + $0x40] sm:$0xff] %vm1146_vm2, %v26235_v63  ;;  %26252 = vst.msk [vmem:[#allocation2 + $0x48] sm:$0xff] %vm1146_vm2, %v26236_v59  ;;  %v26308_v28 = vmul.f32 %v40744_v29, %v39883_v48  ;;  %v26309_v36 = vmul.f32 %v40747_v57, %v39883_v48  ;;  %v26310_v24 = vmul.f32 %v40750_v44, %v39883_v48  ;;  %v40761_v10 = vld [vmem:[#allocation49_spill] sm:$0xff]  ;;  %v40763_v39 = vld [vmem:[#allocation134_spill] sm:$0xff] }
0x17b4   : > { %26253 = vst.msk [vmem:[#allocation2 + $0x50] sm:$0xff] %vm1146_vm2, %v26237_v41  ;;  %26254 = vst.msk [vmem:[#allocation2 + $0x58] sm:$0xff] %vm1146_vm2, %v26238_v33  ;;  %v26311_v47 = vmul.f32 %v40753_v3, %v39883_v48  ;;  %v26312_v5 = vmul.f32 %v40756_v26, %v39883_v48  ;;  %v40759_v15 = vsub.f32 %v40757_v35, %v40758_v12  ;;  %v40764_v21 = vld [vmem:[#allocation68_spill] sm:$0xff]  ;;  %v40767_v9 = vld [vmem:[#allocation55_spill] sm:$0xff] }
0x17b5   : > { %26255 = vst.msk [vmem:[#allocation2 + $0x60] sm:$0xff] %vm1146_vm2, %v26239_v42  ;;  %26256 = vst.msk [vmem:[#allocation2 + $0x68] sm:$0xff] %vm1146_vm2, %v26240_v60  ;;  %v40762_v38 = vsub.f32 %v40760_v56, %v40761_v10  ;;  %v40765_v18 = vsub.f32 %v40763_v39, %v40764_v21  ;;  %v40766_v51 = vld [vmem:[#allocation128_spill] sm:$0xff]  ;;  %v40770_v59 = vld [vmem:[#allocation66_spill] sm:$0xff]  ;;  %v26319_v49 = vmul.f32 %v26303_v4, %v39883_v48 }
0x17b6   : > { %26257 = vst.msk [vmem:[#allocation2 + $0x70] sm:$0xff] %vm1146_vm2, %v26241_v50  ;;  %26258 = vst.msk [vmem:[#allocation2 + $0x78] sm:$0xff] %vm1146_vm2, %v26242_v8  ;;  %v26313_v20 = vmul.f32 %v40759_v15, %v39883_v48  ;;  %v40768_v53 = vsub.f32 %v40766_v51, %v40767_v9  ;;  %v40769_v63 = vld [vmem:[#allocation136_spill] sm:$0xff]  ;;  %v40773_v60 = vld [vmem:[#allocation65_spill] sm:$0xff]  ;;  %v26320_v58 = vmul.f32 %v26304_v31, %v39883_v48 }
0x17b7   : > { %v26314_v37 = vmul.f32 %v40762_v38, %v39883_v48  ;;  %v26315_v22 = vmul.f32 %v40765_v18, %v39883_v48  ;;  %v40771_v41 = vsub.f32 %v40769_v63, %v40770_v59  ;;  %v40772_v42 = vld [vmem:[#allocation132_spill] sm:$0xff]  ;;  %v26321_v17 = vmul.f32 %v26305_v62, %v39883_v48  ;;  %v40775_v7 = vld [vmem:[#allocation103_spill] sm:$0xff]  ;;  %v40777_v4 = vld [vmem:[#allocation105_spill] sm:$0xff] }
0x17b8   : > { %v26316_v30 = vmul.f32 %v40768_v53, %v39883_v48  ;;  %v40774_v50 = vsub.f32 %v40772_v42, %v40773_v60  ;;  %v26322_v13 = vmul.f32 %v26306_v23, %v39883_v48  ;;  %v26323_v29 = vmul.f32 %v40775_v7, %v39886_v46  ;;  %v40780_v62 = vld [vmem:[#allocation107_spill] sm:$0xff]  ;;  %v40782_v23 = vld [vmem:[#allocation110_spill] sm:$0xff]  ;;  %v40786_v3 = vld [vmem:[#allocation124_spill] sm:$0xff] }
0x17b9   : > { %v26317_v33 = vmul.f32 %v40771_v41, %v39883_v48  ;;  %v26324_v32 = vmul.f32 %v40776_v0, %v39886_v46  ;;  %v26325_v1 = vmul.f32 %v40777_v4, %v39886_v46  ;;  %v26326_v31 = vmul.f32 %v40778_v2, %v39886_v46  ;;  %v40783_v57 = vld [vmem:[#allocation126_spill] sm:$0xff]  ;;  %v40788_v35 = vld [vmem:[#allocation140_spill] sm:$0xff]  ;;  %v40797_v7 = vld [vmem:[#allocation79_spill] sm:$0xff] }
0x17ba   : > { %v26318_v8 = vmul.f32 %v40774_v50, %v39883_v48  ;;  %v26327_v27 = vmul.f32 %v40779_v34, %v39886_v46  ;;  %v26328_v52 = vmul.f32 %v40780_v62, %v39886_v46  ;;  %v26329_v55 = vmul.f32 %v40781_v25, %v39886_v46  ;;  %v40784_v61 = vld [vmem:[#allocation122_spill] sm:$0xff]  ;;  %v40799_v4 = vld [vmem:[#allocation81_spill] sm:$0xff] }
0x17bb   : > { %v26330_v54 = vmul.f32 %v40782_v23, %v39886_v46  ;;  %v26331_v19 = vmul.f32 %v40783_v57, %v39886_v46  ;;  %v26332_v44 = vmul.f32 %v40784_v61, %v39886_v46  ;;  %v40785_v11 = vld [vmem:[#allocation130_spill] sm:$0xff]  ;;  %v26334_v14 = vmul.f32 %v40786_v3, %v39886_v46  ;;  %v40801_v34 = vld [vmem:[#allocation85_spill] sm:$0xff] }
0x17bc   : > { %v26333_v40 = vmul.f32 %v40785_v11, %v39886_v46  ;;  %v40787_v6 = vld [vmem:[#allocation142_spill] sm:$0xff]  ;;  %v26336_v12 = vmul.f32 %v40788_v35, %v39886_v46  ;;  %v26337_v15 = vmul.f32 %v39857_v45, %v39886_v46  ;;  %v26339_v38 = vadd.f32 %v26323_v29, %v26307_v43  ;;  %v40803_v25 = vld [vmem:[#allocation89_spill] sm:$0xff] }
0x17bd   : > { %v26335_v26 = vmul.f32 %v40787_v6, %v39886_v46  ;;  %v40789_v56 = vld [vmem:[#allocation138_spill] sm:$0xff]  ;;  %v26340_v39 = vadd.f32 %v26324_v32, %v26308_v28  ;;  %v26341_v21 = vadd.f32 %v26325_v1, %v26309_v36  ;;  %v26342_v18 = vadd.f32 %v26326_v31, %v26310_v24  ;;  %v40790_v36 = vld [vmem:[#allocation76_spill] sm:$0xff] }
0x17be   : > { %v26338_v10 = vmul.f32 %v40789_v56, %v39886_v46  ;;  %v26343_v51 = vadd.f32 %v26327_v27, %v26311_v47  ;;  %v26344_v9 = vadd.f32 %v26328_v52, %v26312_v5  ;;  %v26345_v53 = vadd.f32 %v26329_v55, %v26313_v20  ;;  %26355 = vst.msk [vmem:[#allocation2 + $0x80] sm:$0xff] %vm1146_vm2, %v26339_v38  ;;  %v40791_v47 = vld [vmem:[#allocation60_spill] sm:$0xff]  ;;  %v40792_v20 = vld [vmem:[#allocation67_spill] sm:$0xff]  ;;  %v40798_v0 = vld [vmem:[#allocation82_spill] sm:$0xff] }
0x17bf   : > { %v26346_v63 = vadd.f32 %v26330_v54, %v26314_v37  ;;  %v26347_v59 = vadd.f32 %v26331_v19, %v26315_v22  ;;  %v26348_v41 = vadd.f32 %v26332_v44, %v26316_v30  ;;  %v26349_v42 = vadd.f32 %v26333_v40, %v26317_v33  ;;  %26356 = vst.msk [vmem:[#allocation2 + $0x88] sm:$0xff] %vm1146_vm2, %v26340_v39  ;;  %v40793_v22 = vld [vmem:[#allocation63_spill] sm:$0xff]  ;;  %v40794_v33 = vld [vmem:[#allocation78_spill] sm:$0xff]  ;;  %v40804_v54 = vld [vmem:[#allocation93_spill] sm:$0xff] }
0x17c0   : > { %v26350_v60 = vadd.f32 %v26334_v14, %v26318_v8  ;;  %v26351_v50 = vadd.f32 %v26335_v26, %v26319_v49  ;;  %26357 = vst.msk [vmem:[#allocation2 + $0x90] sm:$0xff] %vm1146_vm2, %v26341_v21  ;;  %26358 = vst.msk [vmem:[#allocation2 + $0x98] sm:$0xff] %vm1146_vm2, %v26342_v18  ;;  %v26352_v45 = vadd.f32 %v26336_v12, %v26320_v58  ;;  %v40795_v49 = vld [vmem:[#allocation77_spill] sm:$0xff]  ;;  %v40800_v2 = vld [vmem:[#allocation86_spill] sm:$0xff] }
0x17c1   : > { %26359 = vst.msk [vmem:[#allocation2 + $0xa0] sm:$0xff] %vm1146_vm2, %v26343_v51  ;;  %v26353_v43 = vadd.f32 %v26337_v15, %v26321_v17  ;;  %v26354_v28 = vadd.f32 %v26338_v10, %v26322_v13  ;;  %26360 = vst.msk [vmem:[#allocation2 + $0xa8] sm:$0xff] %vm1146_vm2, %v26344_v9  ;;  %v26082_v24 = vmul.f32 %v39883_v48, %v40790_v36  ;;  %v40796_v17 = vld [vmem:[#allocation80_spill] sm:$0xff]  ;;  %v40802_v62 = vld [vmem:[#allocation90_spill] sm:$0xff] }
0x17c2   : > { %26361 = vst.msk [vmem:[#allocation2 + $0xb0] sm:$0xff] %vm1146_vm2, %v26345_v53  ;;  %26362 = vst.msk [vmem:[#allocation2 + $0xb8] sm:$0xff] %vm1146_vm2, %v26346_v63  ;;  %v26083_v5 = vmul.f32 %v39883_v48, %v40791_v47  ;;  %v26084_v37 = vmul.f32 %v39883_v48, %v40792_v20  ;;  %v26085_v30 = vmul.f32 %v39883_v48, %v40793_v22  ;;  %v33941_v19 = vld [vmem:[#allocation35] sm:$0xff]  ;;  %v33942_v44 = vld [vmem:[#allocation35 + $0x8] sm:$0xff] }
0x17c3   : > { %26363 = vst.msk [vmem:[#allocation2 + $0xc0] sm:$0xff] %vm1146_vm2, %v26347_v59  ;;  %26364 = vst.msk [vmem:[#allocation2 + $0xc8] sm:$0xff] %vm1146_vm2, %v26348_v41  ;;  %v26086_v8 = vmul.f32 %v39883_v48, %v40794_v33  ;;  %v26087_v58 = vmul.f32 %v39883_v48, %v40795_v49  ;;  %v26088_v13 = vmul.f32 %v39883_v48, %v40796_v17  ;;  %v33943_v40 = vld [vmem:[#allocation35 + $0x10] sm:$0xff]  ;;  %v33944_v14 = vld [vmem:[#allocation35 + $0x18] sm:$0xff] }
0x17c4   : > { %26365 = vst.msk [vmem:[#allocation2 + $0xd0] sm:$0xff] %vm1146_vm2, %v26349_v42  ;;  %26366 = vst.msk [vmem:[#allocation2 + $0xd8] sm:$0xff] %vm1146_vm2, %v26350_v60  ;;  %v26089_v29 = vmul.f32 %v39883_v48, %v40797_v7  ;;  %v26090_v32 = vmul.f32 %v39883_v48, %v40798_v0  ;;  %v26091_v1 = vmul.f32 %v39883_v48, %v40799_v4  ;;  %v33945_v26 = vld [vmem:[#allocation35 + $0x20] sm:$0xff]  ;;  %v33946_v12 = vld [vmem:[#allocation35 + $0x28] sm:$0xff] }
0x17c5   : > { %26367 = vst.msk [vmem:[#allocation2 + $0xe0] sm:$0xff] %vm1146_vm2, %v26351_v50  ;;  %26368 = vst.msk [vmem:[#allocation2 + $0xe8] sm:$0xff] %vm1146_vm2, %v26352_v45  ;;  %v26092_v31 = vmul.f32 %v39883_v48, %v40800_v2  ;;  %v26093_v27 = vmul.f32 %v39883_v48, %v40801_v34  ;;  %v26094_v52 = vmul.f32 %v39883_v48, %v40802_v62  ;;  %v33947_v15 = vld [vmem:[#allocation35 + $0x30] sm:$0xff]  ;;  %v33948_v56 = vld [vmem:[#allocation35 + $0x38] sm:$0xff] }
0x17c6   : > { %26369 = vst.msk [vmem:[#allocation2 + $0xf0] sm:$0xff] %vm1146_vm2, %v26353_v43  ;;  %26370 = vst.msk [vmem:[#allocation2 + $0xf8] sm:$0xff] %vm1146_vm2, %v26354_v28  ;;  %v26095_v55 = vmul.f32 %v39883_v48, %v40803_v25  ;;  %v26096_v23 = vmul.f32 %v39883_v48, %v40695_v16  ;;  %v26097_v57 = vmul.f32 %v39883_v48, %v40804_v54  ;;  %v40805_v38 = vld [vmem:[#allocation84_spill] sm:$0xff]  ;;  %v40806_v21 = vld [vmem:[#allocation83_spill] sm:$0xff] }
0x17c7   : > { %v26099_v61 = vmul.f32 %v33941_v19, %v39886_v46  ;;  %v26100_v11 = vmul.f32 %v33942_v44, %v39886_v46  ;;  %v26101_v3 = vmul.f32 %v33943_v40, %v39886_v46  ;;  %v26102_v6 = vmul.f32 %v33944_v14, %v39886_v46  ;;  %v40807_v51 = vld [vmem:[#allocation88_spill] sm:$0xff]  ;;  %v40808_v53 = vld [vmem:[#allocation87_spill] sm:$0xff] }
0x17c8   : > { %v26103_v35 = vmul.f32 %v33945_v26, %v39886_v46  ;;  %v26104_v16 = vmul.f32 %v33946_v12, %v39886_v46  ;;  %v26105_v48 = vmul.f32 %v33947_v15, %v39886_v46  ;;  %v26106_v10 = vmul.f32 %v33948_v56, %v39886_v46  ;;  %v40809_v59 = vld [vmem:[#allocation92_spill] sm:$0xff]  ;;  %v40810_v42 = vld [vmem:[#allocation91_spill] sm:$0xff] }
0x17c9   : > { %v26107_v39 = vmul.f32 %v39886_v46, %v40805_v38  ;;  %v26108_v18 = vmul.f32 %v39886_v46, %v40806_v21  ;;  %v26109_v9 = vmul.f32 %v39886_v46, %v40807_v51  ;;  %v26110_v63 = vmul.f32 %v39886_v46, %v40808_v53  ;;  %v40811_v50 = vld [vmem:[#allocation96_spill] sm:$0xff]  ;;  %v40812_v43 = vld [vmem:[#allocation95_spill] sm:$0xff] }
0x17ca   : > { %v26111_v41 = vmul.f32 %v39886_v46, %v40809_v59  ;;  %v26112_v60 = vmul.f32 %v39886_v46, %v40810_v42  ;;  %v26113_v45 = vmul.f32 %v39886_v46, %v40811_v50  ;;  %v26114_v28 = vmul.f32 %v39886_v46, %v40812_v43 }
0x17cb   : > { %v26115_v36 = vadd.f32 %v26099_v61, %v26082_v24  ;;  %v26116_v47 = vadd.f32 %v26100_v11, %v26083_v5  ;;  %v26117_v20 = vadd.f32 %v26101_v3, %v26084_v37  ;;  %v26118_v22 = vadd.f32 %v26102_v6, %v26085_v30 }
0x17cc   : > { %v26119_v33 = vadd.f32 %v26103_v35, %v26086_v8  ;;  %v26120_v49 = vadd.f32 %v26104_v16, %v26087_v58  ;;  %v26121_v17 = vadd.f32 %v26105_v48, %v26088_v13  ;;  %v26122_v7 = vadd.f32 %v26106_v10, %v26089_v29 }
0x17cd   : > { %v26123_v0 = vadd.f32 %v26107_v39, %v26090_v32  ;;  %26131 = vst.msk [vmem:[#allocation35] sm:$0xff] %vm1146_vm2, %v26115_v36  ;;  %v26124_v4 = vadd.f32 %v26108_v18, %v26091_v1  ;;  %v26125_v2 = vadd.f32 %v26109_v9, %v26092_v31  ;;  %v26126_v34 = vadd.f32 %v26110_v63, %v26093_v27 }
0x17ce   : > { %v26127_v62 = vadd.f32 %v26111_v41, %v26094_v52  ;;  %26132 = vst.msk [vmem:[#allocation35 + $0x8] sm:$0xff] %vm1146_vm2, %v26116_v47  ;;  %26133 = vst.msk [vmem:[#allocation35 + $0x10] sm:$0xff] %vm1146_vm2, %v26117_v20  ;;  %v26128_v46 = vadd.f32 %v26112_v60, %v26095_v55  ;;  %v26129_v24 = vadd.f32 %v26113_v45, %v26096_v23 }
0x17cf   : > { %26134 = vst.msk [vmem:[#allocation35 + $0x18] sm:$0xff] %vm1146_vm2, %v26118_v22  ;;  %26135 = vst.msk [vmem:[#allocation35 + $0x20] sm:$0xff] %vm1146_vm2, %v26119_v33  ;;  %v26130_v5 = vadd.f32 %v26114_v28, %v26097_v57 }
0x17d0   : > { %26136 = vst.msk [vmem:[#allocation35 + $0x28] sm:$0xff] %vm1146_vm2, %v26120_v49  ;;  %26137 = vst.msk [vmem:[#allocation35 + $0x30] sm:$0xff] %vm1146_vm2, %v26121_v17 }
0x17d1   : > { %26138 = vst.msk [vmem:[#allocation35 + $0x38] sm:$0xff] %vm1146_vm2, %v26122_v7  ;;  %26139 = vst.msk [vmem:[#allocation35 + $0x40] sm:$0xff] %vm1146_vm2, %v26123_v0 }
0x17d2   : > { %26140 = vst.msk [vmem:[#allocation35 + $0x48] sm:$0xff] %vm1146_vm2, %v26124_v4  ;;  %26141 = vst.msk [vmem:[#allocation35 + $0x50] sm:$0xff] %vm1146_vm2, %v26125_v2 }
0x17d3   : > { %26142 = vst.msk [vmem:[#allocation35 + $0x58] sm:$0xff] %vm1146_vm2, %v26126_v34  ;;  %26143 = vst.msk [vmem:[#allocation35 + $0x60] sm:$0xff] %vm1146_vm2, %v26127_v62 }
0x17d4   : > { %26144 = vst.msk [vmem:[#allocation35 + $0x68] sm:$0xff] %vm1146_vm2, %v26128_v46  ;;  %26145 = vst.msk [vmem:[#allocation35 + $0x70] sm:$0xff] %vm1146_vm2, %v26129_v24 }
0x17d5   : > { %26146 = vst.msk [vmem:[#allocation35 + $0x78] sm:$0xff] %vm1146_vm2, %v26130_v5 }
0x17d6   : > { %34494 = shalt.err (!%p34491_p8)
}
0x17d7   : > { %s40814_s12 = sld [smem:[#allocation159_spill]] }
0x17dd   : > { %s34495_s28 = scalar_lea.hbm %s40814_s12, 2048 }
0x17de   : > { %p34496_p4 = scmp.ne.s32.totalorder %s40814_s12, %s34495_s28  ;;  %p34501_p1 = scmp.lt.u32.totalorder %s34495_s28, %s40814_s12 }
0x17e0   : > { %p34497_p13 = pnand %p34496_p4, %p33898_p7 }
0x17e2   : > { %p34498_p0 = pneg %p34497_p13 }
0x17e4   : > { %p34503_p6 = pnand %p34501_p1, %p34498_p0 }
0x17e6   : > { %34506 = shalt.err (!%p34503_p6)
}
0x17e7   : > { %s34589_s10 = smov 128   ;;  %s34590_s18 = smov 8  }
0x17e8   : > { %33799 = dma.vmem_to_hbm [thread:$0]  (%p33898_p7), %s40167_s9, 2048, %s40814_s12, [#allocation7], %s34589_s10, %s34589_s10, %s34590_s18  }
0x17e9   : > { %34552 = dma.done.wait (%p33898_p7), [#allocation7], 2048  }
0x17ea   : > { %34554 = vsyncadd (%p33898_p7), [#allocation7], 4294965248 }
0x17eb PF: > { %s40815_s0 = sld [smem:[#allocation47_spill]] }
0x17f1   : > { %s48_s28 = sadd.s32 1, %s40815_s0  }
0x17f2   : > { %p45_p5 = scmp.ge.s32.totalorder %s48_s28, 12  }
0x17f4   :  { %47 = sbr.rel (!%p45_p5) target bundleno = 30 (0x1e), region = 231 }
0x17fb   :  { %26686 = vsyncpa [#allocation6], 1 }
0x17fc   :  { %26688 = vsyncpa [#allocation6 + $0x1], 1 }
0x17fd   :  { %26689 = vsyncpa [#allocation9], 1 }
0x17fe   :  { %26690 = vsyncpa [#allocation12], 1 }
0x17ff   :  { %26691 = vsyncpa [#allocation15], 1 }
0x1800   :  { %26692 = vsyncpa [#allocation18], 1 }
0x1801   :  { %26693 = vsyncpa [#allocation21], 1 }
0x1802   :  { %26694 = vsyncpa [#allocation24], 1 }
0x1803   :  { %26695 = vsyncpa [#allocation27], 1 }
0x1804   :  { %26696 = vsyncpa [#allocation30], 1 }
0x1805   :  { %26697 = vsyncpa [#allocation33], 1 }
0x1806   :  { %26698 = vsyncpa [#allocation7], 1 }
0x1807   :  { %26700 = vsyncpa [#allocation7 + $0x1], 1 }

</bundles_post_ra>
